<compile_context>
chip_gen: v6e
topology: v6e:2x2x1
jax: 0.10.0
libtpu: 0.0.40
codegen_flags: <defaults>
</compile_context>

<pallas_src>
import functools
import math

import jax
import jax.numpy as jnp
import numpy as np
from jax.experimental import pallas as pl
from jax.experimental.pallas import tpu as pltpu


# ----------------------------- fused res5 kernels ----------------------------

def _block_compute(x, m_ref, w1_ref, b1_ref, w2_ref, b2_ref, w3_ref, b3_ref,
                   shortcut_refs, *, spatial):
    """One BottleneckBlock on a flat [M, Cin] activation tile (M = tile_rows*H*W).

    conv1 (1x1) -> ReLU -> conv2 (3x3, pad 1; 9 shifted+masked matmuls over the
    flattened spatial axis) -> ReLU -> conv3 (1x1) + shortcut -> ReLU.
    bf16 MXU matmuls, f32 accumulation; intermediates never leave VMEM.
    """
    h, w = spatial
    m = x.shape[0]
    cdt = x.dtype

    # conv1 (1x1) + ReLU
    h1 = jnp.dot(x, w1_ref[...], preferred_element_type=jnp.float32) + b1_ref[...]
    h1 = jnp.maximum(h1, 0.0)                                       # [M, Cb] f32

    # conv2 (3x3, stride 1, pad 1): for tap (dy, dx) the contribution at flat
    # position p is h1[p + dy*W + dx] @ w2[tap], masked where (i+dy, j+dx) falls
    # outside the ROI window (the mask also kills wrap-around across ROI
    # boundaries within the tile, so a circular roll of the flat axis is exact).
    acc = jnp.zeros((m, w2_ref.shape[2]), jnp.float32)
    tap = 0
    for dy in (-1, 0, 1):
        for dx in (-1, 0, 1):
            s = dy * w + dx
            shifted = h1 if s == 0 else pltpu.roll(h1, shift=(-s) % m, axis=0)
            masked = shifted * m_ref[:, tap:tap + 1]
            acc = acc + jnp.dot(masked.astype(cdt), w2_ref[tap],
                                preferred_element_type=jnp.float32)
            tap += 1
    h2 = jnp.maximum(acc + b2_ref[...], 0.0)                        # [M, Cb] f32

    # conv3 (1x1) + residual + ReLU
    y = jnp.dot(h2.astype(cdt), w3_ref[...],
                preferred_element_type=jnp.float32) + b3_ref[...]
    if shortcut_refs is None:
        sc = x.astype(jnp.float32)                                  # identity
    else:
        ws_ref, bs_ref = shortcut_refs
        sc = jnp.dot(x, ws_ref[...], preferred_element_type=jnp.float32) + bs_ref[...]
    return jnp.maximum(y + sc, 0.0)                                 # [M, Cout] f32


def _res5_block_kernel(x_ref, m_ref, w1_ref, b1_ref, w2_ref, b2_ref,
                       w3_ref, b3_ref, *rest, spatial, has_shortcut):
    if has_shortcut:
        ws_ref, bs_ref, o_ref = rest
        sc_refs = (ws_ref, bs_ref)
    else:
        (o_ref,) = rest
        sc_refs = None
    out = _block_compute(x_ref[...], m_ref, w1_ref, b1_ref, w2_ref, b2_ref,
                         w3_ref, b3_ref, sc_refs, spatial=spatial)
    o_ref[...] = out.astype(o_ref.dtype)


def _res5_tail_kernel(x_ref, m_ref, pool_ref, w1_ref, b1_ref, w2_ref, b2_ref,
                      w3_ref, b3_ref, wh_ref, bh_ref, o_ref, *, spatial):
    """Last block + spatial mean (pooling matmul) + fused cls/bbox linear head."""
    out = _block_compute(x_ref[...], m_ref, w1_ref, b1_ref, w2_ref, b2_ref,
                         w3_ref, b3_ref, None, spatial=spatial)     # [M, Cout] f32
    pooled = jnp.dot(pool_ref[...], out,
                     preferred_element_type=jnp.float32)            # [TR, Cout]
    preds = jnp.dot(pooled.astype(x_ref.dtype), wh_ref[...],
                    preferred_element_type=jnp.float32) + bh_ref[...]
    o_ref[...] = preds.astype(o_ref.dtype)                          # [TR, 128]


# --------------------------- pallas_call wrappers ----------------------------

def _const_spec(arr):
    """Full-array block, constant index_map -> fetched once, VMEM-resident."""
    zeros = (0,) * arr.ndim
    return pl.BlockSpec(arr.shape, lambda i, _z=zeros: _z)


_PARALLEL = pltpu.CompilerParams(dimension_semantics=("parallel",))


def _run_block(x_flat, mask, blk, *, spatial, tile_rows, has_shortcut):
    tm = tile_rows * spatial[0] * spatial[1]
    m_tot, cin = x_flat.shape
    cout = blk["w3"].shape[1]
    args = [x_flat, mask, blk["w1"], blk["b1"], blk["w2"], blk["b2"],
            blk["w3"], blk["b3"]]
    in_specs = ([pl.BlockSpec((tm, cin), lambda i: (i, 0))]
                + [_const_spec(a) for a in args[1:]])
    if has_shortcut:
        args += [blk["ws"], blk["bs"]]
        in_specs += [_const_spec(blk["ws"]), _const_spec(blk["bs"])]
    return pl.pallas_call(
        functools.partial(_res5_block_kernel, spatial=spatial,
                          has_shortcut=has_shortcut),
        out_shape=jax.ShapeDtypeStruct((m_tot, cout), jnp.bfloat16),
        grid=(m_tot // tm,),
        in_specs=in_specs,
        out_specs=pl.BlockSpec((tm, cout), lambda i: (i, 0)),
        compiler_params=_PARALLEL,
    )(*args)


def _run_tail(x_flat, mask, pool, blk, wh, bh, *, spatial, tile_rows):
    tm = tile_rows * spatial[0] * spatial[1]
    m_tot, cin = x_flat.shape
    n_tiles = m_tot // tm
    nh = wh.shape[1]
    args = [x_flat, mask, pool, blk["w1"], blk["b1"], blk["w2"], blk["b2"],
            blk["w3"], blk["b3"], wh, bh]
    in_specs = ([pl.BlockSpec((tm, cin), lambda i: (i, 0))]
                + [_const_spec(a) for a in args[1:]])
    return pl.pallas_call(
        functools.partial(_res5_tail_kernel, spatial=spatial),
        out_shape=jax.ShapeDtypeStruct((n_tiles * tile_rows, nh), jnp.float32),
        grid=(n_tiles,),
        in_specs=in_specs,
        out_specs=pl.BlockSpec((tile_rows, nh), lambda i: (i, 0)),
        compiler_params=_PARALLEL,
    )(*args)


# ------------------------------- ROI pooler ----------------------------------
# TODO(synk): ROIAlign's data-dependent bilinear gather stays in plain JAX; a
# scalar-prefetch Pallas kernel (per-box corner rows via make_async_copy) is the
# next step for large R / large feature maps.

def roi_align(feat_nhwc, boxes, batch_idx, scale, out_size, step=1):
    """ROIAlign (aligned=True, 1 sample per bin at the bin center), optionally
    sampling only every `step`-th bin.  With step=2 this is exactly the bin set
    read by res5-block-0's stride-2 1x1 convs (stride_in_1x1), so the stride-2
    subsample is folded into the pooler instead of a separate strided slice."""
    _, h, w, _ = feat_nhwc.shape
    p = out_size
    nbin = p // step
    bins = jnp.arange(nbin, dtype=jnp.float32) * step + 0.5

    def one(box, bi):
        fm = feat_nhwc[bi]                                   # [H,W,C]
        x1 = box[0] * scale - 0.5
        y1 = box[1] * scale - 0.5
        x2 = box[2] * scale - 0.5
        y2 = box[3] * scale - 0.5
        bin_w = (x2 - x1) / p
        bin_h = (y2 - y1) / p
        xs = jnp.clip(x1 + bins * bin_w, 0.0, w - 1.0)
        ys = jnp.clip(y1 + bins * bin_h, 0.0, h - 1.0)
        x0 = jnp.floor(xs).astype(jnp.int32)
        y0 = jnp.floor(ys).astype(jnp.int32)
        x1i = jnp.minimum(x0 + 1, w - 1)
        y1i = jnp.minimum(y0 + 1, h - 1)
        wx1 = xs - x0.astype(jnp.float32); wx0 = 1.0 - wx1
        wy1 = ys - y0.astype(jnp.float32); wy0 = 1.0 - wy1
        f00 = fm[y0[:, None], x0[None, :], :]
        f01 = fm[y0[:, None], x1i[None, :], :]
        f10 = fm[y1i[:, None], x0[None, :], :]
        f11 = fm[y1i[:, None], x1i[None, :], :]
        w00 = (wy0[:, None] * wx0[None, :])[:, :, None]
        w01 = (wy0[:, None] * wx1[None, :])[:, :, None]
        w10 = (wy1[:, None] * wx0[None, :])[:, :, None]
        w11 = (wy1[:, None] * wx1[None, :])[:, :, None]
        return w00 * f00 + w01 * f01 + w10 * f10 + w11 * f11    # [nbin,nbin,C]

    return jax.vmap(one)(boxes, batch_idx)


# -------------------------- parameters (synthetic) ----------------------------

def _fold_bn(w, gamma, beta, mean, var, eps=1e-5):
    """Fold a FrozenBatchNorm (conv has no bias in detectron2) into the conv."""
    scale = gamma / jnp.sqrt(var + eps)
    w_f = w * scale.reshape((-1,) + (1,) * (w.ndim - 1))
    b_f = beta - mean * scale
    return w_f, b_f


def init_res5_params(key, in_channels, bottleneck, out_channels):
    """3 BottleneckBlocks; first block has stride-2 + 1x1 shortcut conv."""
    def conv_w(kk, shape):
        fan_in = math.prod(shape[1:])
        return jax.random.normal(kk, shape, jnp.float32) * (1.0 / math.sqrt(fan_in))

    def bn(kk, c):
        k1, k2, k3, k4 = jax.random.split(kk, 4)
        gamma = jax.random.uniform(k1, (c,), minval=0.5, maxval=1.5)
        beta = jax.random.normal(k2, (c,)) * 0.1
        mean = jax.random.normal(k3, (c,)) * 0.1
        var = jax.random.uniform(k4, (c,), minval=0.5, maxval=1.5)
        return gamma, beta, mean, var

    blocks = []
    for i, k in enumerate(jax.random.split(key, 3)):
        cin = in_channels if i == 0 else out_channels
        ks = jax.random.split(k, 8)
        p = {}
        p["conv1"] = _fold_bn(conv_w(ks[0], (bottleneck, cin, 1, 1)), *bn(ks[1], bottleneck))
        p["conv2"] = _fold_bn(conv_w(ks[2], (bottleneck, bottleneck, 3, 3)), *bn(ks[3], bottleneck))
        p["conv3"] = _fold_bn(conv_w(ks[4], (out_channels, bottleneck, 1, 1)), *bn(ks[5], out_channels))
        if i == 0:
            p["shortcut"] = _fold_bn(conv_w(ks[6], (out_channels, cin, 1, 1)), *bn(ks[7], out_channels))
        blocks.append(p)
    return blocks


def _shift_masks(tile_rows, h, w):
    """[tile_rows*h*w, 9] validity mask for the 9 taps of a padded 3x3 conv."""
    hw = h * w
    ii, jj = np.meshgrid(np.arange(h), np.arange(w), indexing="ij")
    cols = []
    for dy in (-1, 0, 1):
        for dx in (-1, 0, 1):
            valid = ((ii + dy >= 0) & (ii + dy < h) &
                     (jj + dx >= 0) & (jj + dx < w)).reshape(hw)
            cols.append(np.tile(valid, tile_rows))
    return jnp.asarray(np.stack(cols, axis=1).astype(np.float32))


def _pool_matrix(tile_rows, hw):
    """[tile_rows, tile_rows*hw] matrix that averages each ROI's spatial rows."""
    m = np.zeros((tile_rows, tile_rows * hw), np.float32)
    for r in range(tile_rows):
        m[r, r * hw:(r + 1) * hw] = 1.0 / hw
    return jnp.asarray(m)


def prepare_params(raw, *, pooler_res, roi_tile):
    """One-time re-layout into kernel operands (done outside the jitted call):
    OIHW conv weights -> [K, Cout] bf16 matmul operands (3x3 taps stacked),
    biases -> [1, Cout] f32 rows, the two predictor linears concatenated and
    zero-padded to a lane-dense 128-wide output, plus static shift masks and
    the mean-pooling matrix."""
    h = w = pooler_res // 2            # res5 spatial after the stride-2 block
    blocks = []
    for blk in raw["res5"]:
        w1, b1 = blk["conv1"]; w2, b2 = blk["conv2"]; w3, b3 = blk["conv3"]
        p = {
            "w1": jnp.transpose(w1[:, :, 0, 0]).astype(jnp.bfloat16),
            "b1": b1.reshape(1, -1).astype(jnp.float32),
            "w2": jnp.transpose(w2, (2, 3, 1, 0))
                     .reshape(9, w2.shape[1], w2.shape[0]).astype(jnp.bfloat16),
            "b2": b2.reshape(1, -1).astype(jnp.float32),
            "w3": jnp.transpose(w3[:, :, 0, 0]).astype(jnp.bfloat16),
            "b3": b3.reshape(1, -1).astype(jnp.float32),
        }
        if "shortcut" in blk:
            ws, bs = blk["shortcut"]
            p["ws"] = jnp.transpose(ws[:, :, 0, 0]).astype(jnp.bfloat16)
            p["bs"] = bs.reshape(1, -1).astype(jnp.float32)
        blocks.append(p)

    cls_w, cls_b = raw["cls_score"]
    box_w, box_b = raw["bbox_pred"]
    nh = cls_w.shape[1] + box_w.shape[1]
    nh_pad = max(128, ((nh + 127) // 128) * 128)
    wh = jnp.pad(jnp.concatenate([cls_w, box_w], axis=1),
                 ((0, 0), (0, nh_pad - nh))).astype(jnp.bfloat16)
    bh = jnp.pad(jnp.concatenate([cls_b, box_b]),
                 (0, nh_pad - nh)).reshape(1, -1).astype(jnp.float32)
    return {"blocks": blocks, "wh": wh, "bh": bh,
            "mask": _shift_masks(roi_tile, h, w),
            "pool": _pool_matrix(roi_tile, h * w)}


# ------------------------------ forward pass ----------------------------------

def res5_roi_heads_forward(features_nchw, boxes, batch_idx, params, *,
                           stride, pooler_res, roi_tile, num_classes):
    """Inference path of Res5ROIHeads.forward up to the box_predictor outputs."""
    feat = jnp.transpose(features_nchw, (0, 2, 3, 1))          # NCHW -> NHWC
    # Pooler; stride-2 of block 0 folded into the sampling grid (exact).
    x = roi_align(feat, boxes, batch_idx, 1.0 / stride, pooler_res, step=2)
    r, h, w, cin = x.shape
    hw = h * w
    r_pad = ((r + roi_tile - 1) // roi_tile) * roi_tile
    if r_pad != r:
        x = jnp.pad(x, ((0, r_pad - r), (0, 0), (0, 0), (0, 0)))
    x = x.reshape(r_pad * hw, cin).astype(jnp.bfloat16)         # flat [M, C] bf16

    blocks = params["blocks"]
    mask = params["mask"]
    x = _run_block(x, mask, blocks[0], spatial=(h, w), tile_rows=roi_tile,
                   has_shortcut=True)
    x = _run_block(x, mask, blocks[1], spatial=(h, w), tile_rows=roi_tile,
                   has_shortcut=False)
    preds = _run_tail(x, mask, params["pool"], blocks[2], params["wh"],
                      params["bh"], spatial=(h, w), tile_rows=roi_tile)
    preds = preds[:r]
    c1 = num_classes + 1
    pred_class_logits = preds[:, :c1]
    pred_proposal_deltas = preds[:, c1:c1 + num_classes * 4]
    return pred_class_logits, pred_proposal_deltas


# ---------------------------------- main ---------------------------------------

if __name__ == "__main__":
    key = jax.random.PRNGKey(0)

    # Small config consistent with the module structure:
    #   res4 feature: N=2, C=32, 16x16, stride 4   (out_channels//2 == 32)
    #   res5: bottleneck=16, out_channels=64, first_stride=2
    #   pooler_resolution=8 -> res5 output 4x4
    N, cin_feat, hf, wf = 2, 32, 16, 16
    feat_stride = 4
    pooler_res = 8
    num_classes = 5
    out_channels = 64
    bottleneck = 16
    boxes_per_image = 8
    roi_tile = 8                       # ROIs per grid step (parallel axis)

    k_feat, k_box, k_res5, k_cls, k_bbox = jax.random.split(key, 5)
    features = jax.random.normal(k_feat, (N, cin_feat, hf, wf), jnp.float32)  # NCHW

    img_size = float(hf * feat_stride)
    kb1, kb2 = jax.random.split(k_box)
    xy1 = jax.random.uniform(kb1, (N * boxes_per_image, 2), minval=0.0,
                             maxval=img_size * 0.6)
    wh_box = jax.random.uniform(kb2, (N * boxes_per_image, 2),
                                minval=img_size * 0.15, maxval=img_size * 0.35)
    boxes = jnp.concatenate([xy1, jnp.minimum(xy1 + wh_box, img_size - 1.0)], axis=-1)
    batch_idx = jnp.repeat(jnp.arange(N, dtype=jnp.int32), boxes_per_image)

    raw_params = {
        "res5": init_res5_params(k_res5, cin_feat, bottleneck, out_channels),
        "cls_score": (jax.random.normal(k_cls, (out_channels, num_classes + 1)) * 0.01,
                      jnp.zeros((num_classes + 1,), jnp.float32)),
        "bbox_pred": (jax.random.normal(k_bbox, (out_channels, num_classes * 4)) * 0.001,
                      jnp.zeros((num_classes * 4,), jnp.float32)),
    }
    params = prepare_params(raw_params, pooler_res=pooler_res, roi_tile=roi_tile)

    fwd = jax.jit(functools.partial(res5_roi_heads_forward, stride=feat_stride,
                                    pooler_res=pooler_res, roi_tile=roi_tile,
                                    num_classes=num_classes))
    logits, deltas = fwd(features, boxes, batch_idx, params)
    jax.block_until_ready((logits, deltas))

    R = N * boxes_per_image
    assert logits.shape == (R, num_classes + 1), logits.shape
    assert deltas.shape == (R, num_classes * 4), deltas.shape
    assert bool(jnp.all(jnp.isfinite(logits))) and bool(jnp.all(jnp.isfinite(deltas)))
    print("KERNEL_OK")
</pallas_src>

<mosaic_0001>
module attributes {stable_mosaic.version = 11 : i64} {
  func.func @_res5_block_kernel(%arg0: i32, %arg1: memref<128x64xbf16, #tpu.memory_space<vmem>>, %arg2: memref<128x9xf32, #tpu.memory_space<vmem>>, %arg3: memref<64x16xbf16, #tpu.memory_space<vmem>>, %arg4: memref<1x16xf32, #tpu.memory_space<vmem>>, %arg5: memref<9x16x16xbf16, #tpu.memory_space<vmem>>, %arg6: memref<1x16xf32, #tpu.memory_space<vmem>>, %arg7: memref<16x64xbf16, #tpu.memory_space<vmem>>, %arg8: memref<1x64xf32, #tpu.memory_space<vmem>>, %arg9: memref<128x64xbf16, #tpu.memory_space<vmem>>) attributes {dimension_semantics = [#tpu.dimension_semantics<parallel>], iteration_bounds = array<i64: 2>, scalar_prefetch = 0 : i64, scratch_operands = 0 : i64, tpu.core_type = #tpu.core_type<tc>, window_params = [{transform_indices = @transform_0, window_bounds = array<i64: 128, 64>}, {pipeline_mode = #tpu.pipeline_mode<synchronous>, transform_indices = @transform_1, window_bounds = array<i64: 128, 9>}, {pipeline_mode = #tpu.pipeline_mode<synchronous>, transform_indices = @transform_2, window_bounds = array<i64: 64, 16>}, {pipeline_mode = #tpu.pipeline_mode<synchronous>, transform_indices = @transform_3, window_bounds = array<i64: 1, 16>}, {pipeline_mode = #tpu.pipeline_mode<synchronous>, transform_indices = @transform_4, window_bounds = array<i64: 9, 16, 16>}, {pipeline_mode = #tpu.pipeline_mode<synchronous>, transform_indices = @transform_5, window_bounds = array<i64: 1, 16>}, {pipeline_mode = #tpu.pipeline_mode<synchronous>, transform_indices = @transform_6, window_bounds = array<i64: 16, 64>}, {pipeline_mode = #tpu.pipeline_mode<synchronous>, transform_indices = @transform_7, window_bounds = array<i64: 1, 64>}, {transform_indices = @transform_8, window_bounds = array<i64: 128, 64>}]} {
    %c0 = arith.constant 0 : index
    %c0_0 = arith.constant 0 : index
    %0 = vector.load %arg1[%c0, %c0_0] : memref<128x64xbf16, #tpu.memory_space<vmem>>, vector<128x64xbf16>
    %c0_1 = arith.constant 0 : index
    %c0_2 = arith.constant 0 : index
    %1 = vector.load %arg3[%c0_1, %c0_2] : memref<64x16xbf16, #tpu.memory_space<vmem>>, vector<64x16xbf16>
    %cst = arith.constant dense<0.000000e+00> : vector<128x16xf32>
    %2 = tpu.matmul %0, %1, %cst {dimension_numbers = #tpu.dot_dimension_numbers<[1], [0], [0], [1], [0, 0, 1, 1], [], []>} : vector<128x64xbf16>, vector<64x16xbf16>, vector<128x16xf32> -> vector<128x16xf32>
    %c0_3 = arith.constant 0 : index
    %c0_4 = arith.constant 0 : index
    %3 = vector.load %arg4[%c0_3, %c0_4] : memref<1x16xf32, #tpu.memory_space<vmem>>, vector<1x16xf32>
    %4 = vector.broadcast %3 : vector<1x16xf32> to vector<128x16xf32>
    %5 = arith.addf %2, %4 : vector<128x16xf32>
    %cst_5 = arith.constant 0.000000e+00 : f32
    %6 = vector.broadcast %cst_5 : f32 to vector<128x16xf32>
    %7 = arith.maximumf %5, %6 : vector<128x16xf32>
    %cst_6 = arith.constant 0.000000e+00 : f32
    %8 = vector.broadcast %cst_6 : f32 to vector<128x16xf32>
    %c5_i32 = arith.constant 5 : i32
    %9 = tpu.dynamic_rotate %7 by %c5_i32 dim 0 : vector<128x16xf32>, i32 -> vector<128x16xf32>
    %c0_7 = arith.constant 0 : index
    %c0_8 = arith.constant 0 : index
    %10 = vector.load %arg2[%c0_7, %c0_8] : memref<128x9xf32, #tpu.memory_space<vmem>>, vector<128x1xf32>
    %11 = vector.broadcast %10 : vector<128x1xf32> to vector<128x16xf32>
    %12 = arith.mulf %9, %11 : vector<128x16xf32>
    %13 = arith.truncf %12 : vector<128x16xf32> to vector<128x16xbf16>
    %c0_9 = arith.constant 0 : index
    %c0_10 = arith.constant 0 : index
    %c0_11 = arith.constant 0 : index
    %14 = vector.load %arg5[%c0_9, %c0_10, %c0_11] : memref<9x16x16xbf16, #tpu.memory_space<vmem>>, vector<1x16x16xbf16>
    %15 = vector.shape_cast %14 : vector<1x16x16xbf16> to vector<16x16xbf16>
    %cst_12 = arith.constant dense<0.000000e+00> : vector<128x16xf32>
    %16 = tpu.matmul %13, %15, %cst_12 {dimension_numbers = #tpu.dot_dimension_numbers<[1], [0], [0], [1], [0, 0, 1, 1], [], []>} : vector<128x16xbf16>, vector<16x16xbf16>, vector<128x16xf32> -> vector<128x16xf32>
    %17 = arith.addf %8, %16 : vector<128x16xf32>
    %c4_i32 = arith.constant 4 : i32
    %18 = tpu.dynamic_rotate %7 by %c4_i32 dim 0 : vector<128x16xf32>, i32 -> vector<128x16xf32>
    %c0_13 = arith.constant 0 : index
    %c1 = arith.constant 1 : index
    %19 = vector.load %arg2[%c0_13, %c1] : memref<128x9xf32, #tpu.memory_space<vmem>>, vector<128x1xf32>
    %20 = vector.broadcast %19 : vector<128x1xf32> to vector<128x16xf32>
    %21 = arith.mulf %18, %20 : vector<128x16xf32>
    %22 = arith.truncf %21 : vector<128x16xf32> to vector<128x16xbf16>
    %c1_14 = arith.constant 1 : index
    %c0_15 = arith.constant 0 : index
    %c0_16 = arith.constant 0 : index
    %23 = vector.load %arg5[%c1_14, %c0_15, %c0_16] : memref<9x16x16xbf16, #tpu.memory_space<vmem>>, vector<1x16x16xbf16>
    %24 = vector.shape_cast %23 : vector<1x16x16xbf16> to vector<16x16xbf16>
    %cst_17 = arith.constant dense<0.000000e+00> : vector<128x16xf32>
    %25 = tpu.matmul %22, %24, %cst_17 {dimension_numbers = #tpu.dot_dimension_numbers<[1], [0], [0], [1], [0, 0, 1, 1], [], []>} : vector<128x16xbf16>, vector<16x16xbf16>, vector<128x16xf32> -> vector<128x16xf32>
    %26 = arith.addf %17, %25 : vector<128x16xf32>
    %c3_i32 = arith.constant 3 : i32
    %27 = tpu.dynamic_rotate %7 by %c3_i32 dim 0 : vector<128x16xf32>, i32 -> vector<128x16xf32>
    %c0_18 = arith.constant 0 : index
    %c2 = arith.constant 2 : index
    %28 = vector.load %arg2[%c0_18, %c2] : memref<128x9xf32, #tpu.memory_space<vmem>>, vector<128x1xf32>
    %29 = vector.broadcast %28 : vector<128x1xf32> to vector<128x16xf32>
    %30 = arith.mulf %27, %29 : vector<128x16xf32>
    %31 = arith.truncf %30 : vector<128x16xf32> to vector<128x16xbf16>
    %c2_19 = arith.constant 2 : index
    %c0_20 = arith.constant 0 : index
    %c0_21 = arith.constant 0 : index
    %32 = vector.load %arg5[%c2_19, %c0_20, %c0_21] : memref<9x16x16xbf16, #tpu.memory_space<vmem>>, vector<1x16x16xbf16>
    %33 = vector.shape_cast %32 : vector<1x16x16xbf16> to vector<16x16xbf16>
    %cst_22 = arith.constant dense<0.000000e+00> : vector<128x16xf32>
    %34 = tpu.matmul %31, %33, %cst_22 {dimension_numbers = #tpu.dot_dimension_numbers<[1], [0], [0], [1], [0, 0, 1, 1], [], []>} : vector<128x16xbf16>, vector<16x16xbf16>, vector<128x16xf32> -> vector<128x16xf32>
    %35 = arith.addf %26, %34 : vector<128x16xf32>
    %c1_i32 = arith.constant 1 : i32
    %36 = tpu.dynamic_rotate %7 by %c1_i32 dim 0 : vector<128x16xf32>, i32 -> vector<128x16xf32>
    %c0_23 = arith.constant 0 : index
    %c3 = arith.constant 3 : index
    %37 = vector.load %arg2[%c0_23, %c3] : memref<128x9xf32, #tpu.memory_space<vmem>>, vector<128x1xf32>
    %38 = vector.broadcast %37 : vector<128x1xf32> to vector<128x16xf32>
    %39 = arith.mulf %36, %38 : vector<128x16xf32>
    %40 = arith.truncf %39 : vector<128x16xf32> to vector<128x16xbf16>
    %c3_24 = arith.constant 3 : index
    %c0_25 = arith.constant 0 : index
    %c0_26 = arith.constant 0 : index
    %41 = vector.load %arg5[%c3_24, %c0_25, %c0_26] : memref<9x16x16xbf16, #tpu.memory_space<vmem>>, vector<1x16x16xbf16>
    %42 = vector.shape_cast %41 : vector<1x16x16xbf16> to vector<16x16xbf16>
    %cst_27 = arith.constant dense<0.000000e+00> : vector<128x16xf32>
    %43 = tpu.matmul %40, %42, %cst_27 {dimension_numbers = #tpu.dot_dimension_numbers<[1], [0], [0], [1], [0, 0, 1, 1], [], []>} : vector<128x16xbf16>, vector<16x16xbf16>, vector<128x16xf32> -> vector<128x16xf32>
    %44 = arith.addf %35, %43 : vector<128x16xf32>
    %c0_28 = arith.constant 0 : index
    %c4 = arith.constant 4 : index
    %45 = vector.load %arg2[%c0_28, %c4] : memref<128x9xf32, #tpu.memory_space<vmem>>, vector<128x1xf32>
    %46 = vector.broadcast %45 : vector<128x1xf32> to vector<128x16xf32>
    %47 = arith.mulf %7, %46 : vector<128x16xf32>
    %48 = arith.truncf %47 : vector<128x16xf32> to vector<128x16xbf16>
    %c4_29 = arith.constant 4 : index
    %c0_30 = arith.constant 0 : index
    %c0_31 = arith.constant 0 : index
    %49 = vector.load %arg5[%c4_29, %c0_30, %c0_31] : memref<9x16x16xbf16, #tpu.memory_space<vmem>>, vector<1x16x16xbf16>
    %50 = vector.shape_cast %49 : vector<1x16x16xbf16> to vector<16x16xbf16>
    %cst_32 = arith.constant dense<0.000000e+00> : vector<128x16xf32>
    %51 = tpu.matmul %48, %50, %cst_32 {dimension_numbers = #tpu.dot_dimension_numbers<[1], [0], [0], [1], [0, 0, 1, 1], [], []>} : vector<128x16xbf16>, vector<16x16xbf16>, vector<128x16xf32> -> vector<128x16xf32>
    %52 = arith.addf %44, %51 : vector<128x16xf32>
    %c127_i32 = arith.constant 127 : i32
    %53 = tpu.dynamic_rotate %7 by %c127_i32 dim 0 : vector<128x16xf32>, i32 -> vector<128x16xf32>
    %c0_33 = arith.constant 0 : index
    %c5 = arith.constant 5 : index
    %54 = vector.load %arg2[%c0_33, %c5] : memref<128x9xf32, #tpu.memory_space<vmem>>, vector<128x1xf32>
    %55 = vector.broadcast %54 : vector<128x1xf32> to vector<128x16xf32>
    %56 = arith.mulf %53, %55 : vector<128x16xf32>
    %57 = arith.truncf %56 : vector<128x16xf32> to vector<128x16xbf16>
    %c5_34 = arith.constant 5 : index
    %c0_35 = arith.constant 0 : index
    %c0_36 = arith.constant 0 : index
    %58 = vector.load %arg5[%c5_34, %c0_35, %c0_36] : memref<9x16x16xbf16, #tpu.memory_space<vmem>>, vector<1x16x16xbf16>
    %59 = vector.shape_cast %58 : vector<1x16x16xbf16> to vector<16x16xbf16>
    %cst_37 = arith.constant dense<0.000000e+00> : vector<128x16xf32>
    %60 = tpu.matmul %57, %59, %cst_37 {dimension_numbers = #tpu.dot_dimension_numbers<[1], [0], [0], [1], [0, 0, 1, 1], [], []>} : vector<128x16xbf16>, vector<16x16xbf16>, vector<128x16xf32> -> vector<128x16xf32>
    %61 = arith.addf %52, %60 : vector<128x16xf32>
    %c125_i32 = arith.constant 125 : i32
    %62 = tpu.dynamic_rotate %7 by %c125_i32 dim 0 : vector<128x16xf32>, i32 -> vector<128x16xf32>
    %c0_38 = arith.constant 0 : index
    %c6 = arith.constant 6 : index
    %63 = vector.load %arg2[%c0_38, %c6] : memref<128x9xf32, #tpu.memory_space<vmem>>, vector<128x1xf32>
    %64 = vector.broadcast %63 : vector<128x1xf32> to vector<128x16xf32>
    %65 = arith.mulf %62, %64 : vector<128x16xf32>
    %66 = arith.truncf %65 : vector<128x16xf32> to vector<128x16xbf16>
    %c6_39 = arith.constant 6 : index
    %c0_40 = arith.constant 0 : index
    %c0_41 = arith.constant 0 : index
    %67 = vector.load %arg5[%c6_39, %c0_40, %c0_41] : memref<9x16x16xbf16, #tpu.memory_space<vmem>>, vector<1x16x16xbf16>
    %68 = vector.shape_cast %67 : vector<1x16x16xbf16> to vector<16x16xbf16>
    %cst_42 = arith.constant dense<0.000000e+00> : vector<128x16xf32>
    %69 = tpu.matmul %66, %68, %cst_42 {dimension_numbers = #tpu.dot_dimension_numbers<[1], [0], [0], [1], [0, 0, 1, 1], [], []>} : vector<128x16xbf16>, vector<16x16xbf16>, vector<128x16xf32> -> vector<128x16xf32>
    %70 = arith.addf %61, %69 : vector<128x16xf32>
    %c124_i32 = arith.constant 124 : i32
    %71 = tpu.dynamic_rotate %7 by %c124_i32 dim 0 : vector<128x16xf32>, i32 -> vector<128x16xf32>
    %c0_43 = arith.constant 0 : index
    %c7 = arith.constant 7 : index
    %72 = vector.load %arg2[%c0_43, %c7] : memref<128x9xf32, #tpu.memory_space<vmem>>, vector<128x1xf32>
    %73 = vector.broadcast %72 : vector<128x1xf32> to vector<128x16xf32>
    %74 = arith.mulf %71, %73 : vector<128x16xf32>
    %75 = arith.truncf %74 : vector<128x16xf32> to vector<128x16xbf16>
    %c7_44 = arith.constant 7 : index
    %c0_45 = arith.constant 0 : index
    %c0_46 = arith.constant 0 : index
    %76 = vector.load %arg5[%c7_44, %c0_45, %c0_46] : memref<9x16x16xbf16, #tpu.memory_space<vmem>>, vector<1x16x16xbf16>
    %77 = vector.shape_cast %76 : vector<1x16x16xbf16> to vector<16x16xbf16>
    %cst_47 = arith.constant dense<0.000000e+00> : vector<128x16xf32>
    %78 = tpu.matmul %75, %77, %cst_47 {dimension_numbers = #tpu.dot_dimension_numbers<[1], [0], [0], [1], [0, 0, 1, 1], [], []>} : vector<128x16xbf16>, vector<16x16xbf16>, vector<128x16xf32> -> vector<128x16xf32>
    %79 = arith.addf %70, %78 : vector<128x16xf32>
    %c123_i32 = arith.constant 123 : i32
    %80 = tpu.dynamic_rotate %7 by %c123_i32 dim 0 : vector<128x16xf32>, i32 -> vector<128x16xf32>
    %c0_48 = arith.constant 0 : index
    %c8 = arith.constant 8 : index
    %81 = vector.load %arg2[%c0_48, %c8] : memref<128x9xf32, #tpu.memory_space<vmem>>, vector<128x1xf32>
    %82 = vector.broadcast %81 : vector<128x1xf32> to vector<128x16xf32>
    %83 = arith.mulf %80, %82 : vector<128x16xf32>
    %84 = arith.truncf %83 : vector<128x16xf32> to vector<128x16xbf16>
    %c8_49 = arith.constant 8 : index
    %c0_50 = arith.constant 0 : index
    %c0_51 = arith.constant 0 : index
    %85 = vector.load %arg5[%c8_49, %c0_50, %c0_51] : memref<9x16x16xbf16, #tpu.memory_space<vmem>>, vector<1x16x16xbf16>
    %86 = vector.shape_cast %85 : vector<1x16x16xbf16> to vector<16x16xbf16>
    %cst_52 = arith.constant dense<0.000000e+00> : vector<128x16xf32>
    %87 = tpu.matmul %84, %86, %cst_52 {dimension_numbers = #tpu.dot_dimension_numbers<[1], [0], [0], [1], [0, 0, 1, 1], [], []>} : vector<128x16xbf16>, vector<16x16xbf16>, vector<128x16xf32> -> vector<128x16xf32>
    %88 = arith.addf %79, %87 : vector<128x16xf32>
    %c0_53 = arith.constant 0 : index
    %c0_54 = arith.constant 0 : index
    %89 = vector.load %arg6[%c0_53, %c0_54] : memref<1x16xf32, #tpu.memory_space<vmem>>, vector<1x16xf32>
    %90 = vector.broadcast %89 : vector<1x16xf32> to vector<128x16xf32>
    %91 = arith.addf %88, %90 : vector<128x16xf32>
    %cst_55 = arith.constant 0.000000e+00 : f32
    %92 = vector.broadcast %cst_55 : f32 to vector<128x16xf32>
    %93 = arith.maximumf %91, %92 : vector<128x16xf32>
    %94 = arith.truncf %93 : vector<128x16xf32> to vector<128x16xbf16>
    %c0_56 = arith.constant 0 : index
    %c0_57 = arith.constant 0 : index
    %95 = vector.load %arg7[%c0_56, %c0_57] : memref<16x64xbf16, #tpu.memory_space<vmem>>, vector<16x64xbf16>
    %cst_58 = arith.constant dense<0.000000e+00> : vector<128x64xf32>
    %96 = tpu.matmul %94, %95, %cst_58 {dimension_numbers = #tpu.dot_dimension_numbers<[1], [0], [0], [1], [0, 0, 1, 1], [], []>} : vector<128x16xbf16>, vector<16x64xbf16>, vector<128x64xf32> -> vector<128x64xf32>
    %c0_59 = arith.constant 0 : index
    %c0_60 = arith.constant 0 : index
    %97 = vector.load %arg8[%c0_59, %c0_60] : memref<1x64xf32, #tpu.memory_space<vmem>>, vector<1x64xf32>
    %98 = vector.broadcast %97 : vector<1x64xf32> to vector<128x64xf32>
    %99 = arith.addf %96, %98 : vector<128x64xf32>
    %100 = arith.extf %0 : vector<128x64xbf16> to vector<128x64xf32>
    %101 = arith.addf %99, %100 : vector<128x64xf32>
    %cst_61 = arith.constant 0.000000e+00 : f32
    %102 = vector.broadcast %cst_61 : f32 to vector<128x64xf32>
    %103 = arith.maximumf %101, %102 : vector<128x64xf32>
    %104 = arith.truncf %103 : vector<128x64xf32> to vector<128x64xbf16>
    %c0_62 = arith.constant 0 : index
    %c0_63 = arith.constant 0 : index
    %105 = vector.load %arg9[%c0_62, %c0_63] : memref<128x64xbf16, #tpu.memory_space<vmem>>, vector<128x64xbf16>
    tpu.vector_store %arg9[%c0_62, %c0_63], %104 {strides = array<i32>} : memref<128x64xbf16, #tpu.memory_space<vmem>>, vector<128x64xbf16>,
    return
  }
  func.func @transform_0(%arg0: i32) -> (i32, i32) {
    %c0_i32 = arith.constant 0 : i32
    %c0_i32_0 = arith.constant 0 : i32
    return %arg0, %c0_i32 : i32, i32
  }
  func.func @transform_1(%arg0: i32) -> (i32, i32) {
    %c0_i32 = arith.constant 0 : i32
    %c0_i32_0 = arith.constant 0 : i32
    %c0_i32_1 = arith.constant 0 : i32
    return %c0_i32, %c0_i32_0 : i32, i32
  }
  func.func @transform_2(%arg0: i32) -> (i32, i32) {
    %c0_i32 = arith.constant 0 : i32
    %c0_i32_0 = arith.constant 0 : i32
    %c0_i32_1 = arith.constant 0 : i32
    return %c0_i32, %c0_i32_0 : i32, i32
  }
  func.func @transform_3(%arg0: i32) -> (i32, i32) {
    %c0_i32 = arith.constant 0 : i32
    %c0_i32_0 = arith.constant 0 : i32
    %c0_i32_1 = arith.constant 0 : i32
    return %c0_i32, %c0_i32_0 : i32, i32
  }
  func.func @transform_4(%arg0: i32) -> (i32, i32, i32) {
    %c0_i32 = arith.constant 0 : i32
    %c0_i32_0 = arith.constant 0 : i32
    %c0_i32_1 = arith.constant 0 : i32
    %c0_i32_2 = arith.constant 0 : i32
    return %c0_i32, %c0_i32_0, %c0_i32_1 : i32, i32, i32
  }
  func.func @transform_5(%arg0: i32) -> (i32, i32) {
    %c0_i32 = arith.constant 0 : i32
    %c0_i32_0 = arith.constant 0 : i32
    %c0_i32_1 = arith.constant 0 : i32
    return %c0_i32, %c0_i32_0 : i32, i32
  }
  func.func @transform_6(%arg0: i32) -> (i32, i32) {
    %c0_i32 = arith.constant 0 : i32
    %c0_i32_0 = arith.constant 0 : i32
    %c0_i32_1 = arith.constant 0 : i32
    return %c0_i32, %c0_i32_0 : i32, i32
  }
  func.func @transform_7(%arg0: i32) -> (i32, i32) {
    %c0_i32 = arith.constant 0 : i32
    %c0_i32_0 = arith.constant 0 : i32
    %c0_i32_1 = arith.constant 0 : i32
    return %c0_i32, %c0_i32_0 : i32, i32
  }
  func.func @transform_8(%arg0: i32) -> (i32, i32) {
    %c0_i32 = arith.constant 0 : i32
    %c0_i32_0 = arith.constant 0 : i32
    return %arg0, %c0_i32 : i32, i32
  }
}

module attributes {stable_mosaic.version = 11 : i64} {
  func.func @_res5_block_kernel(%arg0: i32, %arg1: memref<128x32xbf16, #tpu.memory_space<vmem>>, %arg2: memref<128x9xf32, #tpu.memory_space<vmem>>, %arg3: memref<32x16xbf16, #tpu.memory_space<vmem>>, %arg4: memref<1x16xf32, #tpu.memory_space<vmem>>, %arg5: memref<9x16x16xbf16, #tpu.memory_space<vmem>>, %arg6: memref<1x16xf32, #tpu.memory_space<vmem>>, %arg7: memref<16x64xbf16, #tpu.memory_space<vmem>>, %arg8: memref<1x64xf32, #tpu.memory_space<vmem>>, %arg9: memref<32x64xbf16, #tpu.memory_space<vmem>>, %arg10: memref<1x64xf32, #tpu.memory_space<vmem>>, %arg11: memref<128x64xbf16, #tpu.memory_space<vmem>>) attributes {dimension_semantics = [#tpu.dimension_semantics<parallel>], iteration_bounds = array<i64: 2>, scalar_prefetch = 0 : i64, scratch_operands = 0 : i64, tpu.core_type = #tpu.core_type<tc>, window_params = [{transform_indices = @transform_0, window_bounds = array<i64: 128, 32>}, {pipeline_mode = #tpu.pipeline_mode<synchronous>, transform_indices = @transform_1, window_bounds = array<i64: 128, 9>}, {pipeline_mode = #tpu.pipeline_mode<synchronous>, transform_indices = @transform_2, window_bounds = array<i64: 32, 16>}, {pipeline_mode = #tpu.pipeline_mode<synchronous>, transform_indices = @transform_3, window_bounds = array<i64: 1, 16>}, {pipeline_mode = #tpu.pipeline_mode<synchronous>, transform_indices = @transform_4, window_bounds = array<i64: 9, 16, 16>}, {pipeline_mode = #tpu.pipeline_mode<synchronous>, transform_indices = @transform_5, window_bounds = array<i64: 1, 16>}, {pipeline_mode = #tpu.pipeline_mode<synchronous>, transform_indices = @transform_6, window_bounds = array<i64: 16, 64>}, {pipeline_mode = #tpu.pipeline_mode<synchronous>, transform_indices = @transform_7, window_bounds = array<i64: 1, 64>}, {pipeline_mode = #tpu.pipeline_mode<synchronous>, transform_indices = @transform_8, window_bounds = array<i64: 32, 64>}, {pipeline_mode = #tpu.pipeline_mode<synchronous>, transform_indices = @transform_9, window_bounds = array<i64: 1, 64>}, {transform_indices = @transform_10, window_bounds = array<i64: 128, 64>}]} {
    %c0 = arith.constant 0 : index
    %c0_0 = arith.constant 0 : index
    %0 = vector.load %arg1[%c0, %c0_0] : memref<128x32xbf16, #tpu.memory_space<vmem>>, vector<128x32xbf16>
    %c0_1 = arith.constant 0 : index
    %c0_2 = arith.constant 0 : index
    %1 = vector.load %arg3[%c0_1, %c0_2] : memref<32x16xbf16, #tpu.memory_space<vmem>>, vector<32x16xbf16>
    %cst = arith.constant dense<0.000000e+00> : vector<128x16xf32>
    %2 = tpu.matmul %0, %1, %cst {dimension_numbers = #tpu.dot_dimension_numbers<[1], [0], [0], [1], [0, 0, 1, 1], [], []>} : vector<128x32xbf16>, vector<32x16xbf16>, vector<128x16xf32> -> vector<128x16xf32>
    %c0_3 = arith.constant 0 : index
    %c0_4 = arith.constant 0 : index
    %3 = vector.load %arg4[%c0_3, %c0_4] : memref<1x16xf32, #tpu.memory_space<vmem>>, vector<1x16xf32>
    %4 = vector.broadcast %3 : vector<1x16xf32> to vector<128x16xf32>
    %5 = arith.addf %2, %4 : vector<128x16xf32>
    %cst_5 = arith.constant 0.000000e+00 : f32
    %6 = vector.broadcast %cst_5 : f32 to vector<128x16xf32>
    %7 = arith.maximumf %5, %6 : vector<128x16xf32>
    %cst_6 = arith.constant 0.000000e+00 : f32
    %8 = vector.broadcast %cst_6 : f32 to vector<128x16xf32>
    %c5_i32 = arith.constant 5 : i32
    %9 = tpu.dynamic_rotate %7 by %c5_i32 dim 0 : vector<128x16xf32>, i32 -> vector<128x16xf32>
    %c0_7 = arith.constant 0 : index
    %c0_8 = arith.constant 0 : index
    %10 = vector.load %arg2[%c0_7, %c0_8] : memref<128x9xf32, #tpu.memory_space<vmem>>, vector<128x1xf32>
    %11 = vector.broadcast %10 : vector<128x1xf32> to vector<128x16xf32>
    %12 = arith.mulf %9, %11 : vector<128x16xf32>
    %13 = arith.truncf %12 : vector<128x16xf32> to vector<128x16xbf16>
    %c0_9 = arith.constant 0 : index
    %c0_10 = arith.constant 0 : index
    %c0_11 = arith.constant 0 : index
    %14 = vector.load %arg5[%c0_9, %c0_10, %c0_11] : memref<9x16x16xbf16, #tpu.memory_space<vmem>>, vector<1x16x16xbf16>
    %15 = vector.shape_cast %14 : vector<1x16x16xbf16> to vector<16x16xbf16>
    %cst_12 = arith.constant dense<0.000000e+00> : vector<128x16xf32>
    %16 = tpu.matmul %13, %15, %cst_12 {dimension_numbers = #tpu.dot_dimension_numbers<[1], [0], [0], [1], [0, 0, 1, 1], [], []>} : vector<128x16xbf16>, vector<16x16xbf16>, vector<128x16xf32> -> vector<128x16xf32>
    %17 = arith.addf %8, %16 : vector<128x16xf32>
    %c4_i32 = arith.constant 4 : i32
    %18 = tpu.dynamic_rotate %7 by %c4_i32 dim 0 : vector<128x16xf32>, i32 -> vector<128x16xf32>
    %c0_13 = arith.constant 0 : index
    %c1 = arith.constant 1 : index
    %19 = vector.load %arg2[%c0_13, %c1] : memref<128x9xf32, #tpu.memory_space<vmem>>, vector<128x1xf32>
    %20 = vector.broadcast %19 : vector<128x1xf32> to vector<128x16xf32>
    %21 = arith.mulf %18, %20 : vector<128x16xf32>
    %22 = arith.truncf %21 : vector<128x16xf32> to vector<128x16xbf16>
    %c1_14 = arith.constant 1 : index
    %c0_15 = arith.constant 0 : index
    %c0_16 = arith.constant 0 : index
    %23 = vector.load %arg5[%c1_14, %c0_15, %c0_16] : memref<9x16x16xbf16, #tpu.memory_space<vmem>>, vector<1x16x16xbf16>
    %24 = vector.shape_cast %23 : vector<1x16x16xbf16> to vector<16x16xbf16>
    %cst_17 = arith.constant dense<0.000000e+00> : vector<128x16xf32>
    %25 = tpu.matmul %22, %24, %cst_17 {dimension_numbers = #tpu.dot_dimension_numbers<[1], [0], [0], [1], [0, 0, 1, 1], [], []>} : vector<128x16xbf16>, vector<16x16xbf16>, vector<128x16xf32> -> vector<128x16xf32>
    %26 = arith.addf %17, %25 : vector<128x16xf32>
    %c3_i32 = arith.constant 3 : i32
    %27 = tpu.dynamic_rotate %7 by %c3_i32 dim 0 : vector<128x16xf32>, i32 -> vector<128x16xf32>
    %c0_18 = arith.constant 0 : index
    %c2 = arith.constant 2 : index
    %28 = vector.load %arg2[%c0_18, %c2] : memref<128x9xf32, #tpu.memory_space<vmem>>, vector<128x1xf32>
    %29 = vector.broadcast %28 : vector<128x1xf32> to vector<128x16xf32>
    %30 = arith.mulf %27, %29 : vector<128x16xf32>
    %31 = arith.truncf %30 : vector<128x16xf32> to vector<128x16xbf16>
    %c2_19 = arith.constant 2 : index
    %c0_20 = arith.constant 0 : index
    %c0_21 = arith.constant 0 : index
    %32 = vector.load %arg5[%c2_19, %c0_20, %c0_21] : memref<9x16x16xbf16, #tpu.memory_space<vmem>>, vector<1x16x16xbf16>
    %33 = vector.shape_cast %32 : vector<1x16x16xbf16> to vector<16x16xbf16>
    %cst_22 = arith.constant dense<0.000000e+00> : vector<128x16xf32>
    %34 = tpu.matmul %31, %33, %cst_22 {dimension_numbers = #tpu.dot_dimension_numbers<[1], [0], [0], [1], [0, 0, 1, 1], [], []>} : vector<128x16xbf16>, vector<16x16xbf16>, vector<128x16xf32> -> vector<128x16xf32>
    %35 = arith.addf %26, %34 : vector<128x16xf32>
    %c1_i32 = arith.constant 1 : i32
    %36 = tpu.dynamic_rotate %7 by %c1_i32 dim 0 : vector<128x16xf32>, i32 -> vector<128x16xf32>
    %c0_23 = arith.constant 0 : index
    %c3 = arith.constant 3 : index
    %37 = vector.load %arg2[%c0_23, %c3] : memref<128x9xf32, #tpu.memory_space<vmem>>, vector<128x1xf32>
    %38 = vector.broadcast %37 : vector<128x1xf32> to vector<128x16xf32>
    %39 = arith.mulf %36, %38 : vector<128x16xf32>
    %40 = arith.truncf %39 : vector<128x16xf32> to vector<128x16xbf16>
    %c3_24 = arith.constant 3 : index
    %c0_25 = arith.constant 0 : index
    %c0_26 = arith.constant 0 : index
    %41 = vector.load %arg5[%c3_24, %c0_25, %c0_26] : memref<9x16x16xbf16, #tpu.memory_space<vmem>>, vector<1x16x16xbf16>
    %42 = vector.shape_cast %41 : vector<1x16x16xbf16> to vector<16x16xbf16>
    %cst_27 = arith.constant dense<0.000000e+00> : vector<128x16xf32>
    %43 = tpu.matmul %40, %42, %cst_27 {dimension_numbers = #tpu.dot_dimension_numbers<[1], [0], [0], [1], [0, 0, 1, 1], [], []>} : vector<128x16xbf16>, vector<16x16xbf16>, vector<128x16xf32> -> vector<128x16xf32>
    %44 = arith.addf %35, %43 : vector<128x16xf32>
    %c0_28 = arith.constant 0 : index
    %c4 = arith.constant 4 : index
    %45 = vector.load %arg2[%c0_28, %c4] : memref<128x9xf32, #tpu.memory_space<vmem>>, vector<128x1xf32>
    %46 = vector.broadcast %45 : vector<128x1xf32> to vector<128x16xf32>
    %47 = arith.mulf %7, %46 : vector<128x16xf32>
    %48 = arith.truncf %47 : vector<128x16xf32> to vector<128x16xbf16>
    %c4_29 = arith.constant 4 : index
    %c0_30 = arith.constant 0 : index
    %c0_31 = arith.constant 0 : index
    %49 = vector.load %arg5[%c4_29, %c0_30, %c0_31] : memref<9x16x16xbf16, #tpu.memory_space<vmem>>, vector<1x16x16xbf16>
    %50 = vector.shape_cast %49 : vector<1x16x16xbf16> to vector<16x16xbf16>
    %cst_32 = arith.constant dense<0.000000e+00> : vector<128x16xf32>
    %51 = tpu.matmul %48, %50, %cst_32 {dimension_numbers = #tpu.dot_dimension_numbers<[1], [0], [0], [1], [0, 0, 1, 1], [], []>} : vector<128x16xbf16>, vector<16x16xbf16>, vector<128x16xf32> -> vector<128x16xf32>
    %52 = arith.addf %44, %51 : vector<128x16xf32>
    %c127_i32 = arith.constant 127 : i32
    %53 = tpu.dynamic_rotate %7 by %c127_i32 dim 0 : vector<128x16xf32>, i32 -> vector<128x16xf32>
    %c0_33 = arith.constant 0 : index
    %c5 = arith.constant 5 : index
    %54 = vector.load %arg2[%c0_33, %c5] : memref<128x9xf32, #tpu.memory_space<vmem>>, vector<128x1xf32>
    %55 = vector.broadcast %54 : vector<128x1xf32> to vector<128x16xf32>
    %56 = arith.mulf %53, %55 : vector<128x16xf32>
    %57 = arith.truncf %56 : vector<128x16xf32> to vector<128x16xbf16>
    %c5_34 = arith.constant 5 : index
    %c0_35 = arith.constant 0 : index
    %c0_36 = arith.constant 0 : index
    %58 = vector.load %arg5[%c5_34, %c0_35, %c0_36] : memref<9x16x16xbf16, #tpu.memory_space<vmem>>, vector<1x16x16xbf16>
    %59 = vector.shape_cast %58 : vector<1x16x16xbf16> to vector<16x16xbf16>
    %cst_37 = arith.constant dense<0.000000e+00> : vector<128x16xf32>
    %60 = tpu.matmul %57, %59, %cst_37 {dimension_numbers = #tpu.dot_dimension_numbers<[1], [0], [0], [1], [0, 0, 1, 1], [], []>} : vector<128x16xbf16>, vector<16x16xbf16>, vector<128x16xf32> -> vector<128x16xf32>
    %61 = arith.addf %52, %60 : vector<128x16xf32>
    %c125_i32 = arith.constant 125 : i32
    %62 = tpu.dynamic_rotate %7 by %c125_i32 dim 0 : vector<128x16xf32>, i32 -> vector<128x16xf32>
    %c0_38 = arith.constant 0 : index
    %c6 = arith.constant 6 : index
    %63 = vector.load %arg2[%c0_38, %c6] : memref<128x9xf32, #tpu.memory_space<vmem>>, vector<128x1xf32>
    %64 = vector.broadcast %63 : vector<128x1xf32> to vector<128x16xf32>
    %65 = arith.mulf %62, %64 : vector<128x16xf32>
    %66 = arith.truncf %65 : vector<128x16xf32> to vector<128x16xbf16>
    %c6_39 = arith.constant 6 : index
    %c0_40 = arith.constant 0 : index
    %c0_41 = arith.constant 0 : index
    %67 = vector.load %arg5[%c6_39, %c0_40, %c0_41] : memref<9x16x16xbf16, #tpu.memory_space<vmem>>, vector<1x16x16xbf16>
    %68 = vector.shape_cast %67 : vector<1x16x16xbf16> to vector<16x16xbf16>
    %cst_42 = arith.constant dense<0.000000e+00> : vector<128x16xf32>
    %69 = tpu.matmul %66, %68, %cst_42 {dimension_numbers = #tpu.dot_dimension_numbers<[1], [0], [0], [1], [0, 0, 1, 1], [], []>} : vector<128x16xbf16>, vector<16x16xbf16>, vector<128x16xf32> -> vector<128x16xf32>
    %70 = arith.addf %61, %69 : vector<128x16xf32>
    %c124_i32 = arith.constant 124 : i32
    %71 = tpu.dynamic_rotate %7 by %c124_i32 dim 0 : vector<128x16xf32>, i32 -> vector<128x16xf32>
    %c0_43 = arith.constant 0 : index
    %c7 = arith.constant 7 : index
    %72 = vector.load %arg2[%c0_43, %c7] : memref<128x9xf32, #tpu.memory_space<vmem>>, vector<128x1xf32>
    %73 = vector.broadcast %72 : vector<128x1xf32> to vector<128x16xf32>
    %74 = arith.mulf %71, %73 : vector<128x16xf32>
    %75 = arith.truncf %74 : vector<128x16xf32> to vector<128x16xbf16>
    %c7_44 = arith.constant 7 : index
    %c0_45 = arith.constant 0 : index
    %c0_46 = arith.constant 0 : index
    %76 = vector.load %arg5[%c7_44, %c0_45, %c0_46] : memref<9x16x16xbf16, #tpu.memory_space<vmem>>, vector<1x16x16xbf16>
    %77 = vector.shape_cast %76 : vector<1x16x16xbf16> to vector<16x16xbf16>
    %cst_47 = arith.constant dense<0.000000e+00> : vector<128x16xf32>
    %78 = tpu.matmul %75, %77, %cst_47 {dimension_numbers = #tpu.dot_dimension_numbers<[1], [0], [0], [1], [0, 0, 1, 1], [], []>} : vector<128x16xbf16>, vector<16x16xbf16>, vector<128x16xf32> -> vector<128x16xf32>
    %79 = arith.addf %70, %78 : vector<128x16xf32>
    %c123_i32 = arith.constant 123 : i32
    %80 = tpu.dynamic_rotate %7 by %c123_i32 dim 0 : vector<128x16xf32>, i32 -> vector<128x16xf32>
    %c0_48 = arith.constant 0 : index
    %c8 = arith.constant 8 : index
    %81 = vector.load %arg2[%c0_48, %c8] : memref<128x9xf32, #tpu.memory_space<vmem>>, vector<128x1xf32>
    %82 = vector.broadcast %81 : vector<128x1xf32> to vector<128x16xf32>
    %83 = arith.mulf %80, %82 : vector<128x16xf32>
    %84 = arith.truncf %83 : vector<128x16xf32> to vector<128x16xbf16>
    %c8_49 = arith.constant 8 : index
    %c0_50 = arith.constant 0 : index
    %c0_51 = arith.constant 0 : index
    %85 = vector.load %arg5[%c8_49, %c0_50, %c0_51] : memref<9x16x16xbf16, #tpu.memory_space<vmem>>, vector<1x16x16xbf16>
    %86 = vector.shape_cast %85 : vector<1x16x16xbf16> to vector<16x16xbf16>
    %cst_52 = arith.constant dense<0.000000e+00> : vector<128x16xf32>
    %87 = tpu.matmul %84, %86, %cst_52 {dimension_numbers = #tpu.dot_dimension_numbers<[1], [0], [0], [1], [0, 0, 1, 1], [], []>} : vector<128x16xbf16>, vector<16x16xbf16>, vector<128x16xf32> -> vector<128x16xf32>
    %88 = arith.addf %79, %87 : vector<128x16xf32>
    %c0_53 = arith.constant 0 : index
    %c0_54 = arith.constant 0 : index
    %89 = vector.load %arg6[%c0_53, %c0_54] : memref<1x16xf32, #tpu.memory_space<vmem>>, vector<1x16xf32>
    %90 = vector.broadcast %89 : vector<1x16xf32> to vector<128x16xf32>
    %91 = arith.addf %88, %90 : vector<128x16xf32>
    %cst_55 = arith.constant 0.000000e+00 : f32
    %92 = vector.broadcast %cst_55 : f32 to vector<128x16xf32>
    %93 = arith.maximumf %91, %92 : vector<128x16xf32>
    %94 = arith.truncf %93 : vector<128x16xf32> to vector<128x16xbf16>
    %c0_56 = arith.constant 0 : index
    %c0_57 = arith.constant 0 : index
    %95 = vector.load %arg7[%c0_56, %c0_57] : memref<16x64xbf16, #tpu.memory_space<vmem>>, vector<16x64xbf16>
    %cst_58 = arith.constant dense<0.000000e+00> : vector<128x64xf32>
    %96 = tpu.matmul %94, %95, %cst_58 {dimension_numbers = #tpu.dot_dimension_numbers<[1], [0], [0], [1], [0, 0, 1, 1], [], []>} : vector<128x16xbf16>, vector<16x64xbf16>, vector<128x64xf32> -> vector<128x64xf32>
    %c0_59 = arith.constant 0 : index
    %c0_60 = arith.constant 0 : index
    %97 = vector.load %arg8[%c0_59, %c0_60] : memref<1x64xf32, #tpu.memory_space<vmem>>, vector<1x64xf32>
    %98 = vector.broadcast %97 : vector<1x64xf32> to vector<128x64xf32>
    %99 = arith.addf %96, %98 : vector<128x64xf32>
    %c0_61 = arith.constant 0 : index
    %c0_62 = arith.constant 0 : index
    %100 = vector.load %arg9[%c0_61, %c0_62] : memref<32x64xbf16, #tpu.memory_space<vmem>>, vector<32x64xbf16>
    %cst_63 = arith.constant dense<0.000000e+00> : vector<128x64xf32>
    %101 = tpu.matmul %0, %100, %cst_63 {dimension_numbers = #tpu.dot_dimension_numbers<[1], [0], [0], [1], [0, 0, 1, 1], [], []>} : vector<128x32xbf16>, vector<32x64xbf16>, vector<128x64xf32> -> vector<128x64xf32>
    %c0_64 = arith.constant 0 : index
    %c0_65 = arith.constant 0 : index
    %102 = vector.load %arg10[%c0_64, %c0_65] : memref<1x64xf32, #tpu.memory_space<vmem>>, vector<1x64xf32>
    %103 = vector.broadcast %102 : vector<1x64xf32> to vector<128x64xf32>
    %104 = arith.addf %101, %103 : vector<128x64xf32>
    %105 = arith.addf %99, %104 : vector<128x64xf32>
    %cst_66 = arith.constant 0.000000e+00 : f32
    %106 = vector.broadcast %cst_66 : f32 to vector<128x64xf32>
    %107 = arith.maximumf %105, %106 : vector<128x64xf32>
    %108 = arith.truncf %107 : vector<128x64xf32> to vector<128x64xbf16>
    %c0_67 = arith.constant 0 : index
    %c0_68 = arith.constant 0 : index
    %109 = vector.load %arg11[%c0_67, %c0_68] : memref<128x64xbf16, #tpu.memory_space<vmem>>, vector<128x64xbf16>
    tpu.vector_store %arg11[%c0_67, %c0_68], %108 {strides = array<i32>} : memref<128x64xbf16, #tpu.memory_space<vmem>>, vector<128x64xbf16>,
    return
  }
  func.func @transform_0(%arg0: i32) -> (i32, i32) {
    %c0_i32 = arith.constant 0 : i32
    %c0_i32_0 = arith.constant 0 : i32
    return %arg0, %c0_i32 : i32, i32
  }
  func.func @transform_1(%arg0: i32) -> (i32, i32) {
    %c0_i32 = arith.constant 0 : i32
    %c0_i32_0 = arith.constant 0 : i32
    %c0_i32_1 = arith.constant 0 : i32
    return %c0_i32, %c0_i32_0 : i32, i32
  }
  func.func @transform_2(%arg0: i32) -> (i32, i32) {
    %c0_i32 = arith.constant 0 : i32
    %c0_i32_0 = arith.constant 0 : i32
    %c0_i32_1 = arith.constant 0 : i32
    return %c0_i32, %c0_i32_0 : i32, i32
  }
  func.func @transform_3(%arg0: i32) -> (i32, i32) {
    %c0_i32 = arith.constant 0 : i32
    %c0_i32_0 = arith.constant 0 : i32
    %c0_i32_1 = arith.constant 0 : i32
    return %c0_i32, %c0_i32_0 : i32, i32
  }
  func.func @transform_4(%arg0: i32) -> (i32, i32, i32) {
    %c0_i32 = arith.constant 0 : i32
    %c0_i32_0 = arith.constant 0 : i32
    %c0_i32_1 = arith.constant 0 : i32
    %c0_i32_2 = arith.constant 0 : i32
    return %c0_i32, %c0_i32_0, %c0_i32_1 : i32, i32, i32
  }
  func.func @transform_5(%arg0: i32) -> (i32, i32) {
    %c0_i32 = arith.constant 0 : i32
    %c0_i32_0 = arith.constant 0 : i32
    %c0_i32_1 = arith.constant 0 : i32
    return %c0_i32, %c0_i32_0 : i32, i32
  }
  func.func @transform_6(%arg0: i32) -> (i32, i32) {
    %c0_i32 = arith.constant 0 : i32
    %c0_i32_0 = arith.constant 0 : i32
    %c0_i32_1 = arith.constant 0 : i32
    return %c0_i32, %c0_i32_0 : i32, i32
  }
  func.func @transform_7(%arg0: i32) -> (i32, i32) {
    %c0_i32 = arith.constant 0 : i32
    %c0_i32_0 = arith.constant 0 : i32
    %c0_i32_1 = arith.constant 0 : i32
    return %c0_i32, %c0_i32_0 : i32, i32
  }
  func.func @transform_8(%arg0: i32) -> (i32, i32) {
    %c0_i32 = arith.constant 0 : i32
    %c0_i32_0 = arith.constant 0 : i32
    %c0_i32_1 = arith.constant 0 : i32
    return %c0_i32, %c0_i32_0 : i32, i32
  }
  func.func @transform_9(%arg0: i32) -> (i32, i32) {
    %c0_i32 = arith.constant 0 : i32
    %c0_i32_0 = arith.constant 0 : i32
    %c0_i32_1 = arith.constant 0 : i32
    return %c0_i32, %c0_i32_0 : i32, i32
  }
  func.func @transform_10(%arg0: i32) -> (i32, i32) {
    %c0_i32 = arith.constant 0 : i32
    %c0_i32_0 = arith.constant 0 : i32
    return %arg0, %c0_i32 : i32, i32
  }
}

module attributes {stable_mosaic.version = 11 : i64} {
  func.func @_res5_tail_kernel(%arg0: i32, %arg1: memref<128x64xbf16, #tpu.memory_space<vmem>>, %arg2: memref<128x9xf32, #tpu.memory_space<vmem>>, %arg3: memref<8x128xf32, #tpu.memory_space<vmem>>, %arg4: memref<64x16xbf16, #tpu.memory_space<vmem>>, %arg5: memref<1x16xf32, #tpu.memory_space<vmem>>, %arg6: memref<9x16x16xbf16, #tpu.memory_space<vmem>>, %arg7: memref<1x16xf32, #tpu.memory_space<vmem>>, %arg8: memref<16x64xbf16, #tpu.memory_space<vmem>>, %arg9: memref<1x64xf32, #tpu.memory_space<vmem>>, %arg10: memref<64x128xbf16, #tpu.memory_space<vmem>>, %arg11: memref<1x128xf32, #tpu.memory_space<vmem>>, %arg12: memref<8x128xf32, #tpu.memory_space<vmem>>) attributes {dimension_semantics = [#tpu.dimension_semantics<parallel>], iteration_bounds = array<i64: 2>, scalar_prefetch = 0 : i64, scratch_operands = 0 : i64, tpu.core_type = #tpu.core_type<tc>, window_params = [{transform_indices = @transform_0, window_bounds = array<i64: 128, 64>}, {pipeline_mode = #tpu.pipeline_mode<synchronous>, transform_indices = @transform_1, window_bounds = array<i64: 128, 9>}, {pipeline_mode = #tpu.pipeline_mode<synchronous>, transform_indices = @transform_2, window_bounds = array<i64: 8, 128>}, {pipeline_mode = #tpu.pipeline_mode<synchronous>, transform_indices = @transform_3, window_bounds = array<i64: 64, 16>}, {pipeline_mode = #tpu.pipeline_mode<synchronous>, transform_indices = @transform_4, window_bounds = array<i64: 1, 16>}, {pipeline_mode = #tpu.pipeline_mode<synchronous>, transform_indices = @transform_5, window_bounds = array<i64: 9, 16, 16>}, {pipeline_mode = #tpu.pipeline_mode<synchronous>, transform_indices = @transform_6, window_bounds = array<i64: 1, 16>}, {pipeline_mode = #tpu.pipeline_mode<synchronous>, transform_indices = @transform_7, window_bounds = array<i64: 16, 64>}, {pipeline_mode = #tpu.pipeline_mode<synchronous>, transform_indices = @transform_8, window_bounds = array<i64: 1, 64>}, {pipeline_mode = #tpu.pipeline_mode<synchronous>, transform_indices = @transform_9, window_bounds = array<i64: 64, 128>}, {pipeline_mode = #tpu.pipeline_mode<synchronous>, transform_indices = @transform_10, window_bounds = array<i64: 1, 128>}, {transform_indices = @transform_11, window_bounds = array<i64: 8, 128>}]} {
    %c0 = arith.constant 0 : index
    %c0_0 = arith.constant 0 : index
    %0 = vector.load %arg1[%c0, %c0_0] : memref<128x64xbf16, #tpu.memory_space<vmem>>, vector<128x64xbf16>
    %c0_1 = arith.constant 0 : index
    %c0_2 = arith.constant 0 : index
    %1 = vector.load %arg4[%c0_1, %c0_2] : memref<64x16xbf16, #tpu.memory_space<vmem>>, vector<64x16xbf16>
    %cst = arith.constant dense<0.000000e+00> : vector<128x16xf32>
    %2 = tpu.matmul %0, %1, %cst {dimension_numbers = #tpu.dot_dimension_numbers<[1], [0], [0], [1], [0, 0, 1, 1], [], []>} : vector<128x64xbf16>, vector<64x16xbf16>, vector<128x16xf32> -> vector<128x16xf32>
    %c0_3 = arith.constant 0 : index
    %c0_4 = arith.constant 0 : index
    %3 = vector.load %arg5[%c0_3, %c0_4] : memref<1x16xf32, #tpu.memory_space<vmem>>, vector<1x16xf32>
    %4 = vector.broadcast %3 : vector<1x16xf32> to vector<128x16xf32>
    %5 = arith.addf %2, %4 : vector<128x16xf32>
    %cst_5 = arith.constant 0.000000e+00 : f32
    %6 = vector.broadcast %cst_5 : f32 to vector<128x16xf32>
    %7 = arith.maximumf %5, %6 : vector<128x16xf32>
    %cst_6 = arith.constant 0.000000e+00 : f32
    %8 = vector.broadcast %cst_6 : f32 to vector<128x16xf32>
    %c5_i32 = arith.constant 5 : i32
    %9 = tpu.dynamic_rotate %7 by %c5_i32 dim 0 : vector<128x16xf32>, i32 -> vector<128x16xf32>
    %c0_7 = arith.constant 0 : index
    %c0_8 = arith.constant 0 : index
    %10 = vector.load %arg2[%c0_7, %c0_8] : memref<128x9xf32, #tpu.memory_space<vmem>>, vector<128x1xf32>
    %11 = vector.broadcast %10 : vector<128x1xf32> to vector<128x16xf32>
    %12 = arith.mulf %9, %11 : vector<128x16xf32>
    %13 = arith.truncf %12 : vector<128x16xf32> to vector<128x16xbf16>
    %c0_9 = arith.constant 0 : index
    %c0_10 = arith.constant 0 : index
    %c0_11 = arith.constant 0 : index
    %14 = vector.load %arg6[%c0_9, %c0_10, %c0_11] : memref<9x16x16xbf16, #tpu.memory_space<vmem>>, vector<1x16x16xbf16>
    %15 = vector.shape_cast %14 : vector<1x16x16xbf16> to vector<16x16xbf16>
    %cst_12 = arith.constant dense<0.000000e+00> : vector<128x16xf32>
    %16 = tpu.matmul %13, %15, %cst_12 {dimension_numbers = #tpu.dot_dimension_numbers<[1], [0], [0], [1], [0, 0, 1, 1], [], []>} : vector<128x16xbf16>, vector<16x16xbf16>, vector<128x16xf32> -> vector<128x16xf32>
    %17 = arith.addf %8, %16 : vector<128x16xf32>
    %c4_i32 = arith.constant 4 : i32
    %18 = tpu.dynamic_rotate %7 by %c4_i32 dim 0 : vector<128x16xf32>, i32 -> vector<128x16xf32>
    %c0_13 = arith.constant 0 : index
    %c1 = arith.constant 1 : index
    %19 = vector.load %arg2[%c0_13, %c1] : memref<128x9xf32, #tpu.memory_space<vmem>>, vector<128x1xf32>
    %20 = vector.broadcast %19 : vector<128x1xf32> to vector<128x16xf32>
    %21 = arith.mulf %18, %20 : vector<128x16xf32>
    %22 = arith.truncf %21 : vector<128x16xf32> to vector<128x16xbf16>
    %c1_14 = arith.constant 1 : index
    %c0_15 = arith.constant 0 : index
    %c0_16 = arith.constant 0 : index
    %23 = vector.load %arg6[%c1_14, %c0_15, %c0_16] : memref<9x16x16xbf16, #tpu.memory_space<vmem>>, vector<1x16x16xbf16>
    %24 = vector.shape_cast %23 : vector<1x16x16xbf16> to vector<16x16xbf16>
    %cst_17 = arith.constant dense<0.000000e+00> : vector<128x16xf32>
    %25 = tpu.matmul %22, %24, %cst_17 {dimension_numbers = #tpu.dot_dimension_numbers<[1], [0], [0], [1], [0, 0, 1, 1], [], []>} : vector<128x16xbf16>, vector<16x16xbf16>, vector<128x16xf32> -> vector<128x16xf32>
    %26 = arith.addf %17, %25 : vector<128x16xf32>
    %c3_i32 = arith.constant 3 : i32
    %27 = tpu.dynamic_rotate %7 by %c3_i32 dim 0 : vector<128x16xf32>, i32 -> vector<128x16xf32>
    %c0_18 = arith.constant 0 : index
    %c2 = arith.constant 2 : index
    %28 = vector.load %arg2[%c0_18, %c2] : memref<128x9xf32, #tpu.memory_space<vmem>>, vector<128x1xf32>
    %29 = vector.broadcast %28 : vector<128x1xf32> to vector<128x16xf32>
    %30 = arith.mulf %27, %29 : vector<128x16xf32>
    %31 = arith.truncf %30 : vector<128x16xf32> to vector<128x16xbf16>
    %c2_19 = arith.constant 2 : index
    %c0_20 = arith.constant 0 : index
    %c0_21 = arith.constant 0 : index
    %32 = vector.load %arg6[%c2_19, %c0_20, %c0_21] : memref<9x16x16xbf16, #tpu.memory_space<vmem>>, vector<1x16x16xbf16>
    %33 = vector.shape_cast %32 : vector<1x16x16xbf16> to vector<16x16xbf16>
    %cst_22 = arith.constant dense<0.000000e+00> : vector<128x16xf32>
    %34 = tpu.matmul %31, %33, %cst_22 {dimension_numbers = #tpu.dot_dimension_numbers<[1], [0], [0], [1], [0, 0, 1, 1], [], []>} : vector<128x16xbf16>, vector<16x16xbf16>, vector<128x16xf32> -> vector<128x16xf32>
    %35 = arith.addf %26, %34 : vector<128x16xf32>
    %c1_i32 = arith.constant 1 : i32
    %36 = tpu.dynamic_rotate %7 by %c1_i32 dim 0 : vector<128x16xf32>, i32 -> vector<128x16xf32>
    %c0_23 = arith.constant 0 : index
    %c3 = arith.constant 3 : index
    %37 = vector.load %arg2[%c0_23, %c3] : memref<128x9xf32, #tpu.memory_space<vmem>>, vector<128x1xf32>
    %38 = vector.broadcast %37 : vector<128x1xf32> to vector<128x16xf32>
    %39 = arith.mulf %36, %38 : vector<128x16xf32>
    %40 = arith.truncf %39 : vector<128x16xf32> to vector<128x16xbf16>
    %c3_24 = arith.constant 3 : index
    %c0_25 = arith.constant 0 : index
    %c0_26 = arith.constant 0 : index
    %41 = vector.load %arg6[%c3_24, %c0_25, %c0_26] : memref<9x16x16xbf16, #tpu.memory_space<vmem>>, vector<1x16x16xbf16>
    %42 = vector.shape_cast %41 : vector<1x16x16xbf16> to vector<16x16xbf16>
    %cst_27 = arith.constant dense<0.000000e+00> : vector<128x16xf32>
    %43 = tpu.matmul %40, %42, %cst_27 {dimension_numbers = #tpu.dot_dimension_numbers<[1], [0], [0], [1], [0, 0, 1, 1], [], []>} : vector<128x16xbf16>, vector<16x16xbf16>, vector<128x16xf32> -> vector<128x16xf32>
    %44 = arith.addf %35, %43 : vector<128x16xf32>
    %c0_28 = arith.constant 0 : index
    %c4 = arith.constant 4 : index
    %45 = vector.load %arg2[%c0_28, %c4] : memref<128x9xf32, #tpu.memory_space<vmem>>, vector<128x1xf32>
    %46 = vector.broadcast %45 : vector<128x1xf32> to vector<128x16xf32>
    %47 = arith.mulf %7, %46 : vector<128x16xf32>
    %48 = arith.truncf %47 : vector<128x16xf32> to vector<128x16xbf16>
    %c4_29 = arith.constant 4 : index
    %c0_30 = arith.constant 0 : index
    %c0_31 = arith.constant 0 : index
    %49 = vector.load %arg6[%c4_29, %c0_30, %c0_31] : memref<9x16x16xbf16, #tpu.memory_space<vmem>>, vector<1x16x16xbf16>
    %50 = vector.shape_cast %49 : vector<1x16x16xbf16> to vector<16x16xbf16>
    %cst_32 = arith.constant dense<0.000000e+00> : vector<128x16xf32>
    %51 = tpu.matmul %48, %50, %cst_32 {dimension_numbers = #tpu.dot_dimension_numbers<[1], [0], [0], [1], [0, 0, 1, 1], [], []>} : vector<128x16xbf16>, vector<16x16xbf16>, vector<128x16xf32> -> vector<128x16xf32>
    %52 = arith.addf %44, %51 : vector<128x16xf32>
    %c127_i32 = arith.constant 127 : i32
    %53 = tpu.dynamic_rotate %7 by %c127_i32 dim 0 : vector<128x16xf32>, i32 -> vector<128x16xf32>
    %c0_33 = arith.constant 0 : index
    %c5 = arith.constant 5 : index
    %54 = vector.load %arg2[%c0_33, %c5] : memref<128x9xf32, #tpu.memory_space<vmem>>, vector<128x1xf32>
    %55 = vector.broadcast %54 : vector<128x1xf32> to vector<128x16xf32>
    %56 = arith.mulf %53, %55 : vector<128x16xf32>
    %57 = arith.truncf %56 : vector<128x16xf32> to vector<128x16xbf16>
    %c5_34 = arith.constant 5 : index
    %c0_35 = arith.constant 0 : index
    %c0_36 = arith.constant 0 : index
    %58 = vector.load %arg6[%c5_34, %c0_35, %c0_36] : memref<9x16x16xbf16, #tpu.memory_space<vmem>>, vector<1x16x16xbf16>
    %59 = vector.shape_cast %58 : vector<1x16x16xbf16> to vector<16x16xbf16>
    %cst_37 = arith.constant dense<0.000000e+00> : vector<128x16xf32>
    %60 = tpu.matmul %57, %59, %cst_37 {dimension_numbers = #tpu.dot_dimension_numbers<[1], [0], [0], [1], [0, 0, 1, 1], [], []>} : vector<128x16xbf16>, vector<16x16xbf16>, vector<128x16xf32> -> vector<128x16xf32>
    %61 = arith.addf %52, %60 : vector<128x16xf32>
    %c125_i32 = arith.constant 125 : i32
    %62 = tpu.dynamic_rotate %7 by %c125_i32 dim 0 : vector<128x16xf32>, i32 -> vector<128x16xf32>
    %c0_38 = arith.constant 0 : index
    %c6 = arith.constant 6 : index
    %63 = vector.load %arg2[%c0_38, %c6] : memref<128x9xf32, #tpu.memory_space<vmem>>, vector<128x1xf32>
    %64 = vector.broadcast %63 : vector<128x1xf32> to vector<128x16xf32>
    %65 = arith.mulf %62, %64 : vector<128x16xf32>
    %66 = arith.truncf %65 : vector<128x16xf32> to vector<128x16xbf16>
    %c6_39 = arith.constant 6 : index
    %c0_40 = arith.constant 0 : index
    %c0_41 = arith.constant 0 : index
    %67 = vector.load %arg6[%c6_39, %c0_40, %c0_41] : memref<9x16x16xbf16, #tpu.memory_space<vmem>>, vector<1x16x16xbf16>
    %68 = vector.shape_cast %67 : vector<1x16x16xbf16> to vector<16x16xbf16>
    %cst_42 = arith.constant dense<0.000000e+00> : vector<128x16xf32>
    %69 = tpu.matmul %66, %68, %cst_42 {dimension_numbers = #tpu.dot_dimension_numbers<[1], [0], [0], [1], [0, 0, 1, 1], [], []>} : vector<128x16xbf16>, vector<16x16xbf16>, vector<128x16xf32> -> vector<128x16xf32>
    %70 = arith.addf %61, %69 : vector<128x16xf32>
    %c124_i32 = arith.constant 124 : i32
    %71 = tpu.dynamic_rotate %7 by %c124_i32 dim 0 : vector<128x16xf32>, i32 -> vector<128x16xf32>
    %c0_43 = arith.constant 0 : index
    %c7 = arith.constant 7 : index
    %72 = vector.load %arg2[%c0_43, %c7] : memref<128x9xf32, #tpu.memory_space<vmem>>, vector<128x1xf32>
    %73 = vector.broadcast %72 : vector<128x1xf32> to vector<128x16xf32>
    %74 = arith.mulf %71, %73 : vector<128x16xf32>
    %75 = arith.truncf %74 : vector<128x16xf32> to vector<128x16xbf16>
    %c7_44 = arith.constant 7 : index
    %c0_45 = arith.constant 0 : index
    %c0_46 = arith.constant 0 : index
    %76 = vector.load %arg6[%c7_44, %c0_45, %c0_46] : memref<9x16x16xbf16, #tpu.memory_space<vmem>>, vector<1x16x16xbf16>
    %77 = vector.shape_cast %76 : vector<1x16x16xbf16> to vector<16x16xbf16>
    %cst_47 = arith.constant dense<0.000000e+00> : vector<128x16xf32>
    %78 = tpu.matmul %75, %77, %cst_47 {dimension_numbers = #tpu.dot_dimension_numbers<[1], [0], [0], [1], [0, 0, 1, 1], [], []>} : vector<128x16xbf16>, vector<16x16xbf16>, vector<128x16xf32> -> vector<128x16xf32>
    %79 = arith.addf %70, %78 : vector<128x16xf32>
    %c123_i32 = arith.constant 123 : i32
    %80 = tpu.dynamic_rotate %7 by %c123_i32 dim 0 : vector<128x16xf32>, i32 -> vector<128x16xf32>
    %c0_48 = arith.constant 0 : index
    %c8 = arith.constant 8 : index
    %81 = vector.load %arg2[%c0_48, %c8] : memref<128x9xf32, #tpu.memory_space<vmem>>, vector<128x1xf32>
    %82 = vector.broadcast %81 : vector<128x1xf32> to vector<128x16xf32>
    %83 = arith.mulf %80, %82 : vector<128x16xf32>
    %84 = arith.truncf %83 : vector<128x16xf32> to vector<128x16xbf16>
    %c8_49 = arith.constant 8 : index
    %c0_50 = arith.constant 0 : index
    %c0_51 = arith.constant 0 : index
    %85 = vector.load %arg6[%c8_49, %c0_50, %c0_51] : memref<9x16x16xbf16, #tpu.memory_space<vmem>>, vector<1x16x16xbf16>
    %86 = vector.shape_cast %85 : vector<1x16x16xbf16> to vector<16x16xbf16>
    %cst_52 = arith.constant dense<0.000000e+00> : vector<128x16xf32>
    %87 = tpu.matmul %84, %86, %cst_52 {dimension_numbers = #tpu.dot_dimension_numbers<[1], [0], [0], [1], [0, 0, 1, 1], [], []>} : vector<128x16xbf16>, vector<16x16xbf16>, vector<128x16xf32> -> vector<128x16xf32>
    %88 = arith.addf %79, %87 : vector<128x16xf32>
    %c0_53 = arith.constant 0 : index
    %c0_54 = arith.constant 0 : index
    %89 = vector.load %arg7[%c0_53, %c0_54] : memref<1x16xf32, #tpu.memory_space<vmem>>, vector<1x16xf32>
    %90 = vector.broadcast %89 : vector<1x16xf32> to vector<128x16xf32>
    %91 = arith.addf %88, %90 : vector<128x16xf32>
    %cst_55 = arith.constant 0.000000e+00 : f32
    %92 = vector.broadcast %cst_55 : f32 to vector<128x16xf32>
    %93 = arith.maximumf %91, %92 : vector<128x16xf32>
    %94 = arith.truncf %93 : vector<128x16xf32> to vector<128x16xbf16>
    %c0_56 = arith.constant 0 : index
    %c0_57 = arith.constant 0 : index
    %95 = vector.load %arg8[%c0_56, %c0_57] : memref<16x64xbf16, #tpu.memory_space<vmem>>, vector<16x64xbf16>
    %cst_58 = arith.constant dense<0.000000e+00> : vector<128x64xf32>
    %96 = tpu.matmul %94, %95, %cst_58 {dimension_numbers = #tpu.dot_dimension_numbers<[1], [0], [0], [1], [0, 0, 1, 1], [], []>} : vector<128x16xbf16>, vector<16x64xbf16>, vector<128x64xf32> -> vector<128x64xf32>
    %c0_59 = arith.constant 0 : index
    %c0_60 = arith.constant 0 : index
    %97 = vector.load %arg9[%c0_59, %c0_60] : memref<1x64xf32, #tpu.memory_space<vmem>>, vector<1x64xf32>
    %98 = vector.broadcast %97 : vector<1x64xf32> to vector<128x64xf32>
    %99 = arith.addf %96, %98 : vector<128x64xf32>
    %100 = arith.extf %0 : vector<128x64xbf16> to vector<128x64xf32>
    %101 = arith.addf %99, %100 : vector<128x64xf32>
    %cst_61 = arith.constant 0.000000e+00 : f32
    %102 = vector.broadcast %cst_61 : f32 to vector<128x64xf32>
    %103 = arith.maximumf %101, %102 : vector<128x64xf32>
    %c0_62 = arith.constant 0 : index
    %c0_63 = arith.constant 0 : index
    %104 = vector.load %arg3[%c0_62, %c0_63] : memref<8x128xf32, #tpu.memory_space<vmem>>, vector<8x128xf32>
    %cst_64 = arith.constant dense<0.000000e+00> : vector<8x64xf32>
    %105 = tpu.matmul %104, %103, %cst_64 {dimension_numbers = #tpu.dot_dimension_numbers<[1], [0], [0], [1], [0, 0, 1, 1], [], []>} : vector<8x128xf32>, vector<128x64xf32>, vector<8x64xf32> -> vector<8x64xf32>
    %106 = arith.truncf %105 : vector<8x64xf32> to vector<8x64xbf16>
    %c0_65 = arith.constant 0 : index
    %c0_66 = arith.constant 0 : index
    %107 = vector.load %arg10[%c0_65, %c0_66] : memref<64x128xbf16, #tpu.memory_space<vmem>>, vector<64x128xbf16>
    %cst_67 = arith.constant dense<0.000000e+00> : vector<8x128xf32>
    %108 = tpu.matmul %106, %107, %cst_67 {dimension_numbers = #tpu.dot_dimension_numbers<[1], [0], [0], [1], [0, 0, 1, 1], [], []>} : vector<8x64xbf16>, vector<64x128xbf16>, vector<8x128xf32> -> vector<8x128xf32>
    %c0_68 = arith.constant 0 : index
    %c0_69 = arith.constant 0 : index
    %109 = vector.load %arg11[%c0_68, %c0_69] : memref<1x128xf32, #tpu.memory_space<vmem>>, vector<1x128xf32>
    %110 = vector.broadcast %109 : vector<1x128xf32> to vector<8x128xf32>
    %111 = arith.addf %108, %110 : vector<8x128xf32>
    %c0_70 = arith.constant 0 : index
    %c0_71 = arith.constant 0 : index
    %112 = vector.load %arg12[%c0_70, %c0_71] : memref<8x128xf32, #tpu.memory_space<vmem>>, vector<8x128xf32>
    tpu.vector_store %arg12[%c0_70, %c0_71], %111 {strides = array<i32>} : memref<8x128xf32, #tpu.memory_space<vmem>>, vector<8x128xf32>,
    return
  }
  func.func @transform_0(%arg0: i32) -> (i32, i32) {
    %c0_i32 = arith.constant 0 : i32
    %c0_i32_0 = arith.constant 0 : i32
    return %arg0, %c0_i32 : i32, i32
  }
  func.func @transform_1(%arg0: i32) -> (i32, i32) {
    %c0_i32 = arith.constant 0 : i32
    %c0_i32_0 = arith.constant 0 : i32
    %c0_i32_1 = arith.constant 0 : i32
    return %c0_i32, %c0_i32_0 : i32, i32
  }
  func.func @transform_2(%arg0: i32) -> (i32, i32) {
    %c0_i32 = arith.constant 0 : i32
    %c0_i32_0 = arith.constant 0 : i32
    %c0_i32_1 = arith.constant 0 : i32
    return %c0_i32, %c0_i32_0 : i32, i32
  }
  func.func @transform_3(%arg0: i32) -> (i32, i32) {
    %c0_i32 = arith.constant 0 : i32
    %c0_i32_0 = arith.constant 0 : i32
    %c0_i32_1 = arith.constant 0 : i32
    return %c0_i32, %c0_i32_0 : i32, i32
  }
  func.func @transform_4(%arg0: i32) -> (i32, i32) {
    %c0_i32 = arith.constant 0 : i32
    %c0_i32_0 = arith.constant 0 : i32
    %c0_i32_1 = arith.constant 0 : i32
    return %c0_i32, %c0_i32_0 : i32, i32
  }
  func.func @transform_5(%arg0: i32) -> (i32, i32, i32) {
    %c0_i32 = arith.constant 0 : i32
    %c0_i32_0 = arith.constant 0 : i32
    %c0_i32_1 = arith.constant 0 : i32
    %c0_i32_2 = arith.constant 0 : i32
    return %c0_i32, %c0_i32_0, %c0_i32_1 : i32, i32, i32
  }
  func.func @transform_6(%arg0: i32) -> (i32, i32) {
    %c0_i32 = arith.constant 0 : i32
    %c0_i32_0 = arith.constant 0 : i32
    %c0_i32_1 = arith.constant 0 : i32
    return %c0_i32, %c0_i32_0 : i32, i32
  }
  func.func @transform_7(%arg0: i32) -> (i32, i32) {
    %c0_i32 = arith.constant 0 : i32
    %c0_i32_0 = arith.constant 0 : i32
    %c0_i32_1 = arith.constant 0 : i32
    return %c0_i32, %c0_i32_0 : i32, i32
  }
  func.func @transform_8(%arg0: i32) -> (i32, i32) {
    %c0_i32 = arith.constant 0 : i32
    %c0_i32_0 = arith.constant 0 : i32
    %c0_i32_1 = arith.constant 0 : i32
    return %c0_i32, %c0_i32_0 : i32, i32
  }
  func.func @transform_9(%arg0: i32) -> (i32, i32) {
    %c0_i32 = arith.constant 0 : i32
    %c0_i32_0 = arith.constant 0 : i32
    %c0_i32_1 = arith.constant 0 : i32
    return %c0_i32, %c0_i32_0 : i32, i32
  }
  func.func @transform_10(%arg0: i32) -> (i32, i32) {
    %c0_i32 = arith.constant 0 : i32
    %c0_i32_0 = arith.constant 0 : i32
    %c0_i32_1 = arith.constant 0 : i32
    return %c0_i32, %c0_i32_0 : i32, i32
  }
  func.func @transform_11(%arg0: i32) -> (i32, i32) {
    %c0_i32 = arith.constant 0 : i32
    %c0_i32_0 = arith.constant 0 : i32
    return %arg0, %c0_i32 : i32, i32
  }
}

</mosaic_0001>

<bundles_post_ra>
// kernel: res5_roi_heads_forward.4
= control target key start
LH: loop header
LB: loop body
LE: loop exit
PB: predicated region body
PF: predicated region fallthrough
CT: control target
= control target key end

     0   :  { %s3840_s27 = smov 0   ;;  %s5495_s0 = inlined_call_operand.vmem [shape: bf16[256,64], index: 0, kind: input, shape index: {}]   ;;  %s5496_s1 = inlined_call_operand.vmem [shape: f32[128,9], index: 1, kind: input, shape index: {}]   ;;  %s5497_s2 = inlined_call_operand.vmem [shape: bf16[64,16], index: 2, kind: input, shape index: {}]   ;;  %s5498_s3 = inlined_call_operand.vmem [shape: f32[1,16], index: 3, kind: input, shape index: {}]   ;;  %s5499_s4 = inlined_call_operand.vmem [shape: bf16[9,16,16], index: 4, kind: input, shape index: {}]   ;;  %s5500_s5 = inlined_call_operand.vmem [shape: f32[1,16], index: 5, kind: input, shape index: {}]   ;;  %s5501_s6 = inlined_call_operand.vmem [shape: bf16[16,64], index: 6, kind: input, shape index: {}]   ;;  %s5502_s7 = inlined_call_operand.vmem [shape: f32[1,64], index: 7, kind: input, shape index: {}]   ;;  %s5503_s8 = inlined_call_operand.vmem [shape: bf16[256,64], index: 8, kind: output, shape index: {}]  }
   0x1 LB: > { %s3184_s28 = sadd.s32 4294967295, %s3784_s27   ;;  %p3188_p0 = scmp.ge.s32.totalorder %s3784_s27, 1  ;;  %s3784_s27 = sphi %s3840_s27, %s18_s27  }
   0x2   : > { %p263_p1 = scmp.lt.s32.totalorder %s3784_s27, 3 }
   0x4   : > { %p264_p2 = pnand %p3188_p0, %p263_p1 }
   0x6   : > { %267 = sbr.rel (%p264_p2) target bundleno = 943 (0x3af), region = 52 }
   0xb   : > { %v3851_v0 = vld [vmem:[%s5496_s1 + $0x30] sm:$0xff]  ;;  %v3856_v1 = vld [vmem:[%s5496_s1 + $0x20] sm:$0xff]  ;;  %s3189_s11 = sshll.u32 %s3184_s28, 4  ;;  %v3786_v2 = vmov 1   ;;  %v3724_v3 = vld [vmem:[%s5497_s2 + $0x18] sm:$0xff]   ;;  %vm405_vm0 = vcmask 523264  }
   0xc   : > { %3682 = vset.pattern.permute.xlu1 %v3786_v2  ;;  %3681 = vset.pattern.permute.xlu0 %v3786_v2  ;;  %p298_p3 = scmp.lt.s32.totalorder %s3189_s11, 31  ;;  %v3866_v4 = vld [vmem:[%s5496_s1 + $0x38] sm:$0xff]  ;;  %v3871_v5 = vld [vmem:[%s5496_s1 + $0x28] sm:$0xff]  ;;  %v3725_v6 = vld [vmem:[%s5497_s2 + $0x10] sm:$0xff]   ;;  %v3787_v28 = vmov 0   ;;  %v3788_v30 = vmov 2  }
   0xd   : > { %758 = vperm.xlu1 %3682, %v3851_v0   ;;  %750 = vperm.xlu0 %3681, %v3856_v1   ;;  %v3726_v7 = vld [vmem:[%s5497_s2 + $0x8] sm:$0xff]   ;;  %v3899_v9 = vld [vmem:[%s5496_s1 + $0x40] sm:$0xff]  ;;  %v3910_v12 = vld [vmem:[%s5496_s1 + $0x58] sm:$0xff]  ;;  %v3789_v31 = vmov 3   ;;  %v3790_v33 = vmov 4   ;;  %v5510_v42 = vmov 5  }
   0xe   : > { %3458 = vmatprep.subr.bf16.mxu0 %v3724_v3  ;;  %s5794_s11 = smov (!%p298_p3, %s3189_s11), 31  ;;  %v3894_v8 = vld [vmem:[%s5496_s1 + $0x48] sm:$0xff]  ;;  %5572 = vst [vmem:[#allocation2_spill] sm:$0xff] %v3899_v9  ;;  %v3727_v11 = vld [vmem:[%s5497_s2] sm:$0xff]   ;;  %v3915_v13 = vld [vmem:[%s5496_s1 + $0x50] sm:$0xff]  ;;  %v5508_v59 = vmov 6  }
   0xf   : > { %3459 = vmatpush3.bf16.msra.mxu0 %v3724_v3  ;;  %s3190_s22 = sshll.u32 %s5794_s11, 2  ;;  %v3923_v16 = vld [vmem:[%s5496_s1 + $0x68] sm:$0xff]  ;;  %v3928_v17 = vld [vmem:[%s5496_s1 + $0x60] sm:$0xff]  ;;  %v3938_v18 = vld [vmem:[%s5496_s1 + $0x78] sm:$0xff]  ;;  %vm830_vm3 = vcmask 130048   ;;  %vm3111_vm7 = vcmask 519168  }
  0x10   : > { %3460 = vmatprep.subr.bf16.mxu0 %v3725_v6  ;;  %s3889_s25 = scalar_lea.vmem %s5495_s0, %s3190_s22  ;;  %v3943_v19 = vld [vmem:[%s5496_s1 + $0x70] sm:$0xff]  ;;  %v3953_v22 = vld [vmem:[%s5496_s1 + $0x8] sm:$0xff]  ;;  %v3958_v23 = vld [vmem:[%s5496_s1] sm:$0xff]  ;;  %s5439_s20 = scalar_lea.vmem %s5503_s8, %s3190_s22 }
  0x11   : > { %762 = vperm.xlu1 %3682, %v3866_v4   ;;  %754 = vperm.xlu0 %3681, %v3871_v5   ;;  %v310_v10 = vld [vmem:[%s3889_s25] sm:$0xff]   ;;  %v312_v14 = vld [vmem:[%s3889_s25 + $0x8] sm:$0xff]   ;;  %v314_v15 = vld [vmem:[%s3889_s25 + $0x10] sm:$0xff]  }
  0x12   : > { %3466 = vmatprep.mubr.msk.bf16.mxu0 %vm405_vm0, %v310_v10  ;;  %v316_v20 = vld [vmem:[%s3889_s25 + $0x18] sm:$0xff]   ;;  %v318_v21 = vld [vmem:[%s3889_s25 + $0x20] sm:$0xff]   ;;  %v3971_v25 = vld [vmem:[%s5496_s1 + $0x10] sm:$0xff]  ;;  %v5506_v10 = vmov 8  }
  0x13   : > { %3461 = vmatpush3.bf16.msra.mxu0 %v3725_v6  ;;  %v3966_v24 = vld [vmem:[%s5496_s1 + $0x18] sm:$0xff]  ;;  %v320_v26 = vld [vmem:[%s3889_s25 + $0x28] sm:$0xff]   ;;  %v322_v27 = vld [vmem:[%s3889_s25 + $0x30] sm:$0xff]  }
  0x14   : > { %3462 = vmatprep.subr.bf16.mxu0 %v3726_v7  ;;  %v324_v29 = vld [vmem:[%s3889_s25 + $0x38] sm:$0xff]   ;;  %v3736_v32 = vld [vmem:[%s5499_s4 + $0x8] sm:$0xff]   ;;  %v4047_v38 = vld [vmem:[%s5499_s4 + $0x10] sm:$0xff]  }
  0x15   : > { %770 = vperm.xlu1 %3682, %v3894_v8   ;;  %766 = vperm.xlu0 %3681, %v3899_v9   ;;  %v4052_v39 = vld [vmem:[%s5499_s4] sm:$0xff]  }
  0x16   : > { %3662 = vmatprep.subr.bf16.mxu1 %v3736_v32 }
  0x17   : > { %3463 = vmatpush3.bf16.msra.mxu0 %v3726_v7  ;;  %3663 = vmatpush3.bf16.msra.mxu1 %v3736_v32 }
  0x18   : > { %3464 = vmatprep.subr.bf16.mxu0 %v3727_v11  ;;  %3500 = vmatprep.subr.bf16.mxu1 %v4052_v39 }
  0x19   : > { %778 = vperm.xlu1 %3682, %v3910_v12   ;;  %774 = vperm.xlu0 %3681, %v3915_v13  }
  0x1b   : > { %3465 = vmatpush3.bf16.msra.mxu0 %v3727_v11 }
  0x1c   : > { %3482 = vmatprep.subr.bf16.mxu0 %v3736_v32 }
  0x1d   : > { %786 = vperm.xlu1 %3682, %v3923_v16   ;;  %782 = vperm.xlu0 %3681, %v3928_v17  }
  0x1e   : > { %3467 = vmatmul.mubr.msk.bf16.vlgmr.msra.gmra.mxu0 %vm405_vm0, %v312_v14 }
  0x1f   : > { %3470 = vmatprep.mubr.msk.bf16.mxu0 %vm405_vm0, %v314_v15  ;;  %3483 = vmatpush3.bf16.msra.mxu0 %v3736_v32 }
  0x20   : > { %3518 = vmatprep.subr.bf16.mxu0 %v4047_v38 }
  0x21   : > { %794 = vperm.xlu1 %3682, %v3938_v18   ;;  %790 = vperm.xlu0 %3681, %v3943_v19  }
  0x25   : > { %738 = vperm.xlu1 %3682, %v3953_v22   ;;  %734 = vperm.xlu0 %3681, %v3958_v23  }
  0x26   : > { %3471 = vmatmul.mubr.msk.bf16.gmra.mxu0 %vm405_vm0, %v316_v20 }
  0x27   : > { %3474 = vmatprep.mubr.msk.bf16.mxu0 %vm405_vm0, %v318_v21 }
  0x29   : > { %746 = vperm.xlu1 %3682, %v3966_v24   ;;  %742 = vperm.xlu0 %3681, %v3971_v25  }
  0x2d   : > { %3684 = vset.pattern.permute.xlu1 %v3787_v28  ;;  %3683 = vset.pattern.permute.xlu0 %v3787_v28 }
  0x2e   : > { %601 = vperm.xlu1 %3684, %v3953_v22   ;;  %596 = vperm.xlu0 %3683, %v3958_v23  }
  0x2f   : > { %3475 = vmatmul.mubr.msk.bf16.gmra.mxu0 %vm405_vm0, %v320_v26 }
  0x30   : > { %3478 = vmatprep.mubr.msk.bf16.mxu0 %vm405_vm0, %v322_v27  ;;  %v5504_v27 = vmov 7  }
  0x32   : > { %606 = vperm.xlu1 %3684, %v3971_v25   ;;  %611 = vperm.xlu0 %3683, %v3966_v24  }
  0x36   : > { %3685 = vset.pattern.permute.xlu1 %v3788_v30  ;;  %616 = vperm.xlu0 %3683, %v3856_v1  }
  0x37   : > { %3479 = vmatmul.mubr.msk.bf16.gmra.mxu0 %vm405_vm0, %v324_v29  ;;  %1113 = vperm.xlu1 %3685, %v3958_v23  }
  0x3a   : > { %631 = vperm.xlu0 %3683, %v3866_v4  }
  0x3b   : > { %1121 = vperm.xlu1 %3685, %v3971_v25  }
  0x3e   : > { %636 = vperm.xlu0 %3683, %v3899_v9  }
  0x3f   : > { %1125 = vperm.xlu1 %3685, %v3966_v24  }
  0x42   : > { %651 = vperm.xlu0 %3683, %v3910_v12  }
  0x43   : > { %3686 = vset.pattern.permute.xlu1 %v3787_v28 }
  0x44   : > { %621 = vperm.xlu1 %3686, %v3871_v5  }
  0x46   : > { %656 = vperm.xlu0 %3683, %v3928_v17  }
  0x48   : > { %626 = vperm.xlu1 %3686, %v3851_v0  }
  0x4a   : > { %671 = vperm.xlu0 %3683, %v3938_v18  }
  0x4c   : > { %3687 = vset.pattern.permute.xlu1 %v3788_v30 }
  0x4d   : > { %1129 = vperm.xlu1 %3687, %v3856_v1  }
  0x4e   : > { %3691 = vset.pattern.permute.xlu0 %v3788_v30 }
  0x4f   : > { %1117 = vperm.xlu0 %3691, %v3953_v22  }
  0x51   : > { %1137 = vperm.xlu1 %3687, %v3851_v0  }
  0x53   : > { %1133 = vperm.xlu0 %3691, %v3871_v5  }
  0x55   : > { %1141 = vperm.xlu1 %3687, %v3866_v4  }
  0x57   : > { %1149 = vperm.xlu0 %3691, %v3894_v8  }
  0x59   : > { %3688 = vset.pattern.permute.xlu1 %v3787_v28 }
  0x5a   : > { %641 = vperm.xlu1 %3688, %v3894_v8  }
  0x5b   : > { %1165 = vperm.xlu0 %3691, %v3923_v16  }
  0x5e   : > { %646 = vperm.xlu1 %3688, %v3915_v13  }
  0x5f   : > { %3693 = vset.pattern.permute.xlu0 %v3789_v31 }
  0x60   : > { %1380 = vperm.xlu0 %3693, %v3958_v23  }
  0x62   : > { %3689 = vset.pattern.permute.xlu1 %v3788_v30 }
  0x63   : > { %1145 = vperm.xlu1 %3689, %v3899_v9  }
  0x64   : > { %1392 = vperm.xlu0 %3693, %v3966_v24  }
  0x67   : > { %1153 = vperm.xlu1 %3689, %v3915_v13  }
  0x68   : > { %1396 = vperm.xlu0 %3693, %v3856_v1  }
  0x6b   : > { %1157 = vperm.xlu1 %3689, %v3910_v12  }
  0x6c   : > { %1408 = vperm.xlu0 %3693, %v3866_v4  }
  0x6f   : > { %3690 = vset.pattern.permute.xlu1 %v3787_v28 }
  0x70   : > { %661 = vperm.xlu1 %3690, %v3923_v16   ;;  %1412 = vperm.xlu0 %3693, %v3899_v9  }
  0x74   : > { %666 = vperm.xlu1 %3690, %v3943_v19   ;;  %1424 = vperm.xlu0 %3693, %v3910_v12  }
  0x78   : > { %3692 = vset.pattern.permute.xlu1 %v3788_v30  ;;  %1428 = vperm.xlu0 %3693, %v3928_v17  }
  0x79   : > { %1161 = vperm.xlu1 %3692, %v3928_v17  }
  0x7c   : > { %1440 = vperm.xlu0 %3693, %v3938_v18  }
  0x7d   : > { %1169 = vperm.xlu1 %3692, %v3943_v19  }
  0x80   : > { %3701 = vset.pattern.permute.xlu0 %v3790_v33 }
  0x81   : > { %1173 = vperm.xlu1 %3692, %v3938_v18   ;;  %1618 = vperm.xlu0 %3701, %v3953_v22  }
  0x85   : > { %3694 = vset.pattern.permute.xlu1 %v3789_v31  ;;  %1634 = vperm.xlu0 %3701, %v3871_v5  }
  0x86   : > { %1384 = vperm.xlu1 %3694, %v3953_v22  }
  0x88   : > { %v4031_v34 = vpop.permute.xlu1 %758  ;;  %v4033_v35 = vpop.permute.xlu0 %750 }
  0x89   : > { %1650 = vperm.xlu0 %3701, %v3894_v8  }
  0x8a   : > { %1388 = vperm.xlu1 %3694, %v3971_v25  }
  0x8c   : > { %v4037_v36 = vpop.permute.xlu1 %762  ;;  %v4039_v37 = vpop.permute.xlu0 %754 }
  0x8d   : > { %1666 = vperm.xlu0 %3701, %v3923_v16  }
  0x8e   : > { %3695 = vset.pattern.permute.xlu1 %v3790_v33 }
  0x8f   : > { %1614 = vperm.xlu1 %3695, %v3958_v23  }
  0x90   : > { %v4054_v40 = vpop.permute.xlu1 %770  ;;  %v4056_v41 = vpop.permute.xlu0 %766 }
  0x91   : > { %3703 = vset.pattern.permute.xlu0 %v5510_v42 }
  0x92   : > { %1881 = vperm.xlu0 %3703, %v3958_v23  }
  0x93   : > { %1622 = vperm.xlu1 %3695, %v3971_v25  }
  0x94   : > { %v4063_v43 = vpop.permute.xlu1 %778  ;;  %v4065_v44 = vpop.permute.xlu0 %774 }
  0x96   : > { %1893 = vperm.xlu0 %3703, %v3966_v24  }
  0x97   : > { %1626 = vperm.xlu1 %3695, %v3966_v24  }
  0x98   : > { %v4069_v45 = vpop.permute.xlu1 %786  ;;  %v4071_v46 = vpop.permute.xlu0 %782 }
  0x9a   : > { %1897 = vperm.xlu0 %3703, %v3856_v1  }
  0x9b   : > { %3696 = vset.pattern.permute.xlu1 %v3789_v31 }
  0x9c   : > { %v4075_v47 = vpop.permute.xlu1 %794  ;;  %1400 = vperm.xlu1 %3696, %v3871_v5   ;;  %v4078_v48 = vpop.permute.xlu0 %790 }
  0x9e   : > { %1909 = vperm.xlu0 %3703, %v3866_v4  }
  0xa0   : > { %v4081_v49 = vpop.permute.xlu1 %738  ;;  %1404 = vperm.xlu1 %3696, %v3851_v0   ;;  %v4084_v50 = vpop.permute.xlu0 %734 }
  0xa2   : > { %1913 = vperm.xlu0 %3703, %v3899_v9  }
  0xa4   : > { %v4087_v51 = vpop.permute.xlu1 %746  ;;  %3697 = vset.pattern.permute.xlu1 %v3790_v33  ;;  %v4090_v52 = vpop.permute.xlu0 %742 }
  0xa5   : > { %1630 = vperm.xlu1 %3697, %v3856_v1  }
  0xa6   : > { %1925 = vperm.xlu0 %3703, %v3910_v12  }
  0xa9   : > { %v4094_v53 = vpop.permute.xlu1 %601  ;;  %1638 = vperm.xlu1 %3697, %v3851_v0   ;;  %v4097_v54 = vpop.permute.xlu0 %596 }
  0xaa   : > { %1929 = vperm.xlu0 %3703, %v3928_v17  }
  0xad   : > { %v4100_v55 = vpop.permute.xlu1 %606  ;;  %1642 = vperm.xlu1 %3697, %v3866_v4   ;;  %v4103_v56 = vpop.permute.xlu0 %611 }
  0xae   : > { %1941 = vperm.xlu0 %3703, %v3938_v18  }
  0xb1   : > { %3698 = vset.pattern.permute.xlu1 %v3789_v31  ;;  %v4107_v57 = vpop.permute.xlu0 %616 }
  0xb2   : > { %1416 = vperm.xlu1 %3698, %v3894_v8   ;;  %v4110_v58 = vpop.permute.xlu1 %1113  ;;  %3711 = vset.pattern.permute.xlu0 %v5508_v59  ;;  %v4185_v59 = vld [vmem:[%s5498_s3] ss:$0 sm:$0xff] }
  0xb3   : > { %2119 = vperm.xlu0 %3711, %v3953_v22  }
  0xb5   : > { %v4114_v60 = vpop.permute.xlu0 %631 }
  0xb6   : > { %5573 = vst [vmem:[#allocation3_spill] sm:$0xff] %v4114_v60  ;;  %1420 = vperm.xlu1 %3698, %v3915_v13   ;;  %v4117_v61 = vpop.permute.xlu1 %1121 }
  0xb7   : > { %2135 = vperm.xlu0 %3711, %v3871_v5  }
  0xb9   : > { %v4120_v62 = vpop.permute.xlu0 %636 }
  0xba   : > { %5574 = vst [vmem:[#allocation4_spill] sm:$0xff] %v4120_v62  ;;  %3699 = vset.pattern.permute.xlu1 %v3790_v33  ;;  %v4123_v63 = vpop.permute.xlu1 %1125 }
  0xbb   : > { %1646 = vperm.xlu1 %3699, %v3899_v9   ;;  %2151 = vperm.xlu0 %3711, %v3894_v8  }
  0xbd   : > { %v4127_v2 = vpop.permute.xlu0 %651 }
  0xbe   : > { %5575 = vst [vmem:[#allocation5_spill] sm:$0xff] %v4127_v2  ;;  %v5591_v2 = vmov 6  }
  0xbf   : > { %1654 = vperm.xlu1 %3699, %v3915_v13   ;;  %v4130_v3 = vpop.permute.xlu1 %621  ;;  %2167 = vperm.xlu0 %3711, %v3923_v16  }
  0xc0   : > { %5576 = vst [vmem:[#allocation6_spill] sm:$0xff] %v4130_v3 }
  0xc1   : > { %v4133_v6 = vpop.permute.xlu0 %656 }
  0xc2   : > { %5577 = vst [vmem:[#allocation7_spill] sm:$0xff] %v4133_v6 }
  0xc3   : > { %1658 = vperm.xlu1 %3699, %v3910_v12   ;;  %v4136_v7 = vpop.permute.xlu1 %626  ;;  %3715 = vset.pattern.permute.xlu0 %v5506_v10 }
  0xc4   : > { %5578 = vst [vmem:[#allocation8_spill] sm:$0xff] %v4136_v7  ;;  %2587 = vperm.xlu0 %3715, %v3953_v22  }
  0xc5   : > { %v4140_v11 = vpop.permute.xlu0 %671 }
  0xc6   : > { %5579 = vst [vmem:[#allocation9_spill] sm:$0xff] %v4140_v11 }
  0xc7   : > { %3700 = vset.pattern.permute.xlu1 %v3789_v31 }
  0xc8   : > { %1432 = vperm.xlu1 %3700, %v3923_v16   ;;  %v4144_v14 = vpop.permute.xlu1 %1129  ;;  %2603 = vperm.xlu0 %3715, %v3871_v5  }
  0xca   : > { %v4147_v15 = vpop.permute.xlu0 %1117 }
  0xcc   : > { %1436 = vperm.xlu1 %3700, %v3943_v19   ;;  %v4150_v20 = vpop.permute.xlu1 %1137  ;;  %2619 = vperm.xlu0 %3715, %v3894_v8  }
  0xcd   : > { %5580 = vst [vmem:[#allocation10_spill] sm:$0xff] %v4150_v20 }
  0xce   : > { %v4153_v21 = vpop.permute.xlu0 %1133 }
  0xd0   : > { %3702 = vset.pattern.permute.xlu1 %v3790_v33  ;;  %v4156_v26 = vpop.permute.xlu1 %1141  ;;  %3720 = vset.pattern.permute.xlu0 %v5504_v27 }
  0xd1   : > { %5581 = vst [vmem:[#allocation11_spill] sm:$0xff] %v4156_v26  ;;  %1662 = vperm.xlu1 %3702, %v3928_v17   ;;  %2349 = vperm.xlu0 %3720, %v3958_v23  }
  0xd2   : > { %v4161_v28 = vpop.permute.xlu0 %1149 }
  0xd3   : > { %5582 = vst [vmem:[#allocation12_spill] sm:$0xff] %v4161_v28 }
  0xd5   : > { %1670 = vperm.xlu1 %3702, %v3943_v19   ;;  %v4164_v29 = vpop.permute.xlu1 %641  ;;  %2361 = vperm.xlu0 %3720, %v3966_v24  }
  0xd6   : > { %5583 = vst [vmem:[#allocation13_spill] sm:$0xff] %v4164_v29  ;;  %v4167_v30 = vpop.permute.xlu0 %1165 }
  0xd7   : > { %5584 = vst [vmem:[#allocation14_spill] sm:$0xff] %v4167_v30 }
  0xd9   : > { %1674 = vperm.xlu1 %3702, %v3938_v18   ;;  %v4170_v31 = vpop.permute.xlu1 %646  ;;  %2365 = vperm.xlu0 %3720, %v3856_v1  }
  0xda   : > { %5585 = vst [vmem:[#allocation15_spill] sm:$0xff] %v4170_v31 }
  0xdb   : > { %v4173_v32 = vpop.permute.xlu0 %1380 }
  0xdc   : > { %5586 = vst [vmem:[#allocation16_spill] sm:$0xff] %v4173_v32 }
  0xdd   : > { %3704 = vset.pattern.permute.xlu1 %v5510_v42  ;;  %2377 = vperm.xlu0 %3720, %v3866_v4  }
  0xde   : > { %1885 = vperm.xlu1 %3704, %v3953_v22   ;;  %v4178_v19 = vpop.permute.xlu1 %1145  ;;  %v3468_v33 = vpop.f32.mrf.mxu0 }
  0xdf   : > { %5587 = vst [vmem:[#allocation17_spill] sm:$0xff] %v4178_v19  ;;  %v4180_v27 = vpop.permute.xlu0 %1392 }
  0xe0   : > { %5588 = vst [vmem:[#allocation18_spill] sm:$0xff] %v4180_v27  ;;  %v464_v10 = vpop.f32.mrf.mxu0  ;;  %v559_v27 = vlaneseq }
  0xe1   : > { %2381 = vperm.xlu0 %3720, %v3899_v9  }
  0xe2   : > { %1889 = vperm.xlu1 %3704, %v3971_v25   ;;  %v4189_v42 = vpop.permute.xlu1 %1153  ;;  %v3469_v32 = vpop.f32.mrf.mxu0 }
  0xe3   : > { %5589 = vst [vmem:[#allocation19_spill] sm:$0xff] %v4189_v42  ;;  %v4191_v11 = vpop.permute.xlu0 %1396  ;;  %v476_v22 = vadd.f32 %v3469_v32, %v4185_v59 }
  0xe4   : > { %5590 = vst [vmem:[#allocation20_spill] sm:$0xff] %v4191_v11  ;;  %v467_v6 = vpop.f32.mrf.mxu0 }
  0xe5   : > { %2393 = vperm.xlu0 %3720, %v3910_v12   ;;  %v4201_v62 = vmax.f32 %v476_v22, 0.0  ;;  %v4206_v12 = vshrl.u32 %v559_v27, 7 }
  0xe6   : > { %3705 = vset.pattern.permute.xlu1 %v5591_v2  ;;  %v4196_v31 = vpop.permute.xlu1 %1157  ;;  %v3472_v30 = vpop.f32.mrf.mxu0 }
  0xe7   : > { %5592 = vst [vmem:[#allocation21_spill] sm:$0xff] %v4196_v31  ;;  %2115 = vperm.xlu1 %3705, %v3958_v23   ;;  %v4199_v29 = vpop.permute.xlu0 %1408  ;;  %v489_v42 = vadd.f32 %v3472_v30, %v4185_v59  ;;  %v473_v30 = vadd.f32 %v3468_v33, %v4185_v59  ;;  %vm716_vm1 = vcmp.lt.s32.totalorder %v4206_v12, 4  ;;  %vm1362_vm2 = vcmp.lt.s32.totalorder %v4206_v12, 1 }
  0xe8   : > { %v480_v60 = vpop.f32.mrf.mxu0  ;;  %vm1863_vm4 = vcmp.lt.s32.totalorder %v4206_v12, 7  ;;  %vm1095_vm5 = vcmp.lt.s32.totalorder %v4206_v12, 3  ;;  %vm561_vm6 = vcmp.lt.s32.totalorder %v4206_v12, 5 }
  0xe9   : > { %v481_v32 = vadd.f32 %v4185_v59, %v480_v60  ;;  %2397 = vperm.xlu0 %3720, %v3928_v17   ;;  %v4208_v7 = vmax.f32 %v489_v42, 0.0  ;;  %v4243_v42 = vmax.f32 %v473_v30, 0.0  ;;  %v5603_v30 = vmov 8  }
  0xea   : > { %v3473_v19 = vpop.f32.mrf.mxu0 }
  0xeb   : > { %5593 = vst [vmem:[#allocation22_spill] sm:$0xff] %v4208_v7  ;;  %v4210_v31 = vmax.f32 %v481_v32, 0.0  ;;  %v492_v23 = vadd.f32 %v3473_v19, %v4185_v59  ;;  %2123 = vperm.xlu1 %3705, %v3971_v25   ;;  %v4214_v22 = vpop.permute.xlu1 %661  ;;  %v4216_v26 = vpop.permute.xlu0 %1412  ;;  %v465_v25 = vadd.f32 %v4185_v59, %v464_v10  ;;  %v706_v33 = vrot.slane %v4208_v7, 4 }
  0xec   : > { %5594 = vst [vmem:[#allocation23_spill] sm:$0xff] %v4214_v22  ;;  %5595 = vst [vmem:[#allocation24_spill] sm:$0xff] %v4216_v26  ;;  %v483_v60 = vpop.f32.mrf.mxu0  ;;  %v468_v22 = vadd.f32 %v4185_v59, %v467_v6 }
  0xed   : > { %v4220_v27 = vmax.f32 %v492_v23, 0.0  ;;  %v484_v32 = vadd.f32 %v4185_v59, %v483_v60  ;;  %2409 = vperm.xlu0 %3720, %v3938_v18   ;;  %v704_v19 = vrot.slane %v4210_v31, 4  ;;  %v5598_v18 = vrot.slane %v4201_v62, 4 }
  0xef   : > { %5596 = vst [vmem:[#allocation25_spill] sm:$0xff] %v4220_v27  ;;  %v4231_v23 = vmax.f32 %v484_v32, 0.0  ;;  %v3476_v26 = vpop.f32.mrf.mxu0  ;;  %2127 = vperm.xlu1 %3705, %v3966_v24   ;;  %v4234_v60 = vpop.permute.xlu1 %666  ;;  %v4240_v10 = vsel %vm716_vm1, %v5598_v18, %v704_v19  ;;  %v707_v6 = vrot.slane %v4220_v27, 4  ;;  %v5601_v24 = vrot.slane %v4220_v27, 7 }
  0xf0   : > { %5597 = vst [vmem:[#allocation26_spill] sm:$0xff] %v4234_v60  ;;  %5599 = vst [vmem:[#allocation27_spill] sm:$0xff] %v4240_v10  ;;  %v505_v32 = vadd.f32 %v3476_v26, %v4185_v59  ;;  %v4247_v17 = vpop.permute.xlu0 %1424  ;;  %v5602_v60 = vrot.slane %v4208_v7, 7  ;;  %v801_v20 = vmul.f32 %v4033_v35, %v4240_v10  ;;  %v5605_v27 = vmov 5  }
  0xf1   : > { %5600 = vst [vmem:[#allocation28_spill] sm:$0xff] %v4247_v17  ;;  %v496_v18 = vpop.f32.mrf.mxu0  ;;  %v705_v28 = vrot.slane %v4231_v23, 4  ;;  %3723 = vset.pattern.permute.xlu0 %v5603_v30  ;;  %v4266_v9 = vsel %vm716_vm1, %v706_v33, %v707_v6  ;;  %v702_v7 = vrot.slane %v4243_v42, 4 }
  0xf2   : > { %v4255_v11 = vsel %vm1362_vm2, %v5602_v60, %v5601_v24  ;;  %v497_v17 = vadd.f32 %v4185_v59, %v496_v18  ;;  %5604 = vst [vmem:[#allocation29_spill] sm:$0xff] %v4266_v9  ;;  %2635 = vperm.xlu0 %3723, %v3923_v16   ;;  %v4269_v60 = vmax.f32 %v465_v25, 0.0  ;;  %v4271_v24 = vmax.f32 %v468_v22, 0.0 }
  0xf3   : > { %v3477_v30 = vpop.f32.mrf.mxu0  ;;  %3706 = vset.pattern.permute.xlu1 %v5605_v27  ;;  %v4276_v26 = vsel %vm716_vm1, %v704_v19, %v705_v28  ;;  %v4280_v35 = vsel %vm716_vm1, %v705_v28, %v706_v33  ;;  %v4282_v18 = vmax.f32 %v505_v32, 0.0 }
  0xf4   : > { %5606 = vst [vmem:[#allocation30_spill] sm:$0xff] %v4276_v26  ;;  %5607 = vst [vmem:[#allocation31_spill] sm:$0xff] %v4280_v35  ;;  %v4284_v10 = vmax.f32 %v497_v17, 0.0  ;;  %v508_v16 = vadd.f32 %v3477_v30, %v4185_v59  ;;  %1901 = vperm.xlu1 %3706, %v3871_v5   ;;  %v4288_v22 = vpop.permute.xlu1 %1161  ;;  %v4290_v25 = vpop.permute.xlu0 %1428  ;;  %v802_v19 = vmul.f32 %v4039_v37, %v4276_v26 }
  0xf5   : > { %5608 = vst [vmem:[#allocation32_spill] sm:$0xff] %v4282_v18  ;;  %5609 = vst [vmem:[#allocation33_spill] sm:$0xff] %v4288_v22  ;;  %v499_v3 = vpop.f32.mrf.mxu0  ;;  %v803_v28 = vmul.f32 %v4031_v34, %v4280_v35  ;;  %v804_v17 = vmul.f32 %v4037_v36, %v4266_v9  ;;  %v701_v34 = vrot.slane %v4271_v24, 4  ;;  %v4311_v36 = vld [vmem:[%s5499_s4 + $0x18] sm:$0xff]   ;;  %v5617_v9 = vrot.slane %v4269_v60, 1 }
  0xf6   : > { %5610 = vst [vmem:[#allocation34_spill] sm:$0xff] %v4290_v25  ;;  %v4300_v32 = vmax.f32 %v508_v16, 0.0  ;;  %v500_v5 = vadd.f32 %v4185_v59, %v499_v3  ;;  %v815_v30 = vpack.c.bf16 %v802_v19, %v801_v20  ;;  %v708_v37 = vrot.slane %v4284_v10, 4  ;;  %5612 = vst [vmem:[#allocation36_spill] sm:$0xff] %v4311_v36 }
  0xf7   : > { %v3480_v26 = vpop.f32.mrf.mxu0  ;;  %v816_v25 = vpack.c.bf16 %v804_v17, %v803_v28  ;;  %v710_v28 = vrot.slane %v4282_v18, 4  ;;  %v700_v17 = vrot.slane %v4269_v60, 4 }
  0xf8   : > { %5611 = vst [vmem:[#allocation35_spill] sm:$0xff] %v4300_v32  ;;  %v4314_v20 = vmax.f32 %v500_v5, 0.0  ;;  %1905 = vperm.xlu1 %3706, %v3851_v0   ;;  %v4317_v16 = vpop.permute.xlu1 %1169  ;;  %3488 = vmatprep.mubr.msk.bf16.mxu1 %vm830_vm3, %v815_v30  ;;  %v4320_v19 = vpop.permute.xlu0 %1440  ;;  %v521_v33 = vadd.f32 %v3480_v26, %v4185_v59  ;;  %v4328_v5 = vsel %vm716_vm1, %v707_v6, %v708_v37  ;;  %v711_v3 = vrot.slane %v4300_v32, 4 }
  0xf9   : > { %5613 = vst [vmem:[#allocation37_spill] sm:$0xff] %v4317_v16  ;;  %5614 = vst [vmem:[#allocation38_spill] sm:$0xff] %v4320_v19  ;;  %v512_v35 = vpop.f32.mrf.mxu0  ;;  %3489 = vmatmul.mubr.msk.bf16.vlgmr.msra.gmra.mxu1 %vm830_vm3, %v816_v25  ;;  %v5616_v30 = vrot.slane %v4271_v24, 1  ;;  %v1079_v16 = vrot.slane %v4269_v60, 5  ;;  %v5619_v32 = vrot.slane %v4201_v62, 4 }
  0xfa   : > { %5615 = vst [vmem:[#allocation39_spill] sm:$0xff] %v4328_v5  ;;  %v513_v26 = vadd.f32 %v4185_v59, %v512_v35  ;;  %v709_v25 = vrot.slane %v4314_v20, 4  ;;  %3501 = vmatpush3.bf16.msra.mxu1 %v4052_v39  ;;  %v4354_v35 = vsel %vm716_vm1, %v701_v34, %v702_v7 }
  0xfb   : > { %v4338_v19 = vsel %vm1863_vm4, %v5617_v9, %v5616_v30  ;;  %v4350_v18 = vsel %vm716_vm1, %v702_v7, %v5619_v32  ;;  %v3481_v9 = vpop.f32.mrf.mxu0  ;;  %5621 = vst [vmem:[#allocation42_spill] sm:$0xff] %v4354_v35  ;;  %3536 = vmatprep.subr.bf16.mxu1 %v4311_v36  ;;  %v805_v32 = vmul.f32 %v4056_v41, %v4328_v5  ;;  %v4374_v30 = vmax.f32 %v521_v33, 0.0 }
  0xfc   : > { %5618 = vst [vmem:[#allocation40_spill] sm:$0xff] %v4338_v19  ;;  %5620 = vst [vmem:[#allocation41_spill] sm:$0xff] %v4350_v18  ;;  %v524_v6 = vadd.f32 %v3481_v9, %v4185_v59  ;;  %3707 = vset.pattern.permute.xlu1 %v5591_v2  ;;  %v4360_v39 = vpop.permute.xlu1 %1173  ;;  %v4362_v22 = vpop.permute.xlu0 %1618  ;;  %v4368_v19 = vsel %vm716_vm1, %v710_v28, %v711_v3  ;;  %v4372_v7 = vsel %vm716_vm1, %v700_v17, %v701_v34 }
  0xfd   : > { %5622 = vst [vmem:[#allocation43_spill] sm:$0xff] %v4360_v39  ;;  %5623 = vst [vmem:[#allocation44_spill] sm:$0xff] %v4362_v22  ;;  %v4376_v9 = vmax.f32 %v513_v26, 0.0  ;;  %v515_v36 = vpop.f32.mrf.mxu0  ;;  %2131 = vperm.xlu1 %3707, %v3856_v1   ;;  %v4381_v39 = vsel %vm716_vm1, %v708_v37, %v709_v25  ;;  %v4385_v41 = vsel %vm716_vm1, %v709_v25, %v710_v28  ;;  %v5628_v28 = vrot.slane %v4271_v24, 5 }
  0xfe   : > { %5624 = vst [vmem:[#allocation45_spill] sm:$0xff] %v4368_v19  ;;  %5625 = vst [vmem:[#allocation46_spill] sm:$0xff] %v4372_v7  ;;  %v4387_v5 = vmax.f32 %v524_v6, 0.0  ;;  %v516_v34 = vadd.f32 %v4185_v59, %v515_v36  ;;  %v806_v33 = vmul.f32 %v4054_v40, %v4381_v39  ;;  %v807_v26 = vmul.f32 %v4065_v44, %v4385_v41 }
  0xff   : > { %5626 = vst [vmem:[#allocation47_spill] sm:$0xff] %v4381_v39  ;;  %5627 = vst [vmem:[#allocation48_spill] sm:$0xff] %v4385_v41  ;;  %v808_v1 = vmul.f32 %v4063_v43, %v4368_v19  ;;  %v799_v37 = vmul.f32 %v4090_v52, %v4354_v35  ;;  %v712_v22 = vrot.slane %v4376_v9, 4  ;;  %v4403_v25 = vsel %vm1095_vm5, %v1079_v16, %v5628_v28  ;;  %v5674_v35 = vld [vmem:[#allocation3_spill] sm:$0xff] }
 0x100   : > { %5629 = vst [vmem:[#allocation49_spill] sm:$0xff] %v4403_v25  ;;  %v5529_v59 = vrot.slane %v4387_v5, 5  ;;  %v4406_v40 = vmax.f32 %v516_v34, 0.0  ;;  %v817_v36 = vpack.c.bf16 %v806_v33, %v805_v32  ;;  %v4408_v44 = vpop.permute.xlu0 %1634  ;;  %v544_v43 = vrot.slane %v4271_v24, 3 }
 0x101   : > { %v800_v52 = vmul.f32 %v4087_v51, %v4350_v18  ;;  %2139 = vperm.xlu1 %3707, %v3851_v0   ;;  %v4414_v6 = vpop.permute.xlu1 %1384  ;;  %v818_v19 = vpack.c.bf16 %v808_v1, %v807_v26  ;;  %v715_v28 = vrot.slane %v4387_v5, 4  ;;  %v714_v41 = vrot.slane %v4374_v30, 4 }
 0x102   : > { %v1082_v34 = vrot.slane %v4201_v62, 5  ;;  %3492 = vmatprep.mubr.msk.bf16.mxu1 %vm830_vm3, %v817_v36  ;;  %v4423_v33 = vsel %vm716_vm1, %v711_v3, %v712_v22  ;;  %v798_v26 = vmul.f32 %v4081_v49, %v4372_v7  ;;  %v1177_v32 = vmul.f32 %v4147_v15, %v4403_v25  ;;  %v5660_v25 = vld [vmem:[#allocation2_spill] sm:$0xff] }
 0x103   : > { %5630 = vst [vmem:[#allocation50_spill] sm:$0xff] %v4423_v33  ;;  %3493 = vmatmul.mubr.msk.bf16.gmra.mxu1 %vm830_vm3, %v818_v19  ;;  %v4429_v0 = vsel %vm716_vm1, %v715_v28, %v700_v17  ;;  %v814_v1 = vpack.c.bf16 %v800_v52, %v799_v37  ;;  %v713_v51 = vrot.slane %v4406_v40, 4  ;;  %v4444_v19 = vsel %vm1095_vm5, %v5529_v59, %v1079_v16 }
 0x104   : > { %5631 = vst [vmem:[#allocation51_spill] sm:$0xff] %v4429_v0  ;;  %v797_v36 = vmul.f32 %v4084_v50, %v4429_v0  ;;  %v4437_v3 = vpop.permute.xlu0 %1650  ;;  %5632 = vst [vmem:[#allocation52_spill] sm:$0xff] %v4444_v19  ;;  %v5633_v17 = vrot.slane %v4243_v42, 3  ;;  %v809_v50 = vmul.f32 %v4071_v46, %v4423_v33  ;;  %v1176_v37 = vmul.f32 %v4110_v58, %v4444_v19  ;;  %v5654_v0 = vld [vmem:[#allocation22_spill] sm:$0xff]  ;;  %v5655_v33 = vld [vmem:[#allocation25_spill] sm:$0xff] }
 0x105   : > { %2143 = vperm.xlu1 %3707, %v3866_v4   ;;  %v4453_v15 = vpop.permute.xlu1 %1388  ;;  %v4461_v16 = vsel %vm716_vm1, %v714_v41, %v715_v28  ;;  %v4470_v4 = vsel %vm716_vm1, %v713_v51, %v714_v41  ;;  %v1083_v46 = vrot.slane %v4210_v31, 5  ;;  %v5641_v19 = vrot.slane %v4271_v24, 5 }
 0x106   : > { %v4450_v49 = vsel %vm561_vm6, %v544_v43, %v5633_v17  ;;  %5634 = vst [vmem:[#allocation53_spill] sm:$0xff] %v4461_v16  ;;  %v813_v59 = vpack.c.bf16 %v798_v26, %v797_v36  ;;  %v4466_v17 = vsel %vm716_vm1, %v712_v22, %v713_v51  ;;  %5636 = vst [vmem:[#allocation55_spill] sm:$0xff] %v4470_v4  ;;  %v5637_v26 = vrot.slane %v4269_v60, 3 }
 0x107   : > { %5635 = vst [vmem:[#allocation54_spill] sm:$0xff] %v4466_v17  ;;  %v810_v58 = vmul.f32 %v4069_v45, %v4466_v17  ;;  %v811_v28 = vmul.f32 %v4078_v48, %v4470_v4  ;;  %v812_v52 = vmul.f32 %v4075_v47, %v4461_v16  ;;  %v1192_v41 = vpack.c.bf16 %v1177_v32, %v1176_v37  ;;  %v5653_v16 = vld [vmem:[#allocation6_spill] sm:$0xff] }
 0x108   : > { %v4483_v22 = vsel %vm561_vm6, %v5637_v26, %v544_v43  ;;  %3484 = vmatprep.mubr.msk.bf16.mxu0 %vm830_vm3, %v813_v59  ;;  %v5531_v51 = vrot.slane %v4387_v5, 3  ;;  %v4487_v36 = vpop.permute.xlu0 %1666  ;;  %v5638_v45 = vrot.slane %v4243_v42, 5  ;;  %v4506_v59 = vld [vmem:[%s5499_s4 + $0x20] sm:$0xff]   ;;  %v5643_v26 = vrot.slane %v4231_v23, 5 }
 0x109   : > { %3485 = vmatmul.mubr.msk.bf16.vlgmr.msra.gmra.mxu0 %vm830_vm3, %v814_v1  ;;  %v819_v32 = vpack.c.bf16 %v810_v58, %v809_v50  ;;  %3708 = vset.pattern.permute.xlu1 %v5605_v27  ;;  %v820_v37 = vpack.c.bf16 %v812_v52, %v811_v28  ;;  %v5645_v1 = vrot.slane %v4269_v60, 3  ;;  %v675_v52 = vmul.f32 %v4094_v53, %v4483_v22 }
 0x10a   : > { %v4493_v48 = vsel %vm1095_vm5, %v5638_v45, %v1082_v34  ;;  %v5640_v47 = vmov %v5638_v45  ;;  %v4514_v45 = vsel %vm1095_vm5, %v1083_v46, %v5643_v26  ;;  %3520 = vmatprep.mubr.msk.bf16.mxu0 %vm830_vm3, %v1192_v41  ;;  %1917 = vperm.xlu1 %3708, %v3894_v8   ;;  %v4533_v58 = vsel %vm1095_vm5, %v1082_v34, %v1083_v46 }
 0x10b   : > { %5639 = vst [vmem:[#allocation56_spill] sm:$0xff] %v4493_v48  ;;  %v4501_v43 = vsel %vm1095_vm5, %v5641_v19, %v5640_v47  ;;  %5644 = vst [vmem:[#allocation58_spill] sm:$0xff] %v4514_v45  ;;  %v547_v19 = vrot.slane %v4210_v31, 3  ;;  %v4519_v47 = vpop.permute.xlu1 %1614  ;;  %v4527_v50 = vsel %vm561_vm6, %v5531_v51, %v5645_v1  ;;  %v548_v28 = vrot.slane %v4231_v23, 3  ;;  %3496 = vmatprep.mubr.msk.bf16.mxu1 %vm830_vm3, %v819_v32 }
 0x10c   : > { %5642 = vst [vmem:[#allocation57_spill] sm:$0xff] %v4501_v43  ;;  %5646 = vst [vmem:[#allocation59_spill] sm:$0xff] %v4527_v50  ;;  %v674_v8 = vmul.f32 %v4097_v54, %v4527_v50  ;;  %3519 = vmatpush3.bf16.msra.mxu0 %v4047_v38  ;;  %v1178_v41 = vmul.f32 %v4117_v61, %v4501_v43  ;;  %v5648_v26 = vrot.slane %v4201_v62, 3  ;;  %v5649_v53 = vrot.slane %v4243_v42, 3 }
 0x10d   : > { %5647 = vst [vmem:[#allocation60_spill] sm:$0xff] %v4533_v58  ;;  %v1851_v46 = vrot.slane %v4210_v31, 1  ;;  %3497 = vmatmul.mubr.msk.bf16.gmra.mxu1 %vm830_vm3, %v820_v37  ;;  %v1181_v54 = vmul.f32 %v4153_v21, %v4514_v45  ;;  %v4556_v38 = vsel %vm561_vm6, %v547_v19, %v548_v28  ;;  %v1350_v1 = vrot.slane %v4210_v31, 7  ;;  %3554 = vmatprep.subr.bf16.mxu0 %v4506_v59 }
 0x10e   : > { %v4548_v34 = vsel %vm561_vm6, %v5649_v53, %v5648_v26  ;;  %5650 = vst [vmem:[#allocation61_spill] sm:$0xff] %v4556_v38  ;;  %v5651_v61 = vmov %v5648_v26  ;;  %v4568_v37 = vmul.f32 %v4199_v29, %v4255_v11  ;;  %v690_v26 = vpack.c.bf16 %v675_v52, %v674_v8  ;;  %v4572_v53 = vpop.permute.xlu0 %1881  ;;  %1921 = vperm.xlu1 %3708, %v3915_v13  }
 0x10f   : > { %v4562_v32 = vsel %vm561_vm6, %v5651_v61, %v547_v19  ;;  %v1179_v21 = vmul.f32 %v4123_v63, %v4493_v48  ;;  %v1180_v51 = vmul.f32 %v4144_v14, %v4533_v58  ;;  %v4577_v19 = vpop.permute.xlu1 %1622  ;;  %v676_v61 = vmul.f32 %v4100_v55, %v4450_v49 }
 0x110   : > { %v677_v11 = vmul.f32 %v4103_v56, %v4548_v34  ;;  %v5652_v29 = vrot.slane %v4201_v62, 1  ;;  %v1351_v52 = vrot.slane %v4231_v23, 7  ;;  %3502 = vmatprep.mubr.msk.bf16.mxu1 %vm830_vm3, %v690_v26  ;;  %v678_v8 = vmul.f32 %v4107_v57, %v4562_v32 }
 0x111   : > { %v1193_v14 = vpack.c.bf16 %v1179_v21, %v1178_v41  ;;  %v679_v55 = vmul.f32 %v5653_v16, %v4556_v38  ;;  %v1085_v4 = vrot.slane %v5654_v0, 5  ;;  %v1194_v56 = vpack.c.bf16 %v1181_v54, %v1180_v51 }
 0x112   : > { %v4587_v63 = vsel %vm1863_vm4, %v5652_v29, %v1851_v46  ;;  %v1373_v17 = vsel %vm1362_vm2, %v1350_v1, %v1351_v52  ;;  %v1086_v29 = vrot.slane %v5655_v33, 5  ;;  %v4601_v26 = vpop.permute.xlu0 %1893  ;;  %v5656_v41 = vrot.slane %v4231_v23, 5  ;;  %3709 = vset.pattern.permute.xlu1 %v5591_v2 }
 0x113   : > { %3521 = vmatmul.mubr.msk.bf16.vlgmr.msra.gmra.mxu0 %vm830_vm3, %v1193_v14  ;;  %v1087_v16 = vrot.slane %v4284_v10, 5  ;;  %v1088_v51 = vrot.slane %v4314_v20, 5  ;;  %v549_v54 = vrot.slane %v5654_v0, 3  ;;  %v691_v21 = vpack.c.bf16 %v677_v11, %v676_v61  ;;  %v4614_v14 = vpop.permute.xlu1 %1626  ;;  %2147 = vperm.xlu1 %3709, %v5660_v25   ;;  %v5661_v61 = vld [vmem:[#allocation10_spill] sm:$0xff] }
 0x114   : > { %v4607_v57 = vsel %vm1095_vm5, %v5656_v41, %v1085_v4  ;;  %3524 = vmatprep.mubr.msk.bf16.mxu0 %vm830_vm3, %v1194_v56  ;;  %v5658_v39 = vrot.slane %v4201_v62, 7  ;;  %v4622_v41 = vsel %vm1095_vm5, %v1085_v4, %v1086_v29  ;;  %v550_v58 = vrot.slane %v5655_v33, 3  ;;  %v4641_v4 = vld [vmem:[%s5499_s4 + $0x28] sm:$0xff]   ;;  %3555 = vmatpush3.bf16.msra.mxu0 %v4506_v59 }
 0x115   : > { %5657 = vst [vmem:[#allocation6_spill] sm:$0xff] %v4607_v57  ;;  %5659 = vst [vmem:[#allocation22_spill] sm:$0xff] %v4622_v41  ;;  %v692_v48 = vpack.c.bf16 %v679_v55, %v678_v8  ;;  %v1182_v11 = vmul.f32 %v5661_v61, %v4607_v57  ;;  %v5662_v56 = vrot.slane %v4231_v23, 1  ;;  %3503 = vmatmul.mubr.msk.bf16.vlgmr.msra.gmra.mxu1 %vm830_vm3, %v691_v21  ;;  %v4661_v61 = vld [vmem:[%s5499_s4 + $0x30] sm:$0xff]   ;;  %v551_v21 = vrot.slane %v4284_v10, 3 }
 0x116   : > { %v1374_v45 = vsel %vm1362_vm2, %v5658_v39, %v1350_v1  ;;  %v4636_v39 = vsel %vm1095_vm5, %v1087_v16, %v1088_v51  ;;  %v4646_v25 = vsel %vm1095_vm5, %v1086_v29, %v1087_v16  ;;  %v5666_v1 = vld [vmem:[#allocation12_spill] sm:$0xff]  ;;  %v4656_v55 = vsel %vm561_vm6, %v548_v28, %v549_v54  ;;  %v5672_v28 = vld [vmem:[#allocation17_spill] sm:$0xff]  ;;  %3590 = vmatprep.subr.bf16.mxu0 %v4661_v61 }
 0x117   : > { %v4632_v43 = vsel %vm1863_vm4, %v1851_v46, %v5662_v56  ;;  %5664 = vst [vmem:[#allocation2_spill] sm:$0xff] %v4636_v39  ;;  %5665 = vst [vmem:[#allocation10_spill] sm:$0xff] %v4646_v25  ;;  %v1185_v8 = vmul.f32 %v5666_v1, %v4636_v39  ;;  %v4652_v46 = vsel %vm561_vm6, %v549_v54, %v550_v58  ;;  %3506 = vmatprep.mubr.msk.bf16.mxu1 %vm830_vm3, %v692_v48  ;;  %v5669_v29 = vld [vmem:[#allocation20_spill] sm:$0xff]  ;;  %v5670_v56 = vld [vmem:[#allocation11_spill] sm:$0xff]  ;;  %v4670_v39 = vpop.permute.xlu0 %1897 }
 0x118   : > { %5663 = vst [vmem:[#allocation25_spill] sm:$0xff] %v4632_v43  ;;  %5667 = vst [vmem:[#allocation12_spill] sm:$0xff] %v4652_v46  ;;  %v4666_v16 = vmul.f32 %v5669_v29, %v1374_v45  ;;  %v1183_v1 = vmul.f32 %v5670_v56, %v4622_v41  ;;  %v1184_v54 = vmul.f32 %v5672_v28, %v4646_v25  ;;  %v5673_v57 = vld [vmem:[#allocation8_spill] sm:$0xff]  ;;  %v552_v48 = vrot.slane %v4314_v20, 3  ;;  %v1401_v29 = vpop.permute.xlu1 %1400 }
 0x119   : > { %5668 = vst [vmem:[#allocation62_spill] sm:$0xff] %v4656_v55  ;;  %5671 = vst [vmem:[#allocation20_spill] sm:$0xff] %v4670_v39  ;;  %v680_v18 = vmul.f32 %v5673_v57, %v4656_v55  ;;  %v681_v7 = vmul.f32 %v5674_v35, %v4652_v46  ;;  %v5675_v45 = vld [vmem:[#allocation36_spill] sm:$0xff]  ;;  %2155 = vperm.xlu1 %3709, %v3915_v13   ;;  %v5676_v28 = vrot.slane %v5654_v0, 7  ;;  %v5552_v25 = vrot.slane %v5655_v33, 1  ;;  %v5690_v46 = vld [vmem:[#allocation21_spill] sm:$0xff] }
 0x11a   : > { %3537 = vmatpush3.bf16.msra.mxu1 %v5675_v45  ;;  %v1195_v56 = vpack.c.bf16 %v1183_v1, %v1182_v11  ;;  %v1855_v35 = vrot.slane %v4284_v10, 1  ;;  %v4690_v41 = vmul.f32 %v1401_v29, %v1373_v17  ;;  %v1196_v59 = vpack.c.bf16 %v1185_v8, %v1184_v54  ;;  %v5680_v1 = vld [vmem:[#allocation13_spill] sm:$0xff] }
 0x11b   : > { %v1372_v57 = vsel %vm1362_vm2, %v1351_v52, %v5676_v28  ;;  %3572 = vmatprep.subr.bf16.mxu1 %v4641_v4  ;;  %v4694_v45 = vsel %vm561_vm6, %v551_v21, %v552_v48  ;;  %v4698_v13 = vsel %vm561_vm6, %v550_v58, %v551_v21  ;;  %v5679_v52 = vld [vmem:[#allocation4_spill] sm:$0xff]  ;;  %v4706_v29 = vpop.permute.xlu0 %1909  ;;  %v5684_v28 = vld [vmem:[#allocation35_spill] sm:$0xff]  ;;  %v1347_v38 = vrot.slane %v4271_v24, 7 }
 0x11c   : > { %5677 = vst [vmem:[#allocation11_spill] sm:$0xff] %v4694_v45  ;;  %5678 = vst [vmem:[#allocation17_spill] sm:$0xff] %v4698_v13  ;;  %3525 = vmatmul.mubr.msk.bf16.gmra.mxu0 %vm830_vm3, %v1195_v56  ;;  %v682_v11 = vmul.f32 %v5679_v52, %v4698_v13  ;;  %v683_v17 = vmul.f32 %v5680_v1, %v4694_v45  ;;  %v4712_v8 = vsel %vm1863_vm4, %v5552_v25, %v1855_v35  ;;  %v5683_v58 = vld [vmem:[#allocation32_spill] sm:$0xff]  ;;  %v4723_v45 = vld [vmem:[%s5496_s1 + $0x58] sm:$0xff]  ;;  %v1405_v25 = vpop.permute.xlu1 %1404 }
 0x11d   : > { %5681 = vst [vmem:[#allocation8_spill] sm:$0xff] %v4706_v29  ;;  %5682 = vst [vmem:[#allocation3_spill] sm:$0xff] %v4712_v8  ;;  %v1089_v21 = vrot.slane %v5683_v58, 5  ;;  %3528 = vmatprep.mubr.msk.bf16.mxu0 %vm830_vm3, %v1196_v59  ;;  %v693_v56 = vpack.c.bf16 %v681_v7, %v680_v18  ;;  %v1090_v52 = vrot.slane %v5684_v28, 5  ;;  %v5555_v1 = vrot.slane %v4314_v20, 1  ;;  %2159 = vperm.xlu1 %3709, %v4723_v45  }
 0x11e   : > { %v694_v50 = vpack.c.bf16 %v683_v17, %v682_v11  ;;  %5685 = vst [vmem:[#allocation36_spill] sm:$0xff] %v4723_v45  ;;  %v1091_v59 = vrot.slane %v4376_v9, 5  ;;  %v1092_v18 = vrot.slane %v4406_v40, 5  ;;  %v4733_v7 = vmul.f32 %v1405_v25, %v1372_v57  ;;  %v5688_v17 = vld [vmem:[#allocation19_spill] sm:$0xff] }
 0x11f   : > { %v4728_v13 = vsel %vm1095_vm5, %v1088_v51, %v1089_v21  ;;  %3507 = vmatmul.mubr.msk.bf16.gmra.mxu1 %vm830_vm3, %v693_v56  ;;  %v4737_v11 = vsel %vm1095_vm5, %v1089_v21, %v1090_v52  ;;  %v4745_v51 = vsel %vm1863_vm4, %v1855_v35, %v5555_v1  ;;  %v4750_v25 = vpop.permute.xlu0 %1913  ;;  %v1346_v35 = vrot.slane %v4269_v60, 7  ;;  %v5694_v1 = vld [vmem:[#allocation33_spill] sm:$0xff] }
 0x120   : > { %5686 = vst [vmem:[#allocation4_spill] sm:$0xff] %v4728_v13  ;;  %5687 = vst [vmem:[#allocation13_spill] sm:$0xff] %v4737_v11  ;;  %v1186_v54 = vmul.f32 %v5688_v17, %v4728_v13  ;;  %3510 = vmatprep.mubr.msk.bf16.mxu1 %vm830_vm3, %v694_v50  ;;  %v1187_v56 = vmul.f32 %v5690_v46, %v4737_v11  ;;  %v4754_v57 = vsel %vm1095_vm5, %v1091_v59, %v1092_v18  ;;  %v5695_v11 = vld [vmem:[#allocation14_spill] sm:$0xff] }
 0x121   : > { %5689 = vst [vmem:[#allocation32_spill] sm:$0xff] %v4745_v51  ;;  %5691 = vst [vmem:[#allocation35_spill] sm:$0xff] %v4750_v25  ;;  %v4758_v21 = vsel %vm1095_vm5, %v1090_v52, %v1091_v59  ;;  %v553_v17 = vrot.slane %v5683_v58, 3  ;;  %v1189_v13 = vmul.f32 %v5695_v11, %v4754_v57  ;;  %3710 = vset.pattern.permute.xlu1 %v5605_v27  ;;  %v554_v51 = vrot.slane %v5684_v28, 3  ;;  %v1631_v11 = vpop.permute.xlu1 %1630 }
 0x122   : > { %5692 = vst [vmem:[#allocation19_spill] sm:$0xff] %v4754_v57  ;;  %5693 = vst [vmem:[#allocation21_spill] sm:$0xff] %v4758_v21  ;;  %v1188_v46 = vmul.f32 %v5694_v1, %v4758_v21  ;;  %v1197_v25 = vpack.c.bf16 %v1187_v56, %v1186_v54  ;;  %v555_v59 = vrot.slane %v4376_v9, 3  ;;  %v4779_v1 = vld [vmem:[%s5496_s1 + $0x68] sm:$0xff]  ;;  %v556_v50 = vrot.slane %v4406_v40, 3 }
 0x123   : > { %v4772_v52 = vsel %vm561_vm6, %v552_v48, %v553_v17  ;;  %5697 = vst [vmem:[#allocation14_spill] sm:$0xff] %v4779_v1  ;;  %1933 = vperm.xlu1 %3710, %v4779_v1   ;;  %v5698_v54 = vld [vmem:[#allocation15_spill] sm:$0xff]  ;;  %v5699_v48 = vrot.slane %v4387_v5, 5  ;;  %v5700_v57 = vrot.slane %v4374_v30, 5 }
 0x124   : > { %5696 = vst [vmem:[#allocation33_spill] sm:$0xff] %v4772_v52  ;;  %v1198_v27 = vpack.c.bf16 %v1189_v13, %v1188_v46  ;;  %v684_v56 = vmul.f32 %v5698_v54, %v4772_v52  ;;  %3529 = vmatmul.mubr.msk.bf16.gmra.mxu0 %vm830_vm3, %v1197_v25  ;;  %v4797_v13 = vsel %vm561_vm6, %v553_v17, %v554_v51  ;;  %v4803_v54 = vpop.permute.xlu0 %1925  ;;  %v5705_v52 = vld [vmem:[#allocation5_spill] sm:$0xff]  ;;  %v5707_v25 = vld [vmem:[#allocation7_spill] sm:$0xff]  ;;  %v5708_v17 = vrot.slane %v4374_v30, 5 }
 0x125   : > { %v4791_v21 = vsel %vm1095_vm5, %v5700_v57, %v5699_v48  ;;  %5702 = vst [vmem:[#allocation63_spill] sm:$0xff] %v4797_v13  ;;  %v4801_v46 = vsel %vm561_vm6, %v554_v51, %v555_v59  ;;  %5704 = vst [vmem:[#allocation65_spill] sm:$0xff] %v4803_v54  ;;  %v685_v57 = vmul.f32 %v5705_v52, %v4797_v13  ;;  %v5710_v54 = vld [vmem:[#allocation44_spill] sm:$0xff]  ;;  %v5711_v52 = vld [vmem:[#allocation23_spill] sm:$0xff] }
 0x126   : > { %5701 = vst [vmem:[#allocation15_spill] sm:$0xff] %v4791_v21  ;;  %5703 = vst [vmem:[#allocation64_spill] sm:$0xff] %v4801_v46  ;;  %3532 = vmatprep.mubr.msk.bf16.mxu0 %vm830_vm3, %v1198_v27  ;;  %v4810_v48 = vsel %vm561_vm6, %v555_v59, %v556_v50  ;;  %v686_v55 = vmul.f32 %v5707_v25, %v4801_v46  ;;  %v4818_v51 = vsel %vm1095_vm5, %v1092_v18, %v5708_v17  ;;  %v5712_v59 = vld [vmem:[#allocation37_spill] sm:$0xff]  ;;  %v4831_v25 = vld [vmem:[%s5496_s1 + $0x70] sm:$0xff]  ;;  %v1639_v18 = vpop.permute.xlu1 %1638 }
 0x127   : > { %5706 = vst [vmem:[#allocation5_spill] sm:$0xff] %v4810_v48  ;;  %5709 = vst [vmem:[#allocation7_spill] sm:$0xff] %v4818_v51  ;;  %v1678_v1 = vmul.f32 %v5710_v54, %v4271_v24  ;;  %v1677_v27 = vmul.f32 %v4519_v47, %v4269_v60  ;;  %v687_v13 = vmul.f32 %v5711_v52, %v4810_v48  ;;  %1937 = vperm.xlu1 %3710, %v4831_v25   ;;  %v5713_v52 = vld [vmem:[#allocation43_spill] sm:$0xff] }
 0x128   : > { %v1190_v29 = vmul.f32 %v5712_v59, %v4818_v51  ;;  %v695_v8 = vpack.c.bf16 %v685_v57, %v684_v56  ;;  %v5569_v54 = vrot.slane %v4376_v9, 1  ;;  %v1860_v17 = vrot.slane %v4406_v40, 1  ;;  %v1930_v59 = vpop.permute.xlu0 %1929 }
 0x129   : > { %v557_v47 = vrot.slane %v4374_v30, 3  ;;  %v1191_v48 = vmul.f32 %v5713_v52, %v4791_v21  ;;  %v1377_v56 = vsel %vm1362_vm2, %v1346_v35, %v1347_v38  ;;  %v696_v57 = vpack.c.bf16 %v687_v13, %v686_v55 }
 0x12a   : > { %v5571_v51 = vrot.slane %v4387_v5, 1  ;;  %v5714_v46 = vrot.slane %v4387_v5, 7  ;;  %3511 = vmatmul.mubr.msk.bf16.gmra.mxu1 %vm830_vm3, %v695_v8  ;;  %v1866_v39 = vsel %vm1863_vm4, %v5569_v54, %v1860_v17  ;;  %v5715_v52 = vrot.slane %v4387_v5, 3 }
 0x12b   : > { %v4859_v13 = vsel %vm561_vm6, %v556_v50, %v557_v47  ;;  %3514 = vmatprep.mubr.msk.bf16.mxu1 %vm830_vm3, %v696_v57  ;;  %v5716_v8 = vrot.slane %v4269_v60, 1  ;;  %v1849_v21 = vrot.slane %v4243_v42, 1  ;;  %v1693_v43 = vpack.c.bf16 %v1678_v1, %v1677_v27  ;;  %3712 = vset.pattern.permute.xlu1 %v5591_v2  ;;  %v1643_v50 = vpop.permute.xlu1 %1642  ;;  %v5719_v60 = vld [vmem:[#allocation16_spill] sm:$0xff] }
 0x12c   : > { %v1378_v45 = vsel %vm1362_vm2, %v5714_v46, %v1346_v35  ;;  %v4855_v55 = vsel %vm561_vm6, %v557_v47, %v5715_v52  ;;  %v1199_v35 = vpack.c.bf16 %v1191_v48, %v1190_v29  ;;  %v4862_v46 = vmul.f32 %v1930_v59, %v1866_v39  ;;  %v5717_v47 = vld [vmem:[#allocation26_spill] sm:$0xff]  ;;  %v5718_v39 = vld [vmem:[#allocation9_spill] sm:$0xff]  ;;  %v1942_v2 = vpop.permute.xlu0 %1941 }
 0x12d   : > { %v1879_v54 = vsel %vm1863_vm4, %v5571_v51, %v5716_v8  ;;  %v1444_v52 = vmul.f32 %v4414_v6, %v1377_v56  ;;  %v688_v29 = vmul.f32 %v5717_v47, %v4859_v13  ;;  %v689_v48 = vmul.f32 %v5718_v39, %v4855_v55  ;;  %v4884_v6 = vld [vmem:[%s5496_s1 + $0x60] sm:$0xff] }
 0x12e   : > { %v1443_v57 = vmul.f32 %v5719_v60, %v1378_v45  ;;  %v1683_v59 = vmul.f32 %v1639_v18, %v5654_v0  ;;  %3533 = vmatmul.mubr.msk.bf16.gmra.mxu0 %vm830_vm3, %v1199_v35  ;;  %v1684_v8 = vmul.f32 %v1643_v50, %v5655_v33  ;;  %2163 = vperm.xlu1 %3712, %v4884_v6   ;;  %v1853_v1 = vrot.slane %v5654_v0, 1 }
 0x12f   : > { %v5720_v27 = vrot.slane %v4201_v62, 7  ;;  %v5721_v45 = vrot.slane %v4243_v42, 7  ;;  %v1682_v56 = vmul.f32 %v4408_v44, %v4231_v23  ;;  %3556 = vmatprep.mubr.msk.bf16.mxu0 %vm830_vm3, %v1693_v43  ;;  %v4901_v47 = vmul.f32 %v1942_v2, %v1879_v54 }
 0x130   : > { %v1680_v0 = vmul.f32 %v4614_v14, %v4201_v62  ;;  %v1681_v39 = vmul.f32 %v1631_v11, %v4210_v31  ;;  %v1696_v60 = vpack.c.bf16 %v1684_v8, %v1683_v59  ;;  %v5724_v51 = vrot.slane %v4201_v62, 1  ;;  %v4957_v8 = vld [vmem:[%s5496_s1 + $0x78] sm:$0xff] }
 0x131   : > { %v1375_v18 = vsel %vm1362_vm2, %v5721_v45, %v5720_v27  ;;  %v5722_v35 = vmov %v5721_v45  ;;  %v5723_v27 = vrot.slane %v4271_v24, 1  ;;  %v697_v45 = vpack.c.bf16 %v689_v48, %v688_v29 }
 0x132   : > { %v1376_v50 = vsel %vm1362_vm2, %v1347_v38, %v5722_v35  ;;  %v4916_v43 = vsel %vm1863_vm4, %v1849_v21, %v5724_v51  ;;  %v5725_v38 = vrot.slane %v4231_v23, 1  ;;  %v5726_v31 = vrot.slane %v5655_v33, 1  ;;  %2171 = vperm.xlu1 %3712, %v4831_v25  }
 0x133   : > { %v4910_v44 = vsel %vm1863_vm4, %v5723_v27, %v1849_v21  ;;  %v1459_v11 = vpack.c.bf16 %v1444_v52, %v1443_v57  ;;  %v1679_v62 = vmul.f32 %v4577_v19, %v4243_v42  ;;  %v1417_v21 = vpop.permute.xlu1 %1416  ;;  %v1857_v51 = vrot.slane %v5683_v58, 1  ;;  %3515 = vmatmul.mubr.msk.bf16.gmra.mxu1 %vm830_vm3, %v697_v45  ;;  %v5728_v19 = vld [vmem:[#allocation18_spill] sm:$0xff]  ;;  %v4987_v27 = vld [vmem:[%s5499_s4 + $0x38] sm:$0xff]  }
 0x134   : > { %v4922_v14 = vsel %vm1863_vm4, %v5725_v38, %v1853_v1  ;;  %v4928_v24 = vsel %vm1863_vm4, %v1853_v1, %v5726_v31  ;;  %v1861_v23 = vrot.slane %v4374_v30, 1  ;;  %v5727_v29 = vrot.slane %v4314_v20, 1  ;;  %v5732_v38 = vld [vmem:[#allocation24_spill] sm:$0xff] }
 0x135   : > { %v1694_v54 = vpack.c.bf16 %v1680_v0, %v1679_v62  ;;  %3538 = vmatprep.mubr.msk.bf16.mxu1 %vm830_vm3, %v1459_v11  ;;  %v1446_v48 = vmul.f32 %v5728_v19, %v1375_v18  ;;  %v1445_v57 = vmul.f32 %v4453_v15, %v1376_v50  ;;  %v1695_v59 = vpack.c.bf16 %v1682_v56, %v1681_v39 }
 0x136   : > { %v4943_v52 = vsel %vm1863_vm4, %v5727_v29, %v1857_v51  ;;  %v4949_v42 = vsel %vm1863_vm4, %v1860_v17, %v1861_v23  ;;  %2175 = vperm.xlu1 %3712, %v4957_v8   ;;  %v1354_v1 = vrot.slane %v4284_v10, 7  ;;  %v1355_v17 = vrot.slane %v4314_v20, 7 }
 0x137   : > { %3557 = vmatmul.mubr.msk.bf16.vlgmr.msra.gmra.mxu0 %vm830_vm3, %v1694_v54  ;;  %v1421_v2 = vpop.permute.xlu1 %1420  ;;  %v1460_v15 = vpack.c.bf16 %v1446_v48, %v1445_v57  ;;  %v1686_v18 = vmul.f32 %v4437_v3, %v4314_v20  ;;  %v5729_v56 = vmov 7   ;;  %v5730_v50 = vrot.slane %v5655_v33, 7 }
 0x138   : > { %3560 = vmatprep.mubr.msk.bf16.mxu0 %vm830_vm3, %v1695_v59  ;;  %3591 = vmatpush3.bf16.msra.mxu0 %v4661_v61  ;;  %v1369_v35 = vsel %vm1362_vm2, %v1354_v1, %v1355_v17  ;;  %v3759_v61 = vld [vmem:[%s5496_s1 + $0x8] sm:$0xff]  ;;  %v5731_v20 = vpack.c.bf16 %v4690_v41, %v4666_v16  ;;  %v1356_v33 = vrot.slane %v5683_v58, 7  ;;  %v1357_v45 = vrot.slane %v5684_v28, 7 }
 0x139   : > { %v1370_v0 = vsel %vm1362_vm2, %v5730_v50, %v1354_v1  ;;  %v1452_v11 = vmul.f32 %v1417_v21, %v1369_v35  ;;  %v5733_v29 = vpack.c.bf16 %v4568_v37, %v4733_v7  ;;  %v5734_v19 = vmov 8   ;;  %v5735_v7 = vld [vmem:[#allocation28_spill] sm:$0xff] }
 0x13a   : > { %3713 = vset.pattern.permute.xlu1 %v5729_v56  ;;  %v1451_v31 = vmul.f32 %v5732_v38, %v1370_v0  ;;  %v1367_v16 = vsel %vm1362_vm2, %v1356_v33, %v1357_v45  ;;  %v1368_v21 = vsel %vm1362_vm2, %v1355_v17, %v1356_v33  ;;  %v1360_v57 = vrot.slane %v4374_v30, 7  ;;  %v3761_v17 = vld [vmem:[%s5496_s1] sm:$0xff] }
 0x13b   : > { %3539 = vmatmul.mubr.msk.bf16.vlgmr.msra.gmra.mxu1 %vm830_vm3, %v1460_v15  ;;  %2353 = vperm.xlu1 %3713, %v3759_v61   ;;  %v1647_v39 = vpop.permute.xlu1 %1646  ;;  %v1454_v15 = vmul.f32 %v5735_v7, %v1367_v16  ;;  %v5736_v0 = vld [vmem:[#allocation34_spill] sm:$0xff]  ;;  %v5739_v7 = vld [vmem:[#allocation40_spill] sm:$0xff] }
 0x13c   : > { %3542 = vmatprep.mubr.msk.bf16.mxu1 %vm830_vm3, %v5731_v20  ;;  %v1685_v3 = vmul.f32 %v1647_v39, %v4284_v10  ;;  %3573 = vmatpush3.bf16.msra.mxu1 %v4641_v4  ;;  %v3760_v10 = vld [vmem:[%s5496_s1 + $0x10] sm:$0xff]  ;;  %v1358_v4 = vrot.slane %v4376_v9, 7  ;;  %v1463_v54 = vpack.c.bf16 %v1452_v11, %v1451_v31  ;;  %v5737_v39 = vrot.slane %v4387_v5, 7  ;;  %v5031_v38 = vld [vmem:[%s5499_s4 + $0x40] sm:$0xff]  }
 0x13d   : > { %3608 = vmatprep.subr.bf16.mxu1 %v4987_v27  ;;  %v5738_v31 = vld [vmem:[#allocation38_spill] sm:$0xff]  ;;  %3626 = vmatprep.subr.bf16.mxu0 %v5031_v38 }
 0x13e   : > { %v1697_v62 = vpack.c.bf16 %v1686_v18, %v1685_v3  ;;  %v1366_v37 = vsel %vm1362_vm2, %v1357_v45, %v1358_v4  ;;  %v1453_v18 = vmul.f32 %v1421_v2, %v1368_v21  ;;  %v1363_v20 = vsel %vm1362_vm2, %v1360_v57, %v5737_v39  ;;  %v3763_v21 = vld [vmem:[%s5496_s1 + $0x28] sm:$0xff] }
 0x13f   : > { %3561 = vmatmul.mubr.msk.bf16.gmra.mxu0 %vm830_vm3, %v1696_v60  ;;  %2357 = vperm.xlu1 %3713, %v3760_v10   ;;  %v1655_v41 = vpop.permute.xlu1 %1654  ;;  %v1359_v60 = vrot.slane %v4406_v40, 7  ;;  %v1455_v61 = vmul.f32 %v5736_v0, %v1366_v37  ;;  %v1458_v11 = vmul.f32 %v5738_v31, %v1363_v20 }
 0x140   : > { %3564 = vmatprep.mubr.msk.bf16.mxu0 %vm830_vm3, %v1697_v62  ;;  %v1687_v59 = vmul.f32 %v1655_v41, %v5683_v58  ;;  %v1464_v33 = vpack.c.bf16 %v1454_v15, %v1453_v18  ;;  %v1944_v15 = vmul.f32 %v4572_v53, %v5739_v7  ;;  %v2120_v53 = vpop.permute.xlu0 %2119 }
 0x141   : > { %v1365_v50 = vsel %vm1362_vm2, %v1358_v4, %v1359_v60  ;;  %v1364_v2 = vsel %vm1362_vm2, %v1359_v60, %v1360_v57  ;;  %v3764_v57 = vld [vmem:[%s5496_s1 + $0x30] sm:$0xff] }
 0x143   : > { %3543 = vmatmul.mubr.msk.bf16.gmra.mxu1 %vm830_vm3, %v5733_v29  ;;  %3714 = vset.pattern.permute.xlu1 %v5734_v19  ;;  %v1659_v48 = vpop.permute.xlu1 %1658 }
 0x144   : > { %3546 = vmatprep.mubr.msk.bf16.mxu1 %vm830_vm3, %v1463_v54  ;;  %v1688_v1 = vmul.f32 %v1659_v48, %v5684_v28  ;;  %2583 = vperm.xlu1 %3714, %v3761_v17   ;;  %v1690_v54 = vmul.f32 %v4487_v36, %v4406_v40  ;;  %v3765_v17 = vld [vmem:[%s5496_s1 + $0x20] sm:$0xff] }
 0x146   : > { %v1698_v35 = vpack.c.bf16 %v1688_v1, %v1687_v59 }
 0x147   : > { %v1433_v3 = vpop.permute.xlu1 %1432 }
 0x148   : > { %2591 = vperm.xlu1 %3714, %v3760_v10   ;;  %3565 = vmatmul.mubr.msk.bf16.gmra.mxu0 %vm830_vm3, %v1698_v35  ;;  %v1456_v45 = vmul.f32 %v1433_v3, %v1365_v50  ;;  %v3762_v10 = vld [vmem:[%s5496_s1 + $0x18] sm:$0xff]  ;;  %v1947_v50 = vmul.f32 %v4601_v26, %v4587_v63  ;;  %v3767_v63 = vld [vmem:[%s5496_s1 + $0x48] sm:$0xff] }
 0x14a   : > { %v1465_v62 = vpack.c.bf16 %v1456_v45, %v1455_v61  ;;  %v3766_v61 = vld [vmem:[%s5496_s1 + $0x38] sm:$0xff]  ;;  %v3768_v45 = vld [vmem:[%s5496_s1 + $0x50] sm:$0xff] }
 0x14b   : > { %3547 = vmatmul.mubr.msk.bf16.gmra.mxu1 %vm830_vm3, %v1464_v33  ;;  %v1437_v41 = vpop.permute.xlu1 %1436  ;;  %v2179_v33 = vmul.f32 %v2120_v53, %v4450_v49 }
 0x14c   : > { %2595 = vperm.xlu1 %3714, %v3762_v10   ;;  %v1457_v4 = vmul.f32 %v1437_v41, %v1364_v2  ;;  %3550 = vmatprep.mubr.msk.bf16.mxu1 %vm830_vm3, %v1465_v62  ;;  %v5740_v10 = vld [vmem:[#allocation25_spill] sm:$0xff]  ;;  %v5741_v41 = vld [vmem:[#allocation20_spill] sm:$0xff] }
 0x14e   : > { %v1466_v16 = vpack.c.bf16 %v1458_v11, %v1457_v4  ;;  %v1948_v4 = vmul.f32 %v5741_v41, %v5740_v10 }
 0x14f   : > { %v1663_v60 = vpop.permute.xlu1 %1662 }
 0x150   : > { %3716 = vset.pattern.permute.xlu1 %v5729_v56  ;;  %v1689_v29 = vmul.f32 %v1663_v60, %v4376_v9  ;;  %v5744_v60 = vld [vmem:[#allocation8_spill] sm:$0xff] }
 0x151   : > { %2369 = vperm.xlu1 %3716, %v3763_v21   ;;  %v5743_v21 = vld [vmem:[#allocation3_spill] sm:$0xff] }
 0x152   : > { %v1699_v48 = vpack.c.bf16 %v1690_v54, %v1689_v29  ;;  %v5742_v54 = vld [vmem:[#allocation36_spill] sm:$0xff]  ;;  %v1951_v29 = vmul.f32 %v5744_v60, %v5743_v21  ;;  %v5758_v21 = vrot.slane %v4387_v5, 1 }
 0x153   : > { %3551 = vmatmul.mubr.msk.bf16.gmra.mxu1 %vm830_vm3, %v1466_v16  ;;  %v1671_v59 = vpop.permute.xlu1 %1670 }
 0x154   : > { %3568 = vmatprep.mubr.msk.bf16.mxu0 %vm830_vm3, %v1699_v48  ;;  %v1691_v36 = vmul.f32 %v1671_v59, %v4374_v30  ;;  %v2136_v59 = vpop.permute.xlu0 %2135  ;;  %v1864_v60 = vsel %vm1863_vm4, %v1861_v23, %v5758_v21 }
 0x155   : > { %2373 = vperm.xlu1 %3716, %v3764_v57  }
 0x157   : > { %v1675_v40 = vpop.permute.xlu1 %1674 }
 0x158   : > { %v1692_v1 = vmul.f32 %v1675_v40, %v4387_v5  ;;  %v5745_v40 = vld [vmem:[#allocation14_spill] sm:$0xff] }
 0x159   : > { %3717 = vset.pattern.permute.xlu1 %v5734_v19 }
 0x15a   : > { %2599 = vperm.xlu1 %3717, %v3765_v17   ;;  %v1700_v37 = vpack.c.bf16 %v1692_v1, %v1691_v36  ;;  %v5747_v1 = vld [vmem:[#allocation61_spill] sm:$0xff] }
 0x15b   : > { %v1886_v18 = vpop.permute.xlu1 %1885 }
 0x15c   : > { %3569 = vmatmul.mubr.msk.bf16.gmra.mxu0 %vm830_vm3, %v1700_v37  ;;  %v1945_v35 = vmul.f32 %v1886_v18, %v4910_v44  ;;  %v5749_v18 = vld [vmem:[#allocation17_spill] sm:$0xff] }
 0x15e   : > { %2607 = vperm.xlu1 %3717, %v3764_v57   ;;  %v1960_v0 = vpack.c.bf16 %v1945_v35, %v1944_v15 }
 0x15f   : > { %v1890_v39 = vpop.permute.xlu1 %1889 }
 0x160   : > { %v1946_v20 = vmul.f32 %v1890_v39, %v4916_v43  ;;  %3574 = vmatprep.mubr.msk.bf16.mxu1 %vm830_vm3, %v1960_v0  ;;  %v5750_v39 = vld [vmem:[#allocation32_spill] sm:$0xff] }
 0x162   : > { %2611 = vperm.xlu1 %3717, %v3766_v61   ;;  %v1961_v3 = vpack.c.bf16 %v1947_v50, %v1946_v20  ;;  %v1858_v50 = vrot.slane %v5684_v28, 1  ;;  %v5751_v20 = vld [vmem:[#allocation35_spill] sm:$0xff] }
 0x163   : > { %v2116_v26 = vpop.permute.xlu1 %2115  ;;  %v1952_v53 = vmul.f32 %v5751_v20, %v5750_v39 }
 0x164   : > { %3575 = vmatmul.mubr.msk.bf16.vlgmr.msra.gmra.mxu1 %vm830_vm3, %v1961_v3  ;;  %v2178_v44 = vmul.f32 %v2116_v26, %v4483_v22  ;;  %v3769_v22 = vld [vmem:[%s5496_s1 + $0x40] sm:$0xff]  ;;  %v5752_v3 = vrot.slane %v4376_v9, 1 }
 0x165   : > { %3609 = vmatpush3.bf16.msra.mxu1 %v4987_v27 }
 0x166   : > { %3718 = vset.pattern.permute.xlu1 %v5729_v56  ;;  %v2194_v43 = vpack.c.bf16 %v2179_v33, %v2178_v44  ;;  %v1867_v33 = vsel %vm1863_vm4, %v1858_v50, %v5752_v3  ;;  %v5766_v3 = vld [vmem:[#allocation49_spill] sm:$0xff] }
 0x167   : > { %2385 = vperm.xlu1 %3718, %v3767_v63   ;;  %v2124_v49 = vpop.permute.xlu1 %2123 }
 0x168   : > { %3592 = vmatprep.mubr.msk.bf16.mxu0 %vm830_vm3, %v2194_v43  ;;  %v2180_v31 = vmul.f32 %v2124_v49, %v4548_v34  ;;  %v2152_v43 = vpop.permute.xlu0 %2151 }
 0x16b   : > { %2389 = vperm.xlu1 %3718, %v3768_v45   ;;  %v2128_v2 = vpop.permute.xlu1 %2127 }
 0x16c   : > { %v2181_v11 = vmul.f32 %v2128_v2, %v4562_v32  ;;  %v5755_v2 = vld [vmem:[#allocation11_spill] sm:$0xff] }
 0x16e   : > { %v2195_v27 = vpack.c.bf16 %v2181_v11, %v2180_v31 }
 0x16f   : > { %3719 = vset.pattern.permute.xlu1 %v5734_v19  ;;  %v1902_v62 = vpop.permute.xlu1 %1901 }
 0x170   : > { %2615 = vperm.xlu1 %3719, %v3769_v22   ;;  %3593 = vmatmul.mubr.msk.bf16.vlgmr.msra.gmra.mxu0 %vm830_vm3, %v2195_v27  ;;  %v1949_v16 = vmul.f32 %v1902_v62, %v4922_v14  ;;  %v5756_v22 = vld [vmem:[#allocation63_spill] sm:$0xff]  ;;  %v5757_v62 = vld [vmem:[#allocation64_spill] sm:$0xff] }
 0x171   : > { %3627 = vmatpush3.bf16.msra.mxu0 %v5031_v38  ;;  %v5746_v38 = vld [vmem:[#allocation62_spill] sm:$0xff] }
 0x172   : > { %v1962_v34 = vpack.c.bf16 %v1949_v16, %v1948_v4  ;;  %v2183_v36 = vmul.f32 %v2136_v59, %v5746_v38  ;;  %v5760_v38 = vld [vmem:[#allocation59_spill] sm:$0xff] }
 0x173   : > { %v1906_v32 = vpop.permute.xlu1 %1905 }
 0x174   : > { %2623 = vperm.xlu1 %3719, %v3768_v45   ;;  %v1950_v48 = vmul.f32 %v1906_v32, %v4928_v24  ;;  %3578 = vmatprep.mubr.msk.bf16.mxu1 %vm830_vm3, %v1962_v34  ;;  %v5754_v45 = vld [vmem:[#allocation33_spill] sm:$0xff] }
 0x175   : > { %v2187_v49 = vmul.f32 %v2152_v43, %v5754_v45  ;;  %v5768_v45 = vld [vmem:[#allocation60_spill] sm:$0xff] }
 0x176   : > { %v1963_v57 = vpack.c.bf16 %v1951_v29, %v1950_v48 }
 0x178   : > { %2627 = vperm.xlu1 %3719, %v5742_v54   ;;  %v2132_v14 = vpop.permute.xlu1 %2131  ;;  %3579 = vmatmul.mubr.msk.bf16.gmra.mxu1 %vm830_vm3, %v1963_v57 }
 0x179   : > { %v2182_v17 = vmul.f32 %v2132_v14, %v5747_v1 }
 0x17b   : > { %v2196_v37 = vpack.c.bf16 %v2183_v36, %v2182_v17 }
 0x17c   : > { %3721 = vset.pattern.permute.xlu1 %v5729_v56  ;;  %v2140_v7 = vpop.permute.xlu1 %2139  ;;  %v5748_v56 = vld [vmem:[#allocation12_spill] sm:$0xff] }
 0x17d   : > { %2401 = vperm.xlu1 %3721, %v5745_v40   ;;  %3596 = vmatprep.mubr.msk.bf16.mxu0 %vm830_vm3, %v2196_v37  ;;  %v2184_v15 = vmul.f32 %v2140_v7, %v5748_v56  ;;  %v5761_v37 = vld [vmem:[#allocation46_spill] sm:$0xff] }
 0x17e   : > { %v5762_v7 = vld [vmem:[#allocation42_spill] sm:$0xff] }
 0x180   : > { %v2144_v24 = vpop.permute.xlu1 %2143 }
 0x181   : > { %2405 = vperm.xlu1 %3721, %v4831_v25   ;;  %v2185_v35 = vmul.f32 %v2144_v24, %v5749_v18 }
 0x183   : > { %v2197_v0 = vpack.c.bf16 %v2185_v35, %v2184_v15  ;;  %v5763_v35 = vld [vmem:[#allocation27_spill] sm:$0xff] }
 0x185   : > { %3722 = vset.pattern.permute.xlu1 %v5734_v19  ;;  %v1918_v61 = vpop.permute.xlu1 %1917  ;;  %3597 = vmatmul.mubr.msk.bf16.gmra.mxu0 %vm830_vm3, %v2197_v0  ;;  %v5764_v0 = vld [vmem:[#allocation41_spill] sm:$0xff] }
 0x186   : > { %2631 = vperm.xlu1 %3722, %v4884_v6   ;;  %v1953_v19 = vmul.f32 %v1918_v61, %v4943_v52  ;;  %v5753_v6 = vld [vmem:[#allocation65_spill] sm:$0xff] }
 0x187   : > { %v1955_v26 = vmul.f32 %v5753_v6, %v1867_v33 }
 0x188   : > { %v1964_v63 = vpack.c.bf16 %v1953_v19, %v1952_v53  ;;  %v5765_v53 = vld [vmem:[#allocation57_spill] sm:$0xff] }
 0x189   : > { %v1922_v28 = vpop.permute.xlu1 %1921 }
 0x18a   : > { %2639 = vperm.xlu1 %3722, %v4831_v25   ;;  %v1868_v25 = vsel %vm1863_vm4, %v1857_v51, %v1858_v50  ;;  %3582 = vmatprep.mubr.msk.bf16.mxu1 %vm830_vm3, %v1964_v63  ;;  %v2168_v51 = vpop.permute.xlu0 %2167 }
 0x18b   : > { %v1954_v44 = vmul.f32 %v1922_v28, %v1868_v25 }
 0x18d   : > { %v1965_v52 = vpack.c.bf16 %v1955_v26, %v1954_v44 }
 0x18e   : > { %2643 = vperm.xlu1 %3722, %v4957_v8   ;;  %v2148_v9 = vpop.permute.xlu1 %2147  ;;  %v2588_v34 = vpop.permute.xlu0 %2587 }
 0x18f   : > { %3583 = vmatmul.mubr.msk.bf16.gmra.mxu1 %vm830_vm3, %v1965_v52  ;;  %v2186_v8 = vmul.f32 %v2148_v9, %v5755_v2  ;;  %v2647_v19 = vmul.f32 %v2588_v34, %v5765_v53  ;;  %v5767_v52 = vld [vmem:[#allocation56_spill] sm:$0xff] }
 0x191   : > { %v2198_v31 = vpack.c.bf16 %v2187_v49, %v2186_v8 }
 0x192   : > { %v5142_v57 = vpop.permute.xlu0 %2603 }
 0x193   : > { %3600 = vmatprep.mubr.msk.bf16.mxu0 %vm830_vm3, %v2198_v31 }
 0x194   : > { %v2156_v11 = vpop.permute.xlu1 %2155 }
 0x195   : > { %v2188_v27 = vmul.f32 %v2156_v11, %v5756_v22 }
 0x196   : > { %v5147_v30 = vpop.permute.xlu0 %2619 }
 0x198   : > { %v2160_v58 = vpop.permute.xlu1 %2159 }
 0x199   : > { %v2189_v10 = vmul.f32 %v2160_v58, %v5757_v62 }
 0x19a   : > { %v2350_v36 = vpop.permute.xlu0 %2349 }
 0x19b   : > { %v2199_v41 = vpack.c.bf16 %v2189_v10, %v2188_v27  ;;  %v5770_v27 = vld [vmem:[#allocation31_spill] sm:$0xff] }
 0x19d   : > { %3601 = vmatmul.mubr.msk.bf16.gmra.mxu0 %vm830_vm3, %v2199_v41 }
 0x19e   : > { %v1934_v4 = vpop.permute.xlu1 %1933  ;;  %v2362_v15 = vpop.permute.xlu0 %2361 }
 0x19f   : > { %v1957_v16 = vmul.f32 %v1934_v4, %v4949_v42  ;;  %v5759_v42 = vld [vmem:[#allocation5_spill] sm:$0xff]  ;;  %v2415_v50 = vmul.f32 %v2362_v15, %v5763_v35 }
 0x1a1   : > { %v1966_v54 = vpack.c.bf16 %v1957_v16, %v4862_v46  ;;  %v2191_v46 = vmul.f32 %v2168_v51, %v4859_v13  ;;  %v2412_v13 = vmul.f32 %v2350_v36, %v5761_v37  ;;  %v5769_v51 = vld [vmem:[#allocation30_spill] sm:$0xff] }
 0x1a2   : > { %v1938_v32 = vpop.permute.xlu1 %1937  ;;  %v2366_v2 = vpop.permute.xlu0 %2365 }
 0x1a3   : > { %v1958_v29 = vmul.f32 %v1938_v32, %v1864_v60  ;;  %3586 = vmatprep.mubr.msk.bf16.mxu1 %vm830_vm3, %v1966_v54  ;;  %v2416_v22 = vmul.f32 %v2366_v2, %v5769_v51  ;;  %v5771_v32 = vld [vmem:[#allocation39_spill] sm:$0xff] }
 0x1a5   : > { %v1967_v48 = vpack.c.bf16 %v4901_v47, %v1958_v29  ;;  %v5772_v29 = vld [vmem:[#allocation29_spill] sm:$0xff] }
 0x1a6   : > { %v2378_v4 = vpop.permute.xlu0 %2377 }
 0x1a7   : > { %3587 = vmatmul.mubr.msk.bf16.gmra.mxu1 %vm830_vm3, %v1967_v48  ;;  %v2419_v21 = vmul.f32 %v2378_v4, %v5771_v32 }
 0x1a9   : > { %v2164_v59 = vpop.permute.xlu1 %2163 }
 0x1aa   : > { %v2190_v40 = vmul.f32 %v2164_v59, %v5759_v42 }
 0x1ac   : > { %v2200_v5 = vpack.c.bf16 %v2191_v46, %v2190_v40 }
 0x1ad   : > { %v2172_v14 = vpop.permute.xlu1 %2171 }
 0x1ae   : > { %3604 = vmatprep.mubr.msk.bf16.mxu0 %vm830_vm3, %v2200_v5  ;;  %v2192_v23 = vmul.f32 %v2172_v14, %v4855_v55 }
 0x1b1   : > { %v2176_v12 = vpop.permute.xlu1 %2175 }
 0x1b2   : > { %v2193_v47 = vmul.f32 %v2176_v12, %v5760_v38  ;;  %v5773_v12 = vld [vmem:[#allocation6_spill] sm:$0xff] }
 0x1b4   : > { %v2201_v1 = vpack.c.bf16 %v2193_v47, %v2192_v23  ;;  %v2651_v23 = vmul.f32 %v5142_v57, %v5773_v12  ;;  %v5774_v47 = vld [vmem:[#allocation58_spill] sm:$0xff] }
 0x1b6   : > { %v2354_v17 = vpop.permute.xlu1 %2353  ;;  %3605 = vmatmul.mubr.msk.bf16.gmra.mxu0 %vm830_vm3, %v2201_v1 }
 0x1b7   : > { %v2413_v24 = vmul.f32 %v2354_v17, %v5762_v7 }
 0x1b9   : > { %v2428_v56 = vpack.c.bf16 %v2413_v24, %v2412_v13  ;;  %v5158_v39 = vpop.f32.mrf.mxu1 }
 0x1ba   : > { %v2358_v18 = vpop.permute.xlu1 %2357 }
 0x1bb   : > { %v2414_v61 = vmul.f32 %v2358_v18, %v5764_v0  ;;  %3610 = vmatprep.mubr.msk.bf16.mxu1 %vm830_vm3, %v2428_v56  ;;  %v5163_v63 = vpop.f32.mrf.mxu1 }
 0x1bd   : > { %v2429_v55 = vpack.c.bf16 %v2415_v50, %v2414_v61  ;;  %v5165_v25 = vpop.f32.mrf.mxu1  ;;  %v5775_v61 = vld [vmem:[#allocation22_spill] sm:$0xff] }
 0x1bf   : > { %v2584_v20 = vpop.permute.xlu1 %2583  ;;  %3611 = vmatmul.mubr.msk.bf16.vlgmr.msra.gmra.mxu1 %vm830_vm3, %v2429_v55  ;;  %v5167_v26 = vpop.f32.mrf.mxu1 }
 0x1c0   : > { %v2646_v33 = vmul.f32 %v2584_v20, %v5766_v3 }
 0x1c2   : > { %v2662_v28 = vpack.c.bf16 %v2647_v19, %v2646_v33  ;;  %v5776_v19 = vld [vmem:[#allocation10_spill] sm:$0xff] }
 0x1c3   : > { %v2592_v6 = vpop.permute.xlu1 %2591  ;;  %v5171_v9 = vpop.f32.mrf.mxu1 }
 0x1c4   : > { %3628 = vmatprep.mubr.msk.bf16.mxu0 %vm830_vm3, %v2662_v28  ;;  %v2648_v43 = vmul.f32 %v2592_v6, %v5767_v52  ;;  %v2382_v28 = vpop.permute.xlu0 %2381 }
 0x1c5   : > { %v5174_v31 = vpop.f32.mrf.mxu1 }
 0x1c7   : > { %v2596_v44 = vpop.permute.xlu1 %2595  ;;  %v5176_v11 = vpop.f32.mrf.mxu1 }
 0x1c8   : > { %v2649_v49 = vmul.f32 %v2596_v44, %v5768_v45  ;;  %v2394_v32 = vpop.permute.xlu0 %2393 }
 0x1c9   : > { %v3486_v10 = vpop.f32.mrf.mxu0  ;;  %v5181_v41 = vpop.f32.mrf.mxu1 }
 0x1ca   : > { %v2663_v8 = vpack.c.bf16 %v2649_v49, %v2648_v43 }
 0x1cb   : > { %v889_v34 = vpop.f32.mrf.mxu0 }
 0x1cc   : > { %v2370_v58 = vpop.permute.xlu1 %2369  ;;  %3629 = vmatmul.mubr.msk.bf16.vlgmr.msra.gmra.mxu0 %vm830_vm3, %v2663_v8 }
 0x1cd   : > { %v2417_v62 = vmul.f32 %v2370_v58, %v5770_v27  ;;  %v5184_v60 = vpop.f32.mrf.mxu1  ;;  %v3487_v59 = vpop.f32.mrf.mxu0 }
 0x1cf   : > { %v2430_v16 = vpack.c.bf16 %v2417_v62, %v2416_v22  ;;  %v5188_v42 = vpop.f32.mrf.mxu1  ;;  %v892_v40 = vpop.f32.mrf.mxu0  ;;  %v5777_v22 = vld [vmem:[#allocation47_spill] sm:$0xff] }
 0x1d0   : > { %v2374_v54 = vpop.permute.xlu1 %2373  ;;  %v2420_v27 = vmul.f32 %v2382_v28, %v5777_v22 }
 0x1d1   : > { %v2418_v48 = vmul.f32 %v2374_v54, %v5772_v29  ;;  %3614 = vmatprep.mubr.msk.bf16.mxu1 %vm830_vm3, %v2430_v16  ;;  %v5190_v5 = vpop.f32.mrf.mxu1 }
 0x1d3   : > { %v2431_v46 = vpack.c.bf16 %v2419_v21, %v2418_v48  ;;  %v3522_v38 = vpop.f32.mrf.mxu0  ;;  %v5196_v1 = vpop.f32.mrf.mxu1 }
 0x1d5   : > { %v2600_v14 = vpop.permute.xlu1 %2599  ;;  %3615 = vmatmul.mubr.msk.bf16.gmra.mxu1 %vm830_vm3, %v2431_v46  ;;  %v1267_v37 = vpop.f32.mrf.mxu0 }
 0x1d6   : > { %v2650_v36 = vmul.f32 %v2600_v14, %v5774_v47  ;;  %v3504_v13 = vpop.f32.mrf.mxu1 }
 0x1d7   : > { %v1025_v24 = vadd.f32 %v3504_v13, %v3486_v10  ;;  %v3523_v56 = vpop.f32.mrf.mxu0  ;;  %v5778_v10 = vld [vmem:[#allocation48_spill] sm:$0xff] }
 0x1d8   : > { %v2664_v17 = vpack.c.bf16 %v2651_v23, %v2650_v36  ;;  %v1016_v15 = vpop.f32.mrf.mxu1  ;;  %v5780_v23 = vld [vmem:[#allocation45_spill] sm:$0xff] }
 0x1d9   : > { %v2608_v7 = vpop.permute.xlu1 %2607  ;;  %v1017_v18 = vadd.f32 %v1016_v15, %v889_v34  ;;  %v1270_v35 = vpop.f32.mrf.mxu0  ;;  %v5199_v50 = vadd.f32 %v3522_v38, %v1025_v24  ;;  %v5781_v24 = vld [vmem:[#allocation4_spill] sm:$0xff] }
 0x1da   : > { %3632 = vmatprep.mubr.msk.bf16.mxu0 %vm830_vm3, %v2664_v17  ;;  %v3505_v0 = vpop.f32.mrf.mxu1  ;;  %v2652_v55 = vmul.f32 %v2608_v7, %v5775_v61 }
 0x1db   : > { %v1028_v20 = vadd.f32 %v3505_v0, %v3487_v59  ;;  %v5203_v33 = vadd.f32 %v1267_v37, %v1017_v18 }
 0x1dc   : > { %v3526_v53 = vpop.f32.mrf.mxu0  ;;  %v1019_v6 = vpop.f32.mrf.mxu1 }
 0x1dd   : > { %v2612_v57 = vpop.permute.xlu1 %2611  ;;  %v1020_v44 = vadd.f32 %v1019_v6, %v892_v40  ;;  %v5205_v45 = vadd.f32 %v3523_v56, %v1028_v20  ;;  %v5779_v40 = vld [vmem:[#allocation50_spill] sm:$0xff]  ;;  %v2655_v56 = vmul.f32 %v5147_v30, %v5781_v24 }
 0x1de   : > { %v2653_v3 = vmul.f32 %v2612_v57, %v5776_v19  ;;  %v1283_v43 = vpop.f32.mrf.mxu0  ;;  %v2423_v14 = vmul.f32 %v2394_v32, %v5779_v40 }
 0x1df   : > { %v3508_v49 = vpop.f32.mrf.mxu1  ;;  %v5209_v51 = vadd.f32 %v1270_v35, %v1020_v44  ;;  %v5782_v35 = vld [vmem:[#allocation2_spill] sm:$0xff] }
 0x1e0   : > { %v2665_v52 = vpack.c.bf16 %v2653_v3, %v2652_v55  ;;  %v1041_v2 = vadd.f32 %v3508_v49, %v5158_v39  ;;  %v3527_v8 = vpop.f32.mrf.mxu0  ;;  %v2398_v49 = vpop.permute.xlu0 %2397 }
 0x1e1   : > { %v1032_v62 = vpop.f32.mrf.mxu1 }
 0x1e2   : > { %v2386_v58 = vpop.permute.xlu1 %2385  ;;  %3633 = vmatmul.mubr.msk.bf16.gmra.mxu0 %vm830_vm3, %v2665_v52  ;;  %v1033_v16 = vadd.f32 %v1032_v62, %v5163_v63  ;;  %v1286_v34 = vpop.f32.mrf.mxu0  ;;  %v5214_v54 = vadd.f32 %v3526_v53, %v1041_v2 }
 0x1e3   : > { %v2421_v4 = vmul.f32 %v2386_v58, %v5778_v10  ;;  %v3509_v29 = vpop.f32.mrf.mxu1 }
 0x1e4   : > { %v1044_v39 = vadd.f32 %v3509_v29, %v5165_v25  ;;  %v3530_v48 = vpop.f32.mrf.mxu0  ;;  %v5217_v46 = vadd.f32 %v1283_v43, %v1033_v16 }
 0x1e5   : > { %v2432_v21 = vpack.c.bf16 %v2421_v4, %v2420_v27  ;;  %v1035_v12 = vpop.f32.mrf.mxu1 }
 0x1e6   : > { %v2390_v59 = vpop.permute.xlu1 %2389  ;;  %v1036_v63 = vadd.f32 %v1035_v12, %v5167_v26  ;;  %v1299_v47 = vpop.f32.mrf.mxu0  ;;  %v5223_v36 = vadd.f32 %v3527_v8, %v1044_v39  ;;  %v5783_v8 = vld [vmem:[#allocation13_spill] sm:$0xff] }
 0x1e7   : > { %v2422_v38 = vmul.f32 %v2390_v59, %v5780_v23  ;;  %3618 = vmatprep.mubr.msk.bf16.mxu1 %vm830_vm3, %v2432_v21  ;;  %v2410_v12 = vpop.permute.xlu0 %2409 }
 0x1e8   : > { %v3531_v37 = vpop.f32.mrf.mxu0  ;;  %v5225_v13 = vadd.f32 %v1286_v34, %v1036_v63 }
 0x1e9   : > { %v2433_v17 = vpack.c.bf16 %v2423_v14, %v2422_v38  ;;  %v5786_v14 = vld [vmem:[#allocation55_spill] sm:$0xff] }
 0x1ea   : > { %v3512_v25 = vpop.f32.mrf.mxu1  ;;  %v1302_v18 = vpop.f32.mrf.mxu0 }
 0x1eb   : > { %v2616_v7 = vpop.permute.xlu1 %2615  ;;  %3619 = vmatmul.mubr.msk.bf16.gmra.mxu1 %vm830_vm3, %v2433_v17  ;;  %v1057_v15 = vadd.f32 %v3512_v25, %v5171_v9 }
 0x1ec   : > { %v2654_v0 = vmul.f32 %v2616_v7, %v5782_v35  ;;  %v1048_v26 = vpop.f32.mrf.mxu1  ;;  %v5787_v7 = vld [vmem:[#allocation51_spill] sm:$0xff]  ;;  %v2636_v35 = vpop.permute.xlu0 %2635 }
 0x1ed   : > { %v1049_v57 = vadd.f32 %v1048_v26, %v5174_v31  ;;  %v5233_v20 = vadd.f32 %v3530_v48, %v1057_v15  ;;  %v5785_v48 = vld [vmem:[#allocation54_spill] sm:$0xff]  ;;  %v2427_v24 = vmul.f32 %v2410_v12, %v5787_v7  ;;  %v5788_v15 = vld [vmem:[#allocation53_spill] sm:$0xff] }
 0x1ee   : > { %v2666_v61 = vpack.c.bf16 %v2655_v56, %v2654_v0  ;;  %v3534_v55 = vpop.f32.mrf.mxu0  ;;  %v3513_v53 = vpop.f32.mrf.mxu1  ;;  %v2424_v59 = vmul.f32 %v2398_v49, %v5785_v48 }
 0x1ef   : > { %v2624_v19 = vpop.permute.xlu1 %2623  ;;  %v1060_v3 = vadd.f32 %v3513_v53, %v5176_v11  ;;  %v5237_v30 = vadd.f32 %v1299_v47, %v1049_v57  ;;  %v5784_v11 = vld [vmem:[#allocation21_spill] sm:$0xff]  ;;  %v5789_v53 = vld [vmem:[#allocation7_spill] sm:$0xff] }
 0x1f0   : > { %v1315_v28 = vpop.f32.mrf.mxu0  ;;  %3636 = vmatprep.mubr.msk.bf16.mxu0 %vm830_vm3, %v2666_v61  ;;  %v1051_v9 = vpop.f32.mrf.mxu1  ;;  %v2656_v58 = vmul.f32 %v2624_v19, %v5783_v8  ;;  %v2659_v19 = vmul.f32 %v2636_v35, %v5789_v53 }
 0x1f1   : > { %v1052_v6 = vadd.f32 %v1051_v9, %v5181_v41  ;;  %v5240_v52 = vadd.f32 %v3531_v37, %v1060_v3 }
 0x1f2   : > { %v3535_v44 = vpop.f32.mrf.mxu0 }
 0x1f3   : > { %v3516_v31 = vpop.f32.mrf.mxu1  ;;  %v2628_v43 = vpop.permute.xlu1 %2627  ;;  %v5245_v62 = vadd.f32 %v1302_v18, %v1052_v6 }
 0x1f4   : > { %v1073_v2 = vadd.f32 %v3516_v31, %v5184_v60  ;;  %v1318_v22 = vpop.f32.mrf.mxu0  ;;  %v2657_v27 = vmul.f32 %v2628_v43, %v5784_v11 }
 0x1f5   : > { %v1064_v10 = vpop.f32.mrf.mxu1 }
 0x1f6   : > { %v1065_v4 = vadd.f32 %v1064_v10, %v5188_v42  ;;  %v2667_v16 = vpack.c.bf16 %v2657_v27, %v2656_v58  ;;  %v5250_v34 = vadd.f32 %v3534_v55, %v1073_v2 }
 0x1f7   : > { %v5248_v41 = vpop.f32.mrf.mxu0  ;;  %v3517_v32 = vpop.f32.mrf.mxu1 }
 0x1f8   : > { %v1076_v21 = vadd.f32 %v3517_v32, %v5190_v5  ;;  %v2402_v60 = vpop.permute.xlu1 %2401  ;;  %3637 = vmatmul.mubr.msk.bf16.gmra.mxu0 %vm830_vm3, %v2667_v16  ;;  %v5256_v39 = vadd.f32 %v1315_v28, %v1065_v4  ;;  %v5790_v28 = vld [vmem:[#allocation19_spill] sm:$0xff] }
 0x1f9   : > { %v5253_v29 = vpop.f32.mrf.mxu0  ;;  %v1067_v40 = vpop.f32.mrf.mxu1  ;;  %v2425_v42 = vmul.f32 %v2402_v60, %v5786_v14  ;;  %v5791_v32 = vld [vmem:[#allocation15_spill] sm:$0xff]  ;;  %v5792_v60 = vld [vmem:[#allocation52_spill] sm:$0xff] }
 0x1fa   : > { %v1068_v23 = vadd.f32 %v1067_v40, %v5196_v1  ;;  %v5263_v63 = vadd.f32 %v3535_v44, %v1076_v21 }
 0x1fb   : > { %v5261_v38 = vpop.f32.mrf.mxu0  ;;  %v5265_v5 = vpop.f32.mrf.mxu1  ;;  %v2434_v47 = vpack.c.bf16 %v2425_v42, %v2424_v59 }
 0x1fc   : > { %v2406_v37 = vpop.permute.xlu1 %2405  ;;  %v1343_v25 = vadd.f32 %v1318_v22, %v1068_v23 }
 0x1fd   : > { %v5267_v17 = vpop.f32.mrf.mxu0  ;;  %v5270_v56 = vpop.f32.mrf.mxu1  ;;  %v2426_v18 = vmul.f32 %v2406_v37, %v5788_v15  ;;  %3622 = vmatprep.mubr.msk.bf16.mxu1 %vm830_vm3, %v2434_v47 }
 0x1ff   : > { %v3562_v1 = vpop.f32.mrf.mxu0  ;;  %v5274_v0 = vpop.f32.mrf.mxu1  ;;  %v2435_v26 = vpack.c.bf16 %v2427_v24, %v2426_v18 }
 0x201   : > { %v1784_v57 = vpop.f32.mrf.mxu0  ;;  %v5276_v61 = vpop.f32.mrf.mxu1  ;;  %3623 = vmatmul.mubr.msk.bf16.gmra.mxu1 %vm830_vm3, %v2435_v26 }
 0x202   : > { %v2632_v55 = vpop.permute.xlu1 %2631 }
 0x203   : > { %v3563_v3 = vpop.f32.mrf.mxu0  ;;  %v2658_v9 = vmul.f32 %v2632_v55, %v5790_v28  ;;  %v3544_v6 = vpop.f32.mrf.mxu1 }
 0x204   : > { %v1603_v44 = vadd.f32 %v3544_v6, %v5214_v54 }
 0x205   : > { %v2668_v31 = vpack.c.bf16 %v2659_v19, %v2658_v9  ;;  %v1550_v43 = vpop.f32.mrf.mxu1  ;;  %v1787_v8 = vpop.f32.mrf.mxu0 }
 0x206   : > { %v2640_v49 = vpop.permute.xlu1 %2639  ;;  %v1601_v2 = vadd.f32 %v1550_v43, %v5217_v46  ;;  %v5284_v58 = vadd.f32 %v3562_v1, %v1603_v44 }
 0x207   : > { %3640 = vmatprep.mubr.msk.bf16.mxu0 %vm830_vm3, %v2668_v31  ;;  %v3545_v22 = vpop.f32.mrf.mxu1  ;;  %v2660_v21 = vmul.f32 %v2640_v49, %v5791_v32 }
 0x208   : > { %v1604_v11 = vadd.f32 %v3545_v22, %v5223_v36  ;;  %v3566_v27 = vpop.f32.mrf.mxu0  ;;  %v5287_v10 = vadd.f32 %v1784_v57, %v1601_v2 }
 0x209   : > { %v1553_v4 = vpop.f32.mrf.mxu1 }
 0x20a   : > { %v2644_v16 = vpop.permute.xlu1 %2643  ;;  %v1602_v54 = vadd.f32 %v1553_v4, %v5225_v13  ;;  %v1800_v46 = vpop.f32.mrf.mxu0  ;;  %v5292_v59 = vadd.f32 %v3563_v3, %v1604_v11  ;;  %v3745_v3 = vld [vmem:[%s5501_s6] sm:$0xff]  }
 0x20b   : > { %v2661_v48 = vmul.f32 %v2644_v16, %v5792_v60  ;;  %v3548_v40 = vpop.f32.mrf.mxu1  ;;  %3644 = vmatprep.subr.bf16.mxu1 %v3745_v3 }
 0x20c   : > { %v1607_v14 = vadd.f32 %v3548_v40, %v5233_v20  ;;  %v5295_v12 = vadd.f32 %v1787_v8, %v1602_v54  ;;  %v3567_v23 = vpop.f32.mrf.mxu0  ;;  %3645 = vmatpush3.bf16.msra.mxu1 %v3745_v3 }
 0x20d   : > { %v2669_v42 = vpack.c.bf16 %v2661_v48, %v2660_v21  ;;  %v1566_v36 = vpop.f32.mrf.mxu1 }
 0x20e   : > { %v1605_v47 = vadd.f32 %v1566_v36, %v5237_v30  ;;  %v5298_v37 = vadd.f32 %v3566_v27, %v1607_v14  ;;  %v1803_v18 = vpop.f32.mrf.mxu0 }
 0x20f   : > { %3641 = vmatmul.mubr.msk.bf16.gmra.mxu0 %vm830_vm3, %v2669_v42  ;;  %v3549_v13 = vpop.f32.mrf.mxu1 }
 0x210   : > { %v1608_v7 = vadd.f32 %v3549_v13, %v5240_v52  ;;  %v5302_v24 = vadd.f32 %v1800_v46, %v1605_v47 }
 0x211   : > { %v1569_v15 = vpop.f32.mrf.mxu1 }
 0x212   : > { %v1606_v20 = vadd.f32 %v1569_v15, %v5245_v62  ;;  %v5305_v1 = vadd.f32 %v3567_v23, %v1608_v7 }
 0x213   : > { %v3552_v35 = vpop.f32.mrf.mxu1 }
 0x214   : > { %v5307_v26 = vadd.f32 %v1803_v18, %v1606_v20  ;;  %v1611_v30 = vadd.f32 %v3552_v35, %v5250_v34 }
 0x215   : > { %v1582_v57 = vpop.f32.mrf.mxu1 }
 0x216   : > { %v1609_v55 = vadd.f32 %v1582_v57, %v5256_v39 }
 0x217   : > { %v3553_v53 = vpop.f32.mrf.mxu1 }
 0x218   : > { %v1612_v19 = vadd.f32 %v3553_v53, %v5263_v63 }
 0x219   : > { %v1585_v52 = vpop.f32.mrf.mxu1 }
 0x21a   : > { %v1610_v28 = vadd.f32 %v1585_v52, %v1343_v25 }
 0x21c   : > { %v3570_v62 = vpop.f32.mrf.mxu0 }
 0x21d   : > { %v1845_v9 = vadd.f32 %v3570_v62, %v1611_v30 }
 0x21e   : > { %v1816_v6 = vpop.f32.mrf.mxu0 }
 0x21f   : > { %v1843_v44 = vadd.f32 %v1816_v6, %v1609_v55 }
 0x220   : > { %v3571_v31 = vpop.f32.mrf.mxu0 }
 0x221   : > { %v1846_v34 = vadd.f32 %v3571_v31, %v1612_v19 }
 0x222   : > { %v1819_v43 = vpop.f32.mrf.mxu0 }
 0x223   : > { %v1844_v49 = vadd.f32 %v1819_v43, %v1610_v28  ;;  %v1597_v43 = vadd.f32 %v5270_v56, %v5203_v33 }
 0x224   : > { %v3576_v39 = vpop.f32.mrf.mxu1 }
 0x226   : > { %v2035_v2 = vpop.f32.mrf.mxu1 }
 0x228   : > { %v3577_v8 = vpop.f32.mrf.mxu1 }
 0x22a   : > { %v2038_v63 = vpop.f32.mrf.mxu1 }
 0x230   : > { %v3594_v22 = vpop.f32.mrf.mxu0 }
 0x232   : > { %v2269_v27 = vpop.f32.mrf.mxu0 }
 0x234   : > { %v3595_v25 = vpop.f32.mrf.mxu0 }
 0x236   : > { %v2272_v54 = vpop.f32.mrf.mxu0 }
 0x238   : > { %v5315_v11 = vpop.f32.mrf.mxu1 }
 0x23a   : > { %v5317_v4 = vpop.f32.mrf.mxu1 }
 0x23c   : > { %v5319_v16 = vpop.f32.mrf.mxu1 }
 0x23e   : > { %v5321_v32 = vpop.f32.mrf.mxu1 }
 0x245   : > { %v5323_v21 = vpop.f32.mrf.mxu0 }
 0x247   : > { %v5327_v48 = vpop.f32.mrf.mxu0 }
 0x249   : > { %v5331_v40 = vpop.f32.mrf.mxu0 }
 0x24b   : > { %v5335_v42 = vpop.f32.mrf.mxu0 }
 0x24f   : > { %v5325_v60 = vpop.f32.mrf.mxu1 }
 0x251   : > { %v5329_v46 = vpop.f32.mrf.mxu1 }
 0x253   : > { %v5333_v14 = vpop.f32.mrf.mxu1 }
 0x255   : > { %v5337_v36 = vpop.f32.mrf.mxu1 }
 0x25d   : > { %v5339_v23 = vpop.f32.mrf.mxu0 }
 0x25f   : > { %v5341_v15 = vpop.f32.mrf.mxu0 }
 0x261   : > { %v5343_v57 = vpop.f32.mrf.mxu0 }
 0x263   : > { %v5345_v53 = vpop.f32.mrf.mxu0 }
 0x267   : > { %v3588_v47 = vpop.f32.mrf.mxu1 }
 0x268   : > { %v2112_v13 = vadd.f32 %v3588_v47, %v1845_v9 }
 0x269   : > { %v2083_v7 = vpop.f32.mrf.mxu1 }
 0x26a   : > { %v2110_v18 = vadd.f32 %v2083_v7, %v1843_v44  ;;  %v1599_v44 = vadd.f32 %v5265_v5, %v5199_v50  ;;  %v1598_v7 = vadd.f32 %v5276_v61, %v5209_v51  ;;  %v5370_v51 = vld [vmem:[%s5500_s5] ss:$0 sm:$0xff] }
 0x26b   : > { %v3589_v20 = vpop.f32.mrf.mxu1 }
 0x26c   : > { %v2113_v35 = vadd.f32 %v3589_v20, %v1846_v34  ;;  %v1833_v47 = vadd.f32 %v5248_v41, %v1599_v44  ;;  %v1831_v20 = vadd.f32 %v5253_v29, %v1597_v43  ;;  %v1832_v33 = vadd.f32 %v5267_v17, %v1598_v7 }
 0x26d   : > { %v2086_v30 = vpop.f32.mrf.mxu1 }
 0x26e   : > { %v2111_v55 = vadd.f32 %v2086_v30, %v1844_v49  ;;  %v1600_v49 = vadd.f32 %v5274_v0, %v5205_v45  ;;  %v2099_v0 = vadd.f32 %v2038_v63, %v1832_v33 }
 0x270   : > { %v1834_v30 = vadd.f32 %v5261_v38, %v1600_v49  ;;  %v2333_v38 = vadd.f32 %v2272_v54, %v2099_v0 }
 0x276   : > { %v3606_v19 = vpop.f32.mrf.mxu0 }
 0x277   : > { %v5347_v52 = vadd.f32 %v3606_v19, %v2112_v13 }
 0x278   : > { %v2317_v3 = vpop.f32.mrf.mxu0 }
 0x279   : > { %v5349_v28 = vadd.f32 %v2317_v3, %v2110_v18  ;;  %v2100_v18 = vadd.f32 %v3576_v39, %v1833_v47 }
 0x27a   : > { %v3607_v62 = vpop.f32.mrf.mxu0 }
 0x27b   : > { %v5351_v9 = vadd.f32 %v3607_v62, %v2113_v35  ;;  %v2098_v35 = vadd.f32 %v2035_v2, %v1831_v20  ;;  %v2334_v50 = vadd.f32 %v3594_v22, %v2100_v18 }
 0x27c   : > { %v2320_v6 = vpop.f32.mrf.mxu0 }
 0x27d   : > { %v5353_v31 = vadd.f32 %v2320_v6, %v2111_v55  ;;  %v2101_v55 = vadd.f32 %v3577_v8, %v1834_v30  ;;  %v2332_v56 = vadd.f32 %v2269_v27, %v2098_v35  ;;  %v2104_v35 = vadd.f32 %v5315_v11, %v5284_v58 }
 0x27e   : > { %v2102_v30 = vadd.f32 %v5317_v4, %v5287_v10 }
 0x27f   : > { %v3612_v34 = vpop.f32.mrf.mxu1  ;;  %v2335_v41 = vadd.f32 %v3595_v25, %v2101_v55  ;;  %v2105_v55 = vadd.f32 %v5319_v16, %v5292_v59 }
 0x280   : > { %v2568_v19 = vadd.f32 %v3612_v34, %v2334_v50  ;;  %v2338_v50 = vadd.f32 %v5323_v21, %v2104_v35  ;;  %v2336_v33 = vadd.f32 %v5327_v48, %v2102_v30 }
 0x281   : > { %v2503_v13 = vpop.f32.mrf.mxu1  ;;  %v2339_v0 = vadd.f32 %v5331_v40, %v2105_v55 }
 0x282   : > { %v2566_v3 = vadd.f32 %v2503_v13, %v2332_v56 }
 0x283   : > { %v3613_v5 = vpop.f32.mrf.mxu1 }
 0x284   : > { %v2569_v61 = vadd.f32 %v3613_v5, %v2335_v41 }
 0x285   : > { %v2506_v6 = vpop.f32.mrf.mxu1 }
 0x286   : > { %v2567_v8 = vadd.f32 %v2506_v6, %v2333_v38 }
 0x28c   : > { %v3630_v45 = vpop.f32.mrf.mxu0 }
 0x28d   : > { %v2802_v62 = vadd.f32 %v3630_v45, %v2568_v19  ;;  %v2103_v45 = vadd.f32 %v5321_v32, %v5295_v12 }
 0x28e   : > { %v2737_v29 = vpop.f32.mrf.mxu0 }
 0x28f   : > { %v2800_v39 = vadd.f32 %v2737_v29, %v2566_v3  ;;  %v2825_v17 = vadd.f32 %v5370_v51, %v2802_v62  ;;  %v2337_v10 = vadd.f32 %v5335_v42, %v2103_v45 }
 0x290   : > { %v3631_v2 = vpop.f32.mrf.mxu0 }
 0x291   : > { %v2803_v22 = vadd.f32 %v3631_v2, %v2569_v61  ;;  %v2823_v63 = vadd.f32 %v5370_v51, %v2800_v39  ;;  %v2841_v34 = vmax.f32 %v2825_v17, 0.0 }
 0x292   : > { %v2740_v27 = vpop.f32.mrf.mxu0 }
 0x293   : > { %v2826_v25 = vadd.f32 %v5370_v51, %v2803_v22  ;;  %v2801_v44 = vadd.f32 %v2740_v27, %v2567_v8  ;;  %v2839_v47 = vmax.f32 %v2823_v63, 0.0  ;;  %v2108_v27 = vadd.f32 %v5325_v60, %v5298_v37 }
 0x294   : > { %v2106_v63 = vadd.f32 %v5329_v46, %v5302_v24 }
 0x295   : > { %v2842_v43 = vmax.f32 %v2826_v25, 0.0  ;;  %v2824_v49 = vadd.f32 %v5370_v51, %v2801_v44  ;;  %v3616_v7 = vpop.f32.mrf.mxu1  ;;  %v2342_v25 = vadd.f32 %v5339_v23, %v2108_v27 }
 0x296   : > { %v2572_v56 = vadd.f32 %v3616_v7, %v2338_v50 }
 0x297   : > { %v2856_v13 = vpack.c.bf16 %v2842_v43, %v2841_v34  ;;  %v2840_v54 = vmax.f32 %v2824_v49, 0.0  ;;  %v2519_v20 = vpop.f32.mrf.mxu1  ;;  %v2109_v34 = vadd.f32 %v5333_v14, %v5305_v1  ;;  %v2340_v43 = vadd.f32 %v5341_v15, %v2106_v63 }
 0x298   : > { %v2570_v41 = vadd.f32 %v2519_v20, %v2336_v33 }
 0x299   : > { %v2855_v18 = vpack.c.bf16 %v2840_v54, %v2839_v47  ;;  %v3617_v5 = vpop.f32.mrf.mxu1  ;;  %v2343_v54 = vadd.f32 %v5343_v57, %v2109_v34 }
 0x29a   : > { %v2573_v4 = vadd.f32 %v3617_v5, %v2339_v0 }
 0x29b   : > { %3646 = vmatprep.mubr.msk.bf16.mxu1 %vm830_vm3, %v2855_v18  ;;  %v2522_v11 = vpop.f32.mrf.mxu1 }
 0x29c   : > { %3647 = vmatmul.mubr.msk.bf16.vlgmr.msra.gmra.mxu1 %vm830_vm3, %v2856_v13  ;;  %v2571_v6 = vadd.f32 %v2522_v11, %v2337_v10  ;;  %v2107_v13 = vadd.f32 %v5337_v36, %v5307_v26 }
 0x29e   : > { %v2341_v24 = vadd.f32 %v5345_v53, %v2107_v13 }
 0x2a2   : > { %v3634_v19 = vpop.f32.mrf.mxu0 }
 0x2a3   : > { %v2806_v58 = vadd.f32 %v3634_v19, %v2572_v56 }
 0x2a4   : > { %v2753_v3 = vpop.f32.mrf.mxu0 }
 0x2a5   : > { %v2804_v21 = vadd.f32 %v2753_v3, %v2570_v41  ;;  %v2829_v59 = vadd.f32 %v5370_v51, %v2806_v58 }
 0x2a6   : > { %v3635_v62 = vpop.f32.mrf.mxu0 }
 0x2a7   : > { %v2807_v16 = vadd.f32 %v3635_v62, %v2573_v4  ;;  %v2827_v29 = vadd.f32 %v5370_v51, %v2804_v21  ;;  %v2845_v40 = vmax.f32 %v2829_v59, 0.0 }
 0x2a8   : > { %v2756_v48 = vpop.f32.mrf.mxu0 }
 0x2a9   : > { %v2830_v12 = vadd.f32 %v5370_v51, %v2807_v16  ;;  %v2805_v32 = vadd.f32 %v2756_v48, %v2571_v6  ;;  %v2843_v39 = vmax.f32 %v2827_v29, 0.0 }
 0x2ab   : > { %v2846_v38 = vmax.f32 %v2830_v12, 0.0  ;;  %v2828_v61 = vadd.f32 %v5370_v51, %v2805_v32  ;;  %v3620_v8 = vpop.f32.mrf.mxu1 }
 0x2ac   : > { %v2576_v49 = vadd.f32 %v3620_v8, %v2342_v25 }
 0x2ad   : > { %v2858_v2 = vpack.c.bf16 %v2846_v38, %v2845_v40  ;;  %v2844_v42 = vmax.f32 %v2828_v61, 0.0  ;;  %v2535_v22 = vpop.f32.mrf.mxu1 }
 0x2ae   : > { %v2574_v7 = vadd.f32 %v2535_v22, %v2340_v43  ;;  %v3771_v22 = vld [vmem:[%s3889_s25] sm:$0xff]  }
 0x2af   : > { %v2857_v17 = vpack.c.bf16 %v2844_v42, %v2843_v39  ;;  %v3621_v44 = vpop.f32.mrf.mxu1  ;;  %v3770_v42 = vld [vmem:[%s3889_s25 + $0x8] sm:$0xff]   ;;  %v2999_v27 = vunpack.c.l.bf16 %v3771_v22 }
 0x2b0   : > { %v2577_v46 = vadd.f32 %v3621_v44, %v2343_v54  ;;  %v3001_v8 = vunpack.c.l.bf16 %v3770_v42  ;;  %v3002_v34 = vunpack.c.h.bf16 %v3770_v42 }
 0x2b1   : > { %3650 = vmatprep.mubr.msk.bf16.mxu1 %vm830_vm3, %v2857_v17  ;;  %v2538_v60 = vpop.f32.mrf.mxu1 }
 0x2b2   : > { %3651 = vmatmul.mubr.msk.bf16.gmra.mxu1 %vm830_vm3, %v2858_v2  ;;  %v2575_v35 = vadd.f32 %v2538_v60, %v2341_v24 }
 0x2b8   : > { %v3638_v47 = vpop.f32.mrf.mxu0 }
 0x2b9   : > { %v2810_v37 = vadd.f32 %v3638_v47, %v2576_v49  ;;  %v3000_v49 = vunpack.c.h.bf16 %v3771_v22 }
 0x2ba   : > { %v2769_v18 = vpop.f32.mrf.mxu0 }
 0x2bb   : > { %v2808_v23 = vadd.f32 %v2769_v18, %v2574_v7  ;;  %v2833_v1 = vadd.f32 %v5370_v51, %v2810_v37 }
 0x2bc   : > { %v3639_v20 = vpop.f32.mrf.mxu0 }
 0x2bd   : > { %v2811_v14 = vadd.f32 %v3639_v20, %v2577_v46  ;;  %v2831_v30 = vadd.f32 %v5370_v51, %v2808_v23  ;;  %v2849_v57 = vmax.f32 %v2833_v1, 0.0 }
 0x2be   : > { %v2772_v15 = vpop.f32.mrf.mxu0 }
 0x2bf   : > { %v2834_v26 = vadd.f32 %v5370_v51, %v2811_v14  ;;  %v2809_v36 = vadd.f32 %v2772_v15, %v2575_v35  ;;  %v2847_v55 = vmax.f32 %v2831_v30, 0.0  ;;  %v3772_v15 = vld [vmem:[%s3889_s25 + $0x18] sm:$0xff]  }
 0x2c0   : > { %v3005_v30 = vunpack.c.l.bf16 %v3772_v15 }
 0x2c1   : > { %v2850_v50 = vmax.f32 %v2834_v26, 0.0  ;;  %v2832_v5 = vadd.f32 %v5370_v51, %v2809_v36  ;;  %v3624_v56 = vpop.f32.mrf.mxu1 }
 0x2c2   : > { %v2580_v41 = vadd.f32 %v3624_v56, %v5347_v52 }
 0x2c3   : > { %v2860_v33 = vpack.c.bf16 %v2850_v50, %v2849_v57  ;;  %v2848_v53 = vmax.f32 %v2832_v5, 0.0  ;;  %v2551_v45 = vpop.f32.mrf.mxu1  ;;  %v3773_v57 = vld [vmem:[%s3889_s25 + $0x10] sm:$0xff]  }
 0x2c4   : > { %v2578_v11 = vadd.f32 %v2551_v45, %v5349_v28  ;;  %v3003_v50 = vunpack.c.l.bf16 %v3773_v57 }
 0x2c5   : > { %v2859_v19 = vpack.c.bf16 %v2848_v53, %v2847_v55  ;;  %v3625_v0 = vpop.f32.mrf.mxu1  ;;  %v3006_v53 = vunpack.c.h.bf16 %v3772_v15 }
 0x2c6   : > { %v2581_v21 = vadd.f32 %v3625_v0, %v5351_v9 }
 0x2c7   : > { %3654 = vmatprep.mubr.msk.bf16.mxu1 %vm830_vm3, %v2859_v19  ;;  %v2554_v10 = vpop.f32.mrf.mxu1 }
 0x2c8   : > { %3655 = vmatmul.mubr.msk.bf16.gmra.mxu1 %vm830_vm3, %v2860_v33  ;;  %v2579_v59 = vadd.f32 %v2554_v10, %v5353_v31  ;;  %v5427_v31 = vld [vmem:[%s5502_s7] ss:$0 sm:$0xff] }
 0x2cf   : > { %v3642_v58 = vpop.f32.mrf.mxu0 }
 0x2d0   : > { %v2814_v3 = vadd.f32 %v3642_v58, %v2580_v41  ;;  %v3004_v41 = vunpack.c.h.bf16 %v3773_v57 }
 0x2d1   : > { %v2785_v4 = vpop.f32.mrf.mxu0 }
 0x2d2   : > { %v2812_v62 = vadd.f32 %v2785_v4, %v2578_v11  ;;  %v2837_v16 = vadd.f32 %v5370_v51, %v2814_v3 }
 0x2d3   : > { %v3643_v6 = vpop.f32.mrf.mxu0 }
 0x2d4   : > { %v2815_v48 = vadd.f32 %v3643_v6, %v2581_v21  ;;  %v2835_v12 = vadd.f32 %v5370_v51, %v2812_v62  ;;  %v2853_v32 = vmax.f32 %v2837_v16, 0.0 }
 0x2d5   : > { %v2788_v29 = vpop.f32.mrf.mxu0 }
 0x2d6   : > { %v2838_v52 = vadd.f32 %v5370_v51, %v2815_v48  ;;  %v2813_v28 = vadd.f32 %v2788_v29, %v2579_v59  ;;  %v2851_v9 = vmax.f32 %v2835_v12, 0.0  ;;  %v3774_v29 = vld [vmem:[%s3889_s25 + $0x28] sm:$0xff]  }
 0x2d7   : > { %v3009_v12 = vunpack.c.l.bf16 %v3774_v29 }
 0x2d8   : > { %v2854_v40 = vmax.f32 %v2838_v52, 0.0  ;;  %v2836_v38 = vadd.f32 %v5370_v51, %v2813_v28 }
 0x2da   : > { %v2862_v61 = vpack.c.bf16 %v2854_v40, %v2853_v32  ;;  %v2852_v39 = vmax.f32 %v2836_v38, 0.0  ;;  %v3775_v32 = vld [vmem:[%s3889_s25 + $0x20] sm:$0xff]  }
 0x2db   : > { %v3007_v40 = vunpack.c.l.bf16 %v3775_v32  ;;  %v3008_v22 = vunpack.c.h.bf16 %v3775_v32 }
 0x2dc   : > { %v2861_v2 = vpack.c.bf16 %v2852_v39, %v2851_v9  ;;  %v3010_v39 = vunpack.c.h.bf16 %v3774_v29 }
 0x2de   : > { %3658 = vmatprep.mubr.msk.bf16.mxu1 %vm830_vm3, %v2861_v2 }
 0x2df   : > { %3659 = vmatmul.mubr.msk.bf16.gmra.mxu1 %vm830_vm3, %v2862_v61 }
 0x35c   : > { %v3648_v17 = vpop.f32.mrf.mxu1 }
 0x35d   : > { %v2945_v51 = vadd.f32 %v3648_v17, %v5427_v31 }
 0x35e   : > { %v2936_v63 = vpop.f32.mrf.mxu1 }
 0x35f   : > { %v3017_v25 = vadd.f32 %v3001_v8, %v2945_v51  ;;  %v2937_v44 = vadd.f32 %v5427_v31, %v2936_v63 }
 0x360   : > { %v3649_v43 = vpop.f32.mrf.mxu1 }
 0x361   : > { %v3033_v47 = vmax.f32 %v3017_v25, 0.0  ;;  %v3015_v13 = vadd.f32 %v2999_v27, %v2937_v44  ;;  %v2948_v54 = vadd.f32 %v3649_v43, %v5427_v31 }
 0x362   : > { %v2939_v7 = vpop.f32.mrf.mxu1 }
 0x363   : > { %v3342_v37 = vpack.c.bf16 %v3033_v47, %v3033_v47  ;;  %v3031_v60 = vmax.f32 %v3015_v13, 0.0  ;;  %v3018_v18 = vadd.f32 %v3002_v34, %v2948_v54  ;;  %v2940_v24 = vadd.f32 %v5427_v31, %v2939_v7  ;;  %v3776_v7 = vld [vmem:[%s3889_s25 + $0x38] sm:$0xff]  }
 0x365   : > { %3114 = vst.msk [vmem:[%s5439_s20 + $0x8] sm:$0xf] %vm3111_vm7, %v3342_v37  ;;  %v3340_v46 = vpack.c.bf16 %v3031_v60, %v3031_v60  ;;  %v3034_v23 = vmax.f32 %v3018_v18, 0.0  ;;  %v3016_v20 = vadd.f32 %v3000_v49, %v2940_v24  ;;  %v3013_v37 = vunpack.c.l.bf16 %v3776_v7  ;;  %v3777_v24 = vld [vmem:[%s3889_s25 + $0x30] sm:$0xff]  }
 0x367   : > { %3112 = vst.msk [vmem:[%s5439_s20] sm:$0xf] %vm3111_vm7, %v3340_v46  ;;  %v3343_v35 = vpack.c.bf16 %v3034_v23, %v3034_v23  ;;  %v3032_v1 = vmax.f32 %v3016_v20, 0.0  ;;  %v3011_v46 = vunpack.c.l.bf16 %v3777_v24 }
 0x369   : > { %3115 = vst.msk [vmem:[%s5439_s20 + $0xc] sm:$0xf] %vm3111_vm7, %v3343_v35  ;;  %v3341_v14 = vpack.c.bf16 %v3032_v1, %v3032_v1  ;;  %v3014_v1 = vunpack.c.h.bf16 %v3776_v7 }
 0x36b   : > { %3113 = vst.msk [vmem:[%s5439_s20 + $0x4] sm:$0xf] %vm3111_vm7, %v3341_v14 }
 0x372   : > { %v3652_v26 = vpop.f32.mrf.mxu1 }
 0x373   : > { %v2961_v36 = vadd.f32 %v3652_v26, %v5427_v31 }
 0x374   : > { %v2952_v5 = vpop.f32.mrf.mxu1 }
 0x375   : > { %v3021_v55 = vadd.f32 %v3005_v30, %v2961_v36  ;;  %v2953_v33 = vadd.f32 %v5427_v31, %v2952_v5  ;;  %v3012_v36 = vunpack.c.h.bf16 %v3777_v24 }
 0x376   : > { %v3653_v56 = vpop.f32.mrf.mxu1 }
 0x377   : > { %v3037_v19 = vmax.f32 %v3021_v55, 0.0  ;;  %v3019_v45 = vadd.f32 %v3003_v50, %v2953_v33  ;;  %v2964_v0 = vadd.f32 %v3653_v56, %v5427_v31 }
 0x378   : > { %v2955_v58 = vpop.f32.mrf.mxu1 }
 0x379   : > { %v3346_v11 = vpack.c.bf16 %v3037_v19, %v3037_v19  ;;  %v3035_v3 = vmax.f32 %v3019_v45, 0.0  ;;  %v3022_v10 = vadd.f32 %v3006_v53, %v2964_v0  ;;  %v2956_v4 = vadd.f32 %v5427_v31, %v2955_v58 }
 0x37b   : > { %3118 = vst.msk [vmem:[%s5439_s20 + $0x18] sm:$0xf] %vm3111_vm7, %v3346_v11  ;;  %v3344_v21 = vpack.c.bf16 %v3035_v3, %v3035_v3  ;;  %v3038_v62 = vmax.f32 %v3022_v10, 0.0  ;;  %v3020_v6 = vadd.f32 %v3004_v41, %v2956_v4 }
 0x37d   : > { %3116 = vst.msk [vmem:[%s5439_s20 + $0x10] sm:$0xf] %vm3111_vm7, %v3344_v21  ;;  %v3347_v59 = vpack.c.bf16 %v3038_v62, %v3038_v62  ;;  %v3036_v16 = vmax.f32 %v3020_v6, 0.0 }
 0x37f   : > { %3119 = vst.msk [vmem:[%s5439_s20 + $0x1c] sm:$0xf] %vm3111_vm7, %v3347_v59  ;;  %v3345_v48 = vpack.c.bf16 %v3036_v16, %v3036_v16 }
 0x381   : > { %3117 = vst.msk [vmem:[%s5439_s20 + $0x14] sm:$0xf] %vm3111_vm7, %v3345_v48 }
 0x388   : > { %v3656_v52 = vpop.f32.mrf.mxu1 }
 0x389   : > { %v2977_v28 = vadd.f32 %v3656_v52, %v5427_v31 }
 0x38a   : > { %v2968_v38 = vpop.f32.mrf.mxu1 }
 0x38b   : > { %v3025_v9 = vadd.f32 %v3009_v12, %v2977_v28  ;;  %v2969_v61 = vadd.f32 %v5427_v31, %v2968_v38 }
 0x38c   : > { %v3657_v2 = vpop.f32.mrf.mxu1 }
 0x38d   : > { %v3041_v42 = vmax.f32 %v3025_v9, 0.0  ;;  %v3023_v8 = vadd.f32 %v3007_v40, %v2969_v61  ;;  %v2980_v17 = vadd.f32 %v3657_v2, %v5427_v31 }
 0x38e   : > { %v2971_v27 = vpop.f32.mrf.mxu1 }
 0x38f   : > { %v3350_v51 = vpack.c.bf16 %v3041_v42, %v3041_v42  ;;  %v3039_v63 = vmax.f32 %v3023_v8, 0.0  ;;  %v3026_v25 = vadd.f32 %v3010_v39, %v2980_v17  ;;  %v2972_v44 = vadd.f32 %v5427_v31, %v2971_v27 }
 0x391   : > { %3122 = vst.msk [vmem:[%s5439_s20 + $0x28] sm:$0xf] %vm3111_vm7, %v3350_v51  ;;  %v3348_v34 = vpack.c.bf16 %v3039_v63, %v3039_v63  ;;  %v3042_v43 = vmax.f32 %v3026_v25, 0.0  ;;  %v3024_v49 = vadd.f32 %v3008_v22, %v2972_v44 }
 0x393   : > { %3120 = vst.msk [vmem:[%s5439_s20 + $0x20] sm:$0xf] %vm3111_vm7, %v3348_v34  ;;  %v3351_v47 = vpack.c.bf16 %v3042_v43, %v3042_v43  ;;  %v3040_v13 = vmax.f32 %v3024_v49, 0.0 }
 0x395   : > { %3123 = vst.msk [vmem:[%s5439_s20 + $0x2c] sm:$0xf] %vm3111_vm7, %v3351_v47  ;;  %v3349_v54 = vpack.c.bf16 %v3040_v13, %v3040_v13 }
 0x397   : > { %3121 = vst.msk [vmem:[%s5439_s20 + $0x24] sm:$0xf] %vm3111_vm7, %v3349_v54 }
 0x39f   : > { %v3660_v60 = vpop.f32.mrf.mxu1 }
 0x3a0   : > { %v2993_v18 = vadd.f32 %v3660_v60, %v5427_v31 }
 0x3a1   : > { %v2984_v23 = vpop.f32.mrf.mxu1 }
 0x3a2   : > { %v3029_v20 = vadd.f32 %v3013_v37, %v2993_v18  ;;  %v2985_v35 = vadd.f32 %v5427_v31, %v2984_v23 }
 0x3a3   : > { %v3661_v14 = vpop.f32.mrf.mxu1 }
 0x3a4   : > { %v3045_v15 = vmax.f32 %v3029_v20, 0.0  ;;  %v3027_v30 = vadd.f32 %v3011_v46, %v2985_v35  ;;  %v2996_v26 = vadd.f32 %v3661_v14, %v5427_v31 }
 0x3a5   : > { %v2987_v57 = vpop.f32.mrf.mxu1 }
 0x3a6   : > { %v3354_v50 = vpack.c.bf16 %v3045_v15, %v3045_v15  ;;  %v3043_v5 = vmax.f32 %v3027_v30, 0.0  ;;  %v3030_v55 = vadd.f32 %v3014_v1, %v2996_v26  ;;  %v2988_v33 = vadd.f32 %v5427_v31, %v2987_v57 }
 0x3a8   : > { %3126 = vst.msk [vmem:[%s5439_s20 + $0x38] sm:$0xf] %vm3111_vm7, %v3354_v50  ;;  %v3352_v53 = vpack.c.bf16 %v3043_v5, %v3043_v5  ;;  %v3046_v56 = vmax.f32 %v3030_v55, 0.0  ;;  %v3028_v19 = vadd.f32 %v3012_v36, %v2988_v33 }
 0x3aa   : > { %3124 = vst.msk [vmem:[%s5439_s20 + $0x30] sm:$0xf] %vm3111_vm7, %v3352_v53  ;;  %v3355_v45 = vpack.c.bf16 %v3046_v56, %v3046_v56  ;;  %v3044_v0 = vmax.f32 %v3028_v19, 0.0 }
 0x3ac   : > { %3127 = vst.msk [vmem:[%s5439_s20 + $0x3c] sm:$0xf] %vm3111_vm7, %v3355_v45  ;;  %v3353_v41 = vpack.c.bf16 %v3044_v0, %v3044_v0 }
 0x3ae   : > { %3125 = vst.msk [vmem:[%s5439_s20 + $0x34] sm:$0xf] %vm3111_vm7, %v3353_v41 }
 0x3af PF: > { %s18_s27 = sadd.s32 1, %s3784_s27  }
 0x3b0   : > { %p15_p4 = scmp.ge.s32.totalorder %s18_s27, 4  }
 0x3b2   :  { %17 = sbr.rel (!%p15_p4) target bundleno = 1 (0x1), region = 90 }

// kernel: res5_roi_heads_forward.3
= control target key start
LH: loop header
LB: loop body
LE: loop exit
PB: predicated region body
PF: predicated region fallthrough
CT: control target
= control target key end

     0   :  { %s4015_s13 = smov 0   ;;  %s5787_s0 = inlined_call_operand.vmem [shape: bf16[256,32], index: 0, kind: input, shape index: {}]   ;;  %s5788_s1 = inlined_call_operand.vmem [shape: f32[128,9], index: 1, kind: input, shape index: {}]   ;;  %s5789_s2 = inlined_call_operand.vmem [shape: bf16[32,16], index: 2, kind: input, shape index: {}]   ;;  %s5790_s3 = inlined_call_operand.vmem [shape: f32[1,16], index: 3, kind: input, shape index: {}]   ;;  %s5791_s4 = inlined_call_operand.vmem [shape: bf16[9,16,16], index: 4, kind: input, shape index: {}]   ;;  %s5792_s5 = inlined_call_operand.vmem [shape: f32[1,16], index: 5, kind: input, shape index: {}]   ;;  %s5793_s6 = inlined_call_operand.vmem [shape: bf16[16,64], index: 6, kind: input, shape index: {}]   ;;  %s5794_s7 = inlined_call_operand.vmem [shape: f32[1,64], index: 7, kind: input, shape index: {}]   ;;  %s5795_s8 = inlined_call_operand.vmem [shape: bf16[32,64], index: 8, kind: input, shape index: {}]   ;;  %s5796_s9 = inlined_call_operand.vmem [shape: f32[1,64], index: 9, kind: input, shape index: {}]   ;;  %s5797_s10 = inlined_call_operand.vmem [shape: bf16[256,64], index: 10, kind: output, shape index: {}]  }
   0x1 LB: > { %s3326_s14 = sadd.s32 4294967295, %s3949_s13   ;;  %p3330_p0 = scmp.ge.s32.totalorder %s3949_s13, 1  ;;  %s3949_s13 = sphi %s4015_s13, %s20_s13  }
   0x2   : > { %p313_p1 = scmp.lt.s32.totalorder %s3949_s13, 3 }
   0x4   : > { %p314_p2 = pnand %p3330_p0, %p313_p1 }
   0x6   : > { %317 = sbr.rel (%p314_p2) target bundleno = 939 (0x3ab), region = 60 }
   0xb   : > { %v4026_v0 = vld [vmem:[%s5788_s1 + $0x10] sm:$0xff]  ;;  %v4031_v1 = vld [vmem:[%s5788_s1] sm:$0xff]  ;;  %s3331_s19 = sshll.u32 %s3326_s14, 4  ;;  %v3951_v2 = vmov 1   ;;  %v3897_v3 = vld [vmem:[%s5789_s2 + $0x8] sm:$0xff]   ;;  %vm443_vm0 = vcmask 261120  }
   0xc   : > { %3855 = vset.pattern.permute.xlu1 %v3951_v2  ;;  %3854 = vset.pattern.permute.xlu0 %v3951_v2  ;;  %p352_p3 = scmp.lt.s32.totalorder %s3331_s19, 31  ;;  %v4041_v4 = vld [vmem:[%s5788_s1 + $0x18] sm:$0xff]  ;;  %v4046_v5 = vld [vmem:[%s5788_s1 + $0x8] sm:$0xff]  ;;  %v3898_v6 = vld [vmem:[%s5789_s2] sm:$0xff]   ;;  %v3952_v27 = vmov 0   ;;  %v3953_v28 = vmov 2  }
   0xd   : > { %780 = vperm.xlu1 %3855, %v4026_v0   ;;  %772 = vperm.xlu0 %3854, %v4031_v1   ;;  %v4059_v7 = vld [vmem:[%s5788_s1 + $0x28] sm:$0xff]  ;;  %v4064_v8 = vld [vmem:[%s5788_s1 + $0x20] sm:$0xff]  ;;  %v4082_v12 = vld [vmem:[%s5788_s1 + $0x38] sm:$0xff]  ;;  %v3954_v29 = vmov 3   ;;  %v3955_v32 = vmov 4   ;;  %v5804_v39 = vmov 5  }
   0xe   : > { %3617 = vmatprep.subr.bf16.mxu0 %v3897_v3  ;;  %s6082_s19 = smov (!%p352_p3, %s3331_s19), 31  ;;  %v4088_v13 = vld [vmem:[%s5788_s1 + $0x30] sm:$0xff]  ;;  %v4094_v14 = vld [vmem:[%s5788_s1 + $0x48] sm:$0xff]  ;;  %v4099_v15 = vld [vmem:[%s5788_s1 + $0x40] sm:$0xff]  ;;  %v5802_v58 = vmov 6   ;;  %vm868_vm4 = vcmask 130048  }
   0xf   : > { %3618 = vmatpush3.bf16.msra.mxu0 %v3897_v3  ;;  %s3332_s28 = sshll.u32 %s6082_s19, 2  ;;  %5867 = vst [vmem:[#allocation2_spill] sm:$0xff] %v4094_v14  ;;  %5868 = vst [vmem:[#allocation3_spill] sm:$0xff] %v4099_v15  ;;  %v4108_v18 = vld [vmem:[%s5788_s1 + $0x58] sm:$0xff]  ;;  %v4113_v19 = vld [vmem:[%s5788_s1 + $0x50] sm:$0xff]  ;;  %vm3253_vm7 = vcmask 519168  }
  0x10   : > { %3619 = vmatprep.subr.bf16.mxu0 %v3898_v6  ;;  %s4071_s16 = scalar_lea.vmem %s5787_s0, %s3332_s28  ;;  %5869 = vst [vmem:[#allocation4_spill] sm:$0xff] %v4113_v19  ;;  %v4122_v20 = vld [vmem:[%s5788_s1 + $0x68] sm:$0xff]  ;;  %v4129_v21 = vld [vmem:[%s5788_s1 + $0x60] sm:$0xff]  ;;  %v4139_v24 = vld [vmem:[%s5788_s1 + $0x78] sm:$0xff]  ;;  %s5725_s23 = scalar_lea.vmem %s5797_s10, %s3332_s28 }
  0x11   : > { %784 = vperm.xlu1 %3855, %v4041_v4   ;;  %776 = vperm.xlu0 %3854, %v4046_v5   ;;  %v3899_v9 = vld [vmem:[%s4071_s16] sm:$0xff]   ;;  %v3900_v10 = vld [vmem:[%s4071_s16 + $0x8] sm:$0xff]   ;;  %v3901_v11 = vld [vmem:[%s4071_s16 + $0x10] sm:$0xff]  }
  0x12   : > { %3621 = vmatprep.mubr.msk.bf16.mxu0 %vm443_vm0, %v3899_v9  ;;  %v3902_v16 = vld [vmem:[%s4071_s16 + $0x18] sm:$0xff]   ;;  %v3903_v17 = vld [vmem:[%s4071_s16 + $0x20] sm:$0xff]   ;;  %v3904_v22 = vld [vmem:[%s4071_s16 + $0x28] sm:$0xff]   ;;  %v5800_v9 = vmov 8  }
  0x13   : > { %3620 = vmatpush3.bf16.msra.mxu0 %v3898_v6  ;;  %v3905_v23 = vld [vmem:[%s4071_s16 + $0x30] sm:$0xff]   ;;  %v3906_v26 = vld [vmem:[%s4071_s16 + $0x38] sm:$0xff]   ;;  %v3907_v30 = vld [vmem:[%s5791_s4 + $0x8] sm:$0xff]  }
  0x14   : > { %v4144_v25 = vld [vmem:[%s5788_s1 + $0x70] sm:$0xff]  ;;  %3637 = vmatprep.subr.bf16.mxu1 %v3907_v30  ;;  %v4237_v44 = vld [vmem:[%s5791_s4] sm:$0xff]  }
  0x15   : > { %792 = vperm.xlu1 %3855, %v4059_v7   ;;  %788 = vperm.xlu0 %3854, %v4064_v8   ;;  %v3908_v31 = vld [vmem:[%s5791_s4 + $0x10] sm:$0xff]   ;;  %v4250_v47 = vld [vmem:[%s5791_s4 + $0x20] sm:$0xff]  }
  0x16   : > { %3622 = vmatmul.mubr.msk.bf16.vlgmr.msra.gmra.mxu0 %vm443_vm0, %v3900_v10  ;;  %3673 = vmatprep.subr.bf16.mxu0 %v3908_v31 }
  0x17   : > { %3625 = vmatprep.mubr.msk.bf16.mxu0 %vm443_vm0, %v3901_v11  ;;  %3638 = vmatpush3.bf16.msra.mxu1 %v3907_v30 }
  0x18   : > { %3674 = vmatpush3.bf16.msra.mxu0 %v3908_v31  ;;  %3655 = vmatprep.subr.bf16.mxu1 %v4237_v44 }
  0x19   : > { %800 = vperm.xlu1 %3855, %v4082_v12   ;;  %796 = vperm.xlu0 %3854, %v4088_v13  }
  0x1a   : > { %3709 = vmatprep.subr.bf16.mxu0 %v4250_v47 }
  0x1d   : > { %808 = vperm.xlu1 %3855, %v4094_v14   ;;  %804 = vperm.xlu0 %3854, %v4099_v15  }
  0x1e   : > { %3626 = vmatmul.mubr.msk.bf16.gmra.mxu0 %vm443_vm0, %v3902_v16 }
  0x1f   : > { %3629 = vmatprep.mubr.msk.bf16.mxu0 %vm443_vm0, %v3903_v17 }
  0x21   : > { %816 = vperm.xlu1 %3855, %v4108_v18   ;;  %812 = vperm.xlu0 %3854, %v4113_v19  }
  0x25   : > { %824 = vperm.xlu1 %3855, %v4122_v20   ;;  %820 = vperm.xlu0 %3854, %v4129_v21  }
  0x26   : > { %3630 = vmatmul.mubr.msk.bf16.gmra.mxu0 %vm443_vm0, %v3904_v22 }
  0x27   : > { %3633 = vmatprep.mubr.msk.bf16.mxu0 %vm443_vm0, %v3905_v23 }
  0x29   : > { %832 = vperm.xlu1 %3855, %v4139_v24   ;;  %828 = vperm.xlu0 %3854, %v4144_v25  }
  0x2d   : > { %3857 = vset.pattern.permute.xlu1 %v3952_v27  ;;  %3856 = vset.pattern.permute.xlu0 %v3952_v27 }
  0x2e   : > { %639 = vperm.xlu1 %3857, %v4046_v5   ;;  %634 = vperm.xlu0 %3856, %v4031_v1  }
  0x2f   : > { %3634 = vmatmul.mubr.msk.bf16.gmra.mxu0 %vm443_vm0, %v3906_v26  ;;  %v5798_v26 = vmov 7  }
  0x32   : > { %644 = vperm.xlu1 %3857, %v4026_v0   ;;  %649 = vperm.xlu0 %3856, %v4041_v4  }
  0x36   : > { %3858 = vset.pattern.permute.xlu1 %v3953_v28  ;;  %654 = vperm.xlu0 %3856, %v4064_v8  }
  0x37   : > { %1151 = vperm.xlu1 %3858, %v4031_v1  }
  0x3a   : > { %669 = vperm.xlu0 %3856, %v4082_v12  }
  0x3b   : > { %1159 = vperm.xlu1 %3858, %v4026_v0  }
  0x3e   : > { %674 = vperm.xlu0 %3856, %v4099_v15  }
  0x3f   : > { %1163 = vperm.xlu1 %3858, %v4041_v4  }
  0x42   : > { %689 = vperm.xlu0 %3856, %v4108_v18  }
  0x43   : > { %3859 = vset.pattern.permute.xlu1 %v3952_v27 }
  0x44   : > { %659 = vperm.xlu1 %3859, %v4059_v7  }
  0x46   : > { %694 = vperm.xlu0 %3856, %v4129_v21  }
  0x48   : > { %664 = vperm.xlu1 %3859, %v4088_v13  }
  0x4a   : > { %709 = vperm.xlu0 %3856, %v4139_v24  }
  0x4c   : > { %3860 = vset.pattern.permute.xlu1 %v3953_v28 }
  0x4d   : > { %1167 = vperm.xlu1 %3860, %v4064_v8  }
  0x4e   : > { %3864 = vset.pattern.permute.xlu0 %v3953_v28 }
  0x4f   : > { %1155 = vperm.xlu0 %3864, %v4046_v5  }
  0x51   : > { %1175 = vperm.xlu1 %3860, %v4088_v13  }
  0x53   : > { %1171 = vperm.xlu0 %3864, %v4059_v7  }
  0x55   : > { %1179 = vperm.xlu1 %3860, %v4082_v12  }
  0x57   : > { %1187 = vperm.xlu0 %3864, %v4094_v14  }
  0x59   : > { %3861 = vset.pattern.permute.xlu1 %v3952_v27 }
  0x5a   : > { %679 = vperm.xlu1 %3861, %v4094_v14  }
  0x5b   : > { %1203 = vperm.xlu0 %3864, %v4122_v20  }
  0x5e   : > { %684 = vperm.xlu1 %3861, %v4113_v19  }
  0x5f   : > { %3866 = vset.pattern.permute.xlu0 %v3954_v29 }
  0x60   : > { %1418 = vperm.xlu0 %3866, %v4031_v1  }
  0x62   : > { %3862 = vset.pattern.permute.xlu1 %v3953_v28 }
  0x63   : > { %1183 = vperm.xlu1 %3862, %v4099_v15  }
  0x64   : > { %1430 = vperm.xlu0 %3866, %v4041_v4  }
  0x67   : > { %1191 = vperm.xlu1 %3862, %v4113_v19  }
  0x68   : > { %1434 = vperm.xlu0 %3866, %v4064_v8  }
  0x6b   : > { %1195 = vperm.xlu1 %3862, %v4108_v18  }
  0x6c   : > { %1446 = vperm.xlu0 %3866, %v4082_v12  }
  0x6f   : > { %3863 = vset.pattern.permute.xlu1 %v3952_v27 }
  0x70   : > { %699 = vperm.xlu1 %3863, %v4122_v20   ;;  %1450 = vperm.xlu0 %3866, %v4099_v15  }
  0x74   : > { %704 = vperm.xlu1 %3863, %v4144_v25   ;;  %1462 = vperm.xlu0 %3866, %v4108_v18  }
  0x78   : > { %3865 = vset.pattern.permute.xlu1 %v3953_v28  ;;  %1466 = vperm.xlu0 %3866, %v4129_v21  }
  0x79   : > { %1199 = vperm.xlu1 %3865, %v4129_v21  }
  0x7c   : > { %1478 = vperm.xlu0 %3866, %v4139_v24  }
  0x7d   : > { %1207 = vperm.xlu1 %3865, %v4144_v25  }
  0x80   : > { %3874 = vset.pattern.permute.xlu0 %v3955_v32 }
  0x81   : > { %1211 = vperm.xlu1 %3865, %v4139_v24   ;;  %1656 = vperm.xlu0 %3874, %v4046_v5  }
  0x85   : > { %3867 = vset.pattern.permute.xlu1 %v3954_v29  ;;  %1672 = vperm.xlu0 %3874, %v4059_v7  }
  0x86   : > { %1422 = vperm.xlu1 %3867, %v4046_v5  }
  0x88   : > { %v4203_v33 = vpop.permute.xlu1 %780  ;;  %v4205_v34 = vpop.permute.xlu0 %772 }
  0x89   : > { %1688 = vperm.xlu0 %3874, %v4094_v14  }
  0x8a   : > { %1426 = vperm.xlu1 %3867, %v4026_v0  }
  0x8c   : > { %v4209_v35 = vpop.permute.xlu1 %784  ;;  %v4211_v36 = vpop.permute.xlu0 %776 }
  0x8d   : > { %1704 = vperm.xlu0 %3874, %v4122_v20  }
  0x8e   : > { %3868 = vset.pattern.permute.xlu1 %v3955_v32 }
  0x8f   : > { %1652 = vperm.xlu1 %3868, %v4031_v1  }
  0x90   : > { %v4216_v37 = vpop.permute.xlu1 %792  ;;  %v4218_v38 = vpop.permute.xlu0 %788 }
  0x91   : > { %3876 = vset.pattern.permute.xlu0 %v5804_v39 }
  0x92   : > { %1919 = vperm.xlu0 %3876, %v4031_v1  }
  0x93   : > { %1660 = vperm.xlu1 %3868, %v4026_v0  }
  0x94   : > { %v4223_v40 = vpop.permute.xlu1 %800  ;;  %v4225_v41 = vpop.permute.xlu0 %796 }
  0x96   : > { %1931 = vperm.xlu0 %3876, %v4041_v4  }
  0x97   : > { %1664 = vperm.xlu1 %3868, %v4041_v4  }
  0x98   : > { %v4229_v42 = vpop.permute.xlu1 %808  ;;  %v4231_v43 = vpop.permute.xlu0 %804 }
  0x9a   : > { %1935 = vperm.xlu0 %3876, %v4064_v8  }
  0x9b   : > { %3869 = vset.pattern.permute.xlu1 %v3954_v29 }
  0x9c   : > { %v4240_v45 = vpop.permute.xlu1 %816  ;;  %1438 = vperm.xlu1 %3869, %v4059_v7   ;;  %v4243_v46 = vpop.permute.xlu0 %812 }
  0x9d   : > { %5870 = vst [vmem:[#allocation5_spill] sm:$0xff] %v4240_v45  ;;  %5871 = vst [vmem:[#allocation6_spill] sm:$0xff] %v4243_v46  ;;  %v5905_v46 = vmov 8  }
  0x9e   : > { %1947 = vperm.xlu0 %3876, %v4082_v12  }
  0xa0   : > { %v4252_v48 = vpop.permute.xlu1 %824  ;;  %1442 = vperm.xlu1 %3869, %v4088_v13   ;;  %v4255_v49 = vpop.permute.xlu0 %820 }
  0xa1   : > { %5872 = vst [vmem:[#allocation7_spill] sm:$0xff] %v4252_v48  ;;  %5873 = vst [vmem:[#allocation8_spill] sm:$0xff] %v4255_v49 }
  0xa2   : > { %1951 = vperm.xlu0 %3876, %v4099_v15  }
  0xa4   : > { %v4259_v50 = vpop.permute.xlu1 %832  ;;  %3870 = vset.pattern.permute.xlu1 %v3955_v32  ;;  %v4262_v51 = vpop.permute.xlu0 %828 }
  0xa5   : > { %5874 = vst [vmem:[#allocation9_spill] sm:$0xff] %v4259_v50  ;;  %5875 = vst [vmem:[#allocation10_spill] sm:$0xff] %v4262_v51  ;;  %1668 = vperm.xlu1 %3870, %v4064_v8  }
  0xa6   : > { %1963 = vperm.xlu0 %3876, %v4108_v18  }
  0xa9   : > { %v4266_v52 = vpop.permute.xlu1 %639  ;;  %1676 = vperm.xlu1 %3870, %v4088_v13   ;;  %v4269_v53 = vpop.permute.xlu0 %634 }
  0xaa   : > { %5876 = vst [vmem:[#allocation11_spill] sm:$0xff] %v4266_v52  ;;  %5877 = vst [vmem:[#allocation12_spill] sm:$0xff] %v4269_v53  ;;  %1967 = vperm.xlu0 %3876, %v4129_v21   ;;  %v5894_v53 = vmov 6  }
  0xad   : > { %v4272_v54 = vpop.permute.xlu1 %644  ;;  %1680 = vperm.xlu1 %3870, %v4082_v12   ;;  %v4275_v55 = vpop.permute.xlu0 %649 }
  0xae   : > { %5878 = vst [vmem:[#allocation13_spill] sm:$0xff] %v4272_v54  ;;  %5879 = vst [vmem:[#allocation14_spill] sm:$0xff] %v4275_v55  ;;  %1979 = vperm.xlu0 %3876, %v4139_v24  }
  0xb1   : > { %3871 = vset.pattern.permute.xlu1 %v3954_v29  ;;  %v4279_v56 = vpop.permute.xlu0 %654 }
  0xb2   : > { %5880 = vst [vmem:[#allocation15_spill] sm:$0xff] %v4279_v56  ;;  %1454 = vperm.xlu1 %3871, %v4094_v14   ;;  %v4282_v57 = vpop.permute.xlu1 %1151  ;;  %3884 = vset.pattern.permute.xlu0 %v5802_v58 }
  0xb3   : > { %2157 = vperm.xlu0 %3884, %v4046_v5  }
  0xb5   : > { %v4286_v59 = vpop.permute.xlu0 %669 }
  0xb6   : > { %5881 = vst [vmem:[#allocation16_spill] sm:$0xff] %v4286_v59  ;;  %1458 = vperm.xlu1 %3871, %v4113_v19   ;;  %v4289_v60 = vpop.permute.xlu1 %1159 }
  0xb7   : > { %2173 = vperm.xlu0 %3884, %v4059_v7  }
  0xb9   : > { %v4292_v61 = vpop.permute.xlu0 %674 }
  0xba   : > { %5882 = vst [vmem:[#allocation17_spill] sm:$0xff] %v4292_v61  ;;  %3872 = vset.pattern.permute.xlu1 %v3955_v32  ;;  %v4295_v62 = vpop.permute.xlu1 %1163  ;;  %v5892_v61 = vmov 5  }
  0xbb   : > { %1684 = vperm.xlu1 %3872, %v4099_v15   ;;  %2189 = vperm.xlu0 %3884, %v4094_v14  }
  0xbd   : > { %v4299_v63 = vpop.permute.xlu0 %689 }
  0xbe   : > { %5883 = vst [vmem:[#allocation18_spill] sm:$0xff] %v4299_v63 }
  0xbf   : > { %1692 = vperm.xlu1 %3872, %v4113_v19   ;;  %v4302_v2 = vpop.permute.xlu1 %659  ;;  %2205 = vperm.xlu0 %3884, %v4122_v20  }
  0xc0   : > { %5884 = vst [vmem:[#allocation19_spill] sm:$0xff] %v4302_v2 }
  0xc1   : > { %v4305_v3 = vpop.permute.xlu0 %694 }
  0xc2   : > { %5885 = vst [vmem:[#allocation20_spill] sm:$0xff] %v4305_v3 }
  0xc3   : > { %1696 = vperm.xlu1 %3872, %v4108_v18   ;;  %v4308_v6 = vpop.permute.xlu1 %664  ;;  %3888 = vset.pattern.permute.xlu0 %v5800_v9 }
  0xc4   : > { %5886 = vst [vmem:[#allocation21_spill] sm:$0xff] %v4308_v6  ;;  %2625 = vperm.xlu0 %3888, %v4046_v5  }
  0xc5   : > { %v4312_v10 = vpop.permute.xlu0 %709 }
  0xc6   : > { %5887 = vst [vmem:[#allocation22_spill] sm:$0xff] %v4312_v10  ;;  %v597_v10 = vlaneseq }
  0xc7   : > { %3873 = vset.pattern.permute.xlu1 %v3954_v29  ;;  %v4342_v29 = vld [vmem:[%s5790_s3] ss:$0 sm:$0xff] }
  0xc8   : > { %1470 = vperm.xlu1 %3873, %v4122_v20   ;;  %v4316_v11 = vpop.permute.xlu1 %1167  ;;  %2641 = vperm.xlu0 %3888, %v4059_v7   ;;  %v4364_v6 = vshrl.u32 %v597_v10, 7 }
  0xca   : > { %v4319_v16 = vpop.permute.xlu0 %1155  ;;  %vm1400_vm1 = vcmp.lt.s32.totalorder %v4364_v6, 1  ;;  %vm1133_vm2 = vcmp.lt.s32.totalorder %v4364_v6, 3  ;;  %vm754_vm3 = vcmp.lt.s32.totalorder %v4364_v6, 4  ;;  %vm1901_vm5 = vcmp.lt.s32.totalorder %v4364_v6, 7 }
  0xcb   : > { %vm599_vm6 = vcmp.lt.s32.totalorder %v4364_v6, 5 }
  0xcc   : > { %1474 = vperm.xlu1 %3873, %v4144_v25   ;;  %v4322_v17 = vpop.permute.xlu1 %1175  ;;  %2657 = vperm.xlu0 %3888, %v4094_v14  }
  0xce   : > { %v4325_v22 = vpop.permute.xlu0 %1171 }
  0xd0   : > { %3875 = vset.pattern.permute.xlu1 %v3955_v32  ;;  %v4328_v23 = vpop.permute.xlu1 %1179  ;;  %3893 = vset.pattern.permute.xlu0 %v5798_v26 }
  0xd1   : > { %1700 = vperm.xlu1 %3875, %v4129_v21   ;;  %2387 = vperm.xlu0 %3893, %v4031_v1  }
  0xd2   : > { %v4333_v27 = vpop.permute.xlu0 %1187 }
  0xd5   : > { %1708 = vperm.xlu1 %3875, %v4144_v25   ;;  %v4336_v28 = vpop.permute.xlu1 %679  ;;  %2399 = vperm.xlu0 %3893, %v4041_v4  }
  0xd6   : > { %5888 = vst [vmem:[#allocation23_spill] sm:$0xff] %v4336_v28  ;;  %v3623_v30 = vpop.f32.mrf.mxu0  ;;  %v4344_v31 = vpop.permute.xlu0 %1203 }
  0xd7   : > { %5889 = vst [vmem:[#allocation24_spill] sm:$0xff] %v4344_v31  ;;  %v511_v32 = vadd.f32 %v3623_v30, %v4342_v29 }
  0xd8   : > { %v502_v26 = vpop.f32.mrf.mxu0 }
  0xd9   : > { %1712 = vperm.xlu1 %3875, %v4139_v24   ;;  %v4348_v9 = vpop.permute.xlu1 %684  ;;  %2403 = vperm.xlu0 %3893, %v4064_v8   ;;  %v4354_v3 = vmax.f32 %v511_v32, 0.0  ;;  %v503_v19 = vadd.f32 %v4342_v29, %v502_v26 }
  0xda   : > { %5890 = vst [vmem:[#allocation25_spill] sm:$0xff] %v4348_v9  ;;  %v3624_v25 = vpop.f32.mrf.mxu0 }
  0xdb   : > { %v514_v58 = vadd.f32 %v3624_v25, %v4342_v29  ;;  %v4352_v39 = vpop.permute.xlu0 %1418  ;;  %v5809_v59 = vrot.slane %v4354_v3, 7 }
  0xdc   : > { %5891 = vst [vmem:[#allocation26_spill] sm:$0xff] %v4352_v39  ;;  %v505_v63 = vpop.f32.mrf.mxu0 }
  0xdd   : > { %3877 = vset.pattern.permute.xlu1 %v5892_v61  ;;  %2415 = vperm.xlu0 %3893, %v4082_v12   ;;  %v4358_v30 = vmax.f32 %v514_v58, 0.0  ;;  %v506_v56 = vadd.f32 %v4342_v29, %v505_v63 }
  0xde   : > { %1923 = vperm.xlu1 %3877, %v4046_v5   ;;  %v4361_v9 = vpop.permute.xlu1 %1183  ;;  %v3627_v28 = vpop.f32.mrf.mxu0 }
  0xdf   : > { %5893 = vst [vmem:[#allocation27_spill] sm:$0xff] %v4358_v30  ;;  %v1431_v25 = vpop.permute.xlu0 %1430  ;;  %v1387_v32 = vrot.slane %v4358_v30, 7 }
  0xe0   : > { %v518_v39 = vpop.f32.mrf.mxu0 }
  0xe1   : > { %v519_v2 = vadd.f32 %v4342_v29, %v518_v39  ;;  %2419 = vperm.xlu0 %3893, %v4099_v15   ;;  %v1413_v10 = vsel %vm1400_vm1, %v5809_v59, %v1387_v32  ;;  %v4388_v59 = vmax.f32 %v506_v56, 0.0  ;;  %v1119_v56 = vrot.slane %v4354_v3, 5 }
  0xe2   : > { %1927 = vperm.xlu1 %3877, %v4026_v0   ;;  %v4371_v5 = vpop.permute.xlu1 %1191  ;;  %v3628_v58 = vpop.f32.mrf.mxu0  ;;  %v4380_v54 = vmul.f32 %v1431_v25, %v1413_v10 }
  0xe3   : > { %v4378_v55 = vmax.f32 %v519_v2, 0.0  ;;  %v1435_v39 = vpop.permute.xlu0 %1434 }
  0xe4   : > { %v521_v52 = vpop.f32.mrf.mxu0 }
  0xe5   : > { %2431 = vperm.xlu0 %3893, %v4108_v18   ;;  %v5810_v50 = vrot.slane %v4378_v55, 7  ;;  %v522_v63 = vadd.f32 %v4342_v29, %v521_v52  ;;  %v4403_v52 = vmax.f32 %v503_v19, 0.0  ;;  %v741_v19 = vrot.slane %v4358_v30, 4 }
  0xe6   : > { %3878 = vset.pattern.permute.xlu1 %v5894_v53  ;;  %v4385_v15 = vpop.permute.xlu1 %1195  ;;  %v3631_v51 = vpop.f32.mrf.mxu0 }
  0xe7   : > { %5895 = vst [vmem:[#allocation28_spill] sm:$0xff] %v4385_v15  ;;  %2153 = vperm.xlu1 %3878, %v4031_v1   ;;  %v1412_v18 = vsel %vm1400_vm1, %v1387_v32, %v5810_v50  ;;  %v4396_v2 = vpop.permute.xlu0 %1446  ;;  %v4405_v1 = vmax.f32 %v522_v63, 0.0  ;;  %v5906_v63 = vrot.slane %v4403_v52, 4 }
  0xe8   : > { %5896 = vst [vmem:[#allocation29_spill] sm:$0xff] %v4396_v2  ;;  %v4398_v25 = vmul.f32 %v1435_v39, %v1412_v18  ;;  %v534_v10 = vpop.f32.mrf.mxu0  ;;  %v739_v39 = vrot.slane %v4388_v59, 4  ;;  %v1120_v18 = vrot.slane %v4358_v30, 5 }
  0xe9   : > { %2435 = vperm.xlu0 %3893, %v4129_v21   ;;  %v527_v21 = vadd.f32 %v3627_v28, %v4342_v29 }
  0xea   : > { %5897 = vst [vmem:[#allocation30_spill] sm:$0xff] %v4398_v25  ;;  %v3632_v45 = vpop.f32.mrf.mxu0  ;;  %v740_v25 = vrot.slane %v4354_v3, 4 }
  0xeb   : > { %2161 = vperm.xlu1 %3878, %v4026_v0   ;;  %v4408_v26 = vpop.permute.xlu1 %699  ;;  %v4410_v32 = vpop.permute.xlu0 %1450  ;;  %v4435_v49 = vmax.f32 %v527_v21, 0.0  ;;  %v4453_v21 = vsel %vm754_vm3, %v5906_v63, %v739_v39 }
  0xec   : > { %5898 = vst [vmem:[#allocation31_spill] sm:$0xff] %v4408_v26  ;;  %5899 = vst [vmem:[#allocation32_spill] sm:$0xff] %v4410_v32  ;;  %v537_v50 = vpop.f32.mrf.mxu0  ;;  %v1118_v26 = vrot.slane %v4388_v59, 5  ;;  %v530_v32 = vadd.f32 %v3628_v58, %v4342_v29  ;;  %v4430_v48 = vsel %vm754_vm3, %v739_v39, %v740_v25  ;;  %v4441_v58 = vsel %vm754_vm3, %v740_v25, %v741_v19 }
  0xed   : > { %2447 = vperm.xlu0 %3893, %v4139_v24   ;;  %5901 = vst [vmem:[#allocation34_spill] sm:$0xff] %v4430_v48  ;;  %v742_v24 = vrot.slane %v4378_v55, 4  ;;  %5903 = vst [vmem:[#allocation36_spill] sm:$0xff] %v4441_v58  ;;  %v5909_v25 = vrot.slane %v4403_v52, 5  ;;  %v4472_v39 = vmul.f32 %v4203_v33, %v4430_v48  ;;  %v538_v63 = vadd.f32 %v4342_v29, %v537_v50 }
  0xee   : > { %5907 = vst [vmem:[#allocation38_spill] sm:$0xff] %v4453_v21  ;;  %v4457_v0 = vsel %vm1133_vm2, %v1118_v26, %v1119_v56  ;;  %v4466_v14 = vmax.f32 %v530_v32, 0.0  ;;  %v1122_v33 = vrot.slane %v4405_v1, 5 }
  0xef   : > { %v4423_v2 = vpop.f32.mrf.mxu0  ;;  %2165 = vperm.xlu1 %3878, %v4041_v4   ;;  %v4426_v28 = vpop.permute.xlu1 %704  ;;  %v4445_v4 = vsel %vm1133_vm2, %v1119_v56, %v1120_v18  ;;  %5908 = vst [vmem:[#allocation39_spill] sm:$0xff] %v4457_v0  ;;  %v1121_v56 = vrot.slane %v4378_v55, 5 }
  0xf0   : > { %5900 = vst [vmem:[#allocation33_spill] sm:$0xff] %v4426_v28  ;;  %v4437_v15 = vpop.permute.xlu0 %1462  ;;  %5904 = vst [vmem:[#allocation37_spill] sm:$0xff] %v4445_v4 }
  0xf1   : > { %5902 = vst [vmem:[#allocation35_spill] sm:$0xff] %v4437_v15  ;;  %v550_v31 = vpop.f32.mrf.mxu0  ;;  %3896 = vset.pattern.permute.xlu0 %v5905_v46  ;;  %v4463_v15 = vsel %vm1133_vm2, %v5909_v25, %v1118_v26  ;;  %v543_v46 = vadd.f32 %v3631_v51, %v4342_v29  ;;  %v5911_v26 = vrot.slane %v4405_v1, 4  ;;  %v535_v51 = vadd.f32 %v4342_v29, %v534_v10 }
  0xf2   : > { %5910 = vst [vmem:[#allocation40_spill] sm:$0xff] %v4463_v15  ;;  %2673 = vperm.xlu0 %3896, %v4122_v20   ;;  %v4485_v20 = vsel %vm754_vm3, %v741_v19, %v742_v24  ;;  %v546_v25 = vadd.f32 %v3632_v45, %v4342_v29  ;;  %v836_v19 = vmul.f32 %v4211_v36, %v4453_v21 }
  0xf3   : > { %v3636_v30 = vpop.f32.mrf.mxu0  ;;  %3879 = vset.pattern.permute.xlu1 %v5892_v61  ;;  %v4481_v32 = vsel %vm754_vm3, %v742_v24, %v5911_v26  ;;  %5913 = vst [vmem:[#allocation42_spill] sm:$0xff] %v4485_v20  ;;  %v1216_v26 = vmul.f32 %v4289_v60, %v4457_v0  ;;  %v1215_v10 = vmul.f32 %v4319_v16, %v4463_v15  ;;  %v4520_v16 = vmax.f32 %v543_v46, 0.0 }
  0xf4   : > { %5912 = vst [vmem:[#allocation41_spill] sm:$0xff] %v4481_v32  ;;  %v562_v50 = vadd.f32 %v3636_v30, %v4342_v29  ;;  %1939 = vperm.xlu1 %3879, %v4059_v7   ;;  %v4492_v28 = vpop.permute.xlu1 %1199  ;;  %v4494_v48 = vpop.permute.xlu0 %1466  ;;  %v838_v45 = vmul.f32 %v4209_v35, %v4441_v58  ;;  %v1217_v7 = vmul.f32 %v4295_v62, %v4445_v4  ;;  %v4522_v35 = vmax.f32 %v538_v63, 0.0 }
  0xf5   : > { %v4510_v24 = vmul.f32 %v4218_v38, %v4485_v20  ;;  %v4514_v60 = vmul.f32 %v4216_v37, %v4481_v32  ;;  %v4518_v36 = vsel %vm1133_vm2, %v1120_v18, %v1121_v56  ;;  %v4529_v38 = vmax.f32 %v535_v51, 0.0  ;;  %v553_v32 = vpop.f32.mrf.mxu0 }
  0xf6   : > { %v4506_v30 = vmax.f32 %v562_v50, 0.0  ;;  %5914 = vst [vmem:[#allocation43_spill] sm:$0xff] %v4518_v36  ;;  %v852_v62 = vpack.c.bf16 %v838_v45, %v4472_v39  ;;  %v4527_v50 = vsel %vm1133_vm2, %v1121_v56, %v1122_v33  ;;  %v4531_v4 = vmax.f32 %v546_v25, 0.0 }
  0xf7   : > { %5915 = vst [vmem:[#allocation44_spill] sm:$0xff] %v4527_v50  ;;  %v1231_v63 = vpack.c.bf16 %v1217_v7, %v1216_v26  ;;  %v1218_v56 = vmul.f32 %v4316_v11, %v4518_v36  ;;  %v744_v51 = vrot.slane %v4435_v49, 4  ;;  %v745_v25 = vrot.slane %v4466_v14, 4 }
  0xf8   : > { %1943 = vperm.xlu1 %3879, %v4088_v13   ;;  %v4534_v37 = vpop.permute.xlu1 %1207  ;;  %v5820_v18 = vrot.slane %v4506_v30, 5  ;;  %v4537_v46 = vpop.permute.xlu0 %1478  ;;  %v5823_v39 = vrot.slane %v4506_v30, 4  ;;  %v551_v45 = vadd.f32 %v4342_v29, %v550_v31  ;;  %v5916_v15 = vrot.slane %v4403_v52, 5 }
  0xf9   : > { %v853_v26 = vpack.c.bf16 %v4514_v60, %v4510_v24  ;;  %v1219_v11 = vmul.f32 %v4325_v22, %v4527_v50  ;;  %v5918_v7 = vrot.slane %v4403_v52, 4  ;;  %v554_v60 = vadd.f32 %v4342_v29, %v553_v32 }
  0xfa   : > { %v4551_v0 = vsel %vm1133_vm2, %v5820_v18, %v5916_v15  ;;  %v746_v18 = vrot.slane %v4529_v38, 4  ;;  %v5920_v24 = vrot.slane %v4354_v3, 7  ;;  %v5921_v32 = vrot.slane %v4388_v59, 7 }
  0xfb   : > { %5917 = vst [vmem:[#allocation45_spill] sm:$0xff] %v4551_v0  ;;  %v4564_v31 = vsel %vm754_vm3, %v5823_v39, %v5918_v7  ;;  %v1214_v15 = vmul.f32 %v4282_v57, %v4551_v0  ;;  %v1123_v7 = vrot.slane %v4435_v49, 5  ;;  %v1124_v39 = vrot.slane %v4466_v14, 5 }
  0xfc   : > { %5919 = vst [vmem:[#allocation46_spill] sm:$0xff] %v4564_v31  ;;  %3880 = vset.pattern.permute.xlu1 %v5894_v53  ;;  %v4572_v22 = vpop.permute.xlu1 %1211  ;;  %v835_v50 = vmul.f32 %v4205_v34, %v4564_v31  ;;  %v4576_v36 = vpop.permute.xlu0 %1656  ;;  %v1414_v0 = vsel %vm1400_vm1, %v5921_v32, %v5920_v24  ;;  %v4589_v58 = vsel %vm754_vm3, %v744_v51, %v745_v25  ;;  %v5923_v34 = vrot.slane %v4405_v1, 4 }
  0xfd   : > { %2169 = vperm.xlu1 %3880, %v4064_v8   ;;  %v1230_v57 = vpack.c.bf16 %v1215_v10, %v1214_v15  ;;  %5922 = vst [vmem:[#allocation47_spill] sm:$0xff] %v4589_v58  ;;  %v4597_v20 = vmax.f32 %v551_v45, 0.0  ;;  %v4601_v10 = vsel %vm1133_vm2, %v1122_v33, %v1123_v7  ;;  %v1125_v15 = vrot.slane %v4529_v38, 5 }
  0xfe   : > { %v4595_v31 = vsel %vm754_vm3, %v5923_v34, %v744_v51  ;;  %v851_v8 = vpack.c.bf16 %v836_v19, %v835_v50  ;;  %5925 = vst [vmem:[#allocation49_spill] sm:$0xff] %v4601_v10  ;;  %v1232_v24 = vpack.c.bf16 %v1219_v11, %v1218_v56  ;;  %v5926_v32 = vrot.slane %v4522_v35, 4 }
  0xff   : > { %5924 = vst [vmem:[#allocation48_spill] sm:$0xff] %v4595_v31  ;;  %3675 = vmatprep.mubr.msk.bf16.mxu0 %vm868_vm4, %v1230_v57  ;;  %v4613_v51 = vsel %vm754_vm3, %v745_v25, %v746_v18  ;;  %v1126_v19 = vrot.slane %v4522_v35, 5  ;;  %v1128_v33 = vrot.slane %v4531_v4, 5  ;;  %v4617_v50 = vmax.f32 %v554_v60, 0.0 }
 0x100   : > { %v4609_v21 = vsel %vm754_vm3, %v746_v18, %v5926_v32  ;;  %5928 = vst [vmem:[#allocation51_spill] sm:$0xff] %v4613_v51  ;;  %3639 = vmatprep.mubr.msk.bf16.mxu1 %vm868_vm4, %v851_v8  ;;  %3676 = vmatmul.mubr.msk.bf16.vlgmr.msra.gmra.mxu0 %vm868_vm4, %v1231_v63  ;;  %v4621_v56 = vpop.permute.xlu0 %1672  ;;  %v841_v45 = vmul.f32 %v4225_v41, %v4595_v31  ;;  %v5830_v41 = vrot.slane %v4388_v59, 1 }
 0x101   : > { %5927 = vst [vmem:[#allocation50_spill] sm:$0xff] %v4609_v21  ;;  %v4627_v11 = vsel %vm1133_vm2, %v1123_v7, %v1124_v39  ;;  %3640 = vmatmul.mubr.msk.bf16.vlgmr.msra.gmra.mxu1 %vm868_vm4, %v852_v62  ;;  %3679 = vmatprep.mubr.msk.bf16.mxu0 %vm868_vm4, %v1232_v24  ;;  %v4631_v18 = vpop.permute.xlu1 %1422  ;;  %v842_v25 = vmul.f32 %v4223_v40, %v4589_v58  ;;  %v4645_v62 = vld [vmem:[%s5791_s4 + $0x18] sm:$0xff]   ;;  %v1129_v7 = vrot.slane %v4597_v20, 5  ;;  %v5932_v24 = vrot.slane %v4403_v52, 1 }
 0x102   : > { %5929 = vst [vmem:[#allocation52_spill] sm:$0xff] %v4627_v11  ;;  %v1220_v63 = vmul.f32 %v4322_v17, %v4601_v10  ;;  %v4639_v60 = vsel %vm1133_vm2, %v1125_v15, %v1126_v19  ;;  %3643 = vmatprep.mubr.msk.bf16.mxu1 %vm868_vm4, %v853_v26  ;;  %2177 = vperm.xlu1 %3880, %v4088_v13   ;;  %v748_v26 = vrot.slane %v4520_v16, 4  ;;  %v749_v13 = vrot.slane %v4531_v4, 4 }
 0x103   : > { %5930 = vst [vmem:[#allocation53_spill] sm:$0xff] %v4639_v60  ;;  %v843_v40 = vmul.f32 %v4231_v43, %v4613_v51  ;;  %v844_v17 = vmul.f32 %v4229_v42, %v4609_v21  ;;  %v4656_v57 = vsel %vm1133_vm2, %v1124_v39, %v1125_v15  ;;  %v559_v34 = vadd.f32 %v4423_v2, %v4342_v29  ;;  %v4668_v42 = vld [vmem:[%s5791_s4 + $0x30] sm:$0xff]  }
 0x104   : > { %5931 = vst [vmem:[#allocation54_spill] sm:$0xff] %v4656_v57  ;;  %v1223_v8 = vmul.f32 %v4333_v27, %v4639_v60  ;;  %3656 = vmatpush3.bf16.msra.mxu1 %v4237_v44  ;;  %v854_v39 = vpack.c.bf16 %v842_v25, %v841_v45  ;;  %v1221_v29 = vmul.f32 %v4328_v23, %v4627_v11  ;;  %v4673_v2 = vpop.permute.xlu0 %1688  ;;  %v1127_v27 = vrot.slane %v4520_v16, 5 }
 0x105   : > { %3710 = vmatpush3.bf16.msra.mxu0 %v4250_v47  ;;  %v1427_v15 = vpop.permute.xlu1 %1426  ;;  %v1222_v44 = vmul.f32 %v4361_v9, %v4656_v57  ;;  %v4685_v32 = vsel %vm1901_vm5, %v5932_v24, %v5830_v41  ;;  %v750_v23 = vrot.slane %v4597_v20, 4  ;;  %v751_v45 = vrot.slane %v4617_v50, 4  ;;  %3691 = vmatprep.subr.bf16.mxu1 %v4645_v62 }
 0x106   : > { %v4692_v47 = vsel %vm1133_vm2, %v1128_v33, %v1129_v7  ;;  %2181 = vperm.xlu1 %3880, %v4082_v12   ;;  %v4695_v9 = vmul.f32 %v1427_v15, %v1414_v0  ;;  %v1233_v25 = vpack.c.bf16 %v1221_v29, %v1220_v63  ;;  %v855_v43 = vpack.c.bf16 %v844_v17, %v843_v40  ;;  %v5951_v12 = vld [vmem:[#allocation8_spill] sm:$0xff] }
 0x107   : > { %5933 = vst [vmem:[#allocation55_spill] sm:$0xff] %v4692_v47  ;;  %v1234_v60 = vpack.c.bf16 %v1223_v8, %v1222_v44  ;;  %v4699_v24 = vsel %vm754_vm3, %v748_v26, %v749_v13  ;;  %v5935_v41 = vrot.slane %v4522_v35, 4  ;;  %v4709_v57 = vsel %vm1133_vm2, %v1126_v19, %v1127_v27  ;;  %3745 = vmatprep.subr.bf16.mxu0 %v4668_v42  ;;  %v5947_v44 = vld [vmem:[#allocation6_spill] sm:$0xff] }
 0x108   : > { %5934 = vst [vmem:[#allocation56_spill] sm:$0xff] %v4699_v24  ;;  %5937 = vst [vmem:[#allocation58_spill] sm:$0xff] %v4709_v57  ;;  %3680 = vmatmul.mubr.msk.bf16.gmra.mxu0 %vm868_vm4, %v1233_v25  ;;  %v4715_v0 = vpop.permute.xlu0 %1704  ;;  %v5938_v63 = vrot.slane %v4617_v50, 5  ;;  %v5833_v19 = vrot.slane %v4405_v1, 7  ;;  %v4729_v17 = vsel %vm1133_vm2, %v1127_v27, %v1128_v33  ;;  %v4733_v8 = vsel %vm754_vm3, %v750_v23, %v751_v45 }
 0x109   : > { %v4705_v21 = vsel %vm754_vm3, %v5935_v41, %v748_v26  ;;  %v1889_v41 = vrot.slane %v4378_v55, 1  ;;  %3644 = vmatmul.mubr.msk.bf16.gmra.mxu1 %vm868_vm4, %v854_v39  ;;  %3683 = vmatprep.mubr.msk.bf16.mxu0 %vm868_vm4, %v1234_v60  ;;  %5940 = vst [vmem:[#allocation60_spill] sm:$0xff] %v4729_v17  ;;  %5941 = vst [vmem:[#allocation61_spill] sm:$0xff] %v4733_v8  ;;  %v5836_v26 = vrot.slane %v4405_v1, 1  ;;  %v4740_v29 = vmax.f32 %v559_v34, 0.0  ;;  %v5943_v39 = vld [vmem:[#allocation27_spill] sm:$0xff] }
 0x10a   : > { %5936 = vst [vmem:[#allocation57_spill] sm:$0xff] %v4705_v21  ;;  %v4721_v40 = vsel %vm1133_vm2, %v1129_v7, %v5938_v63  ;;  %v4737_v7 = vsel %vm754_vm3, %v749_v13, %v750_v23  ;;  %3647 = vmatprep.mubr.msk.bf16.mxu1 %vm868_vm4, %v855_v43  ;;  %3881 = vset.pattern.permute.xlu1 %v5892_v61  ;;  %v1653_v60 = vpop.permute.xlu1 %1652  ;;  %v5944_v27 = vrot.slane %v5943_v39, 1  ;;  %v5945_v13 = vrot.slane %v4378_v55, 7  ;;  %v5946_v43 = vld [vmem:[#allocation2_spill] sm:$0xff] }
 0x10b   : > { %5939 = vst [vmem:[#allocation59_spill] sm:$0xff] %v4721_v40  ;;  %5942 = vst [vmem:[#allocation62_spill] sm:$0xff] %v4737_v7  ;;  %v1224_v33 = vmul.f32 %v4371_v5, %v4709_v57  ;;  %1955 = vperm.xlu1 %3881, %v5946_v43   ;;  %v845_v23 = vmul.f32 %v5947_v44, %v4705_v21  ;;  %v5948_v5 = vld [vmem:[#allocation24_spill] sm:$0xff]  ;;  %v4769_v63 = vsel %vm1901_vm5, %v1889_v41, %v5836_v26 }
 0x10c   : > { %v4750_v15 = vsel %vm1901_vm5, %v5944_v27, %v1889_v41  ;;  %v4758_v34 = vsel %vm1400_vm1, %v5945_v13, %v5833_v19  ;;  %v1227_v25 = vmul.f32 %v5948_v5, %v4721_v40  ;;  %5949 = vst [vmem:[#allocation27_spill] sm:$0xff] %v4769_v63  ;;  %v5950_v27 = vld [vmem:[#allocation28_spill] sm:$0xff]  ;;  %v847_v43 = vmul.f32 %v5951_v12, %v4737_v7  ;;  %v5952_v19 = vld [vmem:[#allocation7_spill] sm:$0xff]  ;;  %v5953_v41 = vld [vmem:[#allocation5_spill] sm:$0xff] }
 0x10d   : > { %v1225_v13 = vmul.f32 %v5950_v27, %v4729_v17  ;;  %v848_v44 = vmul.f32 %v5952_v19, %v4733_v8  ;;  %v581_v57 = vrot.slane %v4403_v52, 3  ;;  %v1226_v5 = vmul.f32 %v4492_v28, %v4692_v47  ;;  %v4784_v21 = vpop.permute.xlu0 %1919 }
 0x10e   : > { %v1131_v40 = vrot.slane %v4740_v29, 5  ;;  %v846_v26 = vmul.f32 %v5953_v41, %v4699_v24  ;;  %v1390_v17 = vrot.slane %v4435_v49, 7  ;;  %v4789_v7 = vpop.permute.xlu1 %1660  ;;  %v752_v8 = vrot.slane %v4740_v29, 4  ;;  %v5956_v41 = vld [vmem:[#allocation4_spill] sm:$0xff] }
 0x10f   : > { %v1235_v19 = vpack.c.bf16 %v1225_v13, %v1224_v33  ;;  %v5954_v28 = vrot.slane %v4506_v30, 5  ;;  %1959 = vperm.xlu1 %3881, %v5956_v41   ;;  %v1236_v11 = vpack.c.bf16 %v1227_v25, %v1226_v5  ;;  %v582_v27 = vrot.slane %v4388_v59, 3 }
 0x110   : > { %v856_v24 = vpack.c.bf16 %v846_v26, %v845_v23  ;;  %v857_v12 = vpack.c.bf16 %v848_v44, %v847_v43  ;;  %v4803_v33 = vsel %vm754_vm3, %v751_v45, %v752_v8  ;;  %v5847_v13 = vrot.slane %v4529_v38, 1 }
 0x111   : > { %v4796_v47 = vsel %vm1133_vm2, %v1131_v40, %v5954_v28  ;;  %3684 = vmatmul.mubr.msk.bf16.gmra.mxu0 %vm868_vm4, %v1235_v19  ;;  %5957 = vst [vmem:[#allocation6_spill] sm:$0xff] %v4803_v33  ;;  %v5848_v10 = vrot.slane %v4522_v35, 1  ;;  %v583_v28 = vrot.slane %v4354_v3, 3  ;;  %v584_v58 = vrot.slane %v5943_v39, 3  ;;  %v4817_v45 = vpop.permute.xlu0 %1931 }
 0x112   : > { %5955 = vst [vmem:[#allocation2_spill] sm:$0xff] %v4796_v47  ;;  %v5958_v26 = vrot.slane %v4617_v50, 5  ;;  %3648 = vmatmul.mubr.msk.bf16.gmra.mxu1 %vm868_vm4, %v856_v24  ;;  %3687 = vmatprep.mubr.msk.bf16.mxu0 %vm868_vm4, %v1236_v11  ;;  %v5960_v25 = vrot.slane %v4506_v30, 3  ;;  %v5962_v44 = vrot.slane %v4466_v14, 7  ;;  %v1665_v24 = vpop.permute.xlu1 %1664  ;;  %v5963_v11 = vrot.slane %v4506_v30, 4 }
 0x113   : > { %3651 = vmatprep.mubr.msk.bf16.mxu1 %vm868_vm4, %v857_v12  ;;  %v1715_v12 = vmul.f32 %v1653_v60, %v4403_v52  ;;  %3882 = vset.pattern.permute.xlu1 %v5894_v53  ;;  %v5969_v60 = vld [vmem:[#allocation9_spill] sm:$0xff] }
 0x114   : > { %v4813_v23 = vsel %vm1133_vm2, %v5958_v26, %v1131_v40  ;;  %v4823_v43 = vsel %vm599_vm6, %v5960_v25, %v581_v57  ;;  %v1409_v5 = vsel %vm1400_vm1, %v1390_v17, %v5962_v44  ;;  %v1229_v40 = vmul.f32 %v4572_v22, %v4796_v47  ;;  %v5966_v25 = vld [vmem:[#allocation10_spill] sm:$0xff]  ;;  %v5967_v47 = vld [vmem:[#allocation3_spill] sm:$0xff] }
 0x115   : > { %5959 = vst [vmem:[#allocation24_spill] sm:$0xff] %v4813_v23  ;;  %5961 = vst [vmem:[#allocation28_spill] sm:$0xff] %v4823_v43  ;;  %v4836_v19 = vsel %vm754_vm3, %v752_v8, %v5963_v11  ;;  %v4844_v26 = vsel %vm1901_vm5, %v5847_v13, %v5848_v10  ;;  %v1716_v22 = vmul.f32 %v4576_v36, %v4388_v59  ;;  %2185 = vperm.xlu1 %3882, %v5967_v47   ;;  %v5968_v13 = vld [vmem:[#allocation12_spill] sm:$0xff]  ;;  %v4864_v31 = vpop.permute.xlu0 %1935  ;;  %v5972_v36 = vld [vmem:[#allocation11_spill] sm:$0xff] }
 0x116   : > { %5964 = vst [vmem:[#allocation8_spill] sm:$0xff] %v4836_v19  ;;  %5965 = vst [vmem:[#allocation7_spill] sm:$0xff] %v4844_v26  ;;  %v849_v44 = vmul.f32 %v5966_v25, %v4803_v33  ;;  %v4854_v8 = vsel %vm599_vm6, %v581_v57, %v582_v27  ;;  %v1228_v11 = vmul.f32 %v4534_v37, %v4813_v23  ;;  %v585_v25 = vrot.slane %v4378_v55, 3  ;;  %v5971_v26 = vld [vmem:[#allocation29_spill] sm:$0xff] }
 0x117   : > { %v712_v10 = vmul.f32 %v5968_v13, %v4823_v43  ;;  %v850_v51 = vmul.f32 %v5969_v60, %v4836_v19  ;;  %5970 = vst [vmem:[#allocation5_spill] sm:$0xff] %v4864_v31  ;;  %v586_v57 = vrot.slane %v4405_v1, 3  ;;  %v4870_v37 = vmul.f32 %v5971_v26, %v1409_v5  ;;  %v1439_v19 = vpop.permute.xlu1 %1438 }
 0x118   : > { %v1237_v47 = vpack.c.bf16 %v1229_v40, %v1228_v11  ;;  %v4874_v13 = vsel %vm599_vm6, %v582_v27, %v583_v28  ;;  %v713_v23 = vmul.f32 %v5972_v36, %v4854_v8  ;;  %v1731_v60 = vpack.c.bf16 %v1716_v22, %v1715_v12 }
 0x119   : > { %v858_v43 = vpack.c.bf16 %v850_v51, %v849_v44  ;;  %v4880_v31 = vsel %vm599_vm6, %v583_v28, %v584_v58  ;;  %v5973_v33 = vrot.slane %v4617_v50, 1  ;;  %v5974_v5 = vrot.slane %v4597_v20, 1  ;;  %2193 = vperm.xlu1 %3882, %v5956_v41   ;;  %v5977_v41 = vld [vmem:[#allocation13_spill] sm:$0xff]  ;;  %v5980_v44 = vld [vmem:[#allocation14_spill] sm:$0xff] }
 0x11a   : > { %v4892_v27 = vmul.f32 %v1439_v19, %v4758_v34  ;;  %3688 = vmatmul.mubr.msk.bf16.gmra.mxu0 %vm868_vm4, %v1237_v47  ;;  %v728_v51 = vpack.c.bf16 %v713_v23, %v712_v10  ;;  %v5975_v26 = vrot.slane %v4405_v1, 7  ;;  %v5855_v22 = vrot.slane %v4506_v30, 1 }
 0x11b   : > { %v4888_v40 = vsel %vm1901_vm5, %v5974_v5, %v5973_v33  ;;  %3652 = vmatmul.mubr.msk.bf16.gmra.mxu1 %vm868_vm4, %v858_v43  ;;  %3711 = vmatprep.mubr.msk.bf16.mxu0 %vm868_vm4, %v1731_v60  ;;  %v4902_v33 = vpop.permute.xlu0 %1947  ;;  %v714_v34 = vmul.f32 %v5977_v41, %v4874_v13  ;;  %v4908_v19 = vsel %vm599_vm6, %v585_v25, %v586_v57  ;;  %v5979_v43 = vld [vmem:[#allocation30_spill] sm:$0xff]  ;;  %v5981_v36 = vrot.slane %v4403_v52, 1 }
 0x11c   : > { %v1410_v28 = vsel %vm1400_vm1, %v5975_v26, %v1390_v17  ;;  %5976 = vst [vmem:[#allocation4_spill] sm:$0xff] %v4902_v33  ;;  %5978 = vst [vmem:[#allocation10_spill] sm:$0xff] %v4908_v19  ;;  %v4912_v10 = vsel %vm599_vm6, %v584_v58, %v585_v25  ;;  %v1887_v17 = vrot.slane %v4354_v3, 1  ;;  %v1718_v23 = vmul.f32 %v1665_v24, %v5943_v39  ;;  %v1443_v25 = vpop.permute.xlu1 %1442  ;;  %v4938_v26 = vld [vmem:[%s5788_s1 + $0x58] sm:$0xff] }
 0x11d   : > { %3657 = vmatprep.mubr.msk.bf16.mxu1 %vm868_vm4, %v728_v51  ;;  %v715_v11 = vmul.f32 %v5980_v44, %v4880_v31  ;;  %v4927_v58 = vsel %vm1901_vm5, %v5855_v22, %v5981_v36  ;;  %v587_v47 = vrot.slane %v4435_v49, 3  ;;  %v588_v24 = vrot.slane %v4466_v14, 3  ;;  %2197 = vperm.xlu1 %3882, %v4938_v26   ;;  %v5982_v44 = vld [vmem:[#allocation15_spill] sm:$0xff] }
 0x11e   : > { %v589_v60 = vrot.slane %v4529_v38, 3  ;;  %v1717_v51 = vmul.f32 %v4789_v7, %v4354_v3  ;;  %v4941_v41 = vmul.f32 %v1443_v25, %v1410_v28  ;;  %v716_v36 = vmul.f32 %v5982_v44, %v4912_v10  ;;  %v5983_v22 = vld [vmem:[#allocation19_spill] sm:$0xff] }
 0x11f   : > { %v717_v12 = vmul.f32 %v5983_v22, %v4908_v19  ;;  %v4947_v33 = vpop.permute.xlu0 %1951  ;;  %v1720_v3 = vmul.f32 %v4621_v56, %v4405_v1  ;;  %v729_v63 = vpack.c.bf16 %v715_v11, %v714_v34  ;;  %v4955_v28 = vsel %vm599_vm6, %v587_v47, %v588_v24  ;;  %v4970_v56 = vld [vmem:[%s5791_s4 + $0x28] sm:$0xff]  }
 0x120   : > { %5984 = vst [vmem:[#allocation3_spill] sm:$0xff] %v4947_v33  ;;  %v1732_v7 = vpack.c.bf16 %v1718_v23, %v1717_v51  ;;  %5985 = vst [vmem:[#allocation12_spill] sm:$0xff] %v4955_v28  ;;  %v4959_v25 = vsel %vm599_vm6, %v586_v57, %v587_v47  ;;  %v5987_v22 = vrot.slane %v4522_v35, 3  ;;  %v1669_v34 = vpop.permute.xlu1 %1668  ;;  %v4976_v57 = vsel %vm599_vm6, %v588_v24, %v589_v60 }
 0x121   : > { %5986 = vst [vmem:[#allocation9_spill] sm:$0xff] %v4959_v25  ;;  %3883 = vset.pattern.permute.xlu1 %v5892_v61  ;;  %v730_v23 = vpack.c.bf16 %v717_v12, %v716_v36  ;;  %5989 = vst [vmem:[#allocation11_spill] sm:$0xff] %v4976_v57  ;;  %v5990_v11 = vrot.slane %v4388_v59, 1  ;;  %v1392_v51 = vrot.slane %v4529_v38, 7  ;;  %v4989_v61 = vld [vmem:[%s5788_s1 + $0x68] sm:$0xff]  ;;  %v1719_v12 = vmul.f32 %v1669_v34, %v4378_v55 }
 0x122   : > { %v4965_v44 = vsel %vm599_vm6, %v589_v60, %v5987_v22  ;;  %3712 = vmatmul.mubr.msk.bf16.vlgmr.msra.gmra.mxu0 %vm868_vm4, %v1732_v7  ;;  %5991 = vst [vmem:[#allocation13_spill] sm:$0xff] %v4989_v61  ;;  %1971 = vperm.xlu1 %3883, %v4989_v61   ;;  %v5993_v60 = vrot.slane %v5943_v39, 1  ;;  %v5856_v7 = vrot.slane %v4435_v49, 1  ;;  %v5996_v55 = vld [vmem:[#allocation23_spill] sm:$0xff]  ;;  %v5858_v39 = vrot.slane %v4520_v16, 1 }
 0x123   : > { %5988 = vst [vmem:[#allocation29_spill] sm:$0xff] %v4965_v44  ;;  %v4982_v47 = vsel %vm1901_vm5, %v5990_v11, %v1887_v17  ;;  %3658 = vmatmul.mubr.msk.bf16.vlgmr.msra.gmra.mxu1 %vm868_vm4, %v729_v63  ;;  %v4993_v24 = vpop.permute.xlu0 %1963  ;;  %v5994_v63 = vld [vmem:[#allocation21_spill] sm:$0xff]  ;;  %v5995_v11 = vld [vmem:[#allocation16_spill] sm:$0xff]  ;;  %v721_v34 = vmul.f32 %v5996_v55, %v4965_v44  ;;  %3746 = vmatpush3.bf16.msra.mxu0 %v4668_v42  ;;  %v593_v55 = vrot.slane %v4597_v20, 3  ;;  %v5999_v42 = vrot.slane %v4522_v35, 1 }
 0x124   : > { %5992 = vst [vmem:[#allocation30_spill] sm:$0xff] %v4993_v24  ;;  %v4999_v36 = vsel %vm1901_vm5, %v1887_v17, %v5993_v60  ;;  %3661 = vmatprep.mubr.msk.bf16.mxu1 %vm868_vm4, %v730_v23  ;;  %v718_v22 = vmul.f32 %v5994_v63, %v4959_v25  ;;  %v719_v5 = vmul.f32 %v5995_v11, %v4955_v28  ;;  %v5997_v17 = vld [vmem:[#allocation17_spill] sm:$0xff]  ;;  %v5998_v23 = vrot.slane %v4405_v1, 1  ;;  %v1677_v11 = vpop.permute.xlu1 %1676 }
 0x125   : > { %3692 = vmatpush3.bf16.msra.mxu1 %v4645_v62  ;;  %v1733_v24 = vpack.c.bf16 %v1720_v3, %v1719_v12  ;;  %v720_v60 = vmul.f32 %v5997_v17, %v4976_v57  ;;  %v5864_v62 = vrot.slane %v4740_v29, 1  ;;  %v591_v3 = vrot.slane %v4520_v16, 3  ;;  %v5038_v17 = vld [vmem:[%s5788_s1 + $0x70] sm:$0xff] }
 0x126   : > { %3727 = vmatprep.subr.bf16.mxu1 %v4970_v56  ;;  %v5021_v63 = vsel %vm1901_vm5, %v5998_v23, %v5856_v7  ;;  %v592_v12 = vrot.slane %v4531_v4, 3  ;;  %v5033_v1 = vsel %vm1901_vm5, %v5999_v42, %v5858_v39  ;;  %1975 = vperm.xlu1 %3883, %v5038_v17   ;;  %v594_v7 = vrot.slane %v4617_v50, 3 }
 0x127   : > { %6000 = vst [vmem:[#allocation14_spill] sm:$0xff] %v5033_v1  ;;  %3715 = vmatprep.mubr.msk.bf16.mxu0 %vm868_vm4, %v1733_v24  ;;  %v1968_v23 = vpop.permute.xlu0 %1967  ;;  %v6001_v44 = vrot.slane %v4617_v50, 1  ;;  %v1394_v39 = vrot.slane %v4520_v16, 7  ;;  %v6004_v33 = vrot.slane %v4466_v14, 7  ;;  %v5865_v57 = vrot.slane %v4531_v4, 7 }
 0x128   : > { %v5053_v1 = vmul.f32 %v1968_v23, %v4888_v40  ;;  %v731_v28 = vpack.c.bf16 %v719_v5, %v718_v22  ;;  %v1393_v19 = vrot.slane %v4522_v35, 7  ;;  %v1681_v61 = vpop.permute.xlu1 %1680  ;;  %v732_v25 = vpack.c.bf16 %v721_v34, %v720_v60  ;;  %v6007_v23 = vld [vmem:[#allocation32_spill] sm:$0xff] }
 0x129   : > { %v5049_v42 = vsel %vm1901_vm5, %v6001_v44, %v5864_v62  ;;  %v1408_v24 = vsel %vm1400_vm1, %v6004_v33, %v1392_v51  ;;  %v5063_v44 = vsel %vm599_vm6, %v591_v3, %v592_v12  ;;  %v6005_v62 = vrot.slane %v4522_v35, 3 }
 0x12a   : > { %6002 = vst [vmem:[#allocation15_spill] sm:$0xff] %v5049_v42  ;;  %6003 = vst [vmem:[#allocation19_spill] sm:$0xff] %v5053_v1  ;;  %v5073_v33 = vsel %vm599_vm6, %v592_v12, %v593_v55  ;;  %v1721_v5 = vmul.f32 %v1677_v11, %v4435_v49  ;;  %3885 = vset.pattern.permute.xlu1 %v5894_v53  ;;  %v1722_v22 = vmul.f32 %v1681_v61, %v4466_v14  ;;  %v5090_v11 = vld [vmem:[%s5788_s1 + $0x60] sm:$0xff] }
 0x12b   : > { %v5069_v40 = vsel %vm599_vm6, %v6005_v62, %v591_v3  ;;  %3662 = vmatmul.mubr.msk.bf16.gmra.mxu1 %vm868_vm4, %v731_v28  ;;  %v1980_v34 = vpop.permute.xlu0 %1979  ;;  %v5081_v60 = vsel %vm599_vm6, %v593_v55, %v594_v7  ;;  %v5084_v62 = vmul.f32 %v6007_v23, %v1408_v24  ;;  %2201 = vperm.xlu1 %3885, %v5090_v11   ;;  %v6009_v3 = vld [vmem:[#allocation25_spill] sm:$0xff]  ;;  %v6010_v55 = vld [vmem:[#allocation18_spill] sm:$0xff]  ;;  %v6011_v23 = vld [vmem:[#allocation20_spill] sm:$0xff] }
 0x12c   : > { %6006 = vst [vmem:[#allocation21_spill] sm:$0xff] %v5081_v60  ;;  %3665 = vmatprep.mubr.msk.bf16.mxu1 %vm868_vm4, %v732_v25  ;;  %v5094_v53 = vmul.f32 %v1980_v34, %v4927_v58  ;;  %v1734_v28 = vpack.c.bf16 %v1722_v22, %v1721_v5  ;;  %v1407_v61 = vsel %vm1400_vm1, %v1392_v51, %v1393_v19  ;;  %v6012_v58 = vld [vmem:[#allocation31_spill] sm:$0xff]  ;;  %v595_v22 = vrot.slane %v4740_v29, 3 }
 0x12d   : > { %v722_v12 = vmul.f32 %v6009_v3, %v5069_v40  ;;  %v723_v25 = vmul.f32 %v6010_v55, %v5063_v44  ;;  %v1405_v24 = vsel %vm1400_vm1, %v1394_v39, %v5865_v57  ;;  %v724_v1 = vmul.f32 %v6011_v23, %v5073_v33  ;;  %v1455_v3 = vpop.permute.xlu1 %1454  ;;  %v6013_v57 = vld [vmem:[#allocation35_spill] sm:$0xff] }
 0x12e   : > { %6008 = vst [vmem:[#allocation16_spill] sm:$0xff] %v5094_v53  ;;  %v725_v5 = vmul.f32 %v6012_v58, %v5081_v60  ;;  %v1399_v51 = vrot.slane %v4506_v30, 7  ;;  %v1384_v34 = vrot.slane %v4403_v52, 7  ;;  %3716 = vmatmul.mubr.msk.bf16.gmra.mxu0 %vm868_vm4, %v1734_v28  ;;  %v5115_v55 = vmul.f32 %v1455_v3, %v1407_v61 }
 0x12f   : > { %2209 = vperm.xlu1 %3885, %v5038_v17   ;;  %v5118_v53 = vmul.f32 %v6013_v57, %v1405_v24  ;;  %v733_v23 = vpack.c.bf16 %v723_v25, %v722_v12  ;;  %v1406_v58 = vsel %vm1400_vm1, %v1393_v19, %v1394_v39  ;;  %v6014_v52 = vrot.slane %v4506_v30, 3  ;;  %v6017_v24 = vld [vmem:[#allocation22_spill] sm:$0xff] }
 0x130   : > { %v1501_v60 = vpack.c.bf16 %v5115_v55, %v5084_v62  ;;  %v734_v42 = vpack.c.bf16 %v725_v5, %v724_v1  ;;  %v5132_v61 = vsel %vm599_vm6, %v594_v7, %v595_v22  ;;  %v6015_v57 = vrot.slane %v4388_v59, 7  ;;  %v5145_v1 = vld [vmem:[%s5788_s1 + $0x78] sm:$0xff]  ;;  %v3930_v55 = vld [vmem:[%s5788_s1 + $0x20] sm:$0xff] }
 0x131   : > { %v5128_v28 = vsel %vm599_vm6, %v595_v22, %v6014_v52  ;;  %v1416_v19 = vsel %vm1400_vm1, %v1399_v51, %v1384_v34  ;;  %v1459_v39 = vpop.permute.xlu1 %1458  ;;  %v6016_v59 = vld [vmem:[#allocation33_spill] sm:$0xff]  ;;  %v6018_v22 = vld [vmem:[#allocation26_spill] sm:$0xff]  ;;  %v6019_v52 = vmov 7  }
 0x132   : > { %v1415_v12 = vsel %vm1400_vm1, %v1384_v34, %v6015_v57  ;;  %v5148_v7 = vmul.f32 %v1459_v39, %v1406_v58  ;;  %v726_v25 = vmul.f32 %v6016_v59, %v5132_v61  ;;  %v727_v5 = vmul.f32 %v6017_v24, %v5128_v28  ;;  %v3924_v57 = vld [vmem:[%s5788_s1 + $0x8] sm:$0xff] }
 0x133   : > { %3666 = vmatmul.mubr.msk.bf16.gmra.mxu1 %vm868_vm4, %v733_v23  ;;  %2213 = vperm.xlu1 %3885, %v5145_v1   ;;  %v1481_v34 = vmul.f32 %v6018_v22, %v1416_v19  ;;  %v1482_v3 = vmul.f32 %v4631_v18, %v1415_v12  ;;  %v1724_v23 = vmul.f32 %v4673_v2, %v4522_v35  ;;  %v1396_v35 = vrot.slane %v4597_v20, 7  ;;  %v3925_v2 = vld [vmem:[%s5788_s1 + $0x10] sm:$0xff] }
 0x134   : > { %3669 = vmatprep.mubr.msk.bf16.mxu1 %vm868_vm4, %v734_v42  ;;  %v1502_v42 = vpack.c.bf16 %v5118_v53, %v5148_v7  ;;  %v735_v59 = vpack.c.bf16 %v727_v5, %v726_v25  ;;  %v1397_v53 = vrot.slane %v4617_v50, 7  ;;  %v6020_v7 = vrot.slane %v4531_v4, 7 }
 0x135   : > { %v1497_v19 = vpack.c.bf16 %v1482_v3, %v1481_v34  ;;  %v1398_v5 = vrot.slane %v4740_v29, 7  ;;  %v6021_v34 = vmov 8  }
 0x136   : > { %v1685_v58 = vpop.permute.xlu1 %1684  ;;  %v1404_v25 = vsel %vm1400_vm1, %v6020_v7, %v1396_v35 }
 0x137   : > { %3886 = vset.pattern.permute.xlu1 %v6019_v52  ;;  %v1723_v39 = vmul.f32 %v1685_v58, %v4529_v38  ;;  %v3926_v58 = vld [vmem:[%s5788_s1] sm:$0xff] }
 0x138   : > { %2391 = vperm.xlu1 %3886, %v3924_v57  }
 0x139   : > { %v1735_v24 = vpack.c.bf16 %v1724_v23, %v1723_v39  ;;  %v5184_v23 = vld [vmem:[%s5791_s4 + $0x38] sm:$0xff]   ;;  %v6022_v39 = vpack.c.bf16 %v4380_v54, %v4695_v9 }
 0x13a   : > { %v1693_v18 = vpop.permute.xlu1 %1692 }
 0x13b   : > { %3670 = vmatmul.mubr.msk.bf16.gmra.mxu1 %vm868_vm4, %v735_v59  ;;  %3719 = vmatprep.mubr.msk.bf16.mxu0 %vm868_vm4, %v1735_v24  ;;  %v1725_v22 = vmul.f32 %v1693_v18, %v4520_v16  ;;  %v1403_v59 = vsel %vm1400_vm1, %v1396_v35, %v1397_v53  ;;  %v6023_v24 = vpack.c.bf16 %v4892_v27, %v5979_v43  ;;  %v5211_v43 = vld [vmem:[%s5791_s4 + $0x40] sm:$0xff]  }
 0x13c   : > { %3693 = vmatprep.mubr.msk.bf16.mxu1 %vm868_vm4, %v1497_v19  ;;  %2395 = vperm.xlu1 %3886, %v3925_v2   ;;  %v1493_v19 = vmul.f32 %v4494_v48, %v1404_v25  ;;  %v1401_v18 = vsel %vm1400_vm1, %v1398_v5, %v1399_v51  ;;  %v1402_v48 = vsel %vm1400_vm1, %v1397_v53, %v1398_v5  ;;  %v3927_v51 = vld [vmem:[%s5788_s1 + $0x18] sm:$0xff]  ;;  %v3928_v25 = vld [vmem:[%s5788_s1 + $0x28] sm:$0xff] }
 0x13d   : > { %v1496_v9 = vmul.f32 %v4537_v46, %v1401_v18  ;;  %3781 = vmatprep.subr.bf16.mxu0 %v5211_v43  ;;  %v1728_v53 = vmul.f32 %v4715_v0, %v4617_v50 }
 0x13e   : > { %v1697_v12 = vpop.permute.xlu1 %1696 }
 0x13f   : > { %v1726_v3 = vmul.f32 %v1697_v12, %v4531_v4 }
 0x140   : > { %3887 = vset.pattern.permute.xlu1 %v6021_v34 }
 0x141   : > { %2621 = vperm.xlu1 %3887, %v3926_v58   ;;  %v1736_v57 = vpack.c.bf16 %v1726_v3, %v1725_v22  ;;  %v1982_v3 = vmul.f32 %v4784_v21, %v4685_v32 }
 0x143   : > { %3694 = vmatmul.mubr.msk.bf16.vlgmr.msra.gmra.mxu1 %vm868_vm4, %v6022_v39  ;;  %v1471_v12 = vpop.permute.xlu1 %1470  ;;  %3720 = vmatmul.mubr.msk.bf16.gmra.mxu0 %vm868_vm4, %v1736_v57 }
 0x144   : > { %3697 = vmatprep.mubr.msk.bf16.mxu1 %vm868_vm4, %v6023_v24  ;;  %3728 = vmatpush3.bf16.msra.mxu1 %v4970_v56  ;;  %v1494_v54 = vmul.f32 %v1471_v12, %v1403_v59  ;;  %v1985_v59 = vmul.f32 %v4817_v45, %v4750_v15  ;;  %v2158_v12 = vpop.permute.xlu0 %2157  ;;  %v3932_v15 = vld [vmem:[%s5788_s1 + $0x48] sm:$0xff] }
 0x145   : > { %3763 = vmatprep.subr.bf16.mxu1 %v5184_v23  ;;  %2629 = vperm.xlu1 %3887, %v3925_v2   ;;  %v6024_v2 = vpack.c.bf16 %v4870_v37, %v4941_v41  ;;  %v2217_v32 = vmul.f32 %v2158_v12, %v4874_v13  ;;  %v6037_v12 = vld [vmem:[#allocation14_spill] sm:$0xff] }
 0x146   : > { %v1503_v27 = vpack.c.bf16 %v1494_v54, %v1493_v19  ;;  %v3931_v19 = vld [vmem:[%s5788_s1 + $0x38] sm:$0xff]  ;;  %v3933_v54 = vld [vmem:[%s5788_s1 + $0x50] sm:$0xff] }
 0x147   : > { %v1475_v56 = vpop.permute.xlu1 %1474 }
 0x148   : > { %v1495_v35 = vmul.f32 %v1475_v56, %v1402_v48 }
 0x149   : > { %2633 = vperm.xlu1 %3887, %v3927_v51   ;;  %v6025_v51 = vld [vmem:[#allocation27_spill] sm:$0xff] }
 0x14a   : > { %v1504_v46 = vpack.c.bf16 %v1496_v9, %v1495_v35  ;;  %v6026_v35 = vld [vmem:[#allocation5_spill] sm:$0xff] }
 0x14b   : > { %3698 = vmatmul.mubr.msk.bf16.gmra.mxu1 %vm868_vm4, %v6024_v2  ;;  %v1986_v2 = vmul.f32 %v6026_v35, %v6025_v51 }
 0x14c   : > { %3701 = vmatprep.mubr.msk.bf16.mxu1 %vm868_vm4, %v1501_v60  ;;  %v1701_v7 = vpop.permute.xlu1 %1700  ;;  %v3929_v60 = vld [vmem:[%s5788_s1 + $0x30] sm:$0xff] }
 0x14d   : > { %3889 = vset.pattern.permute.xlu1 %v6019_v52  ;;  %v1727_v37 = vmul.f32 %v1701_v7, %v4597_v20 }
 0x14e   : > { %2407 = vperm.xlu1 %3889, %v3928_v25  }
 0x14f   : > { %v1737_v41 = vpack.c.bf16 %v1728_v53, %v1727_v37  ;;  %v6029_v37 = vld [vmem:[#allocation4_spill] sm:$0xff] }
 0x150   : > { %v1709_v5 = vpop.permute.xlu1 %1708 }
 0x151   : > { %3723 = vmatprep.mubr.msk.bf16.mxu0 %vm868_vm4, %v1737_v41  ;;  %v1729_v0 = vmul.f32 %v1709_v5, %v4740_v29 }
 0x152   : > { %2411 = vperm.xlu1 %3889, %v3929_v60  }
 0x153   : > { %3702 = vmatmul.mubr.msk.bf16.gmra.mxu1 %vm868_vm4, %v1502_v42 }
 0x154   : > { %3705 = vmatprep.mubr.msk.bf16.mxu1 %vm868_vm4, %v1503_v27  ;;  %v1713_v50 = vpop.permute.xlu1 %1712 }
 0x155   : > { %v1730_v62 = vmul.f32 %v1713_v50, %v4506_v30 }
 0x156   : > { %3890 = vset.pattern.permute.xlu1 %v6021_v34 }
 0x157   : > { %2637 = vperm.xlu1 %3890, %v3930_v55   ;;  %v1738_v42 = vpack.c.bf16 %v1730_v62, %v1729_v0  ;;  %v6032_v0 = vld [vmem:[#allocation10_spill] sm:$0xff] }
 0x159   : > { %v1924_v22 = vpop.permute.xlu1 %1923  ;;  %3724 = vmatmul.mubr.msk.bf16.gmra.mxu0 %vm868_vm4, %v1738_v42 }
 0x15a   : > { %v1983_v58 = vmul.f32 %v1924_v22, %v4982_v47  ;;  %v6033_v22 = vld [vmem:[#allocation12_spill] sm:$0xff] }
 0x15b   : > { %3706 = vmatmul.mubr.msk.bf16.gmra.mxu1 %vm868_vm4, %v1504_v46  ;;  %2645 = vperm.xlu1 %3890, %v3929_v60   ;;  %v6030_v60 = vld [vmem:[#allocation9_spill] sm:$0xff] }
 0x15c   : > { %v1998_v57 = vpack.c.bf16 %v1983_v58, %v1982_v3  ;;  %v6034_v3 = vld [vmem:[#allocation11_spill] sm:$0xff] }
 0x15d   : > { %v1928_v39 = vpop.permute.xlu1 %1927 }
 0x15e   : > { %v1984_v24 = vmul.f32 %v1928_v39, %v4999_v36  ;;  %3729 = vmatprep.mubr.msk.bf16.mxu1 %vm868_vm4, %v1998_v57  ;;  %v1896_v57 = vrot.slane %v4531_v4, 1 }
 0x15f   : > { %2649 = vperm.xlu1 %3890, %v3931_v19   ;;  %v6035_v19 = vld [vmem:[#allocation7_spill] sm:$0xff] }
 0x160   : > { %v1999_v18 = vpack.c.bf16 %v1985_v59, %v1984_v24  ;;  %v6036_v24 = vld [vmem:[#allocation3_spill] sm:$0xff] }
 0x162   : > { %v2154_v21 = vpop.permute.xlu1 %2153 }
 0x163   : > { %3891 = vset.pattern.permute.xlu1 %v6019_v52  ;;  %3730 = vmatmul.mubr.msk.bf16.vlgmr.msra.gmra.mxu1 %vm868_vm4, %v1999_v18  ;;  %v2216_v45 = vmul.f32 %v2154_v21, %v4854_v8  ;;  %v3934_v8 = vld [vmem:[%s5788_s1 + $0x40] sm:$0xff]  ;;  %v1990_v18 = vmul.f32 %v6036_v24, %v6035_v19  ;;  %v6038_v21 = vrot.slane %v4597_v20, 1  ;;  %v6052_v24 = vld [vmem:[#allocation36_spill] sm:$0xff] }
 0x164   : > { %2423 = vperm.xlu1 %3891, %v3932_v15   ;;  %3764 = vmatpush3.bf16.msra.mxu1 %v5184_v23  ;;  %v1892_v23 = vrot.slane %v4466_v14, 1  ;;  %v6028_v14 = vrot.slane %v4435_v49, 1  ;;  %v6031_v49 = vld [vmem:[#allocation13_spill] sm:$0xff] }
 0x165   : > { %v2232_v47 = vpack.c.bf16 %v2217_v32, %v2216_v45  ;;  %v1905_v32 = vsel %vm1901_vm5, %v1896_v57, %v6038_v21  ;;  %v6040_v45 = vld [vmem:[#allocation30_spill] sm:$0xff] }
 0x166   : > { %v2162_v36 = vpop.permute.xlu1 %2161  ;;  %v1910_v25 = vsel %vm1901_vm5, %v6028_v14, %v1892_v23  ;;  %v6044_v14 = vrot.slane %v4506_v30, 1 }
 0x167   : > { %3747 = vmatprep.mubr.msk.bf16.mxu0 %vm868_vm4, %v2232_v47  ;;  %v2218_v13 = vmul.f32 %v2162_v36, %v4880_v31  ;;  %v1993_v47 = vmul.f32 %v6040_v45, %v1905_v32  ;;  %v6054_v32 = vld [vmem:[#allocation40_spill] sm:$0xff] }
 0x168   : > { %2427 = vperm.xlu1 %3891, %v3933_v54  }
 0x16a   : > { %v2166_v48 = vpop.permute.xlu1 %2165 }
 0x16b   : > { %v2219_v9 = vmul.f32 %v2166_v48, %v4912_v10  ;;  %v6027_v10 = vrot.slane %v4529_v38, 1 }
 0x16c   : > { %3892 = vset.pattern.permute.xlu1 %v6021_v34 }
 0x16d   : > { %2653 = vperm.xlu1 %3892, %v3934_v8   ;;  %v2233_v27 = vpack.c.bf16 %v2219_v9, %v2218_v13  ;;  %v1909_v46 = vsel %vm1901_vm5, %v1892_v23, %v6027_v10  ;;  %v6041_v9 = vld [vmem:[#allocation29_spill] sm:$0xff]  ;;  %v6042_v10 = vld [vmem:[#allocation15_spill] sm:$0xff] }
 0x16e   : > { %v1989_v41 = vmul.f32 %v6029_v37, %v1909_v46 }
 0x16f   : > { %v1940_v56 = vpop.permute.xlu1 %1939  ;;  %3748 = vmatmul.mubr.msk.bf16.vlgmr.msra.gmra.mxu0 %vm868_vm4, %v2233_v27 }
 0x170   : > { %v1987_v31 = vmul.f32 %v1940_v56, %v5021_v63  ;;  %3782 = vmatpush3.bf16.msra.mxu0 %v5211_v43  ;;  %v2174_v43 = vpop.permute.xlu0 %2173 }
 0x171   : > { %2661 = vperm.xlu1 %3892, %v3933_v54   ;;  %v2221_v50 = vmul.f32 %v2174_v43, %v6030_v60 }
 0x172   : > { %v2000_v53 = vpack.c.bf16 %v1987_v31, %v1986_v2 }
 0x173   : > { %v1944_v7 = vpop.permute.xlu1 %1943 }
 0x174   : > { %v1988_v5 = vmul.f32 %v1944_v7, %v1910_v25  ;;  %3733 = vmatprep.mubr.msk.bf16.mxu1 %vm868_vm4, %v2000_v53  ;;  %v2190_v48 = vpop.permute.xlu0 %2189  ;;  %v6045_v25 = vrot.slane %v4740_v29, 1 }
 0x175   : > { %2665 = vperm.xlu1 %3892, %v4938_v26   ;;  %v2225_v13 = vmul.f32 %v2190_v48, %v5069_v40  ;;  %v6043_v40 = vld [vmem:[#allocation19_spill] sm:$0xff] }
 0x176   : > { %v2001_v63 = vpack.c.bf16 %v1989_v41, %v1988_v5  ;;  %v1902_v37 = vsel %vm1901_vm5, %v6045_v25, %v6044_v14  ;;  %v6046_v41 = vld [vmem:[#allocation16_spill] sm:$0xff] }
 0x178   : > { %v2170_v38 = vpop.permute.xlu1 %2169  ;;  %3734 = vmatmul.mubr.msk.bf16.gmra.mxu1 %vm868_vm4, %v2001_v63 }
 0x179   : > { %3894 = vset.pattern.permute.xlu1 %v6019_v52  ;;  %v2220_v62 = vmul.f32 %v2170_v38, %v6032_v0  ;;  %v6047_v38 = vld [vmem:[#allocation21_spill] sm:$0xff] }
 0x17a   : > { %2439 = vperm.xlu1 %3894, %v6031_v49  }
 0x17b   : > { %v2234_v55 = vpack.c.bf16 %v2221_v50, %v2220_v62  ;;  %v6048_v62 = vld [vmem:[#allocation28_spill] sm:$0xff] }
 0x17d   : > { %v2178_v26 = vpop.permute.xlu1 %2177  ;;  %3751 = vmatprep.mubr.msk.bf16.mxu0 %vm868_vm4, %v2234_v55 }
 0x17e   : > { %2443 = vperm.xlu1 %3894, %v5038_v17   ;;  %v2222_v52 = vmul.f32 %v2178_v26, %v6033_v22  ;;  %v6049_v22 = vld [vmem:[#allocation38_spill] sm:$0xff] }
 0x181   : > { %v2182_v42 = vpop.permute.xlu1 %2181 }
 0x182   : > { %3895 = vset.pattern.permute.xlu1 %v6021_v34  ;;  %v2223_v58 = vmul.f32 %v2182_v42, %v6034_v3 }
 0x183   : > { %2669 = vperm.xlu1 %3895, %v5090_v11   ;;  %v6039_v11 = vrot.slane %v4520_v16, 1  ;;  %v2206_v16 = vpop.permute.xlu0 %2205 }
 0x184   : > { %v2235_v39 = vpack.c.bf16 %v2223_v58, %v2222_v52  ;;  %v2229_v43 = vmul.f32 %v2206_v16, %v5132_v61  ;;  %v6050_v52 = vld [vmem:[#allocation34_spill] sm:$0xff] }
 0x186   : > { %v1956_v59 = vpop.permute.xlu1 %1955  ;;  %3752 = vmatmul.mubr.msk.bf16.gmra.mxu0 %vm868_vm4, %v2235_v39 }
 0x187   : > { %2677 = vperm.xlu1 %3895, %v5038_v17   ;;  %v1991_v34 = vmul.f32 %v1956_v59, %v6037_v12  ;;  %v1906_v17 = vsel %vm1901_vm5, %v6039_v11, %v1896_v57  ;;  %v2626_v2 = vpop.permute.xlu0 %2625  ;;  %v6051_v59 = vld [vmem:[#allocation42_spill] sm:$0xff] }
 0x189   : > { %v2002_v15 = vpack.c.bf16 %v1991_v34, %v1990_v18  ;;  %v6053_v34 = vld [vmem:[#allocation39_spill] sm:$0xff] }
 0x18a   : > { %v1960_v4 = vpop.permute.xlu1 %1959  ;;  %v2685_v21 = vmul.f32 %v2626_v2, %v6053_v34  ;;  %v6057_v2 = vld [vmem:[#allocation41_spill] sm:$0xff] }
 0x18b   : > { %2681 = vperm.xlu1 %3895, %v5145_v1   ;;  %v1992_v36 = vmul.f32 %v1960_v4, %v1906_v17  ;;  %3737 = vmatprep.mubr.msk.bf16.mxu1 %vm868_vm4, %v2002_v15 }
 0x18d   : > { %v2003_v54 = vpack.c.bf16 %v1993_v47, %v1992_v36 }
 0x18f   : > { %3738 = vmatmul.mubr.msk.bf16.gmra.mxu1 %vm868_vm4, %v2003_v54 }
 0x190   : > { %v2186_v20 = vpop.permute.xlu1 %2185 }
 0x191   : > { %v2224_v1 = vmul.f32 %v2186_v20, %v6041_v9  ;;  %v6055_v20 = vld [vmem:[#allocation37_spill] sm:$0xff]  ;;  %v6056_v9 = vld [vmem:[#allocation43_spill] sm:$0xff] }
 0x193   : > { %v2236_v8 = vpack.c.bf16 %v2225_v13, %v2224_v1 }
 0x194   : > { %v2194_v23 = vpop.permute.xlu1 %2193 }
 0x195   : > { %3755 = vmatprep.mubr.msk.bf16.mxu0 %vm868_vm4, %v2236_v8  ;;  %v2226_v56 = vmul.f32 %v2194_v23, %v5063_v44 }
 0x198   : > { %v2198_v27 = vpop.permute.xlu1 %2197 }
 0x199   : > { %v2227_v51 = vmul.f32 %v2198_v27, %v5073_v33  ;;  %v5335_v33 = vpop.permute.xlu0 %2641 }
 0x19b   : > { %v2237_v35 = vpack.c.bf16 %v2227_v51, %v2226_v56 }
 0x19d   : > { %v1972_v31 = vpop.permute.xlu1 %1971  ;;  %3756 = vmatmul.mubr.msk.bf16.gmra.mxu0 %vm868_vm4, %v2237_v35  ;;  %v5341_v30 = vpop.permute.xlu0 %2657 }
 0x19e   : > { %v1995_v46 = vmul.f32 %v1972_v31, %v6042_v10  ;;  %v6058_v10 = vld [vmem:[#allocation48_spill] sm:$0xff] }
 0x1a0   : > { %v2004_v53 = vpack.c.bf16 %v1995_v46, %v6043_v40 }
 0x1a1   : > { %v1976_v7 = vpop.permute.xlu1 %1975  ;;  %v2388_v49 = vpop.permute.xlu0 %2387 }
 0x1a2   : > { %v1996_v44 = vmul.f32 %v1976_v7, %v1902_v37  ;;  %3741 = vmatprep.mubr.msk.bf16.mxu1 %vm868_vm4, %v2004_v53  ;;  %v2450_v61 = vmul.f32 %v2388_v49, %v6049_v22 }
 0x1a4   : > { %v2005_v5 = vpack.c.bf16 %v6046_v41, %v1996_v44  ;;  %v6059_v41 = vld [vmem:[#allocation51_spill] sm:$0xff] }
 0x1a5   : > { %v2400_v58 = vpop.permute.xlu0 %2399 }
 0x1a6   : > { %v2202_v63 = vpop.permute.xlu1 %2201  ;;  %3742 = vmatmul.mubr.msk.bf16.gmra.mxu1 %vm868_vm4, %v2005_v5  ;;  %v2453_v19 = vmul.f32 %v2400_v58, %v6051_v59 }
 0x1a7   : > { %v2228_v60 = vmul.f32 %v2202_v63, %v6047_v38  ;;  %v6060_v63 = vld [vmem:[#allocation47_spill] sm:$0xff] }
 0x1a9   : > { %v2238_v29 = vpack.c.bf16 %v2229_v43, %v2228_v60  ;;  %v2404_v48 = vpop.permute.xlu0 %2403 }
 0x1aa   : > { %v2210_v50 = vpop.permute.xlu1 %2209  ;;  %v2454_v31 = vmul.f32 %v2404_v48, %v6057_v2 }
 0x1ab   : > { %3759 = vmatprep.mubr.msk.bf16.mxu0 %vm868_vm4, %v2238_v29  ;;  %v2230_v0 = vmul.f32 %v2210_v50, %v5128_v28 }
 0x1ad   : > { %v2416_v53 = vpop.permute.xlu0 %2415 }
 0x1ae   : > { %v2214_v6 = vpop.permute.xlu1 %2213  ;;  %v2457_v5 = vmul.f32 %v2416_v53, %v6059_v41 }
 0x1af   : > { %v2231_v55 = vmul.f32 %v2214_v6, %v6048_v62  ;;  %v6061_v62 = vld [vmem:[#allocation49_spill] sm:$0xff] }
 0x1b1   : > { %v2239_v26 = vpack.c.bf16 %v2231_v55, %v2230_v0  ;;  %v2689_v55 = vmul.f32 %v5335_v33, %v6061_v62  ;;  %v2420_v33 = vpop.permute.xlu0 %2419 }
 0x1b3   : > { %v2392_v42 = vpop.permute.xlu1 %2391  ;;  %3760 = vmatmul.mubr.msk.bf16.gmra.mxu0 %vm868_vm4, %v2239_v26  ;;  %v6062_v26 = vld [vmem:[#allocation44_spill] sm:$0xff] }
 0x1b4   : > { %v2451_v3 = vmul.f32 %v2392_v42, %v6050_v52 }
 0x1b6   : > { %v2466_v57 = vpack.c.bf16 %v2451_v3, %v2450_v61 }
 0x1b7   : > { %v2396_v39 = vpop.permute.xlu1 %2395 }
 0x1b8   : > { %v2452_v18 = vmul.f32 %v2396_v39, %v6052_v24  ;;  %3765 = vmatprep.mubr.msk.bf16.mxu1 %vm868_vm4, %v2466_v57  ;;  %v6063_v24 = vld [vmem:[#allocation52_spill] sm:$0xff] }
 0x1ba   : > { %v2467_v28 = vpack.c.bf16 %v2453_v19, %v2452_v18 }
 0x1bc   : > { %v2622_v12 = vpop.permute.xlu1 %2621  ;;  %3766 = vmatmul.mubr.msk.bf16.vlgmr.msra.gmra.mxu1 %vm868_vm4, %v2467_v28 }
 0x1bd   : > { %v2684_v15 = vmul.f32 %v2622_v12, %v6054_v32  ;;  %v6064_v12 = vld [vmem:[#allocation54_spill] sm:$0xff] }
 0x1bf   : > { %v2700_v4 = vpack.c.bf16 %v2685_v21, %v2684_v15 }
 0x1c0   : > { %v2630_v11 = vpop.permute.xlu1 %2629  ;;  %v5355_v17 = vpop.f32.mrf.mxu0 }
 0x1c1   : > { %3783 = vmatprep.mubr.msk.bf16.mxu0 %vm868_vm4, %v2700_v4  ;;  %v5358_v45 = vpop.f32.mrf.mxu1  ;;  %v2686_v13 = vmul.f32 %v2630_v11, %v6055_v20  ;;  %v6066_v20 = vld [vmem:[#allocation57_spill] sm:$0xff] }
 0x1c2   : > { %v5360_v47 = vpop.f32.mrf.mxu0 }
 0x1c3   : > { %v5362_v36 = vpop.f32.mrf.mxu1 }
 0x1c4   : > { %v2634_v54 = vpop.permute.xlu1 %2633  ;;  %v5366_v8 = vpop.f32.mrf.mxu0 }
 0x1c5   : > { %v2687_v1 = vmul.f32 %v2634_v54, %v6056_v9  ;;  %v5368_v23 = vpop.f32.mrf.mxu1  ;;  %v6065_v54 = vld [vmem:[#allocation50_spill] sm:$0xff] }
 0x1c6   : > { %v5370_v27 = vpop.f32.mrf.mxu0  ;;  %v2458_v48 = vmul.f32 %v2420_v33, %v6065_v54 }
 0x1c7   : > { %v2701_v16 = vpack.c.bf16 %v2687_v1, %v2686_v13  ;;  %v5372_v56 = vpop.f32.mrf.mxu1  ;;  %v2432_v1 = vpop.permute.xlu0 %2431 }
 0x1c8   : > { %v5374_v35 = vpop.f32.mrf.mxu0 }
 0x1c9   : > { %v2408_v51 = vpop.permute.xlu1 %2407  ;;  %3784 = vmatmul.mubr.msk.bf16.vlgmr.msra.gmra.mxu0 %vm868_vm4, %v2701_v16  ;;  %v5379_v40 = vpop.f32.mrf.mxu1 }
 0x1ca   : > { %v2455_v46 = vmul.f32 %v2408_v51, %v6058_v10  ;;  %v5381_v7 = vpop.f32.mrf.mxu0 }
 0x1cb   : > { %v5383_v25 = vpop.f32.mrf.mxu1 }
 0x1cc   : > { %v2468_v14 = vpack.c.bf16 %v2455_v46, %v2454_v31  ;;  %v5385_v44 = vpop.f32.mrf.mxu0  ;;  %v6067_v46 = vld [vmem:[#allocation62_spill] sm:$0xff] }
 0x1cd   : > { %v2412_v37 = vpop.permute.xlu1 %2411  ;;  %v5389_v38 = vpop.f32.mrf.mxu1  ;;  %v2461_v53 = vmul.f32 %v2432_v1, %v6067_v46  ;;  %v6072_v1 = vld [vmem:[#allocation55_spill] sm:$0xff] }
 0x1ce   : > { %v2456_v43 = vmul.f32 %v2412_v37, %v6060_v63  ;;  %3769 = vmatprep.mubr.msk.bf16.mxu1 %vm868_vm4, %v2468_v14  ;;  %v5392_v60 = vpop.f32.mrf.mxu0  ;;  %v6068_v14 = vld [vmem:[#allocation56_spill] sm:$0xff] }
 0x1cf   : > { %v5394_v50 = vpop.f32.mrf.mxu1 }
 0x1d0   : > { %v2469_v29 = vpack.c.bf16 %v2457_v5, %v2456_v43 }
 0x1d1   : > { %v5396_v6 = vpop.f32.mrf.mxu0 }
 0x1d2   : > { %v5398_v49 = vpop.f32.mrf.mxu1  ;;  %v2638_v0 = vpop.permute.xlu1 %2637  ;;  %3770 = vmatmul.mubr.msk.bf16.gmra.mxu1 %vm868_vm4, %v2469_v29 }
 0x1d3   : > { %v2688_v42 = vmul.f32 %v2638_v0, %v6062_v26  ;;  %v5404_v22 = vpop.f32.mrf.mxu0 }
 0x1d4   : > { %v5406_v61 = vpop.f32.mrf.mxu1 }
 0x1d5   : > { %v2702_v52 = vpack.c.bf16 %v2689_v55, %v2688_v42  ;;  %v5410_v57 = vpop.f32.mrf.mxu0  ;;  %v6069_v42 = vld [vmem:[#allocation58_spill] sm:$0xff] }
 0x1d6   : > { %v5408_v3 = vpop.f32.mrf.mxu1  ;;  %v2646_v58 = vpop.permute.xlu1 %2645 }
 0x1d7   : > { %3787 = vmatprep.mubr.msk.bf16.mxu0 %vm868_vm4, %v2702_v52  ;;  %v2690_v18 = vmul.f32 %v2646_v58, %v6063_v24  ;;  %v5418_v28 = vpop.f32.mrf.mxu0  ;;  %v2693_v52 = vmul.f32 %v5341_v30, %v6069_v42 }
 0x1d8   : > { %v5413_v39 = vpop.f32.mrf.mxu1 }
 0x1da   : > { %v2650_v19 = vpop.permute.xlu1 %2649  ;;  %v5425_v4 = vpop.f32.mrf.mxu0 }
 0x1db   : > { %v5415_v59 = vpop.f32.mrf.mxu1  ;;  %v2691_v34 = vmul.f32 %v2650_v19, %v6064_v12 }
 0x1dc   : > { %v5432_v2 = vpop.f32.mrf.mxu0 }
 0x1dd   : > { %v5421_v21 = vpop.f32.mrf.mxu1  ;;  %v2703_v32 = vpack.c.bf16 %v2691_v34, %v2690_v18 }
 0x1de   : > { %v5442_v0 = vpop.f32.mrf.mxu0 }
 0x1df   : > { %v5423_v15 = vpop.f32.mrf.mxu1  ;;  %v2424_v11 = vpop.permute.xlu1 %2423  ;;  %3788 = vmatmul.mubr.msk.bf16.gmra.mxu0 %vm868_vm4, %v2703_v32 }
 0x1e0   : > { %v2459_v13 = vmul.f32 %v2424_v11, %v6066_v20  ;;  %v5456_v24 = vpop.f32.mrf.mxu0  ;;  %v2436_v32 = vpop.permute.xlu0 %2435  ;;  %v6071_v20 = vld [vmem:[#allocation60_spill] sm:$0xff] }
 0x1e1   : > { %v5430_v9 = vpop.f32.mrf.mxu1 }
 0x1e2   : > { %v2470_v16 = vpack.c.bf16 %v2459_v13, %v2458_v48  ;;  %v5467_v11 = vpop.f32.mrf.mxu0 }
 0x1e3   : > { %v3659_v51 = vpop.f32.mrf.mxu1  ;;  %v2428_v10 = vpop.permute.xlu1 %2427 }
 0x1e4   : > { %v1063_v31 = vadd.f32 %v3659_v51, %v5358_v45  ;;  %v2460_v37 = vmul.f32 %v2428_v10, %v6068_v14  ;;  %3773 = vmatprep.mubr.msk.bf16.mxu1 %vm868_vm4, %v2470_v16 }
 0x1e5   : > { %v1054_v41 = vpop.f32.mrf.mxu1 }
 0x1e6   : > { %v1055_v5 = vadd.f32 %v1054_v41, %v5362_v36  ;;  %v5440_v63 = vadd.f32 %v5355_v17, %v1063_v31  ;;  %v2471_v43 = vpack.c.bf16 %v2461_v53, %v2460_v37  ;;  %v6070_v17 = vld [vmem:[#allocation53_spill] sm:$0xff]  ;;  %v5479_v31 = vpop.f32.mrf.mxu0  ;;  %v2448_v41 = vpop.permute.xlu0 %2447 }
 0x1e7   : > { %v3660_v29 = vpop.f32.mrf.mxu1 }
 0x1e8   : > { %v1066_v62 = vadd.f32 %v3660_v29, %v5368_v23  ;;  %v5446_v45 = vadd.f32 %v5360_v47, %v1055_v5  ;;  %v2654_v26 = vpop.permute.xlu1 %2653  ;;  %3774 = vmatmul.mubr.msk.bf16.gmra.mxu1 %vm868_vm4, %v2471_v43  ;;  %v6074_v5 = vld [vmem:[#allocation6_spill] sm:$0xff] }
 0x1e9   : > { %v1057_v55 = vpop.f32.mrf.mxu1  ;;  %v2692_v58 = vmul.f32 %v2654_v26, %v6070_v17  ;;  %v6076_v17 = vld [vmem:[#allocation8_spill] sm:$0xff] }
 0x1ea   : > { %v1058_v36 = vadd.f32 %v1057_v55, %v5372_v56  ;;  %v5454_v19 = vadd.f32 %v5366_v8, %v1066_v62  ;;  %v5492_v62 = vpop.f32.mrf.mxu0 }
 0x1eb   : > { %v3663_v33 = vpop.f32.mrf.mxu1  ;;  %v2704_v23 = vpack.c.bf16 %v2693_v52, %v2692_v58  ;;  %v6075_v52 = vld [vmem:[#allocation46_spill] sm:$0xff] }
 0x1ec   : > { %v1079_v47 = vadd.f32 %v3663_v33, %v5379_v40  ;;  %v5460_v18 = vadd.f32 %v5370_v27, %v1058_v36  ;;  %v2662_v34 = vpop.permute.xlu1 %2661  ;;  %v2465_v36 = vmul.f32 %v2448_v41, %v6075_v52 }
 0x1ed   : > { %v1070_v12 = vpop.f32.mrf.mxu1  ;;  %3791 = vmatprep.mubr.msk.bf16.mxu0 %vm868_vm4, %v2704_v23  ;;  %v2694_v13 = vmul.f32 %v2662_v34, %v6071_v20  ;;  %v5505_v23 = vpop.f32.mrf.mxu0 }
 0x1ee   : > { %v1071_v30 = vadd.f32 %v1070_v12, %v5383_v25  ;;  %v5465_v56 = vadd.f32 %v5374_v35, %v1079_v47  ;;  %v2674_v47 = vpop.permute.xlu0 %2673 }
 0x1ef   : > { %v3664_v8 = vpop.f32.mrf.mxu1  ;;  %v3717_v34 = vpop.f32.mrf.mxu0 }
 0x1f0   : > { %v1082_v54 = vadd.f32 %v3664_v8, %v5389_v38  ;;  %v5471_v40 = vadd.f32 %v5381_v7, %v1071_v30  ;;  %v2666_v48 = vpop.permute.xlu1 %2665 }
 0x1f1   : > { %v1073_v27 = vpop.f32.mrf.mxu1  ;;  %v2695_v16 = vmul.f32 %v2666_v48, %v6072_v1  ;;  %v6078_v48 = vld [vmem:[#allocation59_spill] sm:$0xff] }
 0x1f2   : > { %v1074_v25 = vadd.f32 %v1073_v27, %v5394_v50  ;;  %v5477_v35 = vadd.f32 %v5385_v44, %v1082_v54  ;;  %v6073_v44 = vld [vmem:[#allocation61_spill] sm:$0xff]  ;;  %v6077_v54 = vld [vmem:[#allocation24_spill] sm:$0xff] }
 0x1f3   : > { %v3667_v51 = vpop.f32.mrf.mxu1  ;;  %v2705_v10 = vpack.c.bf16 %v2695_v16, %v2694_v13  ;;  %v2462_v37 = vmul.f32 %v2436_v32, %v6073_v44  ;;  %v2697_v27 = vmul.f32 %v2674_v47, %v6077_v54 }
 0x1f4   : > { %v1095_v38 = vadd.f32 %v3667_v51, %v5398_v49  ;;  %v5483_v7 = vadd.f32 %v5392_v60, %v1074_v25  ;;  %v1822_v25 = vpop.f32.mrf.mxu0 }
 0x1f5   : > { %v1086_v46 = vpop.f32.mrf.mxu1  ;;  %v2440_v14 = vpop.permute.xlu1 %2439  ;;  %3792 = vmatmul.mubr.msk.bf16.gmra.mxu0 %vm868_vm4, %v2705_v10 }
 0x1f6   : > { %v1087_v53 = vadd.f32 %v1086_v46, %v5406_v61  ;;  %v5488_v50 = vadd.f32 %v5396_v6, %v1095_v38  ;;  %v2463_v43 = vmul.f32 %v2440_v14, %v6074_v5  ;;  %v6080_v14 = vld [vmem:[#allocation45_spill] sm:$0xff] }
 0x1f7   : > { %v3668_v29 = vpop.f32.mrf.mxu1 }
 0x1f8   : > { %v1098_v60 = vadd.f32 %v3668_v29, %v5408_v3  ;;  %v5496_v49 = vadd.f32 %v5404_v22, %v1087_v53  ;;  %v2472_v61 = vpack.c.bf16 %v2463_v43, %v2462_v37  ;;  %v6079_v53 = vld [vmem:[#allocation2_spill] sm:$0xff] }
 0x1f9   : > { %v1089_v55 = vpop.f32.mrf.mxu1  ;;  %v2444_v42 = vpop.permute.xlu1 %2443 }
 0x1fa   : > { %v1090_v26 = vadd.f32 %v1089_v55, %v5413_v39  ;;  %v5500_v6 = vadd.f32 %v5410_v57, %v1098_v60  ;;  %v2464_v58 = vmul.f32 %v2444_v42, %v6076_v17  ;;  %3777 = vmatprep.mubr.msk.bf16.mxu1 %vm868_vm4, %v2472_v61  ;;  %v3935_v60 = vld [vmem:[%s4071_s16] sm:$0xff]  }
 0x1fb   : > { %v3671_v33 = vpop.f32.mrf.mxu1 }
 0x1fc   : > { %v1111_v22 = vadd.f32 %v3671_v33, %v5415_v59  ;;  %v5509_v3 = vadd.f32 %v5418_v28, %v1090_v26  ;;  %v2473_v39 = vpack.c.bf16 %v2465_v36, %v2464_v58 }
 0x1fd   : > { %v1102_v12 = vpop.f32.mrf.mxu1 }
 0x1fe   : > { %v1103_v57 = vadd.f32 %v1102_v12, %v5421_v21  ;;  %v5513_v30 = vadd.f32 %v5425_v4, %v1111_v22  ;;  %v2670_v32 = vpop.permute.xlu1 %2669  ;;  %3778 = vmatmul.mubr.msk.bf16.gmra.mxu1 %vm868_vm4, %v2473_v39 }
 0x1ff   : > { %v3672_v8 = vpop.f32.mrf.mxu1  ;;  %v2696_v28 = vmul.f32 %v2670_v32, %v6078_v48 }
 0x200   : > { %v1114_v59 = vadd.f32 %v3672_v8, %v5423_v15  ;;  %v5520_v20 = vadd.f32 %v5432_v2, %v1103_v57  ;;  %v3718_v2 = vpop.f32.mrf.mxu0  ;;  %v3916_v57 = vld [vmem:[%s5795_s8 + $0x8] sm:$0xff]  }
 0x201   : > { %v1105_v13 = vpop.f32.mrf.mxu1  ;;  %v2706_v1 = vpack.c.bf16 %v2697_v27, %v2696_v28  ;;  %3817 = vmatprep.subr.bf16.mxu0 %v3916_v57 }
 0x202   : > { %v1106_v21 = vadd.f32 %v1105_v13, %v5430_v9  ;;  %v5524_v4 = vadd.f32 %v5442_v0, %v1114_v59  ;;  %v2678_v51 = vpop.permute.xlu1 %2677  ;;  %v1825_v41 = vpop.f32.mrf.mxu0  ;;  %3818 = vmatpush3.bf16.msra.mxu0 %v3916_v57 }
 0x203   : > { %v5526_v16 = vpop.f32.mrf.mxu1  ;;  %3795 = vmatprep.mubr.msk.bf16.mxu0 %vm868_vm4, %v2706_v1  ;;  %v2698_v9 = vmul.f32 %v2678_v51, %v6079_v53 }
 0x204   : > { %v5530_v15 = vadd.f32 %v5456_v24, %v1106_v21  ;;  %v3721_v24 = vpop.f32.mrf.mxu0 }
 0x205   : > { %v5532_v10 = vpop.f32.mrf.mxu1 }
 0x206   : > { %v2682_v46 = vpop.permute.xlu1 %2681  ;;  %v1838_v36 = vpop.f32.mrf.mxu0 }
 0x207   : > { %v5534_v38 = vpop.f32.mrf.mxu1  ;;  %v2699_v0 = vmul.f32 %v2682_v46, %v6080_v14  ;;  %v3936_v14 = vld [vmem:[%s4071_s16 + $0x8] sm:$0xff]  }
 0x208   : > { %v3722_v39 = vpop.f32.mrf.mxu0 }
 0x209   : > { %v5538_v44 = vpop.f32.mrf.mxu1  ;;  %v2707_v37 = vpack.c.bf16 %v2699_v0, %v2698_v9 }
 0x20b   : > { %v3699_v5 = vpop.f32.mrf.mxu1  ;;  %3796 = vmatmul.mubr.msk.bf16.gmra.mxu0 %vm868_vm4, %v2707_v37  ;;  %v3937_v37 = vld [vmem:[%s4071_s16 + $0x10] sm:$0xff]  }
 0x20c   : > { %v1641_v43 = vadd.f32 %v3699_v5, %v5465_v56  ;;  %3821 = vmatprep.mubr.msk.bf16.mxu0 %vm443_vm0, %v3935_v60  ;;  %v3938_v5 = vld [vmem:[%s4071_s16 + $0x18] sm:$0xff]  }
 0x20d   : > { %v1588_v29 = vpop.f32.mrf.mxu1 }
 0x20e   : > { %v1639_v61 = vadd.f32 %v1588_v29, %v5471_v40  ;;  %v5545_v55 = vadd.f32 %v3717_v34, %v1641_v43  ;;  %v3939_v43 = vld [vmem:[%s4071_s16 + $0x20] sm:$0xff]   ;;  %v3942_v29 = vld [vmem:[%s4071_s16 + $0x38] sm:$0xff]  }
 0x20f   : > { %v3700_v26 = vpop.f32.mrf.mxu1 }
 0x210   : > { %v1642_v42 = vadd.f32 %v3700_v26, %v5477_v35  ;;  %v5548_v52 = vadd.f32 %v1822_v25, %v1639_v61 }
 0x211   : > { %v1591_v17 = vpop.f32.mrf.mxu1 }
 0x212   : > { %v1640_v56 = vadd.f32 %v1591_v17, %v5483_v7  ;;  %v5551_v58 = vadd.f32 %v3718_v2, %v1642_v42  ;;  %v3917_v7 = vld [vmem:[%s5793_s6] sm:$0xff]  }
 0x213   : > { %v3703_v33 = vpop.f32.mrf.mxu1  ;;  %3799 = vmatprep.subr.bf16.mxu1 %v3917_v7 }
 0x214   : > { %v1645_v22 = vadd.f32 %v3703_v33, %v5488_v50  ;;  %v5554_v47 = vadd.f32 %v1825_v41, %v1640_v56  ;;  %v3918_v50 = vld [vmem:[%s5795_s8] sm:$0xff]   ;;  %3800 = vmatpush3.bf16.msra.mxu1 %v3917_v7 }
 0x215   : > { %v1604_v40 = vpop.f32.mrf.mxu1  ;;  %3819 = vmatprep.subr.bf16.mxu0 %v3918_v50 }
 0x216   : > { %v1643_v12 = vadd.f32 %v1604_v40, %v5496_v49  ;;  %v5557_v34 = vadd.f32 %v3721_v24, %v1645_v22  ;;  %v1841_v49 = vpop.f32.mrf.mxu0  ;;  %3820 = vmatpush3.bf16.msra.mxu0 %v3918_v50  ;;  %v3941_v24 = vld [vmem:[%s4071_s16 + $0x30] sm:$0xff]  }
 0x217   : > { %v3704_v35 = vpop.f32.mrf.mxu1 }
 0x218   : > { %v1646_v8 = vadd.f32 %v3704_v35, %v5500_v6  ;;  %v5569_v32 = vadd.f32 %v1838_v36, %v1643_v12 }
 0x219   : > { %v1607_v54 = vpop.f32.mrf.mxu1  ;;  %v3725_v28 = vpop.f32.mrf.mxu0  ;;  %3822 = vmatmul.mubr.msk.bf16.vlgmr.msra.gmra.mxu0 %vm443_vm0, %v3936_v14 }
 0x21a   : > { %v1644_v27 = vadd.f32 %v1607_v54, %v5509_v3  ;;  %v5572_v59 = vadd.f32 %v3722_v39, %v1646_v8  ;;  %3825 = vmatprep.mubr.msk.bf16.mxu0 %vm443_vm0, %v3937_v37 }
 0x21b   : > { %v3707_v48 = vpop.f32.mrf.mxu1  ;;  %v1854_v1 = vpop.f32.mrf.mxu0 }
 0x21c   : > { %v1649_v13 = vadd.f32 %v3707_v48, %v5513_v30  ;;  %v5575_v25 = vadd.f32 %v1841_v49, %v1644_v27 }
 0x21d   : > { %v1620_v6 = vpop.f32.mrf.mxu1  ;;  %v3726_v2 = vpop.f32.mrf.mxu0 }
 0x21e   : > { %v1647_v21 = vadd.f32 %v1620_v6, %v5520_v20  ;;  %v1883_v51 = vadd.f32 %v3725_v28, %v1649_v13 }
 0x21f   : > { %v3708_v3 = vpop.f32.mrf.mxu1  ;;  %v1857_v30 = vpop.f32.mrf.mxu0 }
 0x220   : > { %v1650_v46 = vadd.f32 %v3708_v3, %v5524_v4  ;;  %v1881_v53 = vadd.f32 %v1854_v1, %v1647_v21  ;;  %v3940_v4 = vld [vmem:[%s4071_s16 + $0x28] sm:$0xff]  }
 0x221   : > { %v1623_v9 = vpop.f32.mrf.mxu1  ;;  %3826 = vmatmul.mubr.msk.bf16.gmra.mxu0 %vm443_vm0, %v3938_v5 }
 0x222   : > { %v1648_v0 = vadd.f32 %v1623_v9, %v5530_v15  ;;  %v1884_v20 = vadd.f32 %v3726_v2, %v1650_v46  ;;  %3829 = vmatprep.mubr.msk.bf16.mxu0 %vm443_vm0, %v3939_v43 }
 0x223   : > { %v3731_v15 = vpop.f32.mrf.mxu1 }
 0x224   : > { %v1882_v41 = vadd.f32 %v1857_v30, %v1648_v0 }
 0x225   : > { %v2073_v60 = vpop.f32.mrf.mxu1 }
 0x227   : > { %v3732_v61 = vpop.f32.mrf.mxu1 }
 0x229   : > { %3830 = vmatmul.mubr.msk.bf16.gmra.mxu0 %vm443_vm0, %v3940_v4  ;;  %v2076_v26 = vpop.f32.mrf.mxu1 }
 0x22a   : > { %3833 = vmatprep.mubr.msk.bf16.mxu0 %vm443_vm0, %v3941_v24 }
 0x22f   : > { %v3749_v42 = vpop.f32.mrf.mxu0 }
 0x231   : > { %3834 = vmatmul.mubr.msk.bf16.gmra.mxu0 %vm443_vm0, %v3942_v29  ;;  %v2307_v17 = vpop.f32.mrf.mxu0  ;;  %v1638_v29 = vadd.f32 %v5534_v38, %v5454_v19 }
 0x233   : > { %v3750_v33 = vpop.f32.mrf.mxu0 }
 0x235   : > { %v2310_v39 = vpop.f32.mrf.mxu0 }
 0x238   : > { %v5594_v36 = vpop.f32.mrf.mxu1 }
 0x23a   : > { %v5596_v56 = vpop.f32.mrf.mxu1 }
 0x23c   : > { %v5598_v22 = vpop.f32.mrf.mxu1 }
 0x23e   : > { %v5600_v40 = vpop.f32.mrf.mxu1 }
 0x246   : > { %v5602_v12 = vpop.f32.mrf.mxu0 }
 0x248   : > { %v5606_v57 = vpop.f32.mrf.mxu0 }
 0x24a   : > { %v5610_v50 = vpop.f32.mrf.mxu0 }
 0x24c   : > { %v5614_v49 = vpop.f32.mrf.mxu0 }
 0x24f   : > { %v5604_v35 = vpop.f32.mrf.mxu1 }
 0x251   : > { %v5608_v7 = vpop.f32.mrf.mxu1 }
 0x253   : > { %v5612_v8 = vpop.f32.mrf.mxu1 }
 0x255   : > { %v5616_v54 = vpop.f32.mrf.mxu1 }
 0x25d   : > { %v5618_v27 = vpop.f32.mrf.mxu0 }
 0x25f   : > { %v5620_v6 = vpop.f32.mrf.mxu0 }
 0x261   : > { %v5622_v46 = vpop.f32.mrf.mxu0 }
 0x263   : > { %v5624_v30 = vpop.f32.mrf.mxu0 }
 0x266   : > { %v3743_v48 = vpop.f32.mrf.mxu1 }
 0x267   : > { %v2150_v28 = vadd.f32 %v3743_v48, %v1883_v51 }
 0x268   : > { %v2121_v13 = vpop.f32.mrf.mxu1 }
 0x269   : > { %v2148_v1 = vadd.f32 %v2121_v13, %v1881_v53  ;;  %v1637_v53 = vadd.f32 %v5526_v16, %v5440_v63  ;;  %v1636_v13 = vadd.f32 %v5538_v44, %v5460_v18  ;;  %v5649_v18 = vld [vmem:[%s5792_s5] ss:$0 sm:$0xff] }
 0x26a   : > { %v3744_v21 = vpop.f32.mrf.mxu1 }
 0x26b   : > { %v2151_v3 = vadd.f32 %v3744_v21, %v1884_v20  ;;  %v1871_v48 = vadd.f32 %v5467_v11, %v1637_v53 }
 0x26c   : > { %v2124_v2 = vpop.f32.mrf.mxu1 }
 0x26d   : > { %v2149_v9 = vadd.f32 %v2124_v2, %v1882_v41  ;;  %v1635_v41 = vadd.f32 %v5532_v10, %v5446_v45  ;;  %v1872_v2 = vadd.f32 %v5492_v62, %v1638_v29  ;;  %v1870_v45 = vadd.f32 %v5505_v23, %v1636_v13 }
 0x26f   : > { %v1869_v21 = vadd.f32 %v5479_v31, %v1635_v41  ;;  %v2137_v38 = vadd.f32 %v2076_v26, %v1870_v45 }
 0x271   : > { %v2371_v62 = vadd.f32 %v2310_v39, %v2137_v38 }
 0x273   : > { %v3761_v14 = vpop.f32.mrf.mxu0 }
 0x274   : > { %v5626_v0 = vadd.f32 %v3761_v14, %v2150_v28 }
 0x275   : > { %v2355_v37 = vpop.f32.mrf.mxu0 }
 0x276   : > { %v5628_v5 = vadd.f32 %v2355_v37, %v2148_v1  ;;  %v2138_v1 = vadd.f32 %v3731_v15, %v1871_v48 }
 0x277   : > { %v3762_v43 = vpop.f32.mrf.mxu0 }
 0x278   : > { %v5630_v51 = vadd.f32 %v3762_v43, %v2151_v3  ;;  %v2136_v3 = vadd.f32 %v2073_v60, %v1869_v21  ;;  %v2372_v63 = vadd.f32 %v3749_v42, %v2138_v1 }
 0x279   : > { %v2358_v4 = vpop.f32.mrf.mxu0 }
 0x27a   : > { %v5632_v24 = vadd.f32 %v2358_v4, %v2149_v9  ;;  %v2139_v9 = vadd.f32 %v3732_v61, %v1872_v2  ;;  %v2370_v10 = vadd.f32 %v2307_v17, %v2136_v3  ;;  %v2142_v3 = vadd.f32 %v5594_v36, %v5545_v55 }
 0x27b   : > { %v2140_v2 = vadd.f32 %v5596_v56, %v5548_v52 }
 0x27c   : > { %v3767_v20 = vpop.f32.mrf.mxu1  ;;  %v2373_v11 = vadd.f32 %v3750_v33, %v2139_v9  ;;  %v2143_v9 = vadd.f32 %v5598_v22, %v5551_v58 }
 0x27d   : > { %v2606_v14 = vadd.f32 %v3767_v20, %v2372_v63  ;;  %v2376_v63 = vadd.f32 %v5602_v12, %v2142_v3  ;;  %v2374_v45 = vadd.f32 %v5606_v57, %v2140_v2 }
 0x27e   : > { %v2541_v28 = vpop.f32.mrf.mxu1  ;;  %v2377_v38 = vadd.f32 %v5610_v50, %v2143_v9 }
 0x27f   : > { %v2604_v37 = vadd.f32 %v2541_v28, %v2370_v10 }
 0x280   : > { %v3768_v16 = vpop.f32.mrf.mxu1 }
 0x281   : > { %v2607_v44 = vadd.f32 %v3768_v16, %v2373_v11 }
 0x282   : > { %v2544_v4 = vpop.f32.mrf.mxu1 }
 0x283   : > { %v2605_v61 = vadd.f32 %v2544_v4, %v2371_v62 }
 0x289   : > { %v3785_v19 = vpop.f32.mrf.mxu0 }
 0x28a   : > { %v2840_v43 = vadd.f32 %v3785_v19, %v2606_v14  ;;  %v2141_v19 = vadd.f32 %v5600_v40, %v5554_v47 }
 0x28b   : > { %v2775_v31 = vpop.f32.mrf.mxu0 }
 0x28c   : > { %v2838_v15 = vadd.f32 %v2775_v31, %v2604_v37  ;;  %v2863_v23 = vadd.f32 %v5649_v18, %v2840_v43  ;;  %v2375_v52 = vadd.f32 %v5614_v49, %v2141_v19 }
 0x28d   : > { %v3786_v60 = vpop.f32.mrf.mxu0 }
 0x28e   : > { %v2841_v42 = vadd.f32 %v3786_v60, %v2607_v44  ;;  %v2861_v26 = vadd.f32 %v5649_v18, %v2838_v15  ;;  %v2879_v20 = vmax.f32 %v2863_v23, 0.0 }
 0x28f   : > { %v2778_v17 = vpop.f32.mrf.mxu0 }
 0x290   : > { %v2864_v33 = vadd.f32 %v5649_v18, %v2841_v42  ;;  %v2839_v53 = vadd.f32 %v2778_v17, %v2605_v61  ;;  %v2877_v48 = vmax.f32 %v2861_v26, 0.0  ;;  %v2146_v17 = vadd.f32 %v5604_v35, %v5557_v34 }
 0x291   : > { %v2144_v26 = vadd.f32 %v5608_v7, %v5569_v32 }
 0x292   : > { %v2880_v41 = vmax.f32 %v2864_v33, 0.0  ;;  %v2862_v29 = vadd.f32 %v5649_v18, %v2839_v53  ;;  %v3771_v13 = vpop.f32.mrf.mxu1  ;;  %v2380_v33 = vadd.f32 %v5618_v27, %v2146_v17 }
 0x293   : > { %v2610_v10 = vadd.f32 %v3771_v13, %v2376_v63 }
 0x294   : > { %v2894_v28 = vpack.c.bf16 %v2880_v41, %v2879_v20  ;;  %v2878_v39 = vmax.f32 %v2862_v29, 0.0  ;;  %v2557_v21 = vpop.f32.mrf.mxu1  ;;  %v2147_v20 = vadd.f32 %v5612_v8, %v5572_v59  ;;  %v2378_v41 = vadd.f32 %v5620_v6, %v2144_v26 }
 0x295   : > { %v2608_v11 = vadd.f32 %v2557_v21, %v2374_v45 }
 0x296   : > { %v2893_v1 = vpack.c.bf16 %v2878_v39, %v2877_v48  ;;  %v3772_v16 = vpop.f32.mrf.mxu1  ;;  %v2381_v39 = vadd.f32 %v5622_v46, %v2147_v20 }
 0x297   : > { %v2611_v56 = vadd.f32 %v3772_v16, %v2377_v38 }
 0x298   : > { %3801 = vmatprep.mubr.msk.bf16.mxu1 %vm868_vm4, %v2893_v1  ;;  %v2560_v36 = vpop.f32.mrf.mxu1 }
 0x299   : > { %3802 = vmatmul.mubr.msk.bf16.vlgmr.msra.gmra.mxu1 %vm868_vm4, %v2894_v28  ;;  %v2609_v4 = vadd.f32 %v2560_v36, %v2375_v52  ;;  %v2145_v28 = vadd.f32 %v5616_v54, %v5575_v25 }
 0x29b   : > { %v2379_v32 = vadd.f32 %v5624_v30, %v2145_v28 }
 0x29f   : > { %v3789_v14 = vpop.f32.mrf.mxu0 }
 0x2a0   : > { %v2844_v55 = vadd.f32 %v3789_v14, %v2610_v10 }
 0x2a1   : > { %v2791_v37 = vpop.f32.mrf.mxu0 }
 0x2a2   : > { %v2842_v12 = vadd.f32 %v2791_v37, %v2608_v11  ;;  %v2867_v58 = vadd.f32 %v5649_v18, %v2844_v55 }
 0x2a3   : > { %v3790_v43 = vpop.f32.mrf.mxu0 }
 0x2a4   : > { %v2845_v22 = vadd.f32 %v3790_v43, %v2611_v56  ;;  %v2865_v31 = vadd.f32 %v5649_v18, %v2842_v12  ;;  %v2883_v50 = vmax.f32 %v2867_v58, 0.0 }
 0x2a5   : > { %v2794_v57 = vpop.f32.mrf.mxu0 }
 0x2a6   : > { %v2868_v47 = vadd.f32 %v5649_v18, %v2845_v22  ;;  %v2843_v40 = vadd.f32 %v2794_v57, %v2609_v4  ;;  %v2881_v15 = vmax.f32 %v2865_v31, 0.0 }
 0x2a8   : > { %v2884_v62 = vmax.f32 %v2868_v47, 0.0  ;;  %v2866_v44 = vadd.f32 %v5649_v18, %v2843_v40  ;;  %v3775_v61 = vpop.f32.mrf.mxu1 }
 0x2a9   : > { %v2614_v29 = vadd.f32 %v3775_v61, %v2380_v33  ;;  %v5706_v61 = vld [vmem:[%s5796_s9] ss:$0 sm:$0xff] }
 0x2aa   : > { %v2896_v60 = vpack.c.bf16 %v2884_v62, %v2883_v50  ;;  %v2882_v49 = vmax.f32 %v2866_v44, 0.0  ;;  %v2573_v42 = vpop.f32.mrf.mxu1 }
 0x2ab   : > { %v2612_v13 = vadd.f32 %v2573_v42, %v2378_v41 }
 0x2ac   : > { %v2895_v23 = vpack.c.bf16 %v2882_v49, %v2881_v15  ;;  %v3776_v53 = vpop.f32.mrf.mxu1 }
 0x2ad   : > { %v2615_v7 = vadd.f32 %v3776_v53, %v2381_v39 }
 0x2ae   : > { %3805 = vmatprep.mubr.msk.bf16.mxu1 %vm868_vm4, %v2895_v23  ;;  %v2576_v35 = vpop.f32.mrf.mxu1  ;;  %v5711_v23 = vld [vmem:[%s5794_s7] ss:$0 sm:$0xff] }
 0x2af   : > { %3806 = vmatmul.mubr.msk.bf16.gmra.mxu1 %vm868_vm4, %v2896_v60  ;;  %v2613_v3 = vadd.f32 %v2576_v35, %v2379_v32 }
 0x2b5   : > { %v3793_v48 = vpop.f32.mrf.mxu0 }
 0x2b6   : > { %v2848_v34 = vadd.f32 %v3793_v48, %v2614_v29 }
 0x2b7   : > { %v2807_v1 = vpop.f32.mrf.mxu0 }
 0x2b8   : > { %v2846_v27 = vadd.f32 %v2807_v1, %v2612_v13  ;;  %v2871_v59 = vadd.f32 %v5649_v18, %v2848_v34 }
 0x2b9   : > { %v3794_v21 = vpop.f32.mrf.mxu0 }
 0x2ba   : > { %v2849_v8 = vadd.f32 %v3794_v21, %v2615_v7  ;;  %v2869_v2 = vadd.f32 %v5649_v18, %v2846_v27  ;;  %v2887_v46 = vmax.f32 %v2871_v59, 0.0 }
 0x2bb   : > { %v2810_v6 = vpop.f32.mrf.mxu0 }
 0x2bc   : > { %v2872_v25 = vadd.f32 %v5649_v18, %v2849_v8  ;;  %v2847_v54 = vadd.f32 %v2810_v6, %v2613_v3  ;;  %v2885_v9 = vmax.f32 %v2869_v2, 0.0 }
 0x2be   : > { %v2888_v63 = vmax.f32 %v2872_v25, 0.0  ;;  %v2870_v16 = vadd.f32 %v5649_v18, %v2847_v54  ;;  %v3779_v10 = vpop.f32.mrf.mxu1 }
 0x2bf   : > { %v2618_v11 = vadd.f32 %v3779_v10, %v5626_v0 }
 0x2c0   : > { %v2898_v45 = vpack.c.bf16 %v2888_v63, %v2887_v46  ;;  %v2886_v30 = vmax.f32 %v2870_v16, 0.0  ;;  %v2589_v19 = vpop.f32.mrf.mxu1 }
 0x2c1   : > { %v2616_v36 = vadd.f32 %v2589_v19, %v5628_v5 }
 0x2c2   : > { %v2897_v14 = vpack.c.bf16 %v2886_v30, %v2885_v9  ;;  %v3780_v38 = vpop.f32.mrf.mxu1 }
 0x2c3   : > { %v2619_v12 = vadd.f32 %v3780_v38, %v5630_v51 }
 0x2c4   : > { %3809 = vmatprep.mubr.msk.bf16.mxu1 %vm868_vm4, %v2897_v14  ;;  %v2592_v52 = vpop.f32.mrf.mxu1 }
 0x2c5   : > { %3810 = vmatmul.mubr.msk.bf16.gmra.mxu1 %vm868_vm4, %v2898_v45  ;;  %v2617_v58 = vadd.f32 %v2592_v52, %v5632_v24 }
 0x2cb   : > { %v3797_v55 = vpop.f32.mrf.mxu0 }
 0x2cc   : > { %v2852_v37 = vadd.f32 %v3797_v55, %v2618_v11 }
 0x2cd   : > { %v2823_v56 = vpop.f32.mrf.mxu0 }
 0x2ce   : > { %v2850_v43 = vadd.f32 %v2823_v56, %v2616_v36  ;;  %v2875_v22 = vadd.f32 %v5649_v18, %v2852_v37 }
 0x2cf   : > { %v3798_v4 = vpop.f32.mrf.mxu0 }
 0x2d0   : > { %v2853_v57 = vadd.f32 %v3798_v4, %v2619_v12  ;;  %v2873_v47 = vadd.f32 %v5649_v18, %v2850_v43  ;;  %v2891_v50 = vmax.f32 %v2875_v22, 0.0 }
 0x2d1   : > { %v2826_v31 = vpop.f32.mrf.mxu0 }
 0x2d2   : > { %v2876_v0 = vadd.f32 %v5649_v18, %v2853_v57  ;;  %v2851_v40 = vadd.f32 %v2826_v31, %v2617_v58  ;;  %v2889_v44 = vmax.f32 %v2873_v47, 0.0 }
 0x2d4   : > { %v2892_v5 = vmax.f32 %v2876_v0, 0.0  ;;  %v2874_v62 = vadd.f32 %v5649_v18, %v2851_v40 }
 0x2d6   : > { %v2900_v15 = vpack.c.bf16 %v2892_v5, %v2891_v50  ;;  %v2890_v51 = vmax.f32 %v2874_v62, 0.0 }
 0x2d8   : > { %v2899_v60 = vpack.c.bf16 %v2890_v51, %v2889_v44 }
 0x2d9   : > { %v3823_v24 = vpop.f32.mrf.mxu0 }
 0x2da   : > { %3813 = vmatprep.mubr.msk.bf16.mxu1 %vm868_vm4, %v2899_v60  ;;  %v3103_v42 = vadd.f32 %v3823_v24, %v5706_v61 }
 0x2db   : > { %3814 = vmatmul.mubr.msk.bf16.gmra.mxu1 %vm868_vm4, %v2900_v15  ;;  %v3094_v49 = vpop.f32.mrf.mxu0 }
 0x2dc   : > { %v3095_v33 = vadd.f32 %v5706_v61, %v3094_v49 }
 0x2dd   : > { %v3824_v18 = vpop.f32.mrf.mxu0 }
 0x2de   : > { %v3106_v48 = vadd.f32 %v3824_v18, %v5706_v61 }
 0x2df   : > { %v3097_v20 = vpop.f32.mrf.mxu0 }
 0x2e0   : > { %v3098_v35 = vadd.f32 %v5706_v61, %v3097_v20 }
 0x2e1   : > { %v3827_v25 = vpop.f32.mrf.mxu0 }
 0x2e2   : > { %v3119_v16 = vadd.f32 %v3827_v25, %v5706_v61 }
 0x2e3   : > { %v3110_v46 = vpop.f32.mrf.mxu0 }
 0x2e4   : > { %v3111_v30 = vadd.f32 %v5706_v61, %v3110_v46 }
 0x2e5   : > { %v3828_v63 = vpop.f32.mrf.mxu0 }
 0x2e6   : > { %v3122_v11 = vadd.f32 %v3828_v63, %v5706_v61 }
 0x2e7   : > { %v3113_v14 = vpop.f32.mrf.mxu0 }
 0x2e8   : > { %v3114_v56 = vadd.f32 %v5706_v61, %v3113_v14 }
 0x2e9   : > { %v3831_v50 = vpop.f32.mrf.mxu0 }
 0x2ea   : > { %v3135_v15 = vadd.f32 %v3831_v50, %v5706_v61 }
 0x2eb   : > { %v3126_v62 = vpop.f32.mrf.mxu0 }
 0x2ec   : > { %v3127_v24 = vadd.f32 %v5706_v61, %v3126_v62 }
 0x2ed   : > { %v3832_v44 = vpop.f32.mrf.mxu0 }
 0x2ef   : > { %v3129_v18 = vpop.f32.mrf.mxu0 }
 0x359   : > { %v3803_v17 = vpop.f32.mrf.mxu1 }
 0x35a   : > { %v2983_v26 = vadd.f32 %v3803_v17, %v5711_v23 }
 0x35b   : > { %v2974_v53 = vpop.f32.mrf.mxu1 }
 0x35c   : > { %v3159_v41 = vadd.f32 %v3103_v42, %v2983_v26  ;;  %v2975_v29 = vadd.f32 %v5711_v23, %v2974_v53  ;;  %v3138_v26 = vadd.f32 %v3832_v44, %v5706_v61 }
 0x35d   : > { %v3804_v28 = vpop.f32.mrf.mxu1 }
 0x35e   : > { %v3175_v39 = vmax.f32 %v3159_v41, 0.0  ;;  %v3157_v13 = vadd.f32 %v3095_v33, %v2975_v29  ;;  %v2986_v34 = vadd.f32 %v3804_v28, %v5711_v23  ;;  %v3130_v29 = vadd.f32 %v5706_v61, %v3129_v18 }
 0x35f   : > { %v2977_v1 = vpop.f32.mrf.mxu1 }
 0x360   : > { %v3493_v32 = vpack.c.bf16 %v3175_v39, %v3175_v39  ;;  %v3173_v7 = vmax.f32 %v3157_v13, 0.0  ;;  %v3160_v27 = vadd.f32 %v3106_v48, %v2986_v34  ;;  %v2978_v21 = vadd.f32 %v5711_v23, %v2977_v1 }
 0x362   : > { %3256 = vst.msk [vmem:[%s5725_s23 + $0x8] sm:$0xf] %vm3253_vm7, %v3493_v32  ;;  %v3491_v3 = vpack.c.bf16 %v3173_v7, %v3173_v7  ;;  %v3176_v59 = vmax.f32 %v3160_v27, 0.0  ;;  %v3158_v8 = vadd.f32 %v3098_v35, %v2978_v21 }
 0x364   : > { %3254 = vst.msk [vmem:[%s5725_s23] sm:$0xf] %vm3253_vm7, %v3491_v3  ;;  %v3494_v6 = vpack.c.bf16 %v3176_v59, %v3176_v59  ;;  %v3174_v2 = vmax.f32 %v3158_v8, 0.0  ;;  %v3835_v3 = vpop.f32.mrf.mxu0 }
 0x365   : > { %v3151_v8 = vadd.f32 %v3835_v3, %v5706_v61 }
 0x366   : > { %3257 = vst.msk [vmem:[%s5725_s23 + $0xc] sm:$0xf] %vm3253_vm7, %v3494_v6  ;;  %v3492_v54 = vpack.c.bf16 %v3174_v2, %v3174_v2  ;;  %v3142_v59 = vpop.f32.mrf.mxu0 }
 0x367   : > { %v3143_v46 = vadd.f32 %v5706_v61, %v3142_v59 }
 0x368   : > { %3255 = vst.msk [vmem:[%s5725_s23 + $0x4] sm:$0xf] %vm3253_vm7, %v3492_v54  ;;  %v3836_v6 = vpop.f32.mrf.mxu0 }
 0x36f   : > { %v3807_v9 = vpop.f32.mrf.mxu1 }
 0x370   : > { %v2999_v45 = vadd.f32 %v3807_v9, %v5711_v23 }
 0x371   : > { %v2990_v10 = vpop.f32.mrf.mxu1 }
 0x372   : > { %v3163_v19 = vadd.f32 %v3119_v16, %v2999_v45  ;;  %v2991_v38 = vadd.f32 %v5711_v23, %v2990_v10  ;;  %v3145_v16 = vpop.f32.mrf.mxu0 }
 0x373   : > { %v3808_v55 = vpop.f32.mrf.mxu1 }
 0x374   : > { %v3179_v36 = vmax.f32 %v3163_v19, 0.0  ;;  %v3161_v37 = vadd.f32 %v3111_v30, %v2991_v38  ;;  %v3002_v52 = vadd.f32 %v3808_v55, %v5711_v23  ;;  %v3154_v30 = vadd.f32 %v3836_v6, %v5706_v61 }
 0x375   : > { %v2993_v12 = vpop.f32.mrf.mxu1  ;;  %v3146_v38 = vadd.f32 %v5706_v61, %v3145_v16 }
 0x376   : > { %v3497_v43 = vpack.c.bf16 %v3179_v36, %v3179_v36  ;;  %v3177_v4 = vmax.f32 %v3161_v37, 0.0  ;;  %v3164_v58 = vadd.f32 %v3122_v11, %v3002_v52  ;;  %v2994_v22 = vadd.f32 %v5711_v23, %v2993_v12 }
 0x378   : > { %3260 = vst.msk [vmem:[%s5725_s23 + $0x18] sm:$0xf] %vm3253_vm7, %v3497_v43  ;;  %v3495_v57 = vpack.c.bf16 %v3177_v4, %v3177_v4  ;;  %v3180_v31 = vmax.f32 %v3164_v58, 0.0  ;;  %v3162_v47 = vadd.f32 %v3114_v56, %v2994_v22 }
 0x37a   : > { %3258 = vst.msk [vmem:[%s5725_s23 + $0x10] sm:$0xf] %vm3253_vm7, %v3495_v57  ;;  %v3498_v0 = vpack.c.bf16 %v3180_v31, %v3180_v31  ;;  %v3178_v40 = vmax.f32 %v3162_v47, 0.0 }
 0x37c   : > { %3261 = vst.msk [vmem:[%s5725_s23 + $0x1c] sm:$0xf] %vm3253_vm7, %v3498_v0  ;;  %v3496_v5 = vpack.c.bf16 %v3178_v40, %v3178_v40 }
 0x37e   : > { %3259 = vst.msk [vmem:[%s5725_s23 + $0x14] sm:$0xf] %vm3253_vm7, %v3496_v5 }
 0x385   : > { %v3811_v51 = vpop.f32.mrf.mxu1 }
 0x386   : > { %v3015_v60 = vadd.f32 %v3811_v51, %v5711_v23 }
 0x387   : > { %v3006_v49 = vpop.f32.mrf.mxu1 }
 0x388   : > { %v3167_v42 = vadd.f32 %v3135_v15, %v3015_v60  ;;  %v3007_v17 = vadd.f32 %v5711_v23, %v3006_v49 }
 0x389   : > { %v3812_v33 = vpop.f32.mrf.mxu1 }
 0x38a   : > { %v3183_v53 = vmax.f32 %v3167_v42, 0.0  ;;  %v3165_v20 = vadd.f32 %v3127_v24, %v3007_v17  ;;  %v3018_v41 = vadd.f32 %v3812_v33, %v5711_v23 }
 0x38b   : > { %v3009_v48 = vpop.f32.mrf.mxu1 }
 0x38c   : > { %v3501_v28 = vpack.c.bf16 %v3183_v53, %v3183_v53  ;;  %v3181_v39 = vmax.f32 %v3165_v20, 0.0  ;;  %v3168_v13 = vadd.f32 %v3138_v26, %v3018_v41  ;;  %v3010_v34 = vadd.f32 %v5711_v23, %v3009_v48 }
 0x38e   : > { %3264 = vst.msk [vmem:[%s5725_s23 + $0x28] sm:$0xf] %vm3253_vm7, %v3501_v28  ;;  %v3499_v35 = vpack.c.bf16 %v3181_v39, %v3181_v39  ;;  %v3184_v1 = vmax.f32 %v3168_v13, 0.0  ;;  %v3166_v32 = vadd.f32 %v3130_v29, %v3010_v34 }
 0x390   : > { %3262 = vst.msk [vmem:[%s5725_s23 + $0x20] sm:$0xf] %vm3253_vm7, %v3499_v35  ;;  %v3502_v7 = vpack.c.bf16 %v3184_v1, %v3184_v1  ;;  %v3182_v27 = vmax.f32 %v3166_v32, 0.0 }
 0x392   : > { %3265 = vst.msk [vmem:[%s5725_s23 + $0x2c] sm:$0xf] %vm3253_vm7, %v3502_v7  ;;  %v3500_v21 = vpack.c.bf16 %v3182_v27, %v3182_v27 }
 0x394   : > { %3263 = vst.msk [vmem:[%s5725_s23 + $0x24] sm:$0xf] %vm3253_vm7, %v3500_v21 }
 0x39b   : > { %v3815_v2 = vpop.f32.mrf.mxu1 }
 0x39c   : > { %v3031_v25 = vadd.f32 %v3815_v2, %v5711_v23 }
 0x39d   : > { %v3022_v54 = vpop.f32.mrf.mxu1 }
 0x39e   : > { %v3171_v63 = vadd.f32 %v3151_v8, %v3031_v25  ;;  %v3023_v9 = vadd.f32 %v5711_v23, %v3022_v54 }
 0x39f   : > { %v3816_v45 = vpop.f32.mrf.mxu1 }
 0x3a0   : > { %v3187_v10 = vmax.f32 %v3171_v63, 0.0  ;;  %v3169_v14 = vadd.f32 %v3143_v46, %v3023_v9  ;;  %v3034_v19 = vadd.f32 %v3816_v45, %v5711_v23 }
 0x3a1   : > { %v3025_v11 = vpop.f32.mrf.mxu1 }
 0x3a2   : > { %v3505_v55 = vpack.c.bf16 %v3187_v10, %v3187_v10  ;;  %v3185_v36 = vmax.f32 %v3169_v14, 0.0  ;;  %v3172_v37 = vadd.f32 %v3154_v30, %v3034_v19  ;;  %v3026_v52 = vadd.f32 %v5711_v23, %v3025_v11 }
 0x3a4   : > { %3268 = vst.msk [vmem:[%s5725_s23 + $0x38] sm:$0xf] %vm3253_vm7, %v3505_v55  ;;  %v3503_v56 = vpack.c.bf16 %v3185_v36, %v3185_v36  ;;  %v3188_v12 = vmax.f32 %v3172_v37, 0.0  ;;  %v3170_v43 = vadd.f32 %v3146_v38, %v3026_v52 }
 0x3a6   : > { %3266 = vst.msk [vmem:[%s5725_s23 + $0x30] sm:$0xf] %vm3253_vm7, %v3503_v56  ;;  %v3506_v4 = vpack.c.bf16 %v3188_v12, %v3188_v12  ;;  %v3186_v58 = vmax.f32 %v3170_v43, 0.0 }
 0x3a8   : > { %3269 = vst.msk [vmem:[%s5725_s23 + $0x3c] sm:$0xf] %vm3253_vm7, %v3506_v4  ;;  %v3504_v22 = vpack.c.bf16 %v3186_v58, %v3186_v58 }
 0x3aa   : > { %3267 = vst.msk [vmem:[%s5725_s23 + $0x34] sm:$0xf] %vm3253_vm7, %v3504_v22 }
 0x3ab PF: > { %s20_s13 = sadd.s32 1, %s3949_s13  }
 0x3ac   : > { %p17_p4 = scmp.ge.s32.totalorder %s20_s13, 4  }
 0x3ae   :  { %19 = sbr.rel (!%p17_p4) target bundleno = 1 (0x1), region = 98 }

// kernel: res5_roi_heads_forward.5
= control target key start
LH: loop header
LB: loop body
LE: loop exit
PB: predicated region body
PF: predicated region fallthrough
CT: control target
= control target key end

     0   :  { %s4052_s17 = smov 0   ;;  %s5823_s0 = inlined_call_operand.vmem [shape: bf16[256,64], index: 0, kind: input, shape index: {}]   ;;  %s5824_s1 = inlined_call_operand.vmem [shape: f32[128,9], index: 1, kind: input, shape index: {}]   ;;  %s5825_s2 = inlined_call_operand.vmem [shape: f32[8,128], index: 2, kind: input, shape index: {}]   ;;  %s5826_s3 = inlined_call_operand.vmem [shape: bf16[64,16], index: 3, kind: input, shape index: {}]   ;;  %s5827_s4 = inlined_call_operand.vmem [shape: f32[1,16], index: 4, kind: input, shape index: {}]   ;;  %s5828_s5 = inlined_call_operand.vmem [shape: bf16[9,16,16], index: 5, kind: input, shape index: {}]   ;;  %s5829_s6 = inlined_call_operand.vmem [shape: f32[1,16], index: 6, kind: input, shape index: {}]   ;;  %s5830_s7 = inlined_call_operand.vmem [shape: bf16[16,64], index: 7, kind: input, shape index: {}]   ;;  %s5831_s8 = inlined_call_operand.vmem [shape: f32[1,64], index: 8, kind: input, shape index: {}]   ;;  %s5832_s9 = inlined_call_operand.vmem [shape: bf16[64,128], index: 9, kind: input, shape index: {}]   ;;  %s5833_s10 = inlined_call_operand.vmem [shape: f32[1,128], index: 10, kind: input, shape index: {}]   ;;  %s5834_s11 = inlined_call_operand.vmem [shape: f32[16,128], index: 11, kind: output, shape index: {}]  }
   0x1 LB: > { %s4058_s18 = sadd.s32 4294967295, %s3979_s17   ;;  %p3337_p0 = scmp.ge.s32.totalorder %s3979_s17, 1  ;;  %s3979_s17 = sphi %s4052_s17, %s21_s17  }
   0x2   : > { %p338_p1 = scmp.lt.s32.totalorder %s3979_s17, 3 }
   0x4   : > { %p339_p2 = pnand %p3337_p0, %p338_p1 }
   0x6   : > { %342 = sbr.rel (%p339_p2) target bundleno = 1360 (0x550), region = 64 }
   0xb   : > { %v4065_v0 = vld [vmem:[%s5824_s1 + $0x10] sm:$0xff]  ;;  %v4070_v1 = vld [vmem:[%s5824_s1] sm:$0xff]  ;;  %s3338_s23 = sshll.u32 %s4058_s18, 4  ;;  %v3981_v2 = vmov 1   ;;  %v3915_v3 = vld [vmem:[%s5826_s3 + $0x18] sm:$0xff]   ;;  %vm483_vm0 = vcmask 523264  }
   0xc   : > { %3873 = vset.pattern.permute.xlu1 %v3981_v2  ;;  %3872 = vset.pattern.permute.xlu0 %v3981_v2  ;;  %p378_p3 = scmp.lt.s32.totalorder %s3338_s23, 31  ;;  %v4081_v4 = vld [vmem:[%s5824_s1 + $0x18] sm:$0xff]  ;;  %v4086_v5 = vld [vmem:[%s5824_s1 + $0x8] sm:$0xff]  ;;  %v3916_v6 = vld [vmem:[%s5826_s3 + $0x10] sm:$0xff]   ;;  %v3982_v28 = vmov 0   ;;  %v3983_v30 = vmov 2  }
   0xd   : > { %820 = vperm.xlu1 %3873, %v4065_v0   ;;  %812 = vperm.xlu0 %3872, %v4070_v1   ;;  %v3917_v7 = vld [vmem:[%s5826_s3 + $0x8] sm:$0xff]   ;;  %v4109_v9 = vld [vmem:[%s5824_s1 + $0x20] sm:$0xff]  ;;  %v4120_v12 = vld [vmem:[%s5824_s1 + $0x38] sm:$0xff]  ;;  %v3984_v31 = vmov 3   ;;  %v3985_v32 = vmov 4   ;;  %v5841_v41 = vmov 5  }
   0xe   : > { %3602 = vmatprep.subr.bf16.mxu0 %v3915_v3  ;;  %s6118_s23 = smov (!%p378_p3, %s3338_s23), 31  ;;  %v4104_v8 = vld [vmem:[%s5824_s1 + $0x28] sm:$0xff]  ;;  %v3918_v11 = vld [vmem:[%s5826_s3] sm:$0xff]   ;;  %v4125_v13 = vld [vmem:[%s5824_s1 + $0x30] sm:$0xff]  ;;  %v5839_v60 = vmov 6   ;;  %vm908_vm5 = vcmask 130048  }
   0xf   : > { %3603 = vmatpush3.bf16.msra.mxu0 %v3915_v3  ;;  %s3339_s15 = sshll.u32 %s6118_s23, 2  ;;  %v4133_v16 = vld [vmem:[%s5824_s1 + $0x48] sm:$0xff]  ;;  %v4138_v17 = vld [vmem:[%s5824_s1 + $0x40] sm:$0xff]  ;;  %v4145_v18 = vld [vmem:[%s5824_s1 + $0x58] sm:$0xff]  ;;  %vm3991_vm7 = vmmov 0   ;;  %p383_p4 = scmp.lt.s32.totalorder %s4058_s18, 1 }
  0x10   : > { %3604 = vmatprep.subr.bf16.mxu0 %v3916_v6  ;;  %s4099_s20 = scalar_lea.vmem %s5823_s0, %s3339_s15  ;;  %5898 = vst [vmem:[#allocation2_spill] sm:$0xff] %v4138_v17  ;;  %5899 = vst [vmem:[#allocation3_spill] sm:$0xff] %v4145_v18  ;;  %v4150_v19 = vld [vmem:[%s5824_s1 + $0x50] sm:$0xff]  ;;  %v4163_v22 = vld [vmem:[%s5824_s1 + $0x68] sm:$0xff] }
  0x11   : > { %824 = vperm.xlu1 %3873, %v4081_v4   ;;  %816 = vperm.xlu0 %3872, %v4086_v5   ;;  %v388_v10 = vld [vmem:[%s4099_s20] sm:$0xff]   ;;  %v390_v14 = vld [vmem:[%s4099_s20 + $0x8] sm:$0xff]   ;;  %v392_v15 = vld [vmem:[%s4099_s20 + $0x10] sm:$0xff]   ;;  %5900 = vst [vmem:[#allocation4_spill] sm:$0xff] %v4163_v22  ;;  %s6120_s18 = smov (!%p383_p4, %s4058_s18), 1 }
  0x12   : > { %3610 = vmatprep.mubr.msk.bf16.mxu0 %vm483_vm0, %v388_v10  ;;  %v394_v20 = vld [vmem:[%s4099_s20 + $0x18] sm:$0xff]   ;;  %v396_v21 = vld [vmem:[%s4099_s20 + $0x20] sm:$0xff]   ;;  %v4181_v25 = vld [vmem:[%s5824_s1 + $0x70] sm:$0xff]  ;;  %s3340_s15 = sshll.u32 %s6120_s18, 3 }
  0x13   : > { %3605 = vmatpush3.bf16.msra.mxu0 %v3916_v6  ;;  %v4168_v23 = vld [vmem:[%s5824_s1 + $0x60] sm:$0xff]  ;;  %v4176_v24 = vld [vmem:[%s5824_s1 + $0x78] sm:$0xff]  ;;  %v398_v26 = vld [vmem:[%s4099_s20 + $0x28] sm:$0xff]   ;;  %s386_s24 = scalar_lea.vmem %s5834_s11, %s3340_s15 }
  0x14   : > { %3606 = vmatprep.subr.bf16.mxu0 %v3917_v7  ;;  %v400_v27 = vld [vmem:[%s4099_s20 + $0x30] sm:$0xff]   ;;  %v402_v29 = vld [vmem:[%s4099_s20 + $0x38] sm:$0xff]   ;;  %v3927_v33 = vld [vmem:[%s5828_s5 + $0x8] sm:$0xff]  }
  0x15   : > { %832 = vperm.xlu1 %3873, %v4104_v8   ;;  %828 = vperm.xlu0 %3872, %v4109_v9   ;;  %v3928_v34 = vld [vmem:[%s5828_s5 + $0x10] sm:$0xff]   ;;  %v4291_v50 = vld [vmem:[%s5828_s5] sm:$0xff]  }
  0x16   : > { %3626 = vmatprep.subr.bf16.mxu1 %v3927_v33  ;;  %v4296_v51 = vld [vmem:[%s5828_s5 + $0x20] sm:$0xff]  }
  0x17   : > { %3607 = vmatpush3.bf16.msra.mxu0 %v3917_v7  ;;  %3627 = vmatpush3.bf16.msra.mxu1 %v3927_v33 }
  0x18   : > { %3608 = vmatprep.subr.bf16.mxu0 %v3918_v11  ;;  %3644 = vmatprep.subr.bf16.mxu1 %v4291_v50 }
  0x19   : > { %840 = vperm.xlu1 %3873, %v4120_v12   ;;  %836 = vperm.xlu0 %3872, %v4125_v13  }
  0x1b   : > { %3609 = vmatpush3.bf16.msra.mxu0 %v3918_v11  ;;  %v5837_v11 = vmov 8  }
  0x1c   : > { %3662 = vmatprep.subr.bf16.mxu0 %v3928_v34 }
  0x1d   : > { %848 = vperm.xlu1 %3873, %v4133_v16   ;;  %844 = vperm.xlu0 %3872, %v4138_v17  }
  0x1e   : > { %3611 = vmatmul.mubr.msk.bf16.vlgmr.msra.gmra.mxu0 %vm483_vm0, %v390_v14 }
  0x1f   : > { %3614 = vmatprep.mubr.msk.bf16.mxu0 %vm483_vm0, %v392_v15  ;;  %3663 = vmatpush3.bf16.msra.mxu0 %v3928_v34  ;;  %v4391_v34 = vld [vmem:[%s5827_s4] ss:$0 sm:$0xff] }
  0x20   : > { %3698 = vmatprep.subr.bf16.mxu0 %v4296_v51 }
  0x21   : > { %856 = vperm.xlu1 %3873, %v4145_v18   ;;  %852 = vperm.xlu0 %3872, %v4150_v19  }
  0x25   : > { %864 = vperm.xlu1 %3873, %v4163_v22   ;;  %860 = vperm.xlu0 %3872, %v4168_v23  }
  0x26   : > { %3615 = vmatmul.mubr.msk.bf16.gmra.mxu0 %vm483_vm0, %v394_v20 }
  0x27   : > { %3618 = vmatprep.mubr.msk.bf16.mxu0 %vm483_vm0, %v396_v21 }
  0x29   : > { %872 = vperm.xlu1 %3873, %v4176_v24   ;;  %868 = vperm.xlu0 %3872, %v4181_v25  }
  0x2d   : > { %3875 = vset.pattern.permute.xlu1 %v3982_v28  ;;  %3874 = vset.pattern.permute.xlu0 %v3982_v28 }
  0x2e   : > { %679 = vperm.xlu1 %3875, %v4086_v5   ;;  %674 = vperm.xlu0 %3874, %v4070_v1  }
  0x2f   : > { %3619 = vmatmul.mubr.msk.bf16.gmra.mxu0 %vm483_vm0, %v398_v26 }
  0x30   : > { %3622 = vmatprep.mubr.msk.bf16.mxu0 %vm483_vm0, %v400_v27 }
  0x32   : > { %684 = vperm.xlu1 %3875, %v4065_v0   ;;  %689 = vperm.xlu0 %3874, %v4081_v4  }
  0x36   : > { %3876 = vset.pattern.permute.xlu1 %v3983_v30  ;;  %694 = vperm.xlu0 %3874, %v4109_v9  }
  0x37   : > { %3623 = vmatmul.mubr.msk.bf16.gmra.mxu0 %vm483_vm0, %v402_v29  ;;  %1191 = vperm.xlu1 %3876, %v4070_v1  }
  0x3a   : > { %709 = vperm.xlu0 %3874, %v4120_v12  }
  0x3b   : > { %1199 = vperm.xlu1 %3876, %v4065_v0  }
  0x3e   : > { %714 = vperm.xlu0 %3874, %v4138_v17  }
  0x3f   : > { %1203 = vperm.xlu1 %3876, %v4081_v4  }
  0x42   : > { %729 = vperm.xlu0 %3874, %v4145_v18  }
  0x43   : > { %3877 = vset.pattern.permute.xlu1 %v3982_v28 }
  0x44   : > { %699 = vperm.xlu1 %3877, %v4104_v8  }
  0x46   : > { %734 = vperm.xlu0 %3874, %v4168_v23  }
  0x48   : > { %704 = vperm.xlu1 %3877, %v4125_v13  }
  0x4a   : > { %749 = vperm.xlu0 %3874, %v4176_v24  }
  0x4c   : > { %3878 = vset.pattern.permute.xlu1 %v3983_v30 }
  0x4d   : > { %1207 = vperm.xlu1 %3878, %v4109_v9  }
  0x4e   : > { %3882 = vset.pattern.permute.xlu0 %v3983_v30 }
  0x4f   : > { %1195 = vperm.xlu0 %3882, %v4086_v5  }
  0x51   : > { %1215 = vperm.xlu1 %3878, %v4125_v13  }
  0x53   : > { %1211 = vperm.xlu0 %3882, %v4104_v8  }
  0x55   : > { %1219 = vperm.xlu1 %3878, %v4120_v12  }
  0x57   : > { %1227 = vperm.xlu0 %3882, %v4133_v16  }
  0x59   : > { %3879 = vset.pattern.permute.xlu1 %v3982_v28 }
  0x5a   : > { %719 = vperm.xlu1 %3879, %v4133_v16  }
  0x5b   : > { %1243 = vperm.xlu0 %3882, %v4163_v22  }
  0x5e   : > { %724 = vperm.xlu1 %3879, %v4150_v19  }
  0x5f   : > { %3884 = vset.pattern.permute.xlu0 %v3984_v31 }
  0x60   : > { %1458 = vperm.xlu0 %3884, %v4070_v1  }
  0x62   : > { %3880 = vset.pattern.permute.xlu1 %v3983_v30 }
  0x63   : > { %1223 = vperm.xlu1 %3880, %v4138_v17  }
  0x64   : > { %1470 = vperm.xlu0 %3884, %v4081_v4  }
  0x67   : > { %1231 = vperm.xlu1 %3880, %v4150_v19  }
  0x68   : > { %1474 = vperm.xlu0 %3884, %v4109_v9  }
  0x6b   : > { %1235 = vperm.xlu1 %3880, %v4145_v18  }
  0x6c   : > { %1486 = vperm.xlu0 %3884, %v4120_v12  }
  0x6f   : > { %3881 = vset.pattern.permute.xlu1 %v3982_v28  ;;  %v5835_v28 = vmov 7  }
  0x70   : > { %739 = vperm.xlu1 %3881, %v4163_v22   ;;  %1490 = vperm.xlu0 %3884, %v4138_v17  }
  0x74   : > { %744 = vperm.xlu1 %3881, %v4181_v25   ;;  %1502 = vperm.xlu0 %3884, %v4145_v18  }
  0x78   : > { %3883 = vset.pattern.permute.xlu1 %v3983_v30  ;;  %1506 = vperm.xlu0 %3884, %v4168_v23  }
  0x79   : > { %1239 = vperm.xlu1 %3883, %v4168_v23  }
  0x7c   : > { %1518 = vperm.xlu0 %3884, %v4176_v24  }
  0x7d   : > { %1247 = vperm.xlu1 %3883, %v4181_v25  }
  0x80   : > { %3892 = vset.pattern.permute.xlu0 %v3985_v32 }
  0x81   : > { %1251 = vperm.xlu1 %3883, %v4176_v24   ;;  %1696 = vperm.xlu0 %3892, %v4086_v5  }
  0x85   : > { %3885 = vset.pattern.permute.xlu1 %v3984_v31  ;;  %1712 = vperm.xlu0 %3892, %v4104_v8  }
  0x86   : > { %1462 = vperm.xlu1 %3885, %v4086_v5  }
  0x88   : > { %v4244_v35 = vpop.permute.xlu1 %820  ;;  %v4246_v36 = vpop.permute.xlu0 %812 }
  0x89   : > { %1728 = vperm.xlu0 %3892, %v4133_v16  }
  0x8a   : > { %1466 = vperm.xlu1 %3885, %v4065_v0  }
  0x8c   : > { %v4250_v37 = vpop.permute.xlu1 %824  ;;  %v4252_v38 = vpop.permute.xlu0 %816 }
  0x8d   : > { %1744 = vperm.xlu0 %3892, %v4163_v22  }
  0x8e   : > { %3886 = vset.pattern.permute.xlu1 %v3985_v32 }
  0x8f   : > { %1692 = vperm.xlu1 %3886, %v4070_v1  }
  0x90   : > { %v4257_v39 = vpop.permute.xlu1 %832  ;;  %v4259_v40 = vpop.permute.xlu0 %828 }
  0x91   : > { %3894 = vset.pattern.permute.xlu0 %v5841_v41 }
  0x92   : > { %1959 = vperm.xlu0 %3894, %v4070_v1  }
  0x93   : > { %1700 = vperm.xlu1 %3886, %v4065_v0  }
  0x94   : > { %v4264_v42 = vpop.permute.xlu1 %840  ;;  %v4266_v43 = vpop.permute.xlu0 %836 }
  0x96   : > { %1971 = vperm.xlu0 %3894, %v4081_v4  }
  0x97   : > { %1704 = vperm.xlu1 %3886, %v4081_v4  }
  0x98   : > { %v4270_v44 = vpop.permute.xlu1 %848  ;;  %v4272_v45 = vpop.permute.xlu0 %844 }
  0x9a   : > { %1975 = vperm.xlu0 %3894, %v4109_v9  }
  0x9b   : > { %3887 = vset.pattern.permute.xlu1 %v3984_v31 }
  0x9c   : > { %v4276_v46 = vpop.permute.xlu1 %856  ;;  %1478 = vperm.xlu1 %3887, %v4104_v8   ;;  %v4279_v47 = vpop.permute.xlu0 %852 }
  0x9d   : > { %5901 = vst [vmem:[#allocation5_spill] sm:$0xff] %v4276_v46 }
  0x9e   : > { %1987 = vperm.xlu0 %3894, %v4120_v12  }
  0xa0   : > { %v4282_v48 = vpop.permute.xlu1 %864  ;;  %1482 = vperm.xlu1 %3887, %v4125_v13   ;;  %v4285_v49 = vpop.permute.xlu0 %860 }
  0xa1   : > { %5902 = vst [vmem:[#allocation6_spill] sm:$0xff] %v4282_v48  ;;  %5903 = vst [vmem:[#allocation7_spill] sm:$0xff] %v4285_v49 }
  0xa2   : > { %1991 = vperm.xlu0 %3894, %v4138_v17  }
  0xa4   : > { %v4298_v52 = vpop.permute.xlu1 %872  ;;  %3888 = vset.pattern.permute.xlu1 %v3985_v32  ;;  %v4301_v53 = vpop.permute.xlu0 %868 }
  0xa5   : > { %5904 = vst [vmem:[#allocation8_spill] sm:$0xff] %v4298_v52  ;;  %5905 = vst [vmem:[#allocation9_spill] sm:$0xff] %v4301_v53  ;;  %1708 = vperm.xlu1 %3888, %v4109_v9  }
  0xa6   : > { %2003 = vperm.xlu0 %3894, %v4145_v18  }
  0xa9   : > { %v4307_v54 = vpop.permute.xlu1 %679  ;;  %1716 = vperm.xlu1 %3888, %v4125_v13   ;;  %v4310_v55 = vpop.permute.xlu0 %674 }
  0xaa   : > { %5906 = vst [vmem:[#allocation10_spill] sm:$0xff] %v4307_v54  ;;  %5907 = vst [vmem:[#allocation11_spill] sm:$0xff] %v4310_v55  ;;  %2007 = vperm.xlu0 %3894, %v4168_v23  }
  0xad   : > { %v4313_v56 = vpop.permute.xlu1 %684  ;;  %1720 = vperm.xlu1 %3888, %v4120_v12   ;;  %v4316_v57 = vpop.permute.xlu0 %689 }
  0xae   : > { %5908 = vst [vmem:[#allocation12_spill] sm:$0xff] %v4313_v56  ;;  %5909 = vst [vmem:[#allocation13_spill] sm:$0xff] %v4316_v57  ;;  %2019 = vperm.xlu0 %3894, %v4176_v24  }
  0xb1   : > { %3889 = vset.pattern.permute.xlu1 %v3984_v31  ;;  %v4320_v58 = vpop.permute.xlu0 %694 }
  0xb2   : > { %5910 = vst [vmem:[#allocation14_spill] sm:$0xff] %v4320_v58  ;;  %1494 = vperm.xlu1 %3889, %v4133_v16   ;;  %v4323_v59 = vpop.permute.xlu1 %1191  ;;  %3902 = vset.pattern.permute.xlu0 %v5839_v60 }
  0xb3   : > { %2197 = vperm.xlu0 %3902, %v4086_v5  }
  0xb5   : > { %v4327_v61 = vpop.permute.xlu0 %709 }
  0xb6   : > { %5911 = vst [vmem:[#allocation15_spill] sm:$0xff] %v4327_v61  ;;  %1498 = vperm.xlu1 %3889, %v4150_v19   ;;  %v4330_v62 = vpop.permute.xlu1 %1199 }
  0xb7   : > { %2213 = vperm.xlu0 %3902, %v4104_v8  }
  0xb9   : > { %v4333_v63 = vpop.permute.xlu0 %714 }
  0xba   : > { %5912 = vst [vmem:[#allocation16_spill] sm:$0xff] %v4333_v63  ;;  %3890 = vset.pattern.permute.xlu1 %v3985_v32  ;;  %v4336_v2 = vpop.permute.xlu1 %1203 }
  0xbb   : > { %1724 = vperm.xlu1 %3890, %v4138_v17   ;;  %2229 = vperm.xlu0 %3902, %v4133_v16  }
  0xbd   : > { %v4340_v3 = vpop.permute.xlu0 %729 }
  0xbe   : > { %5913 = vst [vmem:[#allocation17_spill] sm:$0xff] %v4340_v3  ;;  %v637_v3 = vlaneseq }
  0xbf   : > { %1732 = vperm.xlu1 %3890, %v4150_v19   ;;  %v4343_v6 = vpop.permute.xlu1 %699  ;;  %2245 = vperm.xlu0 %3902, %v4163_v22  }
  0xc0   : > { %5914 = vst [vmem:[#allocation18_spill] sm:$0xff] %v4343_v6  ;;  %v4412_v61 = vshrl.u32 %v637_v3, 7 }
  0xc1   : > { %v4346_v7 = vpop.permute.xlu0 %734 }
  0xc2   : > { %5915 = vst [vmem:[#allocation19_spill] sm:$0xff] %v4346_v7  ;;  %vm1440_vm1 = vcmp.lt.s32.totalorder %v4412_v61, 1  ;;  %vm794_vm2 = vcmp.lt.s32.totalorder %v4412_v61, 4  ;;  %vm1173_vm3 = vcmp.lt.s32.totalorder %v4412_v61, 3  ;;  %vm1941_vm4 = vcmp.lt.s32.totalorder %v4412_v61, 7 }
  0xc3   : > { %1736 = vperm.xlu1 %3890, %v4145_v18   ;;  %v4349_v10 = vpop.permute.xlu1 %704  ;;  %3906 = vset.pattern.permute.xlu0 %v5837_v11  ;;  %vm639_vm6 = vcmp.lt.s32.totalorder %v4412_v61, 5 }
  0xc4   : > { %5916 = vst [vmem:[#allocation20_spill] sm:$0xff] %v4349_v10  ;;  %2665 = vperm.xlu0 %3906, %v4086_v5   ;;  %v5925_v10 = vmov 6  }
  0xc5   : > { %v4353_v14 = vpop.permute.xlu0 %749 }
  0xc6   : > { %5917 = vst [vmem:[#allocation21_spill] sm:$0xff] %v4353_v14 }
  0xc7   : > { %3891 = vset.pattern.permute.xlu1 %v3984_v31 }
  0xc8   : > { %1510 = vperm.xlu1 %3891, %v4163_v22   ;;  %v4357_v15 = vpop.permute.xlu1 %1207  ;;  %2681 = vperm.xlu0 %3906, %v4104_v8  }
  0xca   : > { %v4360_v20 = vpop.permute.xlu0 %1195 }
  0xcc   : > { %1514 = vperm.xlu1 %3891, %v4181_v25   ;;  %v4363_v21 = vpop.permute.xlu1 %1215  ;;  %2697 = vperm.xlu0 %3906, %v4133_v16  }
  0xce   : > { %v4366_v26 = vpop.permute.xlu0 %1211 }
  0xd0   : > { %3893 = vset.pattern.permute.xlu1 %v3985_v32  ;;  %v4369_v27 = vpop.permute.xlu1 %1219  ;;  %3911 = vset.pattern.permute.xlu0 %v5835_v28 }
  0xd1   : > { %1740 = vperm.xlu1 %3893, %v4168_v23   ;;  %2427 = vperm.xlu0 %3911, %v4070_v1  }
  0xd2   : > { %v4374_v29 = vpop.permute.xlu0 %1227 }
  0xd5   : > { %1748 = vperm.xlu1 %3893, %v4181_v25   ;;  %v4377_v30 = vpop.permute.xlu1 %719  ;;  %2439 = vperm.xlu0 %3911, %v4081_v4  }
  0xd6   : > { %5918 = vst [vmem:[#allocation22_spill] sm:$0xff] %v4377_v30  ;;  %v4380_v31 = vpop.permute.xlu0 %1243 }
  0xd7   : > { %5919 = vst [vmem:[#allocation23_spill] sm:$0xff] %v4380_v31 }
  0xd9   : > { %1752 = vperm.xlu1 %3893, %v4176_v24   ;;  %v4383_v32 = vpop.permute.xlu1 %724  ;;  %2443 = vperm.xlu0 %3911, %v4109_v9  }
  0xda   : > { %5920 = vst [vmem:[#allocation24_spill] sm:$0xff] %v4383_v32 }
  0xdb   : > { %v4386_v33 = vpop.permute.xlu0 %1458 }
  0xdc   : > { %5921 = vst [vmem:[#allocation25_spill] sm:$0xff] %v4386_v33 }
  0xdd   : > { %3895 = vset.pattern.permute.xlu1 %v5841_v41  ;;  %2455 = vperm.xlu0 %3911, %v4120_v12  }
  0xde   : > { %1963 = vperm.xlu1 %3895, %v4086_v5   ;;  %v4396_v25 = vpop.permute.xlu1 %1223  ;;  %v3612_v28 = vpop.f32.mrf.mxu0 }
  0xdf   : > { %v551_v11 = vadd.f32 %v3612_v28, %v4391_v34  ;;  %v1471_v60 = vpop.permute.xlu0 %1470 }
  0xe0   : > { %v542_v14 = vpop.f32.mrf.mxu0 }
  0xe1   : > { %2459 = vperm.xlu0 %3911, %v4138_v17   ;;  %v4403_v41 = vmax.f32 %v551_v11, 0.0  ;;  %v543_v55 = vadd.f32 %v4391_v34, %v542_v14 }
  0xe2   : > { %1967 = vperm.xlu1 %3895, %v4065_v0   ;;  %v4401_v33 = vpop.permute.xlu1 %1231  ;;  %v3613_v7 = vpop.f32.mrf.mxu0 }
  0xe3   : > { %5922 = vst [vmem:[#allocation26_spill] sm:$0xff] %v4401_v33  ;;  %5923 = vst [vmem:[#allocation27_spill] sm:$0xff] %v4403_v41  ;;  %v554_v32 = vadd.f32 %v3613_v7, %v4391_v34  ;;  %v4406_v5 = vpop.permute.xlu0 %1474  ;;  %v5845_v28 = vrot.slane %v4403_v41, 7  ;;  %v5943_v17 = vrot.slane %v4403_v41, 7 }
  0xe4   : > { %5924 = vst [vmem:[#allocation28_spill] sm:$0xff] %v4406_v5  ;;  %v545_v30 = vpop.f32.mrf.mxu0 }
  0xe5   : > { %v4408_v63 = vmax.f32 %v554_v32, 0.0  ;;  %2471 = vperm.xlu0 %3911, %v4145_v18   ;;  %v546_v54 = vadd.f32 %v4391_v34, %v545_v30  ;;  %v4447_v30 = vmax.f32 %v543_v55, 0.0 }
  0xe6   : > { %3896 = vset.pattern.permute.xlu1 %v5925_v10  ;;  %v4415_v6 = vpop.permute.xlu1 %1235  ;;  %v3616_v58 = vpop.f32.mrf.mxu0 }
  0xe7   : > { %5926 = vst [vmem:[#allocation29_spill] sm:$0xff] %v4415_v6  ;;  %v5844_v11 = vrot.slane %v4408_v63, 7  ;;  %2193 = vperm.xlu1 %3896, %v4070_v1   ;;  %v1487_v7 = vpop.permute.xlu0 %1486  ;;  %v567_v32 = vadd.f32 %v3616_v58, %v4391_v34 }
  0xe8   : > { %v558_v57 = vpop.f32.mrf.mxu0 }
  0xe9   : > { %v1453_v3 = vsel %vm1440_vm1, %v5845_v28, %v5844_v11  ;;  %2475 = vperm.xlu0 %3911, %v4168_v23   ;;  %v4432_v18 = vmax.f32 %v567_v32, 0.0  ;;  %v780_v23 = vrot.slane %v4403_v41, 4 }
  0xea   : > { %v4428_v56 = vmul.f32 %v1471_v60, %v1453_v3  ;;  %v3617_v1 = vpop.f32.mrf.mxu0  ;;  %v4444_v60 = vmax.f32 %v546_v54, 0.0 }
  0xeb   : > { %v570_v58 = vadd.f32 %v3617_v1, %v4391_v34  ;;  %2201 = vperm.xlu1 %3896, %v4065_v0   ;;  %v4436_v52 = vpop.permute.xlu1 %739  ;;  %v4438_v53 = vpop.permute.xlu0 %1490  ;;  %v559_v1 = vadd.f32 %v4391_v34, %v558_v57  ;;  %v781_v57 = vrot.slane %v4408_v63, 4 }
  0xec   : > { %5927 = vst [vmem:[#allocation30_spill] sm:$0xff] %v4436_v52  ;;  %5928 = vst [vmem:[#allocation31_spill] sm:$0xff] %v4438_v53  ;;  %v561_v11 = vpop.f32.mrf.mxu0  ;;  %v1158_v53 = vrot.slane %v4444_v60, 5  ;;  %v5944_v46 = vrot.slane %v4444_v60, 7 }
  0xed   : > { %v4440_v28 = vmax.f32 %v570_v58, 0.0  ;;  %2487 = vperm.xlu0 %3911, %v4176_v24   ;;  %v562_v14 = vadd.f32 %v4391_v34, %v561_v11  ;;  %v5931_v24 = vrot.slane %v4432_v18, 7  ;;  %v5932_v11 = vmov 8  }
  0xee   : > { %v4478_v5 = vmax.f32 %v559_v1, 0.0  ;;  %v5939_v1 = vrot.slane %v4447_v30, 5 }
  0xef   : > { %v5846_v32 = vrot.slane %v4440_v28, 7  ;;  %v3620_v0 = vpop.f32.mrf.mxu0  ;;  %2205 = vperm.xlu1 %3896, %v4081_v4   ;;  %v4451_v3 = vpop.permute.xlu1 %744  ;;  %v1159_v4 = vrot.slane %v4403_v41, 5 }
  0xf0   : > { %5929 = vst [vmem:[#allocation32_spill] sm:$0xff] %v4451_v3  ;;  %v4454_v58 = vpop.permute.xlu0 %1502  ;;  %v1160_v3 = vrot.slane %v4408_v63, 5 }
  0xf1   : > { %5930 = vst [vmem:[#allocation33_spill] sm:$0xff] %v4454_v58  ;;  %v1449_v54 = vsel %vm1440_vm1, %v5931_v24, %v5846_v32  ;;  %v574_v55 = vpop.f32.mrf.mxu0  ;;  %3914 = vset.pattern.permute.xlu0 %v5932_v11  ;;  %v4469_v58 = vmax.f32 %v562_v14, 0.0  ;;  %v5934_v32 = vmov 5   ;;  %v779_v11 = vrot.slane %v4444_v60, 4 }
  0xf2   : > { %v4467_v52 = vmul.f32 %v1487_v7, %v1449_v54  ;;  %2713 = vperm.xlu0 %3914, %v4163_v22   ;;  %v782_v22 = vrot.slane %v4478_v5, 4 }
  0xf3   : > { %v3621_v24 = vpop.f32.mrf.mxu0  ;;  %3897 = vset.pattern.permute.xlu1 %v5934_v32  ;;  %v783_v6 = vrot.slane %v4469_v58, 4 }
  0xf4   : > { %5933 = vst [vmem:[#allocation34_spill] sm:$0xff] %v4467_v52  ;;  %1979 = vperm.xlu1 %3897, %v4104_v8   ;;  %v4481_v7 = vpop.permute.xlu1 %1239  ;;  %v4483_v14 = vpop.permute.xlu0 %1506  ;;  %v5937_v52 = vrot.slane %v4447_v30, 4  ;;  %v4497_v8 = vsel %vm1173_vm3, %v5939_v1, %v1158_v53  ;;  %v4517_v1 = vsel %vm1440_vm1, %v5944_v46, %v5943_v17  ;;  %v4537_v46 = vsel %vm794_vm2, %v779_v11, %v780_v23 }
  0xf5   : > { %5935 = vst [vmem:[#allocation35_spill] sm:$0xff] %v4481_v7  ;;  %5936 = vst [vmem:[#allocation36_spill] sm:$0xff] %v4483_v14  ;;  %v577_v54 = vpop.f32.mrf.mxu0  ;;  %v4501_v14 = vsel %vm794_vm2, %v780_v23, %v781_v57  ;;  %v4505_v7 = vsel %vm1173_vm3, %v1158_v53, %v1159_v4  ;;  %v4533_v17 = vmul.f32 %v4360_v20, %v4497_v8  ;;  %v1161_v20 = vrot.slane %v4478_v5, 5 }
  0xf6   : > { %v4491_v31 = vsel %vm794_vm2, %v5937_v52, %v779_v11  ;;  %5940 = vst [vmem:[#allocation38_spill] sm:$0xff] %v4497_v8  ;;  %5941 = vst [vmem:[#allocation39_spill] sm:$0xff] %v4501_v14  ;;  %v4541_v53 = vmul.f32 %v4250_v37, %v4501_v14  ;;  %v578_v23 = vadd.f32 %v4391_v34, %v577_v54  ;;  %v5951_v54 = vrot.slane %v4444_v60, 1 }
  0xf7   : > { %5938 = vst [vmem:[#allocation37_spill] sm:$0xff] %v4491_v31  ;;  %5942 = vst [vmem:[#allocation40_spill] sm:$0xff] %v4505_v7  ;;  %v4509_v52 = vpop.f32.mrf.mxu0  ;;  %v4529_v41 = vmul.f32 %v4252_v38, %v4491_v31  ;;  %v4549_v38 = vmul.f32 %v4330_v62, %v4505_v7  ;;  %v4556_v11 = vsel %vm794_vm2, %v782_v22, %v783_v6  ;;  %v5952_v31 = vrot.slane %v4447_v30, 1 }
  0xf8   : > { %1983 = vperm.xlu1 %3897, %v4125_v13   ;;  %v4523_v49 = vpop.permute.xlu1 %1247  ;;  %v4525_v33 = vpop.permute.xlu0 %1518  ;;  %5947 = vst [vmem:[#allocation43_spill] sm:$0xff] %v4537_v46  ;;  %5949 = vst [vmem:[#allocation45_spill] sm:$0xff] %v4556_v11  ;;  %v4560_v37 = vsel %vm794_vm2, %v781_v57, %v782_v22  ;;  %v583_v14 = vadd.f32 %v3620_v0, %v4391_v34  ;;  %v575_v62 = vadd.f32 %v4391_v34, %v574_v55 }
  0xf9   : > { %5945 = vst [vmem:[#allocation41_spill] sm:$0xff] %v4523_v49  ;;  %5946 = vst [vmem:[#allocation42_spill] sm:$0xff] %v4525_v33  ;;  %v590_v48 = vpop.f32.mrf.mxu0  ;;  %v4545_v33 = vsel %vm1173_vm3, %v1159_v4, %v1160_v3  ;;  %v1162_v4 = vrot.slane %v4469_v58, 5  ;;  %v4567_v8 = vmul.f32 %v4244_v35, %v4537_v46  ;;  %v4575_v49 = vsel %vm1941_vm4, %v5952_v31, %v5951_v54 }
  0xfa   : > { %5948 = vst [vmem:[#allocation44_spill] sm:$0xff] %v4545_v33  ;;  %5950 = vst [vmem:[#allocation46_spill] sm:$0xff] %v4560_v37  ;;  %v586_v22 = vadd.f32 %v3621_v24, %v4391_v34  ;;  %v4586_v35 = vmul.f32 %v4336_v2, %v4545_v33  ;;  %v784_v46 = vrot.slane %v4432_v18, 4  ;;  %v4592_v31 = vmul.f32 %v4259_v40, %v4560_v37 }
  0xfb   : > { %v3625_v7 = vpop.f32.mrf.mxu0  ;;  %5953 = vst [vmem:[#allocation47_spill] sm:$0xff] %v4575_v49  ;;  %v4596_v24 = vmul.f32 %v4257_v39, %v4556_v11  ;;  %v785_v2 = vrot.slane %v4440_v28, 4  ;;  %v4603_v54 = vmax.f32 %v578_v23, 0.0  ;;  %v4615_v39 = vmax.f32 %v583_v14, 0.0 }
  0xfc   : > { %v602_v57 = vadd.f32 %v3625_v7, %v4391_v34  ;;  %3898 = vset.pattern.permute.xlu1 %v5925_v10  ;;  %v4580_v0 = vpop.permute.xlu1 %1251  ;;  %v4582_v55 = vpop.permute.xlu0 %1696  ;;  %v4600_v7 = vsel %vm1173_vm3, %v1160_v3, %v1161_v20  ;;  %v4613_v40 = vsel %vm794_vm2, %v783_v6, %v784_v46  ;;  %v4617_v11 = vmax.f32 %v575_v62, 0.0 }
  0xfd   : > { %2209 = vperm.xlu1 %3898, %v4109_v9   ;;  %5954 = vst [vmem:[#allocation48_spill] sm:$0xff] %v4600_v7  ;;  %v4609_v9 = vsel %vm1173_vm3, %v1161_v20, %v1162_v4  ;;  %5956 = vst [vmem:[#allocation50_spill] sm:$0xff] %v4613_v40  ;;  %v892_v3 = vpack.c.bf16 %v4541_v53, %v4567_v8  ;;  %v1271_v23 = vpack.c.bf16 %v4586_v35, %v4549_v38  ;;  %v593_v14 = vpop.f32.mrf.mxu0 }
  0xfe   : > { %v4605_v33 = vmax.f32 %v602_v57, 0.0  ;;  %5955 = vst [vmem:[#allocation49_spill] sm:$0xff] %v4609_v9  ;;  %v4623_v57 = vmax.f32 %v586_v22, 0.0  ;;  %v1258_v6 = vmul.f32 %v4357_v15, %v4600_v7  ;;  %v893_v8 = vpack.c.bf16 %v4596_v24, %v4592_v31 }
  0xff   : > { %v1259_v53 = vmul.f32 %v4366_v26, %v4609_v9  ;;  %v4640_v38 = vsel %vm794_vm2, %v784_v46, %v785_v2  ;;  %v4644_v22 = vmul.f32 %v4266_v43, %v4613_v40  ;;  %v1163_v15 = vrot.slane %v4432_v18, 5 }
 0x100   : > { %v4626_v20 = vpop.permute.xlu0 %1712  ;;  %v5863_v49 = vrot.slane %v4605_v33, 4  ;;  %5959 = vst [vmem:[#allocation53_spill] sm:$0xff] %v4640_v38  ;;  %v1929_v37 = vrot.slane %v4478_v5, 1  ;;  %v599_v31 = vadd.f32 %v4509_v52, %v4391_v34  ;;  %v5960_v26 = vrot.slane %v4447_v30, 4 }
 0x101   : > { %5957 = vst [vmem:[#allocation51_spill] sm:$0xff] %v4626_v20  ;;  %2217 = vperm.xlu1 %3898, %v4125_v13   ;;  %v4632_v62 = vpop.permute.xlu1 %1462  ;;  %v786_v13 = vrot.slane %v4617_v11, 4  ;;  %v1164_v43 = vrot.slane %v4440_v28, 5  ;;  %v1428_v24 = vrot.slane %v4478_v5, 7  ;;  %v594_v9 = vadd.f32 %v4391_v34, %v593_v14 }
 0x102   : > { %5958 = vst [vmem:[#allocation52_spill] sm:$0xff] %v4632_v62  ;;  %v4658_v46 = vsel %vm794_vm2, %v5863_v49, %v5960_v26  ;;  %v5962_v40 = vrot.slane %v4447_v30, 5  ;;  %v5963_v52 = vrot.slane %v4605_v33, 5  ;;  %v4677_v26 = vsel %vm1173_vm3, %v1162_v4, %v1163_v15 }
 0x103   : > { %5961 = vst [vmem:[#allocation54_spill] sm:$0xff] %v4658_v46  ;;  %v875_v35 = vmul.f32 %v4246_v36, %v4658_v46  ;;  %5965 = vst [vmem:[#allocation56_spill] sm:$0xff] %v4677_v26  ;;  %v591_v49 = vadd.f32 %v4391_v34, %v590_v48  ;;  %v1165_v46 = vrot.slane %v4617_v11, 5  ;;  %v1166_v20 = vrot.slane %v4603_v54, 5 }
 0x104   : > { %v4671_v7 = vsel %vm1173_vm3, %v5963_v52, %v5962_v40  ;;  %v4673_v62 = vpop.permute.xlu0 %1728  ;;  %v5966_v4 = vrot.slane %v4603_v54, 4 }
 0x105   : > { %5964 = vst [vmem:[#allocation55_spill] sm:$0xff] %v4671_v7  ;;  %2221 = vperm.xlu1 %3898, %v4120_v12   ;;  %v1467_v14 = vpop.permute.xlu1 %1466  ;;  %v1254_v36 = vmul.f32 %v4323_v59, %v4671_v7  ;;  %v891_v52 = vpack.c.bf16 %v4529_v41, %v875_v35  ;;  %v5968_v12 = vrot.slane %v4408_v63, 1  ;;  %v1429_v41 = vrot.slane %v4469_v58, 7 }
 0x106   : > { %v4686_v40 = vmul.f32 %v1467_v14, %v4517_v1  ;;  %v4693_v48 = vsel %vm794_vm2, %v786_v13, %v5966_v4  ;;  %v4704_v1 = vsel %vm794_vm2, %v785_v2, %v786_v13  ;;  %v5970_v35 = vrot.slane %v4408_v63, 7 }
 0x107   : > { %5967 = vst [vmem:[#allocation57_spill] sm:$0xff] %v4693_v48  ;;  %v4699_v59 = vsel %vm1941_vm4, %v5968_v12, %v1929_v37  ;;  %v1270_v34 = vpack.c.bf16 %v4533_v17, %v1254_v36  ;;  %5969 = vst [vmem:[#allocation58_spill] sm:$0xff] %v4704_v1  ;;  %v4713_v4 = vmax.f32 %v594_v9, 0.0  ;;  %3628 = vmatprep.mubr.msk.bf16.mxu1 %vm908_vm5, %v891_v52  ;;  %v4724_v13 = vmax.f32 %v591_v49, 0.0 }
 0x108   : > { %v4711_v14 = vsel %vm1440_vm1, %v5970_v35, %v1428_v24  ;;  %v1272_v17 = vpack.c.bf16 %v1259_v53, %v1258_v6  ;;  %v4718_v36 = vpop.permute.xlu0 %1744  ;;  %v4722_v2 = vsel %vm1173_vm3, %v1163_v15, %v1164_v43  ;;  %3629 = vmatmul.mubr.msk.bf16.vlgmr.msra.gmra.mxu1 %vm908_vm5, %v892_v3  ;;  %v882_v9 = vmul.f32 %v4264_v42, %v4640_v38 }
 0x109   : > { %5971 = vst [vmem:[#allocation59_spill] sm:$0xff] %v4722_v2  ;;  %3664 = vmatprep.mubr.msk.bf16.mxu0 %vm908_vm5, %v1270_v34  ;;  %v1260_v35 = vmul.f32 %v4363_v21, %v4677_v26  ;;  %v4734_v6 = vsel %vm1440_vm1, %v1428_v24, %v1429_v41  ;;  %3632 = vmatprep.mubr.msk.bf16.mxu1 %vm908_vm5, %v893_v8  ;;  %v5865_v21 = vrot.slane %v4469_v58, 1  ;;  %v4757_v8 = vld [vmem:[%s5828_s5 + $0x30] sm:$0xff]   ;;  %v790_v24 = vrot.slane %v4724_v13, 4 }
 0x10a   : > { %3665 = vmatmul.mubr.msk.bf16.vlgmr.msra.gmra.mxu0 %vm908_vm5, %v1271_v23  ;;  %v4738_v49 = vpop.permute.xlu1 %1692  ;;  %v883_v53 = vmul.f32 %v4272_v45, %v4704_v1  ;;  %v884_v3 = vmul.f32 %v4270_v44, %v4693_v48  ;;  %v4746_v42 = vsel %vm1173_vm3, %v1165_v46, %v1166_v20  ;;  %v4752_v23 = vld [vmem:[%s5828_s5 + $0x18] sm:$0xff]   ;;  %v4759_v45 = vmax.f32 %v599_v31, 0.0  ;;  %3899 = vset.pattern.permute.xlu1 %v5934_v32 }
 0x10b   : > { %5972 = vst [vmem:[#allocation60_spill] sm:$0xff] %v4746_v42  ;;  %3668 = vmatprep.mubr.msk.bf16.mxu0 %vm908_vm5, %v1272_v17  ;;  %v1261_v44 = vmul.f32 %v4369_v27, %v4722_v2  ;;  %v4767_v15 = vsel %vm1173_vm3, %v1164_v43, %v1165_v46  ;;  %1995 = vperm.xlu1 %3899, %v4133_v16   ;;  %v788_v31 = vrot.slane %v4615_v39, 4  ;;  %v5866_v27 = vrot.slane %v4713_v4, 4 }
 0x10c   : > { %5973 = vst [vmem:[#allocation61_spill] sm:$0xff] %v4767_v15  ;;  %v894_v52 = vpack.c.bf16 %v882_v9, %v4644_v22  ;;  %v4777_v34 = vsel %vm1941_vm4, %v1929_v37, %v5865_v21  ;;  %3645 = vmatpush3.bf16.msra.mxu1 %v4291_v50  ;;  %v1263_v16 = vmul.f32 %v4374_v29, %v4746_v42  ;;  %v789_v22 = vrot.slane %v4623_v57, 4 }
 0x10d   : > { %v1273_v46 = vpack.c.bf16 %v1261_v44, %v1260_v35  ;;  %v4781_v43 = vpop.permute.xlu0 %1959  ;;  %v1167_v17 = vrot.slane %v4615_v39, 5  ;;  %3699 = vmatpush3.bf16.msra.mxu0 %v4296_v51  ;;  %v895_v37 = vpack.c.bf16 %v884_v3, %v883_v53  ;;  %v1262_v12 = vmul.f32 %v4396_v25, %v4767_v15  ;;  %3680 = vmatprep.subr.bf16.mxu1 %v4752_v23 }
 0x10e   : > { %v4788_v9 = vpop.permute.xlu1 %1700  ;;  %v5974_v50 = vrot.slane %v4603_v54, 4  ;;  %v1168_v29 = vrot.slane %v4623_v57, 5  ;;  %3734 = vmatprep.subr.bf16.mxu0 %v4757_v8  ;;  %v4809_v25 = vsel %vm794_vm2, %v790_v24, %v5866_v27  ;;  %v4813_v53 = vsel %vm794_vm2, %v789_v22, %v790_v24 }
 0x10f   : > { %v4803_v51 = vsel %vm1173_vm3, %v1166_v20, %v1167_v17  ;;  %5977 = vst [vmem:[#allocation64_spill] sm:$0xff] %v4809_v25  ;;  %5978 = vst [vmem:[#allocation65_spill] sm:$0xff] %v4813_v53  ;;  %v1170_v3 = vrot.slane %v4713_v4, 5  ;;  %1999 = vperm.xlu1 %3899, %v4150_v19   ;;  %v1169_v44 = vrot.slane %v4724_v13, 5  ;;  %v5873_v21 = vrot.slane %v4440_v28, 1 }
 0x110   : > { %v4796_v35 = vsel %vm794_vm2, %v5974_v50, %v788_v31  ;;  %5976 = vst [vmem:[#allocation63_spill] sm:$0xff] %v4803_v51  ;;  %v5979_v50 = vrot.slane %v4432_v18, 7  ;;  %v1933_v27 = vrot.slane %v4617_v11, 1  ;;  %v1171_v7 = vrot.slane %v4759_v45, 5  ;;  %3633 = vmatmul.mubr.msk.bf16.gmra.mxu1 %vm908_vm5, %v894_v52 }
 0x111   : > { %5975 = vst [vmem:[#allocation62_spill] sm:$0xff] %v4796_v35  ;;  %v1274_v24 = vpack.c.bf16 %v1263_v16, %v1262_v12  ;;  %v4828_v42 = vpop.permute.xlu0 %1971  ;;  %v4832_v48 = vsel %vm794_vm2, %v788_v31, %v789_v22  ;;  %v885_v15 = vmul.f32 %v4279_v47, %v4796_v35  ;;  %3636 = vmatprep.mubr.msk.bf16.mxu1 %vm908_vm5, %v895_v37  ;;  %v5985_v22 = vld [vmem:[#allocation26_spill] sm:$0xff]  ;;  %v5986_v37 = vld [vmem:[#allocation7_spill] sm:$0xff]  ;;  %v621_v16 = vrot.slane %v4447_v30, 3 }
 0x112   : > { %v4822_v20 = vsel %vm1440_vm1, %v1429_v41, %v5979_v50  ;;  %5980 = vst [vmem:[#allocation66_spill] sm:$0xff] %v4832_v48  ;;  %3669 = vmatmul.mubr.msk.bf16.gmra.mxu0 %vm908_vm5, %v1273_v46  ;;  %v4839_v41 = vpop.permute.xlu1 %1704  ;;  %v4843_v12 = vsel %vm1173_vm3, %v1167_v17, %v1168_v29  ;;  %v4847_v52 = vsel %vm1173_vm3, %v1169_v44, %v1170_v3  ;;  %v5984_v46 = vld [vmem:[#allocation27_spill] sm:$0xff]  ;;  %v5987_v35 = vld [vmem:[#allocation6_spill] sm:$0xff]  ;;  %v5884_v38 = vrot.slane %v4605_v33, 3 }
 0x113   : > { %5981 = vst [vmem:[#allocation67_spill] sm:$0xff] %v4843_v12  ;;  %5982 = vst [vmem:[#allocation68_spill] sm:$0xff] %v4847_v52  ;;  %v4853_v47 = vsel %vm1941_vm4, %v5873_v21, %v1933_v27  ;;  %3672 = vmatprep.mubr.msk.bf16.mxu0 %vm908_vm5, %v1274_v24  ;;  %v1264_v17 = vmul.f32 %v5985_v22, %v4803_v51  ;;  %v887_v50 = vmul.f32 %v5986_v37, %v4813_v53  ;;  %v5988_v21 = vld [vmem:[#allocation5_spill] sm:$0xff]  ;;  %v5990_v37 = vld [vmem:[#allocation2_spill] sm:$0xff] }
 0x114   : > { %5983 = vst [vmem:[#allocation69_spill] sm:$0xff] %v4853_v47  ;;  %v888_v2 = vmul.f32 %v5987_v35, %v4809_v25  ;;  %3900 = vset.pattern.permute.xlu1 %v5925_v10  ;;  %v886_v26 = vmul.f32 %v5988_v21, %v4832_v48  ;;  %v4869_v31 = vsel %vm1173_vm3, %v1168_v29, %v1169_v44  ;;  %v792_v24 = vrot.slane %v4759_v45, 4  ;;  %v5991_v35 = vld [vmem:[#allocation29_spill] sm:$0xff]  ;;  %v5993_v21 = vld [vmem:[#allocation23_spill] sm:$0xff] }
 0x115   : > { %5989 = vst [vmem:[#allocation27_spill] sm:$0xff] %v4869_v31  ;;  %v4875_v22 = vmul.f32 %v4582_v55, %v4444_v60  ;;  %2225 = vperm.xlu1 %3900, %v5990_v37   ;;  %v1265_v25 = vmul.f32 %v5991_v35, %v4843_v12  ;;  %v4880_v51 = vpop.permute.xlu0 %1975  ;;  %v1267_v48 = vmul.f32 %v5993_v21, %v4847_v52  ;;  %v5994_v29 = vrot.slane %v4603_v54, 1  ;;  %v5998_v37 = vld [vmem:[#allocation28_spill] sm:$0xff]  ;;  %v5999_v47 = vld [vmem:[#allocation35_spill] sm:$0xff] }
 0x116   : > { %5992 = vst [vmem:[#allocation26_spill] sm:$0xff] %v4880_v51  ;;  %v5996_v53 = vrot.slane %v4605_v33, 5  ;;  %v4898_v35 = vmul.f32 %v5998_v37, %v4711_v14  ;;  %v896_v12 = vpack.c.bf16 %v886_v26, %v885_v15  ;;  %v897_v1 = vpack.c.bf16 %v888_v2, %v887_v50 }
 0x117   : > { %v4888_v44 = vsel %vm1941_vm4, %v1933_v27, %v5994_v29  ;;  %v1479_v21 = vpop.permute.xlu1 %1478  ;;  %v1275_v52 = vpack.c.bf16 %v1265_v25, %v1264_v17  ;;  %v1266_v27 = vmul.f32 %v5999_v47, %v4869_v31  ;;  %v6000_v29 = vrot.slane %v4713_v4, 4 }
 0x118   : > { %5995 = vst [vmem:[#allocation7_spill] sm:$0xff] %v4888_v44  ;;  %v4894_v55 = vsel %vm1173_vm3, %v1171_v7, %v5996_v53  ;;  %v4910_v53 = vmul.f32 %v1479_v21, %v4734_v6  ;;  %v6002_v14 = vrot.slane %v4605_v33, 4  ;;  %v4920_v2 = vsel %vm1173_vm3, %v1170_v3, %v1171_v7  ;;  %3637 = vmatmul.mubr.msk.bf16.gmra.mxu1 %vm908_vm5, %v896_v12  ;;  %v6008_v12 = vld [vmem:[#allocation8_spill] sm:$0xff]  ;;  %v6009_v21 = vld [vmem:[#allocation41_spill] sm:$0xff]  ;;  %v6012_v7 = vld [vmem:[#allocation11_spill] sm:$0xff] }
 0x119   : > { %5997 = vst [vmem:[#allocation6_spill] sm:$0xff] %v4894_v55  ;;  %v4907_v44 = vsel %vm794_vm2, %v6000_v29, %v792_v24  ;;  %6004 = vst [vmem:[#allocation29_spill] sm:$0xff] %v4920_v2  ;;  %v622_v15 = vrot.slane %v4444_v60, 3  ;;  %v1755_v25 = vmul.f32 %v4738_v49, %v4447_v30  ;;  %2233 = vperm.xlu1 %3900, %v4150_v19   ;;  %v4927_v47 = vpop.permute.xlu0 %1987  ;;  %v5883_v17 = vrot.slane %v4724_v13, 1  ;;  %v6006_v19 = vld [vmem:[#allocation9_spill] sm:$0xff] }
 0x11a   : > { %6001 = vst [vmem:[#allocation5_spill] sm:$0xff] %v4907_v44  ;;  %v4916_v26 = vsel %vm794_vm2, %v792_v24, %v6002_v14  ;;  %v1276_v6 = vpack.c.bf16 %v1267_v48, %v1266_v27  ;;  %6005 = vst [vmem:[#allocation23_spill] sm:$0xff] %v4927_v47  ;;  %v5885_v50 = vrot.slane %v4713_v4, 1  ;;  %v624_v24 = vrot.slane %v4408_v63, 3  ;;  %3673 = vmatmul.mubr.msk.bf16.gmra.mxu0 %vm908_vm5, %v1275_v52 }
 0x11b   : > { %6003 = vst [vmem:[#allocation2_spill] sm:$0xff] %v4916_v26  ;;  %3640 = vmatprep.mubr.msk.bf16.mxu1 %vm908_vm5, %v897_v1  ;;  %v889_v49 = vmul.f32 %v6006_v19, %v4907_v44  ;;  %v4942_v48 = vsel %vm639_vm6, %v5884_v38, %v621_v16  ;;  %v1483_v3 = vpop.permute.xlu1 %1482  ;;  %v890_v37 = vmul.f32 %v6008_v12, %v4916_v26  ;;  %v5891_v27 = vrot.slane %v4605_v33, 1  ;;  %v6010_v12 = vld [vmem:[#allocation3_spill] sm:$0xff]  ;;  %v6016_v44 = vld [vmem:[#allocation10_spill] sm:$0xff] }
 0x11c   : > { %6007 = vst [vmem:[#allocation28_spill] sm:$0xff] %v4942_v48  ;;  %3676 = vmatprep.mubr.msk.bf16.mxu0 %vm908_vm5, %v1276_v6  ;;  %v1268_v52 = vmul.f32 %v6009_v21, %v4920_v2  ;;  %v1944_v1 = vsel %vm1941_vm4, %v5883_v17, %v5885_v50  ;;  %v4957_v29 = vmul.f32 %v1483_v3, %v4822_v20  ;;  %v1432_v6 = vrot.slane %v4617_v11, 7 }
 0x11d   : > { %v4961_v14 = vsel %vm639_vm6, %v621_v16, %v622_v15  ;;  %2237 = vperm.xlu1 %3900, %v6010_v12   ;;  %v4966_v21 = vpop.permute.xlu0 %1991  ;;  %v752_v17 = vmul.f32 %v6012_v7, %v4942_v48  ;;  %v625_v38 = vrot.slane %v4478_v5, 3  ;;  %v626_v20 = vrot.slane %v4469_v58, 3  ;;  %v6014_v12 = vld [vmem:[#allocation34_spill] sm:$0xff] }
 0x11e   : > { %6011 = vst [vmem:[#allocation35_spill] sm:$0xff] %v4966_v21  ;;  %v6013_v3 = vrot.slane %v4447_v30, 1  ;;  %v1269_v50 = vmul.f32 %v4580_v0, %v4894_v55  ;;  %v6015_v2 = vrot.slane %v4603_v54, 7  ;;  %v898_v26 = vpack.c.bf16 %v890_v37, %v889_v49  ;;  %v6024_v37 = vld [vmem:[#allocation13_spill] sm:$0xff] }
 0x11f   : > { %v753_v31 = vmul.f32 %v6016_v44, %v4961_v14  ;;  %v6017_v48 = vrot.slane %v4440_v28, 7  ;;  %v1771_v0 = vpack.c.bf16 %v4875_v22, %v1755_v25  ;;  %v6018_v19 = vrot.slane %v5984_v46, 3 }
 0x120   : > { %v1957_v16 = vsel %vm1941_vm4, %v5891_v27, %v6013_v3  ;;  %v4986_v7 = vsel %vm1440_vm1, %v1432_v6, %v6015_v2  ;;  %v1277_v27 = vpack.c.bf16 %v1269_v50, %v1268_v52  ;;  %v1709_v55 = vpop.permute.xlu1 %1708  ;;  %3641 = vmatmul.mubr.msk.bf16.gmra.mxu1 %vm908_vm5, %v898_v26  ;;  %v5013_v25 = vsel %vm639_vm6, %v625_v38, %v626_v20 }
 0x121   : > { %v1448_v3 = vsel %vm1440_vm1, %v6017_v48, %v1432_v6  ;;  %v4999_v21 = vsel %vm639_vm6, %v622_v15, %v6018_v19  ;;  %v6019_v2 = vmov %v6018_v19  ;;  %3901 = vset.pattern.permute.xlu1 %v5934_v32  ;;  %v768_v49 = vpack.c.bf16 %v753_v31, %v752_v17  ;;  %v5009_v22 = vpop.permute.xlu0 %2003  ;;  %6021 = vst [vmem:[#allocation8_spill] sm:$0xff] %v5013_v25  ;;  %v6022_v32 = vld [vmem:[#allocation4_spill] sm:$0xff]  ;;  %v6025_v19 = vld [vmem:[#allocation14_spill] sm:$0xff] }
 0x122   : > { %v5005_v44 = vsel %vm639_vm6, %v6019_v2, %v624_v24  ;;  %6020 = vst [vmem:[#allocation9_spill] sm:$0xff] %v5009_v22  ;;  %v5017_v15 = vsel %vm639_vm6, %v624_v24, %v625_v38  ;;  %3677 = vmatmul.mubr.msk.bf16.gmra.mxu0 %vm908_vm5, %v1277_v27  ;;  %2011 = vperm.xlu1 %3901, %v6022_v32   ;;  %v627_v31 = vrot.slane %v4432_v18, 3  ;;  %v1927_v26 = vrot.slane %v5984_v46, 1  ;;  %v6023_v38 = vld [vmem:[#allocation12_spill] sm:$0xff]  ;;  %v6026_v32 = vld [vmem:[#allocation18_spill] sm:$0xff] }
 0x123   : > { %v1758_v17 = vmul.f32 %v4839_v41, %v4408_v63  ;;  %3646 = vmatprep.mubr.msk.bf16.mxu1 %vm908_vm5, %v768_v49  ;;  %3700 = vmatprep.mubr.msk.bf16.mxu0 %vm908_vm5, %v1771_v0  ;;  %v754_v24 = vmul.f32 %v6023_v38, %v4999_v21  ;;  %v755_v52 = vmul.f32 %v6024_v37, %v5005_v44  ;;  %v628_v27 = vrot.slane %v4440_v28, 3  ;;  %v6027_v0 = vld [vmem:[#allocation51_spill] sm:$0xff] }
 0x124   : > { %v1717_v6 = vpop.permute.xlu1 %1716  ;;  %v756_v2 = vmul.f32 %v6025_v19, %v5017_v15  ;;  %v757_v50 = vmul.f32 %v6026_v32, %v5013_v25  ;;  %v629_v41 = vrot.slane %v4617_v11, 3  ;;  %v630_v49 = vrot.slane %v4603_v54, 3  ;;  %v5048_v19 = vld [vmem:[%s5824_s1 + $0x70] sm:$0xff] }
 0x125   : > { %v1760_v48 = vmul.f32 %v6027_v0, %v4469_v58  ;;  %v1757_v38 = vmul.f32 %v4788_v9, %v5984_v46  ;;  %v1759_v37 = vmul.f32 %v1709_v55, %v4478_v5  ;;  %v2008_v22 = vpop.permute.xlu0 %2007  ;;  %v5055_v25 = vsel %vm639_vm6, %v626_v20, %v627_v31 }
 0x126   : > { %2015 = vperm.xlu1 %3901, %v5048_v19   ;;  %v5051_v32 = vmul.f32 %v2008_v22, %v1944_v1  ;;  %v6029_v0 = vrot.slane %v4623_v57, 7  ;;  %v6030_v9 = vrot.slane %v4615_v39, 7  ;;  %v769_v55 = vpack.c.bf16 %v755_v52, %v754_v24  ;;  %v6033_v52 = vld [vmem:[#allocation31_spill] sm:$0xff] }
 0x127   : > { %v1772_v46 = vpack.c.bf16 %v1758_v17, %v1757_v38  ;;  %v5065_v47 = vsel %vm639_vm6, %v627_v31, %v628_v27  ;;  %v770_v1 = vpack.c.bf16 %v757_v50, %v756_v2  ;;  %v5069_v22 = vsel %vm639_vm6, %v629_v41, %v630_v49  ;;  %v6034_v2 = vld [vmem:[#allocation20_spill] sm:$0xff] }
 0x128   : > { %6028 = vst [vmem:[#allocation41_spill] sm:$0xff] %v5051_v32  ;;  %v1445_v5 = vsel %vm1440_vm1, %v6030_v9, %v6029_v0  ;;  %v1721_v51 = vpop.permute.xlu1 %1720  ;;  %6031 = vst [vmem:[#allocation3_spill] sm:$0xff] %v5069_v22  ;;  %v5073_v20 = vsel %vm639_vm6, %v628_v27, %v629_v41  ;;  %v6032_v32 = vrot.slane %v4444_v60, 1  ;;  %v1773_v24 = vpack.c.bf16 %v1760_v48, %v1759_v37  ;;  %v5091_v27 = vld [vmem:[%s5828_s5 + $0x28] sm:$0xff]   ;;  %v6037_v9 = vld [vmem:[#allocation16_spill] sm:$0xff] }
 0x129   : > { %3647 = vmatmul.mubr.msk.bf16.vlgmr.msra.gmra.mxu1 %vm908_vm5, %v769_v55  ;;  %v2020_v31 = vpop.permute.xlu0 %2019  ;;  %v5083_v50 = vmul.f32 %v6033_v52, %v1448_v3  ;;  %v758_v38 = vmul.f32 %v6034_v2, %v5055_v25  ;;  %v631_v0 = vrot.slane %v4615_v39, 3  ;;  %v1762_v48 = vmul.f32 %v1721_v51, %v4440_v28  ;;  %v6036_v3 = vld [vmem:[#allocation15_spill] sm:$0xff] }
 0x12a   : > { %v5079_v17 = vsel %vm1941_vm4, %v6032_v32, %v1927_v26  ;;  %3701 = vmatmul.mubr.msk.bf16.vlgmr.msra.gmra.mxu0 %vm908_vm5, %v1772_v46  ;;  %3903 = vset.pattern.permute.xlu1 %v5925_v10  ;;  %v5096_v41 = vmul.f32 %v2020_v31, %v1957_v16  ;;  %v759_v37 = vmul.f32 %v6036_v3, %v5065_v47  ;;  %v1931_v32 = vrot.slane %v4432_v18, 1  ;;  %v6038_v46 = vld [vmem:[#allocation22_spill] sm:$0xff] }
 0x12b   : > { %3650 = vmatprep.mubr.msk.bf16.mxu1 %vm908_vm5, %v770_v1  ;;  %3704 = vmatprep.mubr.msk.bf16.mxu0 %vm908_vm5, %v1773_v24  ;;  %v760_v55 = vmul.f32 %v6037_v9, %v5073_v20  ;;  %v761_v52 = vmul.f32 %v6038_v46, %v5069_v22  ;;  %v632_v10 = vrot.slane %v4623_v57, 3  ;;  %v5896_v51 = vrot.slane %v4615_v39, 1  ;;  %v5113_v31 = vld [vmem:[%s5824_s1 + $0x60] sm:$0xff] }
 0x12c   : > { %6035 = vst [vmem:[#allocation11_spill] sm:$0xff] %v5096_v41  ;;  %v1761_v16 = vmul.f32 %v1717_v6, %v4432_v18  ;;  %2241 = vperm.xlu1 %3903, %v5113_v31   ;;  %v633_v1 = vrot.slane %v4724_v13, 3  ;;  %3681 = vmatpush3.bf16.msra.mxu1 %v4752_v23  ;;  %v6039_v24 = vrot.slane %v4408_v63, 1  ;;  %v5895_v3 = vrot.slane %v4759_v45, 1 }
 0x12d   : > { %v1495_v18 = vpop.permute.xlu1 %1494  ;;  %v634_v6 = vrot.slane %v4713_v4, 3  ;;  %3716 = vmatprep.subr.bf16.mxu1 %v5091_v27  ;;  %3735 = vmatpush3.bf16.msra.mxu0 %v4757_v8  ;;  %v6040_v9 = vrot.slane %v4469_v58, 1  ;;  %v6041_v63 = vrot.slane %v4440_v28, 1  ;;  %v6042_v46 = vrot.slane %v4603_v54, 1 }
 0x12e   : > { %v5122_v2 = vsel %vm1941_vm4, %v1927_v26, %v6039_v24  ;;  %v1774_v8 = vpack.c.bf16 %v1762_v48, %v1761_v16  ;;  %v5149_v58 = vmul.f32 %v1495_v18, %v4986_v7  ;;  %v6043_v28 = vrot.slane %v4713_v4, 1 }
 0x12f   : > { %v5132_v23 = vsel %vm1941_vm4, %v6040_v9, %v1931_v32  ;;  %v5138_v26 = vsel %vm1941_vm4, %v1931_v32, %v6041_v63  ;;  %v5146_v24 = vsel %vm1941_vm4, %v6042_v46, %v5896_v51  ;;  %v6044_v9 = vld [vmem:[#allocation33_spill] sm:$0xff]  ;;  %v771_v41 = vpack.c.bf16 %v759_v37, %v758_v38 }
 0x130   : > { %v5157_v32 = vsel %vm1941_vm4, %v6043_v28, %v5895_v3  ;;  %v5160_v63 = vmul.f32 %v6044_v9, %v1445_v5  ;;  %v6045_v22 = vrot.slane %v4615_v39, 7  ;;  %v6046_v46 = vrot.slane %v4603_v54, 7  ;;  %2249 = vperm.xlu1 %3903, %v5048_v19   ;;  %v5199_v28 = vld [vmem:[%s5824_s1 + $0x78] sm:$0xff]  ;;  %v6051_v9 = vld [vmem:[#allocation30_spill] sm:$0xff] }
 0x131   : > { %v772_v16 = vpack.c.bf16 %v761_v52, %v760_v55  ;;  %v5173_v18 = vsel %vm639_vm6, %v631_v0, %v632_v10  ;;  %v5177_v5 = vsel %vm639_vm6, %v630_v49, %v631_v0  ;;  %3651 = vmatmul.mubr.msk.bf16.gmra.mxu1 %vm908_vm5, %v771_v41  ;;  %v1499_v38 = vpop.permute.xlu1 %1498  ;;  %v5186_v37 = vsel %vm639_vm6, %v632_v10, %v633_v1  ;;  %v6048_v49 = vld [vmem:[#allocation24_spill] sm:$0xff]  ;;  %v6049_v41 = vld [vmem:[#allocation17_spill] sm:$0xff] }
 0x132   : > { %v1446_v7 = vsel %vm1440_vm1, %v6046_v46, %v6045_v22  ;;  %v5182_v22 = vsel %vm639_vm6, %v633_v1, %v634_v6  ;;  %3705 = vmatmul.mubr.msk.bf16.gmra.mxu0 %vm908_vm5, %v1774_v8  ;;  %v762_v0 = vmul.f32 %v6048_v49, %v5177_v5  ;;  %v763_v52 = vmul.f32 %v6049_v41, %v5173_v18  ;;  %v6050_v1 = vld [vmem:[#allocation19_spill] sm:$0xff] }
 0x133   : > { %6047 = vst [vmem:[#allocation34_spill] sm:$0xff] %v5182_v22  ;;  %3654 = vmatprep.mubr.msk.bf16.mxu1 %vm908_vm5, %v772_v16  ;;  %v5190_v55 = vmul.f32 %v1499_v38, %v1446_v7  ;;  %v764_v8 = vmul.f32 %v6050_v1, %v5186_v37  ;;  %v765_v46 = vmul.f32 %v6051_v9, %v5182_v22  ;;  %v635_v7 = vrot.slane %v4759_v45, 3 }
 0x134   : > { %2253 = vperm.xlu1 %3903, %v5199_v28   ;;  %v1439_v16 = vrot.slane %v4605_v33, 7  ;;  %v1424_v38 = vrot.slane %v4447_v30, 7  ;;  %v1764_v49 = vmul.f32 %v4673_v62, %v4603_v54  ;;  %v773_v51 = vpack.c.bf16 %v763_v52, %v762_v0  ;;  %v3952_v62 = vld [vmem:[%s5824_s1 + $0x8] sm:$0xff] }
 0x135   : > { %v6052_v10 = vmov 7   ;;  %v774_v48 = vpack.c.bf16 %v765_v46, %v764_v8  ;;  %v6053_v1 = vrot.slane %v4605_v33, 3  ;;  %v5223_v22 = vsel %vm639_vm6, %v634_v6, %v635_v7  ;;  %v6056_v8 = vld [vmem:[#allocation21_spill] sm:$0xff] }
 0x136   : > { %v1725_v41 = vpop.permute.xlu1 %1724  ;;  %v6054_v30 = vrot.slane %v4444_v60, 7  ;;  %v6055_v60 = vld [vmem:[#allocation32_spill] sm:$0xff] }
 0x137   : > { %v1763_v3 = vmul.f32 %v1725_v41, %v4617_v11  ;;  %v5219_v9 = vsel %vm639_vm6, %v635_v7, %v6053_v1  ;;  %v1456_v11 = vsel %vm1440_vm1, %v1439_v16, %v1424_v38  ;;  %v766_v52 = vmul.f32 %v6055_v60, %v5223_v22  ;;  %v6057_v7 = vld [vmem:[#allocation25_spill] sm:$0xff]  ;;  %v6058_v41 = vld [vmem:[#allocation52_spill] sm:$0xff] }
 0x138   : > { %3904 = vset.pattern.permute.xlu1 %v6052_v10  ;;  %v1455_v54 = vsel %vm1440_vm1, %v1424_v38, %v6054_v30  ;;  %v767_v46 = vmul.f32 %v6056_v8, %v5219_v9  ;;  %v1521_v38 = vmul.f32 %v6057_v7, %v1456_v11  ;;  %v6059_v60 = vmov 8   ;;  %v6060_v7 = vld [vmem:[#allocation42_spill] sm:$0xff] }
 0x139   : > { %2431 = vperm.xlu1 %3904, %v3952_v62   ;;  %v1775_v0 = vpack.c.bf16 %v1764_v49, %v1763_v3  ;;  %3655 = vmatmul.mubr.msk.bf16.gmra.mxu1 %vm908_vm5, %v773_v51  ;;  %v1522_v1 = vmul.f32 %v6058_v41, %v1455_v54  ;;  %v3953_v3 = vld [vmem:[%s5824_s1 + $0x10] sm:$0xff]  ;;  %v3954_v54 = vld [vmem:[%s5824_s1] sm:$0xff] }
 0x13a   : > { %3658 = vmatprep.mubr.msk.bf16.mxu1 %vm908_vm5, %v774_v48  ;;  %v1733_v6 = vpop.permute.xlu1 %1732  ;;  %v1438_v48 = vrot.slane %v4759_v45, 7  ;;  %v775_v30 = vpack.c.bf16 %v767_v46, %v766_v52  ;;  %v1437_v52 = vrot.slane %v4713_v4, 7 }
 0x13b   : > { %3708 = vmatprep.mubr.msk.bf16.mxu0 %vm908_vm5, %v1775_v0  ;;  %v1765_v49 = vmul.f32 %v1733_v6, %v4615_v39  ;;  %v1537_v0 = vpack.c.bf16 %v1522_v1, %v1521_v38 }
 0x13c   : > { %v1441_v11 = vsel %vm1440_vm1, %v1438_v48, %v1439_v16  ;;  %v1442_v46 = vsel %vm1440_vm1, %v1437_v52, %v1438_v48  ;;  %v5270_v16 = vld [vmem:[%s5828_s5 + $0x40] sm:$0xff]  }
 0x13d   : > { %2435 = vperm.xlu1 %3904, %v3953_v3   ;;  %v1536_v38 = vmul.f32 %v6060_v7, %v1441_v11  ;;  %3770 = vmatprep.subr.bf16.mxu0 %v5270_v16  ;;  %v6065_v11 = vpack.c.bf16 %v5149_v58, %v5083_v50  ;;  %v3958_v50 = vld [vmem:[%s5824_s1 + $0x20] sm:$0xff]  ;;  %v6067_v58 = vpack.c.bf16 %v5160_v63, %v5190_v55  ;;  %v3959_v55 = vld [vmem:[%s5824_s1 + $0x38] sm:$0xff] }
 0x13e   : > { %v1737_v51 = vpop.permute.xlu1 %1736 }
 0x13f   : > { %v1766_v62 = vmul.f32 %v1737_v51, %v4623_v57  ;;  %v5265_v51 = vld [vmem:[%s5828_s5 + $0x38] sm:$0xff]  }
 0x141   : > { %3905 = vset.pattern.permute.xlu1 %v6059_v60  ;;  %v1776_v8 = vpack.c.bf16 %v1766_v62, %v1765_v49  ;;  %3659 = vmatmul.mubr.msk.bf16.gmra.mxu1 %vm908_vm5, %v775_v30  ;;  %v6061_v49 = vpack.c.bf16 %v4428_v56, %v4686_v40  ;;  %v6062_v30 = vpack.c.bf16 %v4910_v53, %v4898_v35  ;;  %v1436_v40 = vrot.slane %v4724_v13, 7  ;;  %v3956_v35 = vld [vmem:[%s5824_s1 + $0x28] sm:$0xff] }
 0x142   : > { %2661 = vperm.xlu1 %3905, %v3954_v54   ;;  %3682 = vmatprep.mubr.msk.bf16.mxu1 %vm908_vm5, %v1537_v0  ;;  %v1768_v62 = vmul.f32 %v4718_v36, %v4713_v4  ;;  %v6064_v54 = vpack.c.bf16 %v6014_v12, %v4957_v29 }
 0x143   : > { %v1511_v6 = vpop.permute.xlu1 %1510  ;;  %3709 = vmatmul.mubr.msk.bf16.gmra.mxu0 %vm908_vm5, %v1776_v8  ;;  %v1443_v36 = vsel %vm1440_vm1, %v1436_v40, %v1437_v52  ;;  %v3957_v52 = vld [vmem:[%s5824_s1 + $0x30] sm:$0xff] }
 0x146   : > { %2669 = vperm.xlu1 %3905, %v3953_v3   ;;  %v3955_v3 = vld [vmem:[%s5824_s1 + $0x18] sm:$0xff] }
 0x147   : > { %v1515_v41 = vpop.permute.xlu1 %1514 }
 0x148   : > { %v1535_v1 = vmul.f32 %v1515_v41, %v1442_v46  ;;  %v6066_v46 = vld [vmem:[#allocation36_spill] sm:$0xff] }
 0x149   : > { %3683 = vmatmul.mubr.msk.bf16.vlgmr.msra.gmra.mxu1 %vm908_vm5, %v6061_v49 }
 0x14a   : > { %2673 = vperm.xlu1 %3905, %v3955_v3   ;;  %v1544_v48 = vpack.c.bf16 %v1536_v38, %v1535_v1  ;;  %3686 = vmatprep.mubr.msk.bf16.mxu1 %vm908_vm5, %v6062_v30  ;;  %v1534_v38 = vmul.f32 %v1511_v6, %v1443_v36  ;;  %v6068_v3 = vld [vmem:[#allocation47_spill] sm:$0xff] }
 0x14b   : > { %3717 = vmatpush3.bf16.msra.mxu1 %v5091_v27  ;;  %v6063_v27 = vrot.slane %v4623_v57, 7  ;;  %v2022_v30 = vmul.f32 %v4781_v43, %v6068_v3  ;;  %v2198_v43 = vpop.permute.xlu0 %2197 }
 0x14c   : > { %v1741_v56 = vpop.permute.xlu1 %1740  ;;  %3752 = vmatprep.subr.bf16.mxu1 %v5265_v51 }
 0x14d   : > { %v1767_v0 = vmul.f32 %v1741_v56, %v4724_v13  ;;  %v1444_v8 = vsel %vm1440_vm1, %v6063_v27, %v1436_v40 }
 0x14e   : > { %3907 = vset.pattern.permute.xlu1 %v6052_v10  ;;  %v1533_v7 = vmul.f32 %v6066_v46, %v1444_v8  ;;  %v3962_v8 = vld [vmem:[%s5824_s1 + $0x40] sm:$0xff]  ;;  %v6070_v46 = vld [vmem:[#allocation69_spill] sm:$0xff] }
 0x14f   : > { %2447 = vperm.xlu1 %3907, %v3956_v35   ;;  %v1777_v53 = vpack.c.bf16 %v1768_v62, %v1767_v0  ;;  %v2025_v0 = vmul.f32 %v4828_v42, %v4699_v59  ;;  %v3960_v59 = vld [vmem:[%s5824_s1 + $0x48] sm:$0xff] }
 0x150   : > { %v1749_v4 = vpop.permute.xlu1 %1748  ;;  %v1543_v49 = vpack.c.bf16 %v1534_v38, %v1533_v7  ;;  %v6071_v7 = vld [vmem:[#allocation23_spill] sm:$0xff] }
 0x151   : > { %3687 = vmatmul.mubr.msk.bf16.gmra.mxu1 %vm908_vm5, %v6064_v54  ;;  %3712 = vmatprep.mubr.msk.bf16.mxu0 %vm908_vm5, %v1777_v53  ;;  %v1769_v29 = vmul.f32 %v1749_v4, %v4759_v45  ;;  %v2257_v53 = vmul.f32 %v2198_v43, %v4999_v21  ;;  %v2029_v38 = vmul.f32 %v6071_v7, %v6070_v46 }
 0x152   : > { %3690 = vmatprep.mubr.msk.bf16.mxu1 %vm908_vm5, %v6065_v11  ;;  %v6069_v11 = vld [vmem:[#allocation26_spill] sm:$0xff] }
 0x153   : > { %2451 = vperm.xlu1 %3907, %v3957_v52  }
 0x154   : > { %v1753_v41 = vpop.permute.xlu1 %1752 }
 0x155   : > { %v1770_v12 = vmul.f32 %v1753_v41, %v4605_v33 }
 0x157   : > { %3908 = vset.pattern.permute.xlu1 %v6059_v60  ;;  %v1778_v1 = vpack.c.bf16 %v1770_v12, %v1769_v29  ;;  %v3963_v29 = vld [vmem:[%s5824_s1 + $0x58] sm:$0xff]  ;;  %v2214_v12 = vpop.permute.xlu0 %2213 }
 0x158   : > { %2677 = vperm.xlu1 %3908, %v3958_v50  }
 0x159   : > { %3691 = vmatmul.mubr.msk.bf16.gmra.mxu1 %vm908_vm5, %v6067_v58  ;;  %v1964_v6 = vpop.permute.xlu1 %1963  ;;  %3713 = vmatmul.mubr.msk.bf16.gmra.mxu0 %vm908_vm5, %v1778_v1  ;;  %v6072_v1 = vld [vmem:[#allocation8_spill] sm:$0xff] }
 0x15a   : > { %3694 = vmatprep.mubr.msk.bf16.mxu1 %vm908_vm5, %v1543_v49  ;;  %v2023_v62 = vmul.f32 %v1964_v6, %v5079_v17 }
 0x15c   : > { %2685 = vperm.xlu1 %3908, %v3957_v52   ;;  %v2038_v56 = vpack.c.bf16 %v2023_v62, %v2022_v30  ;;  %v2026_v52 = vmul.f32 %v6069_v11, %v4777_v34 }
 0x15d   : > { %v1968_v40 = vpop.permute.xlu1 %1967 }
 0x15e   : > { %v2024_v63 = vmul.f32 %v1968_v40, %v5122_v2  ;;  %v6074_v40 = vld [vmem:[#allocation35_spill] sm:$0xff] }
 0x160   : > { %2689 = vperm.xlu1 %3908, %v3959_v55   ;;  %v2039_v35 = vpack.c.bf16 %v2025_v0, %v2024_v63 }
 0x161   : > { %3695 = vmatmul.mubr.msk.bf16.gmra.mxu1 %vm908_vm5, %v1544_v48  ;;  %v3961_v48 = vld [vmem:[%s5824_s1 + $0x50] sm:$0xff] }
 0x162   : > { %3718 = vmatprep.mubr.msk.bf16.mxu1 %vm908_vm5, %v2038_v56  ;;  %v2194_v17 = vpop.permute.xlu1 %2193  ;;  %v6073_v56 = vld [vmem:[#allocation7_spill] sm:$0xff] }
 0x163   : > { %v2256_v4 = vmul.f32 %v2194_v17, %v4961_v14  ;;  %v2030_v0 = vmul.f32 %v6074_v40, %v6073_v56 }
 0x164   : > { %3909 = vset.pattern.permute.xlu1 %v6052_v10 }
 0x165   : > { %2463 = vperm.xlu1 %3909, %v3960_v59   ;;  %v2272_v42 = vpack.c.bf16 %v2257_v53, %v2256_v4  ;;  %v6078_v4 = vld [vmem:[#allocation3_spill] sm:$0xff] }
 0x166   : > { %v2202_v2 = vpop.permute.xlu1 %2201 }
 0x167   : > { %3736 = vmatprep.mubr.msk.bf16.mxu0 %vm908_vm5, %v2272_v42  ;;  %v2258_v14 = vmul.f32 %v2202_v2, %v5005_v44 }
 0x169   : > { %2467 = vperm.xlu1 %3909, %v3961_v48   ;;  %3719 = vmatmul.mubr.msk.bf16.vlgmr.msra.gmra.mxu1 %vm908_vm5, %v2039_v35  ;;  %v6077_v35 = vld [vmem:[#allocation9_spill] sm:$0xff] }
 0x16a   : > { %v2206_v21 = vpop.permute.xlu1 %2205  ;;  %3753 = vmatpush3.bf16.msra.mxu1 %v5265_v51 }
 0x16b   : > { %v2259_v36 = vmul.f32 %v2206_v21, %v5017_v15 }
 0x16d   : > { %3910 = vset.pattern.permute.xlu1 %v6059_v60  ;;  %v2273_v27 = vpack.c.bf16 %v2259_v36, %v2258_v14 }
 0x16e   : > { %2693 = vperm.xlu1 %3910, %v3962_v8  }
 0x16f   : > { %v1980_v54 = vpop.permute.xlu1 %1979  ;;  %3737 = vmatmul.mubr.msk.bf16.vlgmr.msra.gmra.mxu0 %vm908_vm5, %v2273_v27 }
 0x170   : > { %v2027_v51 = vmul.f32 %v1980_v54, %v5132_v23  ;;  %3771 = vmatpush3.bf16.msra.mxu0 %v5270_v16  ;;  %v2261_v16 = vmul.f32 %v2214_v12, %v5055_v25 }
 0x172   : > { %2701 = vperm.xlu1 %3910, %v3961_v48   ;;  %v2040_v44 = vpack.c.bf16 %v2027_v51, %v2026_v52  ;;  %v6080_v52 = vrot.slane %v4605_v33, 1  ;;  %v6081_v51 = vrot.slane %v4759_v45, 1 }
 0x173   : > { %v1984_v15 = vpop.permute.xlu1 %1983 }
 0x174   : > { %v2028_v41 = vmul.f32 %v1984_v15, %v5138_v26  ;;  %3722 = vmatprep.mubr.msk.bf16.mxu1 %vm908_vm5, %v2040_v44  ;;  %v3964_v26 = vld [vmem:[%s5824_s1 + $0x68] sm:$0xff]  ;;  %v1942_v44 = vsel %vm1941_vm4, %v6081_v51, %v6080_v52 }
 0x175   : > { %v6082_v15 = vld [vmem:[#allocation11_spill] sm:$0xff] }
 0x176   : > { %2705 = vperm.xlu1 %3910, %v3963_v29   ;;  %v2041_v34 = vpack.c.bf16 %v2029_v38, %v2028_v41  ;;  %v6083_v38 = vld [vmem:[#allocation34_spill] sm:$0xff] }
 0x178   : > { %v2210_v23 = vpop.permute.xlu1 %2209  ;;  %3723 = vmatmul.mubr.msk.bf16.gmra.mxu1 %vm908_vm5, %v2041_v34 }
 0x179   : > { %v2260_v49 = vmul.f32 %v2210_v23, %v6072_v1  ;;  %v6084_v23 = vld [vmem:[#allocation28_spill] sm:$0xff] }
 0x17a   : > { %3912 = vset.pattern.permute.xlu1 %v6052_v10  ;;  %v1936_v10 = vrot.slane %v4623_v57, 1 }
 0x17b   : > { %2479 = vperm.xlu1 %3912, %v3964_v26   ;;  %v2274_v50 = vpack.c.bf16 %v2261_v16, %v2260_v49  ;;  %v6085_v26 = vld [vmem:[#allocation37_spill] sm:$0xff] }
 0x17c   : > { %v2218_v58 = vpop.permute.xlu1 %2217 }
 0x17d   : > { %3740 = vmatprep.mubr.msk.bf16.mxu0 %vm908_vm5, %v2274_v50  ;;  %v2262_v3 = vmul.f32 %v2218_v58, %v5065_v47  ;;  %v6075_v47 = vrot.slane %v4724_v13, 1  ;;  %v6086_v50 = vld [vmem:[#allocation43_spill] sm:$0xff] }
 0x17f   : > { %2483 = vperm.xlu1 %3912, %v5048_v19  }
 0x180   : > { %v2222_v6 = vpop.permute.xlu1 %2221 }
 0x181   : > { %v2263_v25 = vmul.f32 %v2222_v6, %v5073_v20  ;;  %v1945_v20 = vsel %vm1941_vm4, %v1936_v10, %v6075_v47  ;;  %v6090_v47 = vld [vmem:[#allocation38_spill] sm:$0xff] }
 0x182   : > { %v2033_v43 = vmul.f32 %v6077_v35, %v1945_v20  ;;  %v6091_v35 = vld [vmem:[#allocation44_spill] sm:$0xff] }
 0x183   : > { %3913 = vset.pattern.permute.xlu1 %v6059_v60  ;;  %v2275_v30 = vpack.c.bf16 %v2263_v25, %v2262_v3 }
 0x184   : > { %2709 = vperm.xlu1 %3913, %v5113_v31   ;;  %v6076_v31 = vrot.slane %v4615_v39, 1 }
 0x185   : > { %3741 = vmatmul.mubr.msk.bf16.gmra.mxu0 %vm908_vm5, %v2275_v30  ;;  %v6087_v30 = vld [vmem:[#allocation46_spill] sm:$0xff] }
 0x186   : > { %v1996_v62 = vpop.permute.xlu1 %1995  ;;  %v1946_v57 = vsel %vm1941_vm4, %v6076_v31, %v1936_v10 }
 0x187   : > { %v2031_v63 = vmul.f32 %v1996_v62, %v5146_v24  ;;  %v2230_v24 = vpop.permute.xlu0 %2229  ;;  %v6088_v62 = vld [vmem:[#allocation39_spill] sm:$0xff] }
 0x188   : > { %2717 = vperm.xlu1 %3913, %v5048_v19   ;;  %v2265_v53 = vmul.f32 %v2230_v24, %v5177_v5  ;;  %v6079_v5 = vld [vmem:[#allocation41_spill] sm:$0xff] }
 0x189   : > { %v2042_v60 = vpack.c.bf16 %v2031_v63, %v2030_v0  ;;  %v6089_v0 = vld [vmem:[#allocation40_spill] sm:$0xff] }
 0x18a   : > { %v2000_v55 = vpop.permute.xlu1 %1999 }
 0x18b   : > { %v2032_v17 = vmul.f32 %v2000_v55, %v1946_v57  ;;  %3726 = vmatprep.mubr.msk.bf16.mxu1 %vm908_vm5, %v2042_v60  ;;  %v2246_v2 = vpop.permute.xlu0 %2245 }
 0x18c   : > { %2721 = vperm.xlu1 %3913, %v5199_v28  }
 0x18d   : > { %v2043_v19 = vpack.c.bf16 %v2033_v43, %v2032_v17  ;;  %v6092_v17 = vld [vmem:[#allocation48_spill] sm:$0xff] }
 0x18f   : > { %3727 = vmatmul.mubr.msk.bf16.gmra.mxu1 %vm908_vm5, %v2043_v19  ;;  %v2666_v27 = vpop.permute.xlu0 %2665 }
 0x190   : > { %v2226_v13 = vpop.permute.xlu1 %2225  ;;  %v2725_v63 = vmul.f32 %v2666_v27, %v6089_v0 }
 0x191   : > { %v2264_v59 = vmul.f32 %v2226_v13, %v6078_v4 }
 0x193   : > { %v2276_v39 = vpack.c.bf16 %v2265_v53, %v2264_v59  ;;  %v6093_v59 = vld [vmem:[#allocation45_spill] sm:$0xff] }
 0x194   : > { %v2234_v42 = vpop.permute.xlu1 %2233 }
 0x195   : > { %3744 = vmatprep.mubr.msk.bf16.mxu0 %vm908_vm5, %v2276_v39  ;;  %v2266_v28 = vmul.f32 %v2234_v42, %v5173_v18  ;;  %v6094_v42 = vld [vmem:[#allocation50_spill] sm:$0xff] }
 0x198   : > { %v2238_v48 = vpop.permute.xlu1 %2237 }
 0x199   : > { %v2267_v21 = vmul.f32 %v2238_v48, %v5186_v37  ;;  %v2682_v37 = vpop.permute.xlu0 %2681 }
 0x19b   : > { %v2277_v14 = vpack.c.bf16 %v2267_v21, %v2266_v28 }
 0x19d   : > { %v2012_v36 = vpop.permute.xlu1 %2011  ;;  %3745 = vmatmul.mubr.msk.bf16.gmra.mxu0 %vm908_vm5, %v2277_v14  ;;  %v5416_v29 = vpop.permute.xlu0 %2697 }
 0x19e   : > { %v2035_v8 = vmul.f32 %v2012_v36, %v5157_v32  ;;  %v2269_v32 = vmul.f32 %v2246_v2, %v5223_v22 }
 0x1a0   : > { %v2044_v54 = vpack.c.bf16 %v2035_v8, %v6079_v5  ;;  %v6095_v5 = vld [vmem:[#allocation58_spill] sm:$0xff] }
 0x1a1   : > { %v2016_v11 = vpop.permute.xlu1 %2015  ;;  %v2428_v34 = vpop.permute.xlu0 %2427 }
 0x1a2   : > { %v2036_v18 = vmul.f32 %v2016_v11, %v1942_v44  ;;  %3730 = vmatprep.mubr.msk.bf16.mxu1 %vm908_vm5, %v2044_v54  ;;  %v2490_v22 = vmul.f32 %v2428_v34, %v6085_v26  ;;  %v6096_v11 = vld [vmem:[#allocation53_spill] sm:$0xff] }
 0x1a4   : > { %v2045_v46 = vpack.c.bf16 %v6082_v15, %v2036_v18 }
 0x1a5   : > { %v2440_v6 = vpop.permute.xlu0 %2439 }
 0x1a6   : > { %3731 = vmatmul.mubr.msk.bf16.gmra.mxu1 %vm908_vm5, %v2045_v46  ;;  %v2493_v10 = vmul.f32 %v2440_v6, %v6087_v30  ;;  %v6099_v6 = vld [vmem:[#allocation59_spill] sm:$0xff] }
 0x1a7   : > { %v2242_v7 = vpop.permute.xlu1 %2241 }
 0x1a8   : > { %v2268_v41 = vmul.f32 %v2242_v7, %v6083_v38  ;;  %v6097_v38 = vld [vmem:[#allocation56_spill] sm:$0xff] }
 0x1a9   : > { %v2444_v57 = vpop.permute.xlu0 %2443 }
 0x1aa   : > { %v2278_v33 = vpack.c.bf16 %v2269_v32, %v2268_v41  ;;  %v2494_v39 = vmul.f32 %v2444_v57, %v6093_v59  ;;  %v2729_v41 = vmul.f32 %v2682_v37, %v6097_v38 }
 0x1ab   : > { %v2250_v45 = vpop.permute.xlu1 %2249 }
 0x1ac   : > { %3748 = vmatprep.mubr.msk.bf16.mxu0 %vm908_vm5, %v2278_v33  ;;  %v2270_v12 = vmul.f32 %v2250_v45, %v5219_v9  ;;  %v6098_v33 = vld [vmem:[#allocation49_spill] sm:$0xff] }
 0x1ad   : > { %v2456_v28 = vpop.permute.xlu0 %2455 }
 0x1ae   : > { %v2497_v54 = vmul.f32 %v2456_v28, %v6095_v5 }
 0x1af   : > { %v2254_v61 = vpop.permute.xlu1 %2253 }
 0x1b0   : > { %v2271_v16 = vmul.f32 %v2254_v61, %v6084_v23 }
 0x1b2   : > { %v2279_v1 = vpack.c.bf16 %v2271_v16, %v2270_v12 }
 0x1b4   : > { %v2432_v49 = vpop.permute.xlu1 %2431  ;;  %3749 = vmatmul.mubr.msk.bf16.gmra.mxu0 %vm908_vm5, %v2279_v1 }
 0x1b5   : > { %v2491_v58 = vmul.f32 %v2432_v49, %v6086_v50 }
 0x1b7   : > { %v2506_v3 = vpack.c.bf16 %v2491_v58, %v2490_v22  ;;  %v2460_v58 = vpop.permute.xlu0 %2459 }
 0x1b8   : > { %v2436_v25 = vpop.permute.xlu1 %2435 }
 0x1b9   : > { %v2492_v56 = vmul.f32 %v2436_v25, %v6088_v62  ;;  %3754 = vmatprep.mubr.msk.bf16.mxu1 %vm908_vm5, %v2506_v3  ;;  %v6100_v25 = vld [vmem:[#allocation61_spill] sm:$0xff] }
 0x1bb   : > { %v2507_v9 = vpack.c.bf16 %v2493_v10, %v2492_v56  ;;  %v2472_v57 = vpop.permute.xlu0 %2471 }
 0x1bd   : > { %v2662_v40 = vpop.permute.xlu1 %2661  ;;  %3755 = vmatmul.mubr.msk.bf16.vlgmr.msra.gmra.mxu1 %vm908_vm5, %v2507_v9 }
 0x1be   : > { %v2724_v20 = vmul.f32 %v2662_v40, %v6090_v47  ;;  %v6101_v47 = vld [vmem:[#allocation57_spill] sm:$0xff] }
 0x1c0   : > { %v2740_v60 = vpack.c.bf16 %v2725_v63, %v2724_v20  ;;  %v2498_v20 = vmul.f32 %v2460_v58, %v6101_v47 }
 0x1c1   : > { %v2670_v55 = vpop.permute.xlu1 %2669 }
 0x1c2   : > { %3772 = vmatprep.mubr.msk.bf16.mxu0 %vm908_vm5, %v2740_v60  ;;  %v2726_v43 = vmul.f32 %v2670_v55, %v6091_v35  ;;  %v6102_v60 = vld [vmem:[#allocation62_spill] sm:$0xff] }
 0x1c5   : > { %v2674_v31 = vpop.permute.xlu1 %2673 }
 0x1c6   : > { %v2727_v19 = vmul.f32 %v2674_v31, %v6092_v17 }
 0x1c8   : > { %v2741_v24 = vpack.c.bf16 %v2727_v19, %v2726_v43  ;;  %v5433_v13 = vpop.f32.mrf.mxu1 }
 0x1ca   : > { %v2448_v53 = vpop.permute.xlu1 %2447  ;;  %v5435_v4 = vpop.f32.mrf.mxu0  ;;  %3773 = vmatmul.mubr.msk.bf16.vlgmr.msra.gmra.mxu0 %vm908_vm5, %v2741_v24 }
 0x1cb   : > { %v2495_v2 = vmul.f32 %v2448_v53, %v6094_v42  ;;  %v5440_v48 = vpop.f32.mrf.mxu1  ;;  %v6103_v53 = vld [vmem:[#allocation65_spill] sm:$0xff] }
 0x1cc   : > { %v5442_v21 = vpop.f32.mrf.mxu0  ;;  %v2501_v59 = vmul.f32 %v2472_v57, %v6103_v53 }
 0x1cd   : > { %v2508_v14 = vpack.c.bf16 %v2495_v2, %v2494_v39  ;;  %v5444_v36 = vpop.f32.mrf.mxu1  ;;  %v6104_v39 = vld [vmem:[#allocation66_spill] sm:$0xff] }
 0x1ce   : > { %v2452_v27 = vpop.permute.xlu1 %2451  ;;  %v5446_v8 = vpop.f32.mrf.mxu0 }
 0x1cf   : > { %v2496_v52 = vmul.f32 %v2452_v27, %v6096_v11  ;;  %3758 = vmatprep.mubr.msk.bf16.mxu1 %vm908_vm5, %v2508_v14  ;;  %v5451_v51 = vpop.f32.mrf.mxu1  ;;  %v6105_v11 = vld [vmem:[#allocation63_spill] sm:$0xff] }
 0x1d0   : > { %v5453_v44 = vpop.f32.mrf.mxu0 }
 0x1d1   : > { %v2509_v18 = vpack.c.bf16 %v2497_v54, %v2496_v52  ;;  %v5455_v15 = vpop.f32.mrf.mxu1  ;;  %v2733_v52 = vmul.f32 %v5416_v29, %v6105_v11 }
 0x1d2   : > { %v5457_v46 = vpop.f32.mrf.mxu0 }
 0x1d3   : > { %v2678_v7 = vpop.permute.xlu1 %2677  ;;  %3759 = vmatmul.mubr.msk.bf16.gmra.mxu1 %vm908_vm5, %v2509_v18  ;;  %v5460_v32 = vpop.f32.mrf.mxu1  ;;  %v6106_v18 = vld [vmem:[#allocation60_spill] sm:$0xff] }
 0x1d4   : > { %v2728_v45 = vmul.f32 %v2678_v7, %v6098_v33  ;;  %v5464_v61 = vpop.f32.mrf.mxu0 }
 0x1d5   : > { %v5466_v34 = vpop.f32.mrf.mxu1 }
 0x1d6   : > { %v2742_v12 = vpack.c.bf16 %v2729_v41, %v2728_v45  ;;  %v5468_v23 = vpop.f32.mrf.mxu0 }
 0x1d7   : > { %v2686_v16 = vpop.permute.xlu1 %2685  ;;  %v5470_v1 = vpop.f32.mrf.mxu1 }
 0x1d8   : > { %v5472_v49 = vpop.f32.mrf.mxu0  ;;  %3776 = vmatprep.mubr.msk.bf16.mxu0 %vm908_vm5, %v2742_v12  ;;  %v2730_v3 = vmul.f32 %v2686_v16, %v6099_v6 }
 0x1d9   : > { %v5475_v26 = vpop.f32.mrf.mxu1 }
 0x1da   : > { %v5477_v22 = vpop.f32.mrf.mxu0 }
 0x1db   : > { %v2690_v37 = vpop.permute.xlu1 %2689  ;;  %v5479_v50 = vpop.f32.mrf.mxu1 }
 0x1dc   : > { %v2731_v30 = vmul.f32 %v2690_v37, %v6100_v25  ;;  %v5483_v10 = vpop.f32.mrf.mxu0 }
 0x1dd   : > { %v5485_v62 = vpop.f32.mrf.mxu1 }
 0x1de   : > { %v2743_v56 = vpack.c.bf16 %v2731_v30, %v2730_v3  ;;  %v5487_v9 = vpop.f32.mrf.mxu0 }
 0x1df   : > { %v5489_v40 = vpop.f32.mrf.mxu1 }
 0x1e0   : > { %v2464_v0 = vpop.permute.xlu1 %2463  ;;  %v5491_v63 = vpop.f32.mrf.mxu0  ;;  %3777 = vmatmul.mubr.msk.bf16.gmra.mxu0 %vm908_vm5, %v2743_v56 }
 0x1e1   : > { %v2499_v55 = vmul.f32 %v2464_v0, %v6102_v60  ;;  %v5496_v31 = vpop.f32.mrf.mxu1  ;;  %v6107_v0 = vld [vmem:[#allocation67_spill] sm:$0xff] }
 0x1e2   : > { %v5498_v35 = vpop.f32.mrf.mxu0 }
 0x1e3   : > { %v2510_v43 = vpack.c.bf16 %v2499_v55, %v2498_v20  ;;  %v5500_v17 = vpop.f32.mrf.mxu1  ;;  %v6108_v20 = vld [vmem:[#allocation27_spill] sm:$0xff] }
 0x1e4   : > { %v2468_v19 = vpop.permute.xlu1 %2467  ;;  %v5502_v24 = vpop.f32.mrf.mxu0 }
 0x1e5   : > { %v2500_v42 = vmul.f32 %v2468_v19, %v6104_v39  ;;  %3762 = vmatprep.mubr.msk.bf16.mxu1 %vm908_vm5, %v2510_v43  ;;  %v5507_v2 = vpop.f32.mrf.mxu1 }
 0x1e6   : > { %v5511_v27 = vpop.f32.mrf.mxu0 }
 0x1e7   : > { %v2511_v28 = vpack.c.bf16 %v2501_v59, %v2500_v42  ;;  %v5509_v14 = vpop.f32.mrf.mxu1 }
 0x1e8   : > { %v5518_v33 = vpop.f32.mrf.mxu0 }
 0x1e9   : > { %v2694_v5 = vpop.permute.xlu1 %2693  ;;  %3763 = vmatmul.mubr.msk.bf16.gmra.mxu1 %vm908_vm5, %v2511_v28  ;;  %v3648_v54 = vpop.f32.mrf.mxu1  ;;  %v6110_v28 = vld [vmem:[#allocation5_spill] sm:$0xff] }
 0x1ea   : > { %v2732_v7 = vmul.f32 %v2694_v5, %v6106_v18  ;;  %v1103_v38 = vadd.f32 %v3648_v54, %v5433_v13  ;;  %v2476_v13 = vpop.permute.xlu0 %2475  ;;  %v5529_v25 = vpop.f32.mrf.mxu0 }
 0x1eb   : > { %v1094_v41 = vpop.f32.mrf.mxu1 }
 0x1ec   : > { %v2744_v45 = vpack.c.bf16 %v2733_v52, %v2732_v7  ;;  %v1095_v12 = vadd.f32 %v1094_v41, %v5440_v48  ;;  %v5522_v16 = vadd.f32 %v5435_v4, %v1103_v38  ;;  %v6111_v38 = vld [vmem:[#allocation54_spill] sm:$0xff] }
 0x1ed   : > { %v2702_v37 = vpop.permute.xlu1 %2701  ;;  %v3649_v58 = vpop.f32.mrf.mxu1 }
 0x1ee   : > { %v1106_v6 = vadd.f32 %v3649_v58, %v5444_v36  ;;  %3780 = vmatprep.mubr.msk.bf16.mxu0 %vm908_vm5, %v2744_v45  ;;  %v5527_v29 = vadd.f32 %v5442_v21, %v1095_v12  ;;  %v2734_v47 = vmul.f32 %v2702_v37, %v6107_v0  ;;  %v2488_v53 = vpop.permute.xlu0 %2487  ;;  %v6112_v45 = vld [vmem:[#allocation2_spill] sm:$0xff] }
 0x1ef   : > { %v1097_v3 = vpop.f32.mrf.mxu1  ;;  %v2505_v41 = vmul.f32 %v2488_v53, %v6111_v38 }
 0x1f0   : > { %v1098_v30 = vadd.f32 %v1097_v3, %v5451_v51  ;;  %v5533_v48 = vadd.f32 %v5446_v8, %v1106_v6  ;;  %v5545_v8 = vpop.f32.mrf.mxu0 }
 0x1f1   : > { %v2706_v4 = vpop.permute.xlu1 %2705  ;;  %v3652_v56 = vpop.f32.mrf.mxu1 }
 0x1f2   : > { %v2735_v36 = vmul.f32 %v2706_v4, %v6108_v20  ;;  %v1119_v60 = vadd.f32 %v3652_v56, %v5455_v15  ;;  %v5539_v21 = vadd.f32 %v5453_v44, %v1098_v30  ;;  %v6109_v44 = vld [vmem:[#allocation64_spill] sm:$0xff]  ;;  %v5558_v11 = vpop.f32.mrf.mxu0  ;;  %v6113_v56 = vld [vmem:[#allocation29_spill] sm:$0xff] }
 0x1f3   : > { %v1110_v55 = vpop.f32.mrf.mxu1  ;;  %v2502_v42 = vmul.f32 %v2476_v13, %v6109_v44 }
 0x1f4   : > { %v2745_v57 = vpack.c.bf16 %v2735_v36, %v2734_v47  ;;  %v1111_v43 = vadd.f32 %v1110_v55, %v5460_v32  ;;  %v5543_v51 = vadd.f32 %v5457_v46, %v1119_v60  ;;  %v5567_v6 = vpop.f32.mrf.mxu0  ;;  %v6114_v47 = vld [vmem:[#allocation68_spill] sm:$0xff] }
 0x1f5   : > { %v3653_v19 = vpop.f32.mrf.mxu1 }
 0x1f6   : > { %v2480_v59 = vpop.permute.xlu1 %2479  ;;  %v1122_v39 = vadd.f32 %v3653_v19, %v5466_v34  ;;  %3781 = vmatmul.mubr.msk.bf16.gmra.mxu0 %vm908_vm5, %v2745_v57  ;;  %v5550_v15 = vadd.f32 %v5464_v61, %v1111_v43  ;;  %v3706_v36 = vpop.f32.mrf.mxu0 }
 0x1f7   : > { %v2503_v5 = vmul.f32 %v2480_v59, %v6110_v28  ;;  %v1113_v32 = vpop.f32.mrf.mxu1  ;;  %v6115_v28 = vld [vmem:[#allocation6_spill] sm:$0xff] }
 0x1f8   : > { %v1114_v46 = vadd.f32 %v1113_v32, %v5470_v1  ;;  %v5556_v54 = vadd.f32 %v5468_v23, %v1122_v39  ;;  %v2714_v1 = vpop.permute.xlu0 %2713  ;;  %v1862_v59 = vpop.f32.mrf.mxu0 }
 0x1f9   : > { %v2512_v52 = vpack.c.bf16 %v2503_v5, %v2502_v42  ;;  %v3656_v18 = vpop.f32.mrf.mxu1  ;;  %v2737_v0 = vmul.f32 %v2714_v1, %v6113_v56  ;;  %v6116_v5 = vld [vmem:[#allocation55_spill] sm:$0xff] }
 0x1fa   : > { %v2484_v34 = vpop.permute.xlu1 %2483  ;;  %v1135_v7 = vadd.f32 %v3656_v18, %v5475_v26  ;;  %v1413_v61 = vadd.f32 %v5472_v49, %v1114_v46  ;;  %v3707_v46 = vpop.f32.mrf.mxu0 }
 0x1fb   : > { %v2504_v12 = vmul.f32 %v2484_v34, %v6112_v45  ;;  %3766 = vmatprep.mubr.msk.bf16.mxu1 %vm908_vm5, %v2512_v52  ;;  %v1126_v37 = vpop.f32.mrf.mxu1 }
 0x1fc   : > { %v1127_v23 = vadd.f32 %v1126_v37, %v5479_v50  ;;  %v1418_v58 = vadd.f32 %v5477_v22, %v1135_v7 }
 0x1fd   : > { %v2513_v3 = vpack.c.bf16 %v2505_v41, %v2504_v12  ;;  %v3657_v13 = vpop.f32.mrf.mxu1 }
 0x1fe   : > { %v1138_v26 = vadd.f32 %v3657_v13, %v5485_v62  ;;  %v1416_v49 = vadd.f32 %v5483_v10, %v1127_v23 }
 0x1ff   : > { %v2710_v30 = vpop.permute.xlu1 %2709  ;;  %3767 = vmatmul.mubr.msk.bf16.gmra.mxu1 %vm908_vm5, %v2513_v3  ;;  %v1129_v4 = vpop.f32.mrf.mxu1 }
 0x200   : > { %v2736_v20 = vmul.f32 %v2710_v30, %v6114_v47  ;;  %v1130_v50 = vadd.f32 %v1129_v4, %v5489_v40  ;;  %v1419_v22 = vadd.f32 %v5487_v9, %v1138_v26  ;;  %v3936_v26 = vld [vmem:[%s5830_s7] sm:$0xff]  }
 0x201   : > { %v3660_v60 = vpop.f32.mrf.mxu1  ;;  %3788 = vmatprep.subr.bf16.mxu1 %v3936_v26 }
 0x202   : > { %v2746_v55 = vpack.c.bf16 %v2737_v0, %v2736_v20  ;;  %v1151_v57 = vadd.f32 %v3660_v60, %v5496_v31  ;;  %v1417_v62 = vadd.f32 %v5491_v63, %v1130_v50  ;;  %3789 = vmatpush3.bf16.msra.mxu1 %v3936_v26 }
 0x203   : > { %v2718_v10 = vpop.permute.xlu1 %2717  ;;  %v1142_v43 = vpop.f32.mrf.mxu1 }
 0x204   : > { %v1143_v19 = vadd.f32 %v1142_v43, %v5500_v17  ;;  %3784 = vmatprep.mubr.msk.bf16.mxu0 %vm908_vm5, %v2746_v55  ;;  %v1422_v53 = vadd.f32 %v5498_v35, %v1151_v57  ;;  %v2738_v31 = vmul.f32 %v2718_v10, %v6115_v28 }
 0x205   : > { %v3661_v39 = vpop.f32.mrf.mxu1 }
 0x206   : > { %v1154_v40 = vadd.f32 %v3661_v39, %v5507_v2  ;;  %v1420_v9 = vadd.f32 %v5502_v24, %v1143_v19  ;;  %v1865_v24 = vpop.f32.mrf.mxu0 }
 0x207   : > { %v2722_v44 = vpop.permute.xlu1 %2721  ;;  %v1145_v42 = vpop.f32.mrf.mxu1 }
 0x208   : > { %v2739_v63 = vmul.f32 %v2722_v44, %v6116_v5  ;;  %v1146_v32 = vadd.f32 %v1145_v42, %v5509_v14  ;;  %v1423_v17 = vadd.f32 %v5511_v27, %v1154_v40  ;;  %v3710_v7 = vpop.f32.mrf.mxu0 }
 0x209   : > { %v5587_v52 = vpop.f32.mrf.mxu1 }
 0x20a   : > { %v2747_v35 = vpack.c.bf16 %v2739_v63, %v2738_v31  ;;  %v1421_v18 = vadd.f32 %v5518_v33, %v1146_v32  ;;  %v1878_v27 = vpop.f32.mrf.mxu0 }
 0x20b   : > { %v5590_v34 = vpop.f32.mrf.mxu1 }
 0x20c   : > { %3785 = vmatmul.mubr.msk.bf16.gmra.mxu0 %vm908_vm5, %v2747_v35  ;;  %v3711_v3 = vpop.f32.mrf.mxu0 }
 0x20d   : > { %v5593_v2 = vpop.f32.mrf.mxu1 }
 0x20e   : > { %v1881_v0 = vpop.f32.mrf.mxu0 }
 0x20f   : > { %v5595_v38 = vpop.f32.mrf.mxu1 }
 0x211   : > { %v3688_v41 = vpop.f32.mrf.mxu1 }
 0x212   : > { %v1681_v14 = vadd.f32 %v3688_v41, %v5543_v51 }
 0x213   : > { %v1628_v45 = vpop.f32.mrf.mxu1 }
 0x214   : > { %v1679_v12 = vadd.f32 %v1628_v45, %v5550_v15  ;;  %v5599_v37 = vadd.f32 %v3706_v36, %v1681_v14 }
 0x215   : > { %v3689_v33 = vpop.f32.mrf.mxu1 }
 0x216   : > { %v1682_v1 = vadd.f32 %v3689_v33, %v5556_v54  ;;  %v5602_v23 = vadd.f32 %v1862_v59, %v1679_v12 }
 0x217   : > { %v1631_v13 = vpop.f32.mrf.mxu1 }
 0x218   : > { %v1680_v30 = vadd.f32 %v1631_v13, %v1413_v61  ;;  %v5607_v4 = vadd.f32 %v3707_v46, %v1682_v1 }
 0x219   : > { %v3692_v51 = vpop.f32.mrf.mxu1  ;;  %v3714_v50 = vpop.f32.mrf.mxu0 }
 0x21a   : > { %v1685_v56 = vadd.f32 %v3692_v51, %v1418_v58  ;;  %v5609_v15 = vadd.f32 %v1865_v24, %v1680_v30 }
 0x21b   : > { %v1644_v47 = vpop.f32.mrf.mxu1  ;;  %v1894_v43 = vpop.f32.mrf.mxu0 }
 0x21c   : > { %v1683_v54 = vadd.f32 %v1644_v47, %v1416_v49  ;;  %v5611_v20 = vadd.f32 %v3710_v7, %v1685_v56 }
 0x21d   : > { %v3693_v36 = vpop.f32.mrf.mxu1  ;;  %v3715_v49 = vpop.f32.mrf.mxu0 }
 0x21e   : > { %v1686_v60 = vadd.f32 %v3693_v36, %v1419_v22  ;;  %v5613_v55 = vadd.f32 %v1878_v27, %v1683_v54 }
 0x21f   : > { %v1647_v57 = vpop.f32.mrf.mxu1  ;;  %v1897_v32 = vpop.f32.mrf.mxu0 }
 0x220   : > { %v1684_v61 = vadd.f32 %v1647_v57, %v1417_v62  ;;  %v5615_v10 = vadd.f32 %v3711_v3, %v1686_v60 }
 0x221   : > { %v3696_v19 = vpop.f32.mrf.mxu1 }
 0x222   : > { %v1689_v58 = vadd.f32 %v3696_v19, %v1422_v53  ;;  %v5617_v59 = vadd.f32 %v1881_v0, %v1684_v61 }
 0x223   : > { %v1660_v39 = vpop.f32.mrf.mxu1 }
 0x224   : > { %v1687_v40 = vadd.f32 %v1660_v39, %v1420_v9  ;;  %v1923_v44 = vadd.f32 %v3714_v50, %v1689_v58 }
 0x225   : > { %v3697_v42 = vpop.f32.mrf.mxu1 }
 0x226   : > { %v1690_v28 = vadd.f32 %v3697_v42, %v1423_v17  ;;  %v1921_v31 = vadd.f32 %v1894_v43, %v1687_v40 }
 0x227   : > { %v1663_v5 = vpop.f32.mrf.mxu1 }
 0x228   : > { %v1688_v22 = vadd.f32 %v1663_v5, %v1421_v18  ;;  %v1924_v63 = vadd.f32 %v3715_v49, %v1690_v28 }
 0x229   : > { %v3720_v62 = vpop.f32.mrf.mxu1 }
 0x22a   : > { %v1922_v46 = vadd.f32 %v1897_v32, %v1688_v22  ;;  %v1677_v22 = vadd.f32 %v5587_v52, %v5522_v16  ;;  %v1675_v32 = vadd.f32 %v5590_v34, %v5527_v29 }
 0x22b   : > { %v2113_v35 = vpop.f32.mrf.mxu1 }
 0x22d   : > { %v3721_v24 = vpop.f32.mrf.mxu1 }
 0x22f   : > { %v2116_v7 = vpop.f32.mrf.mxu1  ;;  %v3738_v41 = vpop.f32.mrf.mxu0 }
 0x231   : > { %v2347_v14 = vpop.f32.mrf.mxu0 }
 0x233   : > { %v3739_v9 = vpop.f32.mrf.mxu0 }
 0x235   : > { %v2350_v17 = vpop.f32.mrf.mxu0 }
 0x238   : > { %v5619_v53 = vpop.f32.mrf.mxu1 }
 0x23a   : > { %v5621_v27 = vpop.f32.mrf.mxu1 }
 0x23c   : > { %v5623_v45 = vpop.f32.mrf.mxu1 }
 0x23e   : > { %v5625_v12 = vpop.f32.mrf.mxu1 }
 0x245   : > { %v5627_v18 = vpop.f32.mrf.mxu0 }
 0x247   : > { %v5631_v1 = vpop.f32.mrf.mxu0 }
 0x249   : > { %v5635_v13 = vpop.f32.mrf.mxu0 }
 0x24b   : > { %v5639_v30 = vpop.f32.mrf.mxu0 }
 0x24f   : > { %v5629_v33 = vpop.f32.mrf.mxu1 }
 0x251   : > { %v5633_v3 = vpop.f32.mrf.mxu1 }
 0x253   : > { %v5637_v26 = vpop.f32.mrf.mxu1 }
 0x255   : > { %v5641_v51 = vpop.f32.mrf.mxu1 }
 0x25d   : > { %v5643_v56 = vpop.f32.mrf.mxu0 }
 0x25f   : > { %v5645_v36 = vpop.f32.mrf.mxu0 }
 0x261   : > { %v5647_v19 = vpop.f32.mrf.mxu0 }
 0x263   : > { %v5649_v58 = vpop.f32.mrf.mxu0 }
 0x266   : > { %v3732_v0 = vpop.f32.mrf.mxu1 }
 0x267   : > { %v2190_v47 = vadd.f32 %v3732_v0, %v1923_v44  ;;  %v1911_v0 = vadd.f32 %v5529_v25, %v1677_v22 }
 0x268   : > { %v2161_v54 = vpop.f32.mrf.mxu1 }
 0x269   : > { %v2188_v50 = vadd.f32 %v2161_v54, %v1921_v31  ;;  %v1676_v54 = vadd.f32 %v5595_v38, %v5539_v21  ;;  %v5674_v21 = vld [vmem:[%s5829_s6] ss:$0 sm:$0xff] }
 0x26a   : > { %v3733_v60 = vpop.f32.mrf.mxu1 }
 0x26b   : > { %v2191_v57 = vadd.f32 %v3733_v60, %v1924_v63  ;;  %v1909_v60 = vadd.f32 %v5545_v8, %v1675_v32  ;;  %v1910_v29 = vadd.f32 %v5567_v6, %v1676_v54 }
 0x26c   : > { %v2164_v61 = vpop.f32.mrf.mxu1 }
 0x26d   : > { %v2189_v43 = vadd.f32 %v2164_v61, %v1922_v46  ;;  %v1678_v46 = vadd.f32 %v5593_v2, %v5533_v48  ;;  %v2177_v2 = vadd.f32 %v2116_v7, %v1910_v29 }
 0x26f   : > { %v1912_v61 = vadd.f32 %v5558_v11, %v1678_v46  ;;  %v2411_v11 = vadd.f32 %v2350_v17, %v2177_v2 }
 0x274   : > { %v3750_v39 = vpop.f32.mrf.mxu0 }
 0x275   : > { %v5651_v40 = vadd.f32 %v3750_v39, %v2190_v47 }
 0x276   : > { %v2395_v49 = vpop.f32.mrf.mxu0 }
 0x277   : > { %v5653_v42 = vadd.f32 %v2395_v49, %v2188_v50  ;;  %v2178_v50 = vadd.f32 %v3720_v62, %v1911_v0 }
 0x278   : > { %v3751_v28 = vpop.f32.mrf.mxu0 }
 0x279   : > { %v5655_v44 = vadd.f32 %v3751_v28, %v2191_v57  ;;  %v2176_v57 = vadd.f32 %v2113_v35, %v1909_v60  ;;  %v2412_v16 = vadd.f32 %v3738_v41, %v2178_v50 }
 0x27a   : > { %v2398_v31 = vpop.f32.mrf.mxu0 }
 0x27b   : > { %v5657_v5 = vadd.f32 %v2398_v31, %v2189_v43  ;;  %v2179_v43 = vadd.f32 %v3721_v24, %v1912_v61  ;;  %v2410_v34 = vadd.f32 %v2347_v14, %v2176_v57  ;;  %v2182_v57 = vadd.f32 %v5619_v53, %v5599_v37 }
 0x27c   : > { %v2180_v61 = vadd.f32 %v5621_v27, %v5602_v23 }
 0x27d   : > { %v3756_v63 = vpop.f32.mrf.mxu1  ;;  %v2413_v25 = vadd.f32 %v3739_v9, %v2179_v43  ;;  %v2183_v43 = vadd.f32 %v5623_v45, %v5607_v4 }
 0x27e   : > { %v2646_v39 = vadd.f32 %v3756_v63, %v2412_v16  ;;  %v2416_v16 = vadd.f32 %v5627_v18, %v2182_v57  ;;  %v2414_v29 = vadd.f32 %v5631_v1, %v2180_v61 }
 0x27f   : > { %v2581_v47 = vpop.f32.mrf.mxu1  ;;  %v2417_v2 = vadd.f32 %v5635_v13, %v2183_v43 }
 0x280   : > { %v2644_v49 = vadd.f32 %v2581_v47, %v2410_v34 }
 0x281   : > { %v3757_v52 = vpop.f32.mrf.mxu1 }
 0x282   : > { %v2647_v38 = vadd.f32 %v3757_v52, %v2413_v25 }
 0x283   : > { %v2584_v31 = vpop.f32.mrf.mxu1 }
 0x284   : > { %v2645_v24 = vadd.f32 %v2584_v31, %v2411_v11 }
 0x28a   : > { %v3774_v48 = vpop.f32.mrf.mxu0 }
 0x28b   : > { %v2880_v28 = vadd.f32 %v3774_v48, %v2646_v39  ;;  %v2181_v48 = vadd.f32 %v5625_v12, %v5609_v15 }
 0x28c   : > { %v2815_v8 = vpop.f32.mrf.mxu0 }
 0x28d   : > { %v2878_v62 = vadd.f32 %v2815_v8, %v2644_v49  ;;  %v2903_v6 = vadd.f32 %v5674_v21, %v2880_v28  ;;  %v2415_v23 = vadd.f32 %v5639_v30, %v2181_v48 }
 0x28e   : > { %v3775_v35 = vpop.f32.mrf.mxu0 }
 0x28f   : > { %v2881_v41 = vadd.f32 %v3775_v35, %v2647_v38  ;;  %v2901_v7 = vadd.f32 %v5674_v21, %v2878_v62  ;;  %v2919_v63 = vmax.f32 %v2903_v6, 0.0 }
 0x290   : > { %v2818_v14 = vpop.f32.mrf.mxu0 }
 0x291   : > { %v2904_v9 = vadd.f32 %v5674_v21, %v2881_v41  ;;  %v2879_v22 = vadd.f32 %v2818_v14, %v2645_v24  ;;  %v2917_v0 = vmax.f32 %v2901_v7, 0.0  ;;  %v2186_v14 = vadd.f32 %v5629_v33, %v5611_v20 }
 0x292   : > { %v2184_v7 = vadd.f32 %v5633_v3, %v5613_v55 }
 0x293   : > { %v2920_v32 = vmax.f32 %v2904_v9, 0.0  ;;  %v2902_v46 = vadd.f32 %v5674_v21, %v2879_v22  ;;  %v3760_v54 = vpop.f32.mrf.mxu1  ;;  %v2420_v9 = vadd.f32 %v5643_v56, %v2186_v14 }
 0x294   : > { %v2650_v34 = vadd.f32 %v3760_v54, %v2416_v16 }
 0x295   : > { %v2934_v47 = vpack.c.bf16 %v2920_v32, %v2919_v63  ;;  %v2918_v17 = vmax.f32 %v2902_v46, 0.0  ;;  %v2597_v60 = vpop.f32.mrf.mxu1  ;;  %v2187_v63 = vadd.f32 %v5637_v26, %v5615_v10  ;;  %v2418_v32 = vadd.f32 %v5645_v36, %v2184_v7 }
 0x296   : > { %v2648_v25 = vadd.f32 %v2597_v60, %v2414_v29 }
 0x297   : > { %v2933_v50 = vpack.c.bf16 %v2918_v17, %v2917_v0  ;;  %v3761_v52 = vpop.f32.mrf.mxu1  ;;  %v2421_v17 = vadd.f32 %v5647_v19, %v2187_v63 }
 0x298   : > { %v2651_v27 = vadd.f32 %v3761_v52, %v2417_v2 }
 0x299   : > { %3790 = vmatprep.mubr.msk.bf16.mxu1 %vm908_vm5, %v2933_v50  ;;  %v2600_v53 = vpop.f32.mrf.mxu1 }
 0x29a   : > { %3791 = vmatmul.mubr.msk.bf16.vlgmr.msra.gmra.mxu1 %vm908_vm5, %v2934_v47  ;;  %v2649_v31 = vadd.f32 %v2600_v53, %v2415_v23  ;;  %v2185_v47 = vadd.f32 %v5641_v51, %v5617_v59 }
 0x29c   : > { %v2419_v55 = vadd.f32 %v5649_v58, %v2185_v47  ;;  %v5744_v47 = vld [vmem:[%s5831_s8] ss:$0 sm:$0xff] }
 0x2a0   : > { %v3778_v39 = vpop.f32.mrf.mxu0 }
 0x2a1   : > { %v2884_v37 = vadd.f32 %v3778_v39, %v2650_v34 }
 0x2a2   : > { %v2831_v49 = vpop.f32.mrf.mxu0 }
 0x2a3   : > { %v2882_v18 = vadd.f32 %v2831_v49, %v2648_v25  ;;  %v2907_v4 = vadd.f32 %v5674_v21, %v2884_v37 }
 0x2a4   : > { %v3779_v28 = vpop.f32.mrf.mxu0 }
 0x2a5   : > { %v2885_v45 = vadd.f32 %v3779_v28, %v2651_v27  ;;  %v2905_v8 = vadd.f32 %v5674_v21, %v2882_v18  ;;  %v2923_v13 = vmax.f32 %v2907_v4, 0.0 }
 0x2a6   : > { %v2834_v1 = vpop.f32.mrf.mxu0 }
 0x2a7   : > { %v2908_v15 = vadd.f32 %v5674_v21, %v2885_v45  ;;  %v2883_v12 = vadd.f32 %v2834_v1, %v2649_v31  ;;  %v2921_v62 = vmax.f32 %v2905_v8, 0.0 }
 0x2a9   : > { %v2924_v11 = vmax.f32 %v2908_v15, 0.0  ;;  %v2906_v38 = vadd.f32 %v5674_v21, %v2883_v12  ;;  %v3764_v24 = vpop.f32.mrf.mxu1 }
 0x2aa   : > { %v2654_v46 = vadd.f32 %v3764_v24, %v2420_v9 }
 0x2ab   : > { %v2936_v35 = vpack.c.bf16 %v2924_v11, %v2923_v13  ;;  %v2922_v30 = vmax.f32 %v2906_v38, 0.0  ;;  %v2613_v41 = vpop.f32.mrf.mxu1 }
 0x2ac   : > { %v2652_v54 = vadd.f32 %v2613_v41, %v2418_v32 }
 0x2ad   : > { %v2935_v6 = vpack.c.bf16 %v2922_v30, %v2921_v62  ;;  %v3765_v22 = vpop.f32.mrf.mxu1 }
 0x2ae   : > { %v2655_v3 = vadd.f32 %v3765_v22, %v2421_v17 }
 0x2af   : > { %3794 = vmatprep.mubr.msk.bf16.mxu1 %vm908_vm5, %v2935_v6  ;;  %v2616_v33 = vpop.f32.mrf.mxu1 }
 0x2b0   : > { %3795 = vmatmul.mubr.msk.bf16.gmra.mxu1 %vm908_vm5, %v2936_v35  ;;  %v2653_v57 = vadd.f32 %v2616_v33, %v2419_v55 }
 0x2b6   : > { %v3782_v0 = vpop.f32.mrf.mxu0 }
 0x2b7   : > { %v2888_v20 = vadd.f32 %v3782_v0, %v2654_v46 }
 0x2b8   : > { %v2847_v50 = vpop.f32.mrf.mxu0 }
 0x2b9   : > { %v2886_v56 = vadd.f32 %v2847_v50, %v2652_v54  ;;  %v2911_v10 = vadd.f32 %v5674_v21, %v2888_v20  ;;  %v3965_v20 = vld [vmem:[%s4099_s20 + $0x38] sm:$0xff]  }
 0x2ba   : > { %v3783_v60 = vpop.f32.mrf.mxu0  ;;  %v3091_v33 = vunpack.c.l.bf16 %v3965_v20  ;;  %v3092_v50 = vunpack.c.h.bf16 %v3965_v20  ;;  %v3972_v20 = vld [vmem:[%s4099_s20] sm:$0xff]  }
 0x2bb   : > { %v2889_v26 = vadd.f32 %v3783_v60, %v2655_v3  ;;  %v2909_v61 = vadd.f32 %v5674_v21, %v2886_v56  ;;  %v2927_v19 = vmax.f32 %v2911_v10, 0.0  ;;  %v3966_v56 = vld [vmem:[%s4099_s20 + $0x30] sm:$0xff]  }
 0x2bc   : > { %v2850_v36 = vpop.f32.mrf.mxu0  ;;  %v3090_v60 = vunpack.c.h.bf16 %v3966_v56 }
 0x2bd   : > { %v2912_v59 = vadd.f32 %v5674_v21, %v2889_v26  ;;  %v2887_v51 = vadd.f32 %v2850_v36, %v2653_v57  ;;  %v2925_v43 = vmax.f32 %v2909_v61, 0.0  ;;  %v3089_v57 = vunpack.c.l.bf16 %v3966_v56 }
 0x2bf   : > { %v2928_v16 = vmax.f32 %v2912_v59, 0.0  ;;  %v2910_v52 = vadd.f32 %v5674_v21, %v2887_v51  ;;  %v3768_v34 = vpop.f32.mrf.mxu1 }
 0x2c0   : > { %v2658_v25 = vadd.f32 %v3768_v34, %v5651_v40 }
 0x2c1   : > { %v2938_v29 = vpack.c.bf16 %v2928_v16, %v2927_v19  ;;  %v2926_v58 = vmax.f32 %v2910_v52, 0.0  ;;  %v2629_v48 = vpop.f32.mrf.mxu1  ;;  %v3967_v19 = vld [vmem:[%s4099_s20 + $0x28] sm:$0xff]  }
 0x2c2   : > { %v2656_v53 = vadd.f32 %v2629_v48, %v5653_v42  ;;  %v3088_v16 = vunpack.c.h.bf16 %v3967_v19 }
 0x2c3   : > { %v2937_v39 = vpack.c.bf16 %v2926_v58, %v2925_v43  ;;  %v3769_v2 = vpop.f32.mrf.mxu1  ;;  %v3087_v58 = vunpack.c.l.bf16 %v3967_v19  ;;  %v3940_v19 = vld [vmem:[%s5832_s9] sm:$0xff]  }
 0x2c4   : > { %v2659_v18 = vadd.f32 %v3769_v2, %v5655_v44 }
 0x2c5   : > { %3798 = vmatprep.mubr.msk.bf16.mxu1 %vm908_vm5, %v2937_v39  ;;  %v2632_v23 = vpop.f32.mrf.mxu1 }
 0x2c6   : > { %3799 = vmatmul.mubr.msk.bf16.gmra.mxu1 %vm908_vm5, %v2938_v29  ;;  %v2657_v4 = vadd.f32 %v2632_v23, %v5657_v5  ;;  %v3990_v5 = vmov 0.0  }
 0x2c7   : > { %3806 = vmatprep.subr.mxu0 %v3990_v5  ;;  %3838 = vmatprep.mubr.msk.f32.mxu0 %vm3991_vm7, %v3990_v5 }
 0x2cc   : > { %v3786_v37 = vpop.f32.mrf.mxu0 }
 0x2cd   : > { %v2892_v49 = vadd.f32 %v3786_v37, %v2658_v25  ;;  %v3968_v25 = vld [vmem:[%s4099_s20 + $0x20] sm:$0xff]  }
 0x2ce   : > { %v2863_v27 = vpop.f32.mrf.mxu0  ;;  %v3086_v37 = vunpack.c.h.bf16 %v3968_v25 }
 0x2cf   : > { %v2890_v28 = vadd.f32 %v2863_v27, %v2656_v53  ;;  %v2915_v45 = vadd.f32 %v5674_v21, %v2892_v49  ;;  %v3085_v27 = vunpack.c.l.bf16 %v3968_v25 }
 0x2d0   : > { %v3787_v31 = vpop.f32.mrf.mxu0 }
 0x2d1   : > { %v2893_v1 = vadd.f32 %v3787_v31, %v2659_v18  ;;  %v2913_v15 = vadd.f32 %v5674_v21, %v2890_v28  ;;  %v2931_v13 = vmax.f32 %v2915_v45, 0.0  ;;  %v3969_v31 = vld [vmem:[%s4099_s20 + $0x18] sm:$0xff]  }
 0x2d2   : > { %v2866_v8 = vpop.f32.mrf.mxu0 }
 0x2d3   : > { %v2916_v40 = vadd.f32 %v5674_v21, %v2893_v1  ;;  %v2891_v12 = vadd.f32 %v2866_v8, %v2657_v4  ;;  %v2929_v38 = vmax.f32 %v2913_v15, 0.0  ;;  %v3084_v4 = vunpack.c.h.bf16 %v3969_v31 }
 0x2d4   : > { %v3083_v15 = vunpack.c.l.bf16 %v3969_v31 }
 0x2d5   : > { %v2932_v42 = vmax.f32 %v2916_v40, 0.0  ;;  %v2914_v11 = vadd.f32 %v5674_v21, %v2891_v12 }
 0x2d7   : > { %v2940_v62 = vpack.c.bf16 %v2932_v42, %v2931_v13  ;;  %v2930_v44 = vmax.f32 %v2914_v11, 0.0  ;;  %v3970_v11 = vld [vmem:[%s4099_s20 + $0x10] sm:$0xff]  }
 0x2d9   : > { %v2939_v35 = vpack.c.bf16 %v2930_v44, %v2929_v38  ;;  %v3082_v38 = vunpack.c.h.bf16 %v3970_v11 }
 0x2db   : > { %3802 = vmatprep.mubr.msk.bf16.mxu1 %vm908_vm5, %v2939_v35 }
 0x2dc   : > { %3803 = vmatmul.mubr.msk.bf16.gmra.mxu1 %vm908_vm5, %v2940_v62 }
 0x35a   : > { %v5731_v30 = vpop.f32.mrf.mxu1 }
 0x35c   : > { %v5733_v24 = vpop.f32.mrf.mxu1 }
 0x35e   : > { %v5735_v21 = vpop.f32.mrf.mxu1 }
 0x360   : > { %v5737_v6 = vpop.f32.mrf.mxu1 }
 0x370   : > { %v3796_v41 = vpop.f32.mrf.mxu1 }
 0x371   : > { %v3039_v8 = vadd.f32 %v3796_v41, %v5744_v47  ;;  %v3081_v41 = vunpack.c.l.bf16 %v3970_v11 }
 0x372   : > { %v5739_v14 = vpop.f32.mrf.mxu1 }
 0x373   : > { %v3099_v44 = vadd.f32 %v3083_v15, %v3039_v8  ;;  %v3031_v35 = vadd.f32 %v5744_v47, %v5739_v14 }
 0x374   : > { %v3797_v7 = vpop.f32.mrf.mxu1 }
 0x375   : > { %v3042_v28 = vadd.f32 %v3797_v7, %v5744_v47 }
 0x376   : > { %v3033_v9 = vpop.f32.mrf.mxu1 }
 0x377   : > { %v3100_v13 = vadd.f32 %v3084_v4, %v3042_v28  ;;  %v3034_v42 = vadd.f32 %v5744_v47, %v3033_v9  ;;  %v3971_v9 = vld [vmem:[%s4099_s20 + $0x8] sm:$0xff]  }
 0x378   : > { %v3079_v14 = vunpack.c.l.bf16 %v3971_v9 }
 0x386   : > { %v3800_v22 = vpop.f32.mrf.mxu1 }
 0x387   : > { %v3055_v29 = vadd.f32 %v3800_v22, %v5744_v47  ;;  %v3026_v22 = vadd.f32 %v5735_v21, %v5744_v47  ;;  %v3018_v21 = vadd.f32 %v5744_v47, %v5737_v6 }
 0x388   : > { %v3046_v63 = vpop.f32.mrf.mxu1 }
 0x389   : > { %v3103_v49 = vadd.f32 %v3087_v58, %v3055_v29  ;;  %v3047_v23 = vadd.f32 %v5744_v47, %v3046_v63  ;;  %v3080_v63 = vunpack.c.h.bf16 %v3971_v9  ;;  %v3470_v29 = vld [vmem:[%s5833_s10] ss:$0 sm:$0xff] }
 0x38a   : > { %v3801_v32 = vpop.f32.mrf.mxu1 }
 0x38b   : > { %v3058_v51 = vadd.f32 %v3801_v32, %v5744_v47  ;;  %v3119_v40 = vmax.f32 %v3103_v49, 0.0  ;;  %v3101_v12 = vadd.f32 %v3085_v27, %v3047_v23  ;;  %v3116_v32 = vmax.f32 %v3100_v13, 0.0 }
 0x38c   : > { %v3049_v46 = vpop.f32.mrf.mxu1 }
 0x38d   : > { %v3104_v48 = vadd.f32 %v3088_v16, %v3058_v51  ;;  %v3050_v2 = vadd.f32 %v5744_v47, %v3049_v46  ;;  %v3117_v7 = vmax.f32 %v3101_v12, 0.0  ;;  %v3098_v46 = vadd.f32 %v3082_v38, %v3034_v42  ;;  %v3939_v51 = vld [vmem:[%s5832_s9 + $0x8] sm:$0xff]  }
 0x38f   : > { %v3120_v45 = vmax.f32 %v3104_v48, 0.0  ;;  %v3102_v1 = vadd.f32 %v3086_v37, %v3050_v2 }
 0x391   : > { %v3118_v62 = vmax.f32 %v3102_v1, 0.0 }
 0x39c   : > { %v3804_v0 = vpop.f32.mrf.mxu1 }
 0x39d   : > { %v3071_v54 = vadd.f32 %v3804_v0, %v5744_v47  ;;  %v3023_v0 = vadd.f32 %v5731_v30, %v5744_v47  ;;  %v3015_v30 = vadd.f32 %v5744_v47, %v5733_v24  ;;  %v3125_v24 = vld [vmem:[%s5825_s2] sm:$0xff] }
 0x39e   : > { %v3062_v17 = vpop.f32.mrf.mxu1 }
 0x39f   : > { %v3107_v26 = vadd.f32 %v3091_v33, %v3071_v54  ;;  %v3063_v36 = vadd.f32 %v5744_v47, %v3062_v17  ;;  %v3115_v17 = vmax.f32 %v3099_v44, 0.0  ;;  %v3097_v54 = vadd.f32 %v3081_v41, %v3031_v35 }
 0x3a0   : > { %v3805_v55 = vpop.f32.mrf.mxu1  ;;  %v3078_v33 = vunpack.c.h.bf16 %v3972_v20  ;;  %v3095_v56 = vadd.f32 %v3079_v14, %v3023_v0 }
 0x3a1   : > { %v3074_v3 = vadd.f32 %v3805_v55, %v5744_v47  ;;  %v3123_v34 = vmax.f32 %v3107_v26, 0.0  ;;  %v3105_v39 = vadd.f32 %v3089_v57, %v3063_v36  ;;  %v3114_v55 = vmax.f32 %v3098_v46, 0.0 }
 0x3a2   : > { %v3065_v10 = vpop.f32.mrf.mxu1  ;;  %v3111_v26 = vmax.f32 %v3095_v56, 0.0 }
 0x3a3   : > { %v3108_v61 = vadd.f32 %v3092_v50, %v3074_v3  ;;  %v3066_v59 = vadd.f32 %v5744_v47, %v3065_v10  ;;  %v3121_v18 = vmax.f32 %v3105_v39, 0.0  ;;  %v3096_v50 = vadd.f32 %v3080_v63, %v3026_v22  ;;  %v3937_v47 = vld [vmem:[%s5832_s9 + $0x18] sm:$0xff]  }
 0x3a4   : > { %v3077_v3 = vunpack.c.l.bf16 %v3972_v20  ;;  %v3094_v10 = vadd.f32 %v3078_v33, %v3018_v21 }
 0x3a5   : > { %v3124_v52 = vmax.f32 %v3108_v61, 0.0  ;;  %v3106_v43 = vadd.f32 %v3090_v60, %v3066_v59  ;;  %v3113_v60 = vmax.f32 %v3097_v54, 0.0  ;;  %v3112_v57 = vmax.f32 %v3096_v50, 0.0  ;;  %v3938_v59 = vld [vmem:[%s5832_s9 + $0x10] sm:$0xff]  }
 0x3a6   : > { %v3093_v6 = vadd.f32 %v3077_v3, %v3015_v30  ;;  %v3110_v36 = vmax.f32 %v3094_v10, 0.0 }
 0x3a7   : > { %3807 = vmatpush3.msra.mxu0 %v3124_v52  ;;  %v3122_v53 = vmax.f32 %v3106_v43, 0.0 }
 0x3a8   : > { %3808 = vmatprep.subr.mxu0 %v3990_v5  ;;  %v3109_v61 = vmax.f32 %v3093_v6, 0.0 }
 0x3a9   : > { %3809 = vmatpush3.msra.mxu0 %v3123_v34 }
 0x3aa   : > { %3810 = vmatprep.subr.mxu0 %v3990_v5 }
 0x3ab   : > { %3811 = vmatpush3.msra.mxu0 %v3122_v53 }
 0x3ac   : > { %3812 = vmatprep.subr.mxu0 %v3990_v5 }
 0x3ad   : > { %3813 = vmatpush3.msra.mxu0 %v3121_v18 }
 0x3ae   : > { %3814 = vmatprep.subr.mxu0 %v3990_v5 }
 0x3af   : > { %3815 = vmatpush3.msra.mxu0 %v3120_v45 }
 0x3b0   : > { %3816 = vmatprep.subr.mxu0 %v3990_v5 }
 0x3b1   : > { %3817 = vmatpush3.msra.mxu0 %v3119_v40 }
 0x3b2   : > { %3818 = vmatprep.subr.mxu0 %v3990_v5 }
 0x3b3   : > { %3819 = vmatpush3.msra.mxu0 %v3118_v62 }
 0x3b4   : > { %3820 = vmatprep.subr.mxu0 %v3990_v5 }
 0x3b5   : > { %3821 = vmatpush3.msra.mxu0 %v3117_v7 }
 0x3b6   : > { %3822 = vmatprep.subr.mxu0 %v3990_v5 }
 0x3b7   : > { %3823 = vmatpush3.msra.mxu0 %v3116_v32 }
 0x3b8   : > { %3824 = vmatprep.subr.mxu0 %v3990_v5 }
 0x3b9   : > { %3825 = vmatpush3.msra.mxu0 %v3115_v17 }
 0x3ba   : > { %3826 = vmatprep.subr.mxu0 %v3990_v5 }
 0x3bb   : > { %3827 = vmatpush3.msra.mxu0 %v3114_v55 }
 0x3bc   : > { %3828 = vmatprep.subr.mxu0 %v3990_v5 }
 0x3bd   : > { %3829 = vmatpush3.msra.mxu0 %v3113_v60 }
 0x3be   : > { %3830 = vmatprep.subr.mxu0 %v3990_v5 }
 0x3bf   : > { %3831 = vmatpush3.msra.mxu0 %v3112_v57 }
 0x3c0   : > { %3832 = vmatprep.subr.mxu0 %v3990_v5 }
 0x3c1   : > { %3833 = vmatpush3.msra.mxu0 %v3111_v26 }
 0x3c2   : > { %3834 = vmatprep.subr.mxu0 %v3990_v5 }
 0x3c3   : > { %3835 = vmatpush3.msra.mxu0 %v3110_v36 }
 0x3c4   : > { %3836 = vmatprep.subr.mxu0 %v3990_v5 }
 0x3c5   : > { %3837 = vmatpush3.msra.mxu0 %v3109_v61 }
 0x3c6   : > { %3839 = vmatmul.mubr.f32.vlgmr.msra.gmra.mxu0 %v3125_v24  ;;  %3841 = vmatprep.subr.bf16.mxu0 %v3990_v5 }
 0x3c7   : > { %3842 = vmatpush3.bf16.msra.mxu0 %v3937_v47  ;;  %3849 = vmatprep.mubr.msk.bf16.mxu0 %vm3991_vm7, %v3990_v5 }
 0x3c8   : > { %3843 = vmatprep.subr.bf16.mxu0 %v3990_v5 }
 0x3cb   : > { %3844 = vmatpush3.bf16.msra.mxu0 %v3938_v59 }
 0x3cc   : > { %3845 = vmatprep.subr.bf16.mxu0 %v3990_v5 }
 0x3cf   : > { %3846 = vmatpush3.bf16.msra.mxu0 %v3939_v51 }
 0x3d0   : > { %3847 = vmatprep.subr.bf16.mxu0 %v3990_v5 }
 0x3d3   : > { %3848 = vmatpush3.bf16.msra.mxu0 %v3940_v19 }
 0x486   : > { %v3192_v16 = vpop.f32.mrf.mxu0 }
 0x487   : > { %v3196_v52 = vpack.c.bf16 %v3192_v16, %v3192_v16 }
 0x488   : > { %v3840_v43 = vpop.f32.mrf.mxu0 }
 0x489   : > { %3850 = vmatmul.mubr.msk.bf16.vlgmr.msra.gmra.mxu0 %vm483_vm0, %v3196_v52 }
 0x549   : > { %v3273_v5 = vpop.f32.mrf.mxu0 }
 0x54a   : > { %v3274_v58 = vadd.f32 %v3470_v29, %v3273_v5 }
 0x54b   : > { %v3851_v34 = vpop.f32.mrf.mxu0 }
 0x54c   : > { %3279 = vst [vmem:[%s386_s24] sm:$0xff] %v3274_v58 }
 0x54d   : > { %v3276_v39 = vpop.f32.mrf.mxu0 }
 0x54f   : > { %v3852_v48 = vpop.f32.mrf.mxu0 }
 0x550 PF: > { %s21_s17 = sadd.s32 1, %s3979_s17  }
 0x551   : > { %p18_p5 = scmp.ge.s32.totalorder %s21_s17, 4  }
 0x553   :  { %20 = sbr.rel (!%p18_p5) target bundleno = 1 (0x1), region = 102 }

</bundles_post_ra>
